<compile_context>
chip_gen: v6e
topology: v6e:2x2x1
jax: 0.10.0
libtpu: 0.0.40
codegen_flags: <defaults>
</compile_context>

<pallas_src>
import jax
import jax.numpy as jnp
from jax import lax
from jax.experimental import pallas as pl
from jax.experimental.pallas import tpu as pltpu

DIM = 1024          # fixed by nn.Linear(1024, 1024) in the module
LN_EPS = 1e-5       # PyTorch LayerNorm default eps


def _feature_selector_kernel(cap_ref, pat_ref,
                             w1_ref, b1_ref, w2_ref, b2_ref,
                             gamma_ref, beta_ref,
                             out_ref):
    cap = cap_ref[...]                                    # (TB, D) f32
    pat = pat_ref[...]                                    # (P, D)  f32
    n_pat, _ = pat.shape
    tb, _ = cap.shape

    # |cap_b - pattern_p| for every (p, b) pair, folded into the MXU M dim.
    sim = jnp.abs(cap[None, :, :] - pat[:, None, :])      # (P, TB, D)
    sim = sim.reshape(n_pat * tb, DIM)                    # (P*TB, D)

    # PFS: Linear -> ReLU -> Linear -> LayerNorm -> ReLU
    # bf16 operands, f32 accumulation (native MXU path on all generations).
    h1 = jnp.dot(sim.astype(jnp.bfloat16), w1_ref[...],
                 preferred_element_type=jnp.float32) + b1_ref[...]
    h1 = jnp.maximum(h1, 0.0)
    h2 = jnp.dot(h1.astype(jnp.bfloat16), w2_ref[...],
                 preferred_element_type=jnp.float32) + b2_ref[...]

    # LayerNorm: single pass over h2 (E[x^2] - mu^2), gamma folded into scale.
    mu = jnp.mean(h2, axis=-1, keepdims=True)             # (P*TB, 1)
    ms = jnp.mean(h2 * h2, axis=-1, keepdims=True)
    scale = lax.rsqrt(ms - mu * mu + LN_EPS) * gamma_ref[...]
    mask = jnp.maximum((h2 - mu) * scale + beta_ref[...], 0.0)   # (P*TB, D)

    # Running max over patterns (torch.max(masks, dim=1)[0]) + final gating.
    mask_max = jnp.max(mask.reshape(n_pat, tb, DIM), axis=0)     # (TB, D)
    out_ref[...] = mask_max * cap


def _pick_batch_tile(bsz, n_pat):
    """Pick a batch tile so the MXU M dim (n_pat * tile) lands ~256-512 and
    large batches still give >=2 'parallel' grid steps (v7x megacore)."""
    target = max(8, min(256, 512 // max(n_pat, 1)))
    for cand in (256, 128, 64, 32, 16, 8):
        if cand <= target and bsz % cand == 0:
            return cand
    return bsz  # small / awkward batch: one full-extent tile


def _vmem_limit_bytes():
    """Generation-aware VMEM limit (v7x has only 64 MiB per TensorCore)."""
    try:
        phys = int(pltpu.get_tpu_info().vmem_capacity_bytes)
    except Exception:
        phys = 64 << 20  # conservative: assume v7x-sized VMEM
    return min(96 << 20, (phys * 4) // 5)


def feature_selector(cap_feats, video_patterns, params, *, batch_tile=None):
    """cap_feats: [bsz, 1024] f32, video_patterns: [P, 1024] f32 -> [bsz, 1024]."""
    bsz, dim = cap_feats.shape
    n_pat, dim2 = video_patterns.shape
    assert dim == DIM and dim2 == DIM

    if batch_tile is None:
        batch_tile = _pick_batch_tile(bsz, n_pat)
    assert bsz % batch_tile == 0

    # PyTorch Linear computes x @ W.T + b; pass W pre-transposed (in, out) and
    # pre-cast to bf16 for the MXU.
    w1_t = params["w1"].T.astype(jnp.bfloat16)
    w2_t = params["w2"].T.astype(jnp.bfloat16)
    b1 = params["b1"].reshape(1, DIM).astype(jnp.float32)
    b2 = params["b2"].reshape(1, DIM).astype(jnp.float32)
    gamma = params["gamma"].reshape(1, DIM).astype(jnp.float32)
    beta = params["beta"].reshape(1, DIM).astype(jnp.float32)

    grid = (bsz // batch_tile,)

    invariant_mat = pl.BlockSpec((DIM, DIM), lambda i: (0, 0))
    invariant_row = pl.BlockSpec((1, DIM), lambda i: (0, 0))

    return pl.pallas_call(
        _feature_selector_kernel,
        out_shape=jax.ShapeDtypeStruct((bsz, DIM), jnp.float32),
        grid_spec=pltpu.PrefetchScalarGridSpec(
            num_scalar_prefetch=0,
            grid=grid,
            in_specs=[
                pl.BlockSpec((batch_tile, DIM), lambda i: (i, 0)),   # cap_feats tile
                pl.BlockSpec((n_pat, DIM), lambda i: (0, 0)),        # all patterns
                invariant_mat,   # W1^T (bf16)
                invariant_row,   # b1
                invariant_mat,   # W2^T (bf16)
                invariant_row,   # b2
                invariant_row,   # gamma
                invariant_row,   # beta
            ],
            out_specs=pl.BlockSpec((batch_tile, DIM), lambda i: (i, 0)),
        ),
        compiler_params=pltpu.CompilerParams(
            dimension_semantics=("parallel",),
            vmem_limit_bytes=_vmem_limit_bytes(),
        ),
    )(cap_feats, video_patterns, w1_t, b1, w2_t, b2, gamma, beta)


def _reference(cap_feats, video_patterns, params, matmul_dtype=jnp.float32):
    """Pure-JAX reference mirroring the PyTorch forward.

    matmul_dtype=bfloat16 reproduces the kernel's documented MXU precision
    (bf16 operands, f32 accumulation); everything else stays f32.
    """
    w1 = params["w1"].astype(matmul_dtype)
    w2 = params["w2"].astype(matmul_dtype)
    masks = []
    for p in range(video_patterns.shape[0]):
        sim = jnp.abs(cap_feats - video_patterns[p][None, :])
        h1 = jnp.dot(sim.astype(matmul_dtype), w1.T,
                     preferred_element_type=jnp.float32) + params["b1"]
        h1 = jnp.maximum(h1, 0.0)
        h2 = jnp.dot(h1.astype(matmul_dtype), w2.T,
                     preferred_element_type=jnp.float32) + params["b2"]
        mu = jnp.mean(h2, axis=-1, keepdims=True)
        var = jnp.mean((h2 - mu) ** 2, axis=-1, keepdims=True)
        ln = (h2 - mu) / jnp.sqrt(var + LN_EPS) * params["gamma"] + params["beta"]
        masks.append(jnp.maximum(ln, 0.0)[:, None, :])
    masks = jnp.concatenate(masks, axis=1)
    mask_max = jnp.max(masks, axis=1)
    return mask_max * cap_feats


def init_params(key):
    # Deterministic synthetic init (module shapes from __init__), scaled small
    # so the two 1024-wide matmuls stay well-conditioned.
    k1, k2, k3, k4 = jax.random.split(key, 4)
    scale = 1.0 / jnp.sqrt(jnp.float32(DIM))
    return {
        "w1": jax.random.normal(k1, (DIM, DIM), jnp.float32) * scale,  # (out, in)
        "b1": jax.random.normal(k2, (DIM,), jnp.float32) * 0.01,
        "w2": jax.random.normal(k3, (DIM, DIM), jnp.float32) * scale,  # (out, in)
        "b2": jax.random.normal(k4, (DIM,), jnp.float32) * 0.01,
        "gamma": jnp.ones((DIM,), jnp.float32),   # LayerNorm weight
        "beta": jnp.zeros((DIM,), jnp.float32),   # LayerNorm bias
    }


if __name__ == "__main__":
    # NOTE: hidden_size is stored by the module but unused in forward();
    # the working dim is hard-coded to 1024 by the PFS Linear layers.
    key = jax.random.PRNGKey(0)
    kp, kc, kv = jax.random.split(key, 3)

    params = init_params(kp)
    bsz, n_patterns = 8, 3
    cap_feats = jax.random.normal(kc, (bsz, DIM), jnp.float32)
    video_patterns = jax.random.normal(kv, (n_patterns, DIM), jnp.float32)

    out = jax.block_until_ready(feature_selector(cap_feats, video_patterns, params))
    assert out.shape == (bsz, DIM)

    # Reference using the same bf16-operand / f32-accumulate matmul math as the
    # kernel's MXU path (documented precision choice); all other ops are f32.
    ref = jax.block_until_ready(
        _reference(cap_feats, video_patterns, params, matmul_dtype=jnp.bfloat16))
    max_err = float(jnp.max(jnp.abs(out - ref)))
    assert jnp.allclose(out, ref, atol=2e-3, rtol=2e-3), max_err

    print("KERNEL_OK")
</pallas_src>

<mosaic_0001>
module attributes {stable_mosaic.version = 11 : i64} {
  func.func @_feature_selector_kernel(%arg0: i32, %arg1: memref<8x1024xf32, #tpu.memory_space<vmem>>, %arg2: memref<3x1024xf32, #tpu.memory_space<vmem>>, %arg3: memref<1024x1024xbf16, #tpu.memory_space<vmem>>, %arg4: memref<1x1024xf32, #tpu.memory_space<vmem>>, %arg5: memref<1024x1024xbf16, #tpu.memory_space<vmem>>, %arg6: memref<1x1024xf32, #tpu.memory_space<vmem>>, %arg7: memref<1x1024xf32, #tpu.memory_space<vmem>>, %arg8: memref<1x1024xf32, #tpu.memory_space<vmem>>, %arg9: memref<8x1024xf32, #tpu.memory_space<vmem>>) attributes {dimension_semantics = [#tpu.dimension_semantics<parallel>], iteration_bounds = array<i64: 1>, scalar_prefetch = 0 : i64, scratch_operands = 0 : i64, tpu.core_type = #tpu.core_type<tc>, window_params = [{transform_indices = @transform_0, window_bounds = array<i64: 8, 1024>}, {pipeline_mode = #tpu.pipeline_mode<synchronous>, transform_indices = @transform_1, window_bounds = array<i64: 3, 1024>}, {pipeline_mode = #tpu.pipeline_mode<synchronous>, transform_indices = @transform_2, window_bounds = array<i64: 1024, 1024>}, {pipeline_mode = #tpu.pipeline_mode<synchronous>, transform_indices = @transform_3, window_bounds = array<i64: 1, 1024>}, {pipeline_mode = #tpu.pipeline_mode<synchronous>, transform_indices = @transform_4, window_bounds = array<i64: 1024, 1024>}, {pipeline_mode = #tpu.pipeline_mode<synchronous>, transform_indices = @transform_5, window_bounds = array<i64: 1, 1024>}, {pipeline_mode = #tpu.pipeline_mode<synchronous>, transform_indices = @transform_6, window_bounds = array<i64: 1, 1024>}, {pipeline_mode = #tpu.pipeline_mode<synchronous>, transform_indices = @transform_7, window_bounds = array<i64: 1, 1024>}, {transform_indices = @transform_8, window_bounds = array<i64: 8, 1024>}]} {
    %c0 = arith.constant 0 : index
    %c0_0 = arith.constant 0 : index
    %0 = vector.load %arg1[%c0, %c0_0] : memref<8x1024xf32, #tpu.memory_space<vmem>>, vector<8x1024xf32>
    %c0_1 = arith.constant 0 : index
    %c0_2 = arith.constant 0 : index
    %1 = vector.load %arg2[%c0_1, %c0_2] : memref<3x1024xf32, #tpu.memory_space<vmem>>, vector<3x1024xf32>
    %2 = vector.shape_cast %0 : vector<8x1024xf32> to vector<1x8x1024xf32>
    %3 = vector.shape_cast %1 : vector<3x1024xf32> to vector<3x1x1024xf32>
    %4 = vector.broadcast %2 : vector<1x8x1024xf32> to vector<3x8x1024xf32>
    %5 = vector.broadcast %3 : vector<3x1x1024xf32> to vector<3x8x1024xf32>
    %6 = arith.subf %4, %5 : vector<3x8x1024xf32>
    %7 = math.absf %6 : vector<3x8x1024xf32>
    %8 = vector.shape_cast %7 : vector<3x8x1024xf32> to vector<24x1024xf32>
    %9 = arith.truncf %8 : vector<24x1024xf32> to vector<24x1024xbf16>
    %c0_3 = arith.constant 0 : index
    %c0_4 = arith.constant 0 : index
    %10 = vector.load %arg3[%c0_3, %c0_4] : memref<1024x1024xbf16, #tpu.memory_space<vmem>>, vector<1024x1024xbf16>
    %cst = arith.constant dense<0.000000e+00> : vector<24x1024xf32>
    %11 = tpu.matmul %9, %10, %cst {dimension_numbers = #tpu.dot_dimension_numbers<[1], [0], [0], [1], [0, 0, 1, 1], [], []>} : vector<24x1024xbf16>, vector<1024x1024xbf16>, vector<24x1024xf32> -> vector<24x1024xf32>
    %c0_5 = arith.constant 0 : index
    %c0_6 = arith.constant 0 : index
    %12 = vector.load %arg4[%c0_5, %c0_6] : memref<1x1024xf32, #tpu.memory_space<vmem>>, vector<1x1024xf32>
    %13 = vector.broadcast %12 : vector<1x1024xf32> to vector<24x1024xf32>
    %14 = arith.addf %11, %13 : vector<24x1024xf32>
    %cst_7 = arith.constant 0.000000e+00 : f32
    %15 = vector.broadcast %cst_7 : f32 to vector<24x1024xf32>
    %16 = arith.maximumf %14, %15 : vector<24x1024xf32>
    %17 = arith.truncf %16 : vector<24x1024xf32> to vector<24x1024xbf16>
    %c0_8 = arith.constant 0 : index
    %c0_9 = arith.constant 0 : index
    %18 = vector.load %arg5[%c0_8, %c0_9] : memref<1024x1024xbf16, #tpu.memory_space<vmem>>, vector<1024x1024xbf16>
    %cst_10 = arith.constant dense<0.000000e+00> : vector<24x1024xf32>
    %19 = tpu.matmul %17, %18, %cst_10 {dimension_numbers = #tpu.dot_dimension_numbers<[1], [0], [0], [1], [0, 0, 1, 1], [], []>} : vector<24x1024xbf16>, vector<1024x1024xbf16>, vector<24x1024xf32> -> vector<24x1024xf32>
    %c0_11 = arith.constant 0 : index
    %c0_12 = arith.constant 0 : index
    %20 = vector.load %arg6[%c0_11, %c0_12] : memref<1x1024xf32, #tpu.memory_space<vmem>>, vector<1x1024xf32>
    %21 = vector.broadcast %20 : vector<1x1024xf32> to vector<24x1024xf32>
    %22 = arith.addf %19, %21 : vector<24x1024xf32>
    %cst_13 = arith.constant dense<0.000000e+00> : vector<24xf32>
    %23 = vector.multi_reduction <add>, %22, %cst_13 [1] : vector<24x1024xf32> to vector<24xf32>
    %24 = vector.shape_cast %23 : vector<24xf32> to vector<24x1xf32>
    %cst_14 = arith.constant 1.024000e+03 : f32
    %25 = vector.broadcast %cst_14 : f32 to vector<24x1xf32>
    %26 = arith.divf %24, %25 : vector<24x1xf32>
    %27 = arith.mulf %22, %22 : vector<24x1024xf32>
    %cst_15 = arith.constant dense<0.000000e+00> : vector<24xf32>
    %28 = vector.multi_reduction <add>, %27, %cst_15 [1] : vector<24x1024xf32> to vector<24xf32>
    %29 = vector.shape_cast %28 : vector<24xf32> to vector<24x1xf32>
    %cst_16 = arith.constant 1.024000e+03 : f32
    %30 = vector.broadcast %cst_16 : f32 to vector<24x1xf32>
    %31 = arith.divf %29, %30 : vector<24x1xf32>
    %32 = arith.mulf %26, %26 : vector<24x1xf32>
    %33 = arith.subf %31, %32 : vector<24x1xf32>
    %cst_17 = arith.constant 9.99999974E-6 : f32
    %34 = vector.broadcast %cst_17 : f32 to vector<24x1xf32>
    %35 = arith.addf %33, %34 : vector<24x1xf32>
    %36 = math.rsqrt %35 : vector<24x1xf32>
    %c0_18 = arith.constant 0 : index
    %c0_19 = arith.constant 0 : index
    %37 = vector.load %arg7[%c0_18, %c0_19] : memref<1x1024xf32, #tpu.memory_space<vmem>>, vector<1x1024xf32>
    %38 = vector.broadcast %36 : vector<24x1xf32> to vector<24x1024xf32>
    %39 = vector.broadcast %37 : vector<1x1024xf32> to vector<24x1024xf32>
    %40 = arith.mulf %38, %39 : vector<24x1024xf32>
    %41 = vector.broadcast %26 : vector<24x1xf32> to vector<24x1024xf32>
    %42 = arith.subf %22, %41 : vector<24x1024xf32>
    %43 = arith.mulf %42, %40 : vector<24x1024xf32>
    %c0_20 = arith.constant 0 : index
    %c0_21 = arith.constant 0 : index
    %44 = vector.load %arg8[%c0_20, %c0_21] : memref<1x1024xf32, #tpu.memory_space<vmem>>, vector<1x1024xf32>
    %45 = vector.broadcast %44 : vector<1x1024xf32> to vector<24x1024xf32>
    %46 = arith.addf %43, %45 : vector<24x1024xf32>
    %cst_22 = arith.constant 0.000000e+00 : f32
    %47 = vector.broadcast %cst_22 : f32 to vector<24x1024xf32>
    %48 = arith.maximumf %46, %47 : vector<24x1024xf32>
    %49 = vector.shape_cast %48 : vector<24x1024xf32> to vector<3x8x1024xf32>
    %cst_23 = arith.constant dense<0xFF800000> : vector<8x1024xf32>
    %50 = vector.multi_reduction <maximumf>, %49, %cst_23 [0] : vector<3x8x1024xf32> to vector<8x1024xf32>
    %51 = arith.mulf %50, %0 : vector<8x1024xf32>
    %c0_24 = arith.constant 0 : index
    %c0_25 = arith.constant 0 : index
    %52 = vector.load %arg9[%c0_24, %c0_25] : memref<8x1024xf32, #tpu.memory_space<vmem>>, vector<8x1024xf32>
    tpu.vector_store %arg9[%c0_24, %c0_25], %51 {strides = array<i32>} : memref<8x1024xf32, #tpu.memory_space<vmem>>, vector<8x1024xf32>,
    return
  }
  func.func @transform_0(%arg0: i32) -> (i32, i32) {
    %c0_i32 = arith.constant 0 : i32
    %c0_i32_0 = arith.constant 0 : i32
    return %arg0, %c0_i32 : i32, i32
  }
  func.func @transform_1(%arg0: i32) -> (i32, i32) {
    %c0_i32 = arith.constant 0 : i32
    %c0_i32_0 = arith.constant 0 : i32
    %c0_i32_1 = arith.constant 0 : i32
    return %c0_i32, %c0_i32_0 : i32, i32
  }
  func.func @transform_2(%arg0: i32) -> (i32, i32) {
    %c0_i32 = arith.constant 0 : i32
    %c0_i32_0 = arith.constant 0 : i32
    %c0_i32_1 = arith.constant 0 : i32
    return %c0_i32, %c0_i32_0 : i32, i32
  }
  func.func @transform_3(%arg0: i32) -> (i32, i32) {
    %c0_i32 = arith.constant 0 : i32
    %c0_i32_0 = arith.constant 0 : i32
    %c0_i32_1 = arith.constant 0 : i32
    return %c0_i32, %c0_i32_0 : i32, i32
  }
  func.func @transform_4(%arg0: i32) -> (i32, i32) {
    %c0_i32 = arith.constant 0 : i32
    %c0_i32_0 = arith.constant 0 : i32
    %c0_i32_1 = arith.constant 0 : i32
    return %c0_i32, %c0_i32_0 : i32, i32
  }
  func.func @transform_5(%arg0: i32) -> (i32, i32) {
    %c0_i32 = arith.constant 0 : i32
    %c0_i32_0 = arith.constant 0 : i32
    %c0_i32_1 = arith.constant 0 : i32
    return %c0_i32, %c0_i32_0 : i32, i32
  }
  func.func @transform_6(%arg0: i32) -> (i32, i32) {
    %c0_i32 = arith.constant 0 : i32
    %c0_i32_0 = arith.constant 0 : i32
    %c0_i32_1 = arith.constant 0 : i32
    return %c0_i32, %c0_i32_0 : i32, i32
  }
  func.func @transform_7(%arg0: i32) -> (i32, i32) {
    %c0_i32 = arith.constant 0 : i32
    %c0_i32_0 = arith.constant 0 : i32
    %c0_i32_1 = arith.constant 0 : i32
    return %c0_i32, %c0_i32_0 : i32, i32
  }
  func.func @transform_8(%arg0: i32) -> (i32, i32) {
    %c0_i32 = arith.constant 0 : i32
    %c0_i32_0 = arith.constant 0 : i32
    return %arg0, %c0_i32 : i32, i32
  }
}

</mosaic_0001>

<bundles_post_ra>
// kernel: tpu_custom_call.1
= control target key start
LH: loop header
LB: loop body
LE: loop exit
PB: predicated region body
PF: predicated region fallthrough
CT: control target
= control target key end

     0   :  { %13 = vsyncpa [#allocation3], 0  ;;  %s10948_s0 = inlined_call_operand.hbm [shape: f32[8,1024], index: 0, kind: input, shape index: {}]   ;;  %s10949_s1 = inlined_call_operand.hbm [shape: f32[3,1024], index: 1, kind: input, shape index: {}]   ;;  %s10950_s2 = inlined_call_operand.hbm [shape: bf16[1024,1024], index: 2, kind: input, shape index: {}]   ;;  %s10951_s3 = inlined_call_operand.hbm [shape: f32[1,1024], index: 3, kind: input, shape index: {}]   ;;  %s10952_s4 = inlined_call_operand.hbm [shape: bf16[1024,1024], index: 4, kind: input, shape index: {}]   ;;  %s10953_s5 = inlined_call_operand.hbm [shape: f32[1,1024], index: 5, kind: input, shape index: {}]   ;;  %s10954_s6 = inlined_call_operand.hbm [shape: f32[1,1024], index: 6, kind: input, shape index: {}]   ;;  %s10955_s7 = inlined_call_operand.hbm [shape: f32[1,1024], index: 7, kind: input, shape index: {}]   ;;  %s10956_s8 = inlined_call_operand.hbm [shape: f32[8,1024], index: 8, kind: output, shape index: {}]  }
   0x1   :  { %14 = vsyncpa [#allocation6], 0 }
   0x2   :  { %15 = vsyncpa [#allocation9], 0 }
   0x3   :  { %16 = vsyncpa [#allocation12], 0 }
   0x4   :  { %17 = vsyncpa [#allocation15], 0 }
   0x5   :  { %18 = vsyncpa [#allocation4], 0  ;;  %s9890_s27 = smov [#allocation5]   ;;  %s9891_s29 = smov [#allocation8]  }
   0x6   :  { %s35_s28 = sshll.u32 %s9890_s27, 4  ;;  %s57_s30 = sshll.u32 %s9891_s29, 4  ;;  %s36_s28 = int_to_ptr.vmem [resolvable:$true] %s35_s28  ;;  %s58_s30 = int_to_ptr.vmem [resolvable:$true] %s57_s30 }
   0x7   :  { %s9706_s9 = scalar_lea.vmem %s36_s28, 512  ;;  %p9711_p1 = scmp.lt.s32.totalorder %s36_s28, %s36_s28 }
   0x8   :  { %p9707_p0 = scmp.ne.s32.totalorder %s36_s28, %s9706_s9  ;;  %p9712_p2 = scmp.lt.s32.totalorder %s9706_s9, %s9706_s9 }
   0xa   :  { %p9713_p3 = por %p9712_p2, %p9711_p1 }
   0xc   :  { %p9714_p4 = pnand %p9713_p3, %p9707_p0 }
   0xe   :  { %9717 = shalt.err (!%p9714_p4)
}
   0xf   :  { %38 = dma.hbm_to_vmem [thread:$0]  %s10949_s1, 512, %s36_s28, [#allocation6]  }
  0x10   :  { %s9726_s12 = scalar_lea.vmem %s58_s30, 128  ;;  %p9731_p6 = scmp.lt.s32.totalorder %s58_s30, %s58_s30 }
  0x11   :  { %p9727_p5 = scmp.ne.s32.totalorder %s58_s30, %s9726_s12  ;;  %p9732_p7 = scmp.lt.s32.totalorder %s9726_s12, %s9726_s12 }
  0x13   :  { %p9733_p8 = por %p9732_p7, %p9731_p6 }
  0x15   :  { %p9734_p9 = pnand %p9733_p8, %p9727_p5 }
  0x17   :  { %9737 = shalt.err (!%p9734_p9)
}
  0x18   :  { %60 = dma.hbm_to_vmem [thread:$0]  %s10951_s3, 128, %s58_s30, [#allocation9]  }
  0x19   :  { %s9892_s15 = smov [#allocation11]   ;;  %s9893_s17 = smov [#allocation2]  }
  0x1a   :  { %s79_s16 = sshll.u32 %s9892_s15, 4  ;;  %s25_s18 = sshll.u32 %s9893_s17, 4  ;;  %s80_s16 = int_to_ptr.vmem [resolvable:$true] %s79_s16  ;;  %s26_s18 = int_to_ptr.vmem [resolvable:$true] %s25_s18 }
  0x1b   :  { %s9746_s19 = scalar_lea.vmem %s80_s16, 128  ;;  %p9751_p11 = scmp.lt.s32.totalorder %s80_s16, %s80_s16 }
  0x1c   :  { %p9747_p10 = scmp.ne.s32.totalorder %s80_s16, %s9746_s19  ;;  %p9752_p12 = scmp.lt.s32.totalorder %s9746_s19, %s9746_s19 }
  0x1e   :  { %p9753_p13 = por %p9752_p12, %p9751_p11 }
  0x20   :  { %p9754_p0 = pnand %p9753_p13, %p9747_p10 }
  0x22   :  { %9757 = shalt.err (!%p9754_p0)
}
  0x23   :  { %82 = dma.hbm_to_vmem [thread:$0]  %s10953_s5, 128, %s80_s16, [#allocation12]  }
  0x24   :  { %s9766_s21 = scalar_lea.vmem %s26_s18, 1024  ;;  %p9771_p2 = scmp.lt.s32.totalorder %s26_s18, %s26_s18 }
  0x25   :  { %p9767_p1 = scmp.ne.s32.totalorder %s26_s18, %s9766_s21  ;;  %p9772_p3 = scmp.lt.s32.totalorder %s9766_s21, %s9766_s21 }
  0x27   :  { %p9773_p4 = por %p9772_p3, %p9771_p2 }
  0x29   :  { %p9774_p5 = pnand %p9773_p4, %p9767_p1 }
  0x2b   :  { %9777 = shalt.err (!%p9774_p5)
}
  0x2c   :  { %28 = dma.hbm_to_vmem [thread:$0]  %s10948_s0, 1024, %s26_s18, [#allocation3]  }
  0x2d   :  { %s9894_s23 = smov [#allocation7]  }
  0x2e   :  { %s44_s24 = sshll.u32 %s9894_s23, 4  ;;  %s45_s24 = int_to_ptr.vmem [resolvable:$true] %s44_s24 }
  0x2f   :  { %s9786_s25 = scalar_lea.vmem %s45_s24, 65536  ;;  %p9791_p7 = scmp.lt.s32.totalorder %s45_s24, %s45_s24 }
  0x30   :  { %p9787_p6 = scmp.ne.s32.totalorder %s45_s24, %s9786_s25  ;;  %p9792_p8 = scmp.lt.s32.totalorder %s9786_s25, %s9786_s25 }
  0x32   :  { %p9793_p9 = por %p9792_p8, %p9791_p7 }
  0x34   :  { %p9794_p10 = pnand %p9793_p9, %p9787_p6 }
  0x36   :  { %9797 = shalt.err (!%p9794_p10)
}
  0x37   :  { %s9895_s5 = smov 512   ;;  %s9896_s26 = smov 32  }
  0x38   :  { %50 = dma.hbm_to_vmem [thread:$0]  %s10950_s2, 65536, %s45_s24, [#allocation6], %s9895_s5, %s9895_s5, %s9896_s26  }
  0x39   :  { %s9897_s29 = smov [#allocation10]   ;;  %s9898_s0 = smov [#allocation13]  }
  0x3a   :  { %s66_s30 = sshll.u32 %s9897_s29, 4  ;;  %s89_s9 = sshll.u32 %s9898_s0, 4  ;;  %s67_s30 = int_to_ptr.vmem [resolvable:$true] %s66_s30  ;;  %s90_s9 = int_to_ptr.vmem [resolvable:$true] %s89_s9 }
  0x3b   :  { %s9806_s10 = scalar_lea.vmem %s67_s30, 65536  ;;  %p9811_p12 = scmp.lt.s32.totalorder %s67_s30, %s67_s30 }
  0x3c   :  { %p9807_p11 = scmp.ne.s32.totalorder %s67_s30, %s9806_s10  ;;  %p9812_p13 = scmp.lt.s32.totalorder %s9806_s10, %s9806_s10 }
  0x3e   :  { %p9813_p0 = por %p9812_p13, %p9811_p12 }
  0x40   :  { %p9814_p1 = pnand %p9813_p0, %p9807_p11 }
  0x42   :  { %9817 = shalt.err (!%p9814_p1)
}
  0x43   :  { %72 = dma.hbm_to_vmem [thread:$0]  %s10952_s4, 65536, %s67_s30, [#allocation9], %s9895_s5, %s9895_s5, %s9896_s26  }
  0x44   :  { %s9826_s13 = scalar_lea.vmem %s90_s9, 128  ;;  %p9831_p3 = scmp.lt.s32.totalorder %s90_s9, %s90_s9 }
  0x45   :  { %p9827_p2 = scmp.ne.s32.totalorder %s90_s9, %s9826_s13  ;;  %p9832_p4 = scmp.lt.s32.totalorder %s9826_s13, %s9826_s13 }
  0x47   :  { %p9833_p5 = por %p9832_p4, %p9831_p3 }
  0x49   :  { %p9834_p6 = pnand %p9833_p5, %p9827_p2 }
  0x4b   :  { %9837 = shalt.err (!%p9834_p6)
}
  0x4c   :  { %92 = dma.hbm_to_vmem [thread:$0]  %s10954_s6, 128, %s90_s9, [#allocation12]  }
  0x4d   :  { %s9899_s15 = smov [#allocation14]  }
  0x4e   :  { %s99_s16 = sshll.u32 %s9899_s15, 4  ;;  %s100_s16 = int_to_ptr.vmem [resolvable:$true] %s99_s16 }
  0x4f   :  { %s9846_s17 = scalar_lea.vmem %s100_s16, 128  ;;  %p9851_p8 = scmp.lt.s32.totalorder %s100_s16, %s100_s16 }
  0x50   :  { %p9847_p7 = scmp.ne.s32.totalorder %s100_s16, %s9846_s17  ;;  %p9852_p9 = scmp.lt.s32.totalorder %s9846_s17, %s9846_s17 }
  0x52   :  { %p9853_p10 = por %p9852_p9, %p9851_p8 }
  0x54   :  { %p9854_p11 = pnand %p9853_p10, %p9847_p7 }
  0x56   :  { %9857 = shalt.err (!%p9854_p11)
}
  0x57   :  { %102 = dma.hbm_to_vmem [thread:$0]  %s10955_s7, 128, %s100_s16, [#allocation15]  }
  0x58   :  { %9878 = dma.done.wait [#allocation3], 1024  }
  0x59   :  { %9879 = vsyncadd [#allocation3], 4294966272 }
  0x5a   :  { %9880 = dma.done.wait [#allocation6], 66048  }
  0x5b   :  { %9881 = vsyncadd [#allocation6], 4294901248 }
  0x5c   :  { %9882 = dma.done.wait [#allocation9], 65664  }
  0x5d   :  { %9883 = vsyncadd [#allocation9], 4294901632 }
  0x5e   :  { %9884 = dma.done.wait [#allocation12], 256  }
  0x5f   :  { %9885 = vsyncadd [#allocation12], 4294967040 }
  0x60   :  { %9886 = dma.done.wait [#allocation15], 128  }
  0x61   :  { %9887 = vsyncadd [#allocation15], 4294967168  ;;  %v446_v0 = vld [vmem:[#allocation7 + $0x1c0] sm:$0xff]  ;;  %v9900_v37 = vmov 1966171168   ;;  %v178_v39 = vlaneseq  ;;  %s9901_s6 = smov [#allocation16]  }
  0x62   :  { %v450_v1 = vld [vmem:[#allocation7 + $0x1e0] sm:$0xff]  ;;  %v176_v38 = vunpack.c.l.s4 %v9900_v37  ;;  %v8643_v63 = vld.sshfl [vmem:[#allocation5 + $0x8] sm:$0x5f pattern:$0x75316420]  ;;  %s8629_s7 = sshll.u32 %s9901_s6, 4  ;;  %s8630_s7 = int_to_ptr.vmem [resolvable:$true] %s8629_s7 }
  0x63   :  { %v574_v2 = vld [vmem:[#allocation7 + $0x5c0] sm:$0xff]  ;;  %v8703_v3 = vcombine.high %v446_v0, %v450_v1  ;;  %v8702_v5 = vcombine.low %v446_v0, %v450_v1  ;;  %v9971_v49 = vshrl.u32 %v178_v39, 7  ;;  %s9858_s19 = scalar_lea.vmem %s8630_s7, 1024  ;;  %p9863_p13 = scmp.lt.s32.totalorder %s8630_s7, %s8630_s7 }
  0x64   :  { %v578_v4 = vld [vmem:[#allocation7 + $0x5e0] sm:$0xff]  ;;  %v177_v48 = vunpack.c.0.s8 %v176_v38  ;;  %p9859_p12 = scmp.ne.s32.totalorder %s8630_s7, %s9858_s19  ;;  %p9864_p0 = scmp.lt.s32.totalorder %s9858_s19, %s9858_s19 }
  0x65   :  { %v438_v6 = vld [vmem:[#allocation7 + $0x180] sm:$0xff]  ;;  %v8831_v8 = vcombine.high %v574_v2, %v578_v4  ;;  %v8830_v9 = vcombine.low %v574_v2, %v578_v4  ;;  %3504 = vmatprep.subr.bf16.mxu0 %v8703_v3  ;;  %v8644_v2 = vld.sshfl [vmem:[#allocation5 + $0x10] sm:$0x5f pattern:$0x75316420] }
  0x66   :  { %v442_v7 = vld [vmem:[#allocation7 + $0x1a0] sm:$0xff]  ;;  %3505 = vmatpush1.bf16.msra.mxu0 %v8702_v5  ;;  %v180_v61 = vsub.s32 %v177_v48, %v9971_v49  ;;  %p9865_p1 = por %p9864_p0, %p9863_p13 }
  0x67   :  { %v8695_v10 = vcombine.high %v438_v6, %v442_v7  ;;  %v566_v11 = vld [vmem:[#allocation7 + $0x580] sm:$0xff]  ;;  %3555 = vmatprep.subr.bf16.mxu1 %v8831_v8  ;;  %v8694_v18 = vcombine.low %v438_v6, %v442_v7  ;;  %v8645_v8 = vld.sshfl [vmem:[#allocation5 + $0x18] sm:$0x5f pattern:$0x75316420] }
  0x68   :  { %v570_v12 = vld [vmem:[#allocation7 + $0x5a0] sm:$0xff]  ;;  %3556 = vmatpush1.bf16.msra.mxu1 %v8830_v9  ;;  %v173_v9 = vcombine.low %v8644_v2, %v8645_v8  ;;  %p9866_p2 = pnand %p9865_p1, %p9859_p12 }
  0x69   :  { %v430_v13 = vld [vmem:[#allocation7 + $0x140] sm:$0xff]  ;;  %v8823_v14 = vcombine.high %v566_v11, %v570_v12  ;;  %3506 = vmatprep.subr.bf16.mxu0 %v8695_v10  ;;  %v8822_v19 = vcombine.low %v566_v11, %v570_v12  ;;  %v174_v10 = vcombine.high %v8644_v2, %v8645_v8 }
  0x6a   :  { %v434_v15 = vld [vmem:[#allocation7 + $0x160] sm:$0xff]  ;;  %3507 = vmatpush1.bf16.msra.mxu0 %v8694_v18  ;;  %v9976_v18 = vrot.slane %v173_v9, %v180_v61  ;;  %v10013_v9 = vsub.s32 0, %v9971_v49 }
  0x6b   :  { %v558_v16 = vld [vmem:[#allocation7 + $0x540] sm:$0xff]  ;;  %v8687_v20 = vcombine.high %v430_v13, %v434_v15  ;;  %3557 = vmatprep.subr.bf16.mxu1 %v8823_v14  ;;  %v8686_v26 = vcombine.low %v430_v13, %v434_v15 }
  0x6c   :  { %v562_v17 = vld [vmem:[#allocation7 + $0x560] sm:$0xff]  ;;  %3558 = vmatpush1.bf16.msra.mxu1 %v8822_v19  ;;  %v202_v19 = vrot.slane %v174_v10, %v180_v61 }
  0x6d   :  { %v8815_v21 = vcombine.high %v558_v16, %v562_v17  ;;  %v422_v22 = vld [vmem:[#allocation7 + $0x100] sm:$0xff]  ;;  %3508 = vmatprep.subr.bf16.mxu0 %v8687_v20  ;;  %v8814_v27 = vcombine.low %v558_v16, %v562_v17  ;;  %v9979_v20 = vsub.s32 1, %v9971_v49 }
  0x6e   :  { %v426_v23 = vld [vmem:[#allocation7 + $0x120] sm:$0xff]  ;;  %3509 = vmatpush1.bf16.msra.mxu0 %v8686_v26 }
  0x6f   :  { %v550_v24 = vld [vmem:[#allocation7 + $0x500] sm:$0xff]  ;;  %v8679_v28 = vcombine.high %v422_v22, %v426_v23  ;;  %3559 = vmatprep.subr.bf16.mxu1 %v8815_v21  ;;  %v8678_v34 = vcombine.low %v422_v22, %v426_v23  ;;  %v9982_v21 = vsub.s32 3, %v9971_v49 }
  0x70   :  { %v554_v25 = vld [vmem:[#allocation7 + $0x520] sm:$0xff]  ;;  %3560 = vmatpush1.bf16.msra.mxu1 %v8814_v27 }
  0x71   :  { %v8807_v29 = vcombine.high %v550_v24, %v554_v25  ;;  %v414_v30 = vld [vmem:[#allocation7 + $0xc0] sm:$0xff]  ;;  %3510 = vmatprep.subr.bf16.mxu0 %v8679_v28  ;;  %v8806_v35 = vcombine.low %v550_v24, %v554_v25  ;;  %10959 = vst [vmem:[#allocation23_spill] sm:$0xff] %v9982_v21 }
  0x72   :  { %v418_v31 = vld [vmem:[#allocation7 + $0xe0] sm:$0xff]  ;;  %3511 = vmatpush1.bf16.msra.mxu0 %v8678_v34 }
  0x73   :  { %v542_v32 = vld [vmem:[#allocation7 + $0x4c0] sm:$0xff]  ;;  %v8671_v36 = vcombine.high %v414_v30, %v418_v31  ;;  %3561 = vmatprep.subr.bf16.mxu1 %v8807_v29  ;;  %v8670_v45 = vcombine.low %v414_v30, %v418_v31  ;;  %v9990_v30 = vld [vmem:[#allocation2 + $0x8] sm:$0xff]  ;;  %v9992_v31 = vld [vmem:[#allocation2 + $0x18] sm:$0xff] }
  0x74   :  { %v546_v33 = vld [vmem:[#allocation7 + $0x4e0] sm:$0xff]  ;;  %3562 = vmatpush1.bf16.msra.mxu1 %v8806_v35 }
  0x75   :  { %v8799_v40 = vcombine.high %v542_v32, %v546_v33  ;;  %v406_v41 = vld [vmem:[#allocation7 + $0x80] sm:$0xff]  ;;  %3512 = vmatprep.subr.bf16.mxu0 %v8671_v36  ;;  %v8798_v46 = vcombine.low %v542_v32, %v546_v33 }
  0x76   :  { %v410_v42 = vld [vmem:[#allocation7 + $0xa0] sm:$0xff]  ;;  %3513 = vmatpush1.bf16.msra.mxu0 %v8670_v45 }
  0x77   :  { %v534_v43 = vld [vmem:[#allocation7 + $0x480] sm:$0xff]  ;;  %v8663_v47 = vcombine.high %v406_v41, %v410_v42  ;;  %3563 = vmatprep.subr.bf16.mxu1 %v8799_v40  ;;  %v8662_v55 = vcombine.low %v406_v41, %v410_v42 }
  0x78   :  { %v538_v44 = vld [vmem:[#allocation7 + $0x4a0] sm:$0xff]  ;;  %3564 = vmatpush1.bf16.msra.mxu1 %v8798_v46 }
  0x79   :  { %v8791_v50 = vcombine.high %v534_v43, %v538_v44  ;;  %v398_v51 = vld [vmem:[#allocation7 + $0x40] sm:$0xff]  ;;  %3514 = vmatprep.subr.bf16.mxu0 %v8663_v47  ;;  %v8790_v56 = vcombine.low %v534_v43, %v538_v44 }
  0x7a   :  { %v402_v52 = vld [vmem:[#allocation7 + $0x60] sm:$0xff]  ;;  %3515 = vmatpush1.bf16.msra.mxu0 %v8662_v55 }
  0x7b   :  { %v526_v53 = vld [vmem:[#allocation7 + $0x440] sm:$0xff]  ;;  %v8655_v57 = vcombine.high %v398_v51, %v402_v52  ;;  %3565 = vmatprep.subr.bf16.mxu1 %v8791_v50  ;;  %v8654_v5 = vcombine.low %v398_v51, %v402_v52 }
  0x7c   :  { %v530_v54 = vld [vmem:[#allocation7 + $0x460] sm:$0xff]  ;;  %3566 = vmatpush1.bf16.msra.mxu1 %v8790_v56 }
  0x7d   :  { %v390_v58 = vld [vmem:[#allocation7] sm:$0xff]  ;;  %v8783_v62 = vcombine.high %v526_v53, %v530_v54  ;;  %v8782_v6 = vcombine.low %v526_v53, %v530_v54  ;;  %3516 = vmatprep.subr.bf16.mxu0 %v8655_v57 }
  0x7e   :  { %v394_v59 = vld [vmem:[#allocation7 + $0x20] sm:$0xff]  ;;  %3517 = vmatpush1.bf16.msra.mxu0 %v8654_v5 }
  0x7f   :  { %v8642_v60 = vld.sshfl [vmem:[#allocation5] sm:$0x5f pattern:$0x75316420]  ;;  %v8647_v7 = vcombine.high %v390_v58, %v394_v59  ;;  %3567 = vmatprep.subr.bf16.mxu1 %v8783_v62  ;;  %v8646_v22 = vcombine.low %v390_v58, %v394_v59 }
  0x80   :  { %v518_v0 = vld [vmem:[#allocation7 + $0x400] sm:$0xff]  ;;  %v171_v3 = vcombine.low %v8642_v60, %v8643_v63  ;;  %v172_v4 = vcombine.high %v8642_v60, %v8643_v63  ;;  %3568 = vmatpush1.bf16.msra.mxu1 %v8782_v6 }
  0x81   :  { %v522_v1 = vld [vmem:[#allocation7 + $0x420] sm:$0xff]  ;;  %3518 = vmatprep.subr.bf16.mxu0 %v8647_v7 }
  0x82   :  { %v9974_v11 = vrot.slane %v171_v3, %v180_v61  ;;  %v8775_v12 = vcombine.high %v518_v0, %v522_v1  ;;  %v510_v13 = vld [vmem:[#allocation7 + $0x3c0] sm:$0xff]  ;;  %v188_v15 = vrot.slane %v172_v4, %v180_v61  ;;  %v8774_v23 = vcombine.low %v518_v0, %v522_v1  ;;  %3519 = vmatpush1.bf16.msra.mxu0 %v8646_v22 }
  0x83   :  { %v514_v14 = vld [vmem:[#allocation7 + $0x3e0] sm:$0xff] }
  0x84   :  { %v638_v16 = vld [vmem:[#allocation7 + $0x7c0] sm:$0xff]  ;;  %v8767_v24 = vcombine.high %v510_v13, %v514_v14  ;;  %v9986_v27 = vcombine.low %v9974_v11, %v9976_v18  ;;  %v9988_v28 = vcombine.low %v188_v15, %v202_v19  ;;  %3569 = vmatprep.subr.bf16.mxu1 %v8775_v12  ;;  %v8766_v38 = vcombine.low %v510_v13, %v514_v14 }
  0x85   :  { %v642_v17 = vld [vmem:[#allocation7 + $0x7e0] sm:$0xff]  ;;  %3570 = vmatpush1.bf16.msra.mxu1 %v8774_v23 }
  0x86   :  { %v502_v25 = vld [vmem:[#allocation7 + $0x380] sm:$0xff]  ;;  %v8895_v29 = vcombine.high %v638_v16, %v642_v17  ;;  %v213_v34 = vrot.slane %v9986_v27, %v9979_v20  ;;  %v245_v35 = vrot.slane %v9988_v28, %v9979_v20  ;;  %v221_v36 = vrot.slane %v9986_v27, %v9982_v21  ;;  %3520 = vmatprep.subr.bf16.mxu0 %v8767_v24 }
  0x87   :  { %v506_v26 = vld [vmem:[#allocation7 + $0x3a0] sm:$0xff]  ;;  %v253_v37 = vrot.slane %v9988_v28, %v9982_v21  ;;  %v8894_v39 = vcombine.low %v638_v16, %v642_v17  ;;  %3521 = vmatpush2.bf16.msra.mxu0 %v8766_v38  ;;  %v10016_v17 = vsub.s32 2, %v9971_v49  ;;  %v209_v23 = vrot.slane %v9986_v27, %v10013_v9 }
  0x88   :  { %v630_v32 = vld [vmem:[#allocation7 + $0x780] sm:$0xff]  ;;  %v8759_v40 = vcombine.high %v502_v25, %v506_v26  ;;  %v327_v42 = vsub.f32 %v9990_v30, %v213_v34  ;;  %v335_v43 = vsub.f32 %v9990_v30, %v245_v35  ;;  %v329_v44 = vsub.f32 %v9992_v31, %v221_v36  ;;  %3571 = vmatprep.subr.bf16.mxu1 %v8895_v29 }
  0x89   :  { %v634_v33 = vld [vmem:[#allocation7 + $0x7a0] sm:$0xff]  ;;  %v337_v50 = vsub.f32 %v9992_v31, %v253_v37  ;;  %v8758_v54 = vcombine.low %v502_v25, %v506_v26  ;;  %3572 = vmatpush2.bf16.msra.mxu1 %v8894_v39  ;;  %v241_v24 = vrot.slane %v9988_v28, %v10013_v9  ;;  %v217_v37 = vrot.slane %v9986_v27, %v10016_v17 }
  0x8a   :  { %v494_v41 = vld [vmem:[#allocation7 + $0x340] sm:$0xff]  ;;  %v8887_v45 = vcombine.high %v630_v32, %v634_v33  ;;  %v351_v51 = vand.u32 2147483647, %v327_v42  ;;  %v359_v52 = vand.u32 2147483647, %v335_v43  ;;  %3522 = vmatprep.subr.bf16.mxu0 %v8759_v40  ;;  %v8886_v56 = vcombine.low %v630_v32, %v634_v33  ;;  %v10032_v42 = vld [vmem:[#allocation2 + $0x10] sm:$0xff] }
  0x8b   :  { %v498_v46 = vld [vmem:[#allocation7 + $0x360] sm:$0xff]  ;;  %v353_v53 = vand.u32 2147483647, %v329_v44  ;;  %v361_v55 = vand.u32 2147483647, %v337_v50  ;;  %3523 = vmatpush2.bf16.msra.mxu0 %v8758_v54  ;;  %v10026_v33 = vcombine.high %v9974_v11, %v9976_v18  ;;  %v249_v43 = vrot.slane %v9988_v28, %v10016_v17 }
  0x8c   :  { %v622_v47 = vld [vmem:[#allocation7 + $0x740] sm:$0xff]  ;;  %v8751_v57 = vcombine.high %v494_v41, %v498_v46  ;;  %v10006_v58 = vpack.c.bf16 %v359_v52, %v351_v51  ;;  %3573 = vmatprep.subr.bf16.mxu1 %v8887_v45  ;;  %v8750_v1 = vcombine.low %v494_v41, %v498_v46  ;;  %v10041_v46 = vsub.s32 5, %v9971_v49 }
  0x8d   :  { %v626_v48 = vld [vmem:[#allocation7 + $0x760] sm:$0xff]  ;;  %v10008_v62 = vpack.c.bf16 %v361_v55, %v353_v53  ;;  %3574 = vmatpush2.bf16.msra.mxu1 %v8886_v56  ;;  %v277_v52 = vrot.slane %v10026_v33, %v9979_v20  ;;  %v285_v53 = vrot.slane %v10026_v33, %v9982_v21  ;;  %v10055_v54 = vsub.s32 6, %v9971_v49 }
  0x8e   :  { %v8879_v59 = vcombine.high %v622_v47, %v626_v48  ;;  %v486_v60 = vld [vmem:[#allocation7 + $0x300] sm:$0xff]  ;;  %3536 = vmatprep.mubr.bf16.mxu0 %v10006_v58  ;;  %3524 = vmatprep.subr.bf16.mxu0 %v8751_v57  ;;  %v8878_v2 = vcombine.low %v622_v47, %v626_v48  ;;  %v10044_v47 = vsub.s32 4, %v9971_v49 }
  0x8f   :  { %v490_v61 = vld [vmem:[#allocation7 + $0x320] sm:$0xff]  ;;  %3587 = vmatprep.mubr.bf16.mxu1 %v10008_v62  ;;  %3525 = vmatpush2.bf16.msra.mxu0 %v8750_v1 }
  0x90   :  { %v614_v63 = vld [vmem:[#allocation7 + $0x700] sm:$0xff]  ;;  %v8743_v3 = vcombine.high %v486_v60, %v490_v61  ;;  %3575 = vmatprep.subr.bf16.mxu1 %v8879_v59  ;;  %v8742_v10 = vcombine.low %v486_v60, %v490_v61  ;;  %v328_v59 = vsub.f32 %v10032_v42, %v217_v37 }
  0x91   :  { %v618_v0 = vld [vmem:[#allocation7 + $0x720] sm:$0xff]  ;;  %3576 = vmatpush2.bf16.msra.mxu1 %v8878_v2  ;;  %v336_v2 = vsub.f32 %v10032_v42, %v249_v43  ;;  %v229_v43 = vrot.slane %v9986_v27, %v10041_v46 }
  0x92   :  { %v8871_v4 = vcombine.high %v614_v63, %v618_v0  ;;  %v478_v5 = vld [vmem:[#allocation7 + $0x2c0] sm:$0xff]  ;;  %3526 = vmatprep.subr.bf16.mxu0 %v8743_v3  ;;  %v8870_v12 = vcombine.low %v614_v63, %v618_v0 }
  0x93   :  { %v482_v6 = vld [vmem:[#allocation7 + $0x2e0] sm:$0xff]  ;;  %3527 = vmatpush2.bf16.msra.mxu0 %v8742_v10 }
  0x94   :  { %v606_v7 = vld [vmem:[#allocation7 + $0x6c0] sm:$0xff]  ;;  %v8735_v13 = vcombine.high %v478_v5, %v482_v6  ;;  %3577 = vmatprep.subr.bf16.mxu1 %v8871_v4  ;;  %v8734_v25 = vcombine.low %v478_v5, %v482_v6 }
  0x95   :  { %v610_v8 = vld [vmem:[#allocation7 + $0x6e0] sm:$0xff]  ;;  %3578 = vmatpush2.bf16.msra.mxu1 %v8870_v12  ;;  %v343_v12 = vsub.f32 %v9990_v30, %v277_v52 }
  0x96   :  { %v8863_v14 = vcombine.high %v606_v7, %v610_v8  ;;  %v470_v15 = vld [vmem:[#allocation7 + $0x280] sm:$0xff]  ;;  %3528 = vmatprep.subr.bf16.mxu0 %v8735_v13  ;;  %v8862_v29 = vcombine.low %v606_v7, %v610_v8  ;;  %v273_v8 = vrot.slane %v10026_v33, %v10013_v9  ;;  %v345_v13 = vsub.f32 %v9992_v31, %v285_v53 }
  0x97   :  { %v474_v16 = vld [vmem:[#allocation7 + $0x2a0] sm:$0xff]  ;;  %3529 = vmatpush2.bf16.msra.mxu0 %v8734_v25  ;;  %v360_v31 = vand.u32 2147483647, %v336_v2  ;;  %v265_v25 = vrot.slane %v9988_v28, %v10055_v54  ;;  %v367_v37 = vand.u32 2147483647, %v343_v12 }
  0x98   :  { %v598_v19 = vld [vmem:[#allocation7 + $0x680] sm:$0xff]  ;;  %v8727_v32 = vcombine.high %v470_v15, %v474_v16  ;;  %3579 = vmatprep.subr.bf16.mxu1 %v8863_v14  ;;  %v8726_v11 = vcombine.low %v470_v15, %v474_v16  ;;  %v10082_v14 = vsub.s32 7, %v9971_v49  ;;  %v352_v16 = vand.u32 2147483647, %v328_v59  ;;  %v10126_v59 = vld [vmem:[#allocation2 + $0x38] sm:$0xff] }
  0x99   :  { %v602_v22 = vld [vmem:[#allocation7 + $0x6a0] sm:$0xff]  ;;  %3580 = vmatpush2.bf16.msra.mxu1 %v8862_v29  ;;  %v233_v49 = vrot.slane %v9986_v27, %v10055_v54 }
  0x9a   :  { %v10022_v26 = vld [vmem:[#allocation2] sm:$0xff]  ;;  %v8855_v34 = vcombine.high %v598_v19, %v602_v22  ;;  %v8854_v18 = vcombine.low %v598_v19, %v602_v22  ;;  %3530 = vmatprep.subr.bf16.mxu0 %v8727_v32  ;;  %v225_v22 = vrot.slane %v9986_v27, %v10044_v47  ;;  %v281_v32 = vrot.slane %v10026_v33, %v10016_v17 }
  0x9b   :  { %v462_v35 = vld [vmem:[#allocation7 + $0x240] sm:$0xff]  ;;  %v326_v40 = vsub.f32 %v10022_v26, %v209_v23  ;;  %v334_v41 = vsub.f32 %v10022_v26, %v241_v24  ;;  %3531 = vmatpush2.bf16.msra.mxu0 %v8726_v11  ;;  %v257_v23 = vrot.slane %v9988_v28, %v10044_v47  ;;  %v10092_v24 = vld [vmem:[#allocation2 + $0x30] sm:$0xff]  ;;  %v10101_v29 = vsub.f32 %v10022_v26, %v273_v8 }
  0x9c   :  { %v466_v36 = vld [vmem:[#allocation7 + $0x260] sm:$0xff]  ;;  %3581 = vmatprep.subr.bf16.mxu1 %v8855_v34  ;;  %v261_v11 = vrot.slane %v9988_v28, %v10041_v46 }
  0x9d   :  { %v590_v38 = vld [vmem:[#allocation7 + $0x640] sm:$0xff]  ;;  %v8719_v48 = vcombine.high %v462_v35, %v466_v36  ;;  %v8718_v56 = vcombine.low %v462_v35, %v466_v36  ;;  %v350_v0 = vand.u32 2147483647, %v326_v40  ;;  %v358_v1 = vand.u32 2147483647, %v334_v41  ;;  %3582 = vmatpush2.bf16.msra.mxu1 %v8854_v18 }
  0x9e   :  { %v594_v39 = vld [vmem:[#allocation7 + $0x660] sm:$0xff]  ;;  %v340_v40 = vsub.f32 %v10092_v24, %v265_v25 }
  0x9f   :  { %v10036_v44 = vld [vmem:[#allocation7 + $0x200] sm:$0xff]  ;;  %v8847_v55 = vcombine.high %v590_v38, %v594_v39  ;;  %v8846_v57 = vcombine.low %v590_v38, %v594_v39  ;;  %3532 = vmatprep.subr.bf16.mxu0 %v8719_v48  ;;  %v10094_v30 = vpack.c.bf16 %v358_v1, %v350_v0  ;;  %v369_v38 = vand.u32 2147483647, %v345_v13  ;;  %v10115_v48 = vld [vmem:[#allocation2 + $0x28] sm:$0xff] }
  0xa0   :  { %v10038_v45 = vld [vmem:[#allocation7 + $0x220] sm:$0xff]  ;;  %3533 = vmatpush2.bf16.msra.mxu0 %v8718_v56  ;;  %v332_v39 = vsub.f32 %v10092_v24, %v233_v49  ;;  %v364_v53 = vand.u32 2147483647, %v340_v40 }
  0xa1   :  { %v10046_v50 = vld [vmem:[#allocation7 + $0x600] sm:$0xff]  ;;  %v8711_v63 = vcombine.high %v10036_v44, %v10038_v45  ;;  %v8710_v6 = vcombine.low %v10036_v44, %v10038_v45  ;;  %3583 = vmatprep.subr.bf16.mxu1 %v8847_v55  ;;  %v10121_v55 = vpack.c.bf16 %v360_v31, %v352_v16 }
  0xa2   :  { %v10048_v51 = vld [vmem:[#allocation7 + $0x620] sm:$0xff]  ;;  %3584 = vmatpush2.bf16.msra.mxu1 %v8846_v57  ;;  %v356_v52 = vand.u32 2147483647, %v332_v39  ;;  %v344_v57 = vsub.f32 %v10032_v42, %v281_v32  ;;  %v331_v42 = vsub.f32 %v10115_v48, %v229_v43 }
  0xa3   :  { %v10058_v60 = vld [vmem:[#allocation7 + $0x9c0] sm:$0xff]  ;;  %v8839_v5 = vcombine.high %v10046_v50, %v10048_v51  ;;  %v8838_v7 = vcombine.low %v10046_v50, %v10048_v51  ;;  %3534 = vmatprep.subr.bf16.mxu0 %v8711_v63  ;;  %v237_v50 = vrot.slane %v9986_v27, %v10082_v14  ;;  %v269_v51 = vrot.slane %v9988_v28, %v10082_v14 }
  0xa4   :  { %v10060_v61 = vld [vmem:[#allocation7 + $0x9e0] sm:$0xff]  ;;  %3535 = vmatpush2.bf16.msra.mxu0 %v8710_v6  ;;  %v10133_v0 = vpack.c.bf16 %v364_v53, %v356_v52  ;;  %v368_v13 = vand.u32 2147483647, %v344_v57  ;;  %v355_v49 = vand.u32 2147483647, %v331_v42 }
  0xa5   :  { %v10065_v3 = vld [vmem:[#allocation7 + $0xdc0] sm:$0xff]  ;;  %v8959_v10 = vcombine.high %v10058_v60, %v10060_v61  ;;  %3585 = vmatprep.subr.bf16.mxu1 %v8839_v5  ;;  %v8958_v56 = vcombine.low %v10058_v60, %v10060_v61  ;;  %v10135_v60 = vpack.c.bf16 %v367_v37, %v367_v37  ;;  %v339_v61 = vsub.f32 %v10115_v48, %v261_v11 }
  0xa6   :  { %v10067_v4 = vld [vmem:[#allocation7 + $0xde0] sm:$0xff]  ;;  %3586 = vmatpush2.bf16.msra.mxu1 %v8838_v7  ;;  %v333_v8 = vsub.f32 %v10126_v59, %v237_v50 }
  0xa7   :  { %v10084_v15 = vld [vmem:[#allocation2 + $0x20] sm:$0xff]  ;;  %v9087_v19 = vcombine.high %v10065_v3, %v10067_v4  ;;  %3606 = vmatprep.subr.bf16.mxu0 %v8959_v10  ;;  %v9086_v27 = vcombine.low %v10065_v3, %v10067_v4  ;;  %3537 = vmatmul.mubr.bf16.vlgmr.msra.gmra.mxu0 %v10094_v30  ;;  %v366_v3 = vand.u32 2147483647, %v10101_v29  ;;  %v10141_v4 = vpack.c.bf16 %v369_v38, %v369_v38 }
  0xa8   :  { %v330_v34 = vsub.f32 %v10084_v15, %v225_v22  ;;  %v338_v35 = vsub.f32 %v10084_v15, %v257_v23  ;;  %v10107_v36 = vld [vmem:[#allocation7 + $0x980] sm:$0xff]  ;;  %v341_v10 = vsub.f32 %v10126_v59, %v269_v51  ;;  %3607 = vmatpush1.bf16.msra.mxu0 %v8958_v56  ;;  %3546 = vmatprep.mubr.bf16.mxu0 %v10135_v60  ;;  %v363_v25 = vand.u32 2147483647, %v339_v61 }
  0xa9   :  { %v698_v26 = vld [vmem:[#allocation7 + $0x9a0] sm:$0xff]  ;;  %3657 = vmatprep.subr.bf16.mxu1 %v9087_v19  ;;  %3588 = vmatmul.mubr.bf16.vlgmr.msra.gmra.mxu1 %v10121_v55  ;;  %v10151_v38 = vpack.c.bf16 %v368_v13, %v368_v13 }
  0xaa   :  { %v822_v41 = vld [vmem:[#allocation7 + $0xd80] sm:$0xff]  ;;  %v354_v18 = vand.u32 2147483647, %v330_v34  ;;  %v362_v44 = vand.u32 2147483647, %v338_v35  ;;  %v8951_v28 = vcombine.high %v10107_v36, %v698_v26  ;;  %v8950_v12 = vcombine.low %v10107_v36, %v698_v26  ;;  %3658 = vmatpush1.bf16.msra.mxu1 %v9086_v27  ;;  %3597 = vmatprep.mubr.bf16.mxu1 %v10141_v4 }
  0xab   :  { %v826_v45 = vld [vmem:[#allocation7 + $0xda0] sm:$0xff]  ;;  %v10148_v34 = vpack.c.bf16 %v366_v3, %v366_v3  ;;  %v357_v35 = vand.u32 2147483647, %v333_v8  ;;  %v365_v36 = vand.u32 2147483647, %v341_v10  ;;  %v10153_v11 = vpack.c.bf16 %v363_v25, %v355_v49 }
  0xac   :  { %v10128_v63 = vpack.c.bf16 %v362_v44, %v354_v18  ;;  %v9079_v1 = vcombine.high %v822_v41, %v826_v45  ;;  %v686_v2 = vld [vmem:[#allocation7 + $0x940] sm:$0xff]  ;;  %3608 = vmatprep.subr.bf16.mxu0 %v8951_v28  ;;  %v9078_v16 = vcombine.low %v822_v41, %v826_v45 }
  0xad   :  { %v690_v5 = vld [vmem:[#allocation7 + $0x960] sm:$0xff]  ;;  %3609 = vmatpush1.bf16.msra.mxu0 %v8950_v12  ;;  %v10156_v45 = vpack.c.bf16 %v365_v36, %v357_v35 }
  0xae   :  { %v814_v6 = vld [vmem:[#allocation7 + $0xd40] sm:$0xff]  ;;  %v8943_v19 = vcombine.high %v686_v2, %v690_v5  ;;  %3659 = vmatprep.subr.bf16.mxu1 %v9079_v1  ;;  %v8942_v37 = vcombine.low %v686_v2, %v690_v5 }
  0xaf   :  { %v818_v7 = vld [vmem:[#allocation7 + $0xd60] sm:$0xff]  ;;  %3660 = vmatpush1.bf16.msra.mxu1 %v9078_v16  ;;  %3547 = vmatmul.mubr.bf16.gmra.mxu0 %v10148_v34 }
  0xb0   :  { %v9071_v22 = vcombine.high %v814_v6, %v818_v7  ;;  %v678_v23 = vld [vmem:[#allocation7 + $0x900] sm:$0xff]  ;;  %3610 = vmatprep.subr.bf16.mxu0 %v8943_v19  ;;  %v9070_v39 = vcombine.low %v814_v6, %v818_v7  ;;  %3638 = vmatprep.mubr.bf16.mxu0 %v10153_v11 }
  0xb1   :  { %v682_v31 = vld [vmem:[#allocation7 + $0x920] sm:$0xff]  ;;  %3611 = vmatpush1.bf16.msra.mxu0 %v8942_v37  ;;  %3598 = vmatmul.mubr.bf16.gmra.mxu1 %v10151_v38 }
  0xb2   :  { %v806_v29 = vld [vmem:[#allocation7 + $0xd00] sm:$0xff]  ;;  %v8935_v40 = vcombine.high %v678_v23, %v682_v31  ;;  %3661 = vmatprep.subr.bf16.mxu1 %v9071_v22  ;;  %v8934_v50 = vcombine.low %v678_v23, %v682_v31  ;;  %3689 = vmatprep.mubr.bf16.mxu1 %v10156_v45 }
  0xb3   :  { %v810_v32 = vld [vmem:[#allocation7 + $0xd20] sm:$0xff]  ;;  %3662 = vmatpush1.bf16.msra.mxu1 %v9070_v39 }
  0xb4   :  { %v9063_v26 = vcombine.high %v806_v29, %v810_v32  ;;  %v670_v41 = vld [vmem:[#allocation7 + $0x8c0] sm:$0xff]  ;;  %3612 = vmatprep.subr.bf16.mxu0 %v8935_v40  ;;  %v9062_v51 = vcombine.low %v806_v29, %v810_v32 }
  0xb5   :  { %v674_v43 = vld [vmem:[#allocation7 + $0x8e0] sm:$0xff]  ;;  %3613 = vmatpush1.bf16.msra.mxu0 %v8934_v50 }
  0xb6   :  { %v798_v18 = vld [vmem:[#allocation7 + $0xcc0] sm:$0xff]  ;;  %v8927_v52 = vcombine.high %v670_v41, %v674_v43  ;;  %3663 = vmatprep.subr.bf16.mxu1 %v9063_v26  ;;  %v8926_v1 = vcombine.low %v670_v41, %v674_v43 }
  0xb7   :  { %v802_v44 = vld [vmem:[#allocation7 + $0xce0] sm:$0xff]  ;;  %3664 = vmatpush1.bf16.msra.mxu1 %v9062_v51 }
  0xb8   :  { %v9055_v53 = vcombine.high %v798_v18, %v802_v44  ;;  %v662_v56 = vld [vmem:[#allocation7 + $0x880] sm:$0xff]  ;;  %3614 = vmatprep.subr.bf16.mxu0 %v8927_v52  ;;  %v9054_v2 = vcombine.low %v798_v18, %v802_v44 }
  0xb9   :  { %v666_v57 = vld [vmem:[#allocation7 + $0x8a0] sm:$0xff]  ;;  %3615 = vmatpush1.bf16.msra.mxu0 %v8926_v1 }
  0xba   :  { %v790_v27 = vld [vmem:[#allocation7 + $0xc80] sm:$0xff]  ;;  %v8919_v5 = vcombine.high %v662_v56, %v666_v57  ;;  %3665 = vmatprep.subr.bf16.mxu1 %v9055_v53  ;;  %v8918_v8 = vcombine.low %v662_v56, %v666_v57 }
  0xbb   :  { %v794_v28 = vld [vmem:[#allocation7 + $0xca0] sm:$0xff]  ;;  %3666 = vmatpush1.bf16.msra.mxu1 %v9054_v2 }
  0xbc   :  { %v9047_v42 = vcombine.high %v790_v27, %v794_v28  ;;  %v654_v61 = vld [vmem:[#allocation7 + $0x840] sm:$0xff]  ;;  %3616 = vmatprep.subr.bf16.mxu0 %v8919_v5  ;;  %v9046_v10 = vcombine.low %v790_v27, %v794_v28 }
  0xbd   :  { %v658_v6 = vld [vmem:[#allocation7 + $0x860] sm:$0xff]  ;;  %3617 = vmatpush1.bf16.msra.mxu0 %v8918_v8 }
  0xbe   :  { %v782_v7 = vld [vmem:[#allocation7 + $0xc40] sm:$0xff]  ;;  %v8911_v12 = vcombine.high %v654_v61, %v658_v6  ;;  %3667 = vmatprep.subr.bf16.mxu1 %v9047_v42  ;;  %v8910_v31 = vcombine.low %v654_v61, %v658_v6 }
  0xbf   :  { %v786_v3 = vld [vmem:[#allocation7 + $0xc60] sm:$0xff]  ;;  %3668 = vmatpush1.bf16.msra.mxu1 %v9046_v10 }
  0xc0   :  { %v9039_v13 = vcombine.high %v782_v7, %v786_v3  ;;  %v646_v16 = vld [vmem:[#allocation7 + $0x800] sm:$0xff]  ;;  %3618 = vmatprep.subr.bf16.mxu0 %v8911_v12  ;;  %v9038_v49 = vcombine.low %v782_v7, %v786_v3 }
  0xc1   :  { %v650_v19 = vld [vmem:[#allocation7 + $0x820] sm:$0xff]  ;;  %3619 = vmatpush1.bf16.msra.mxu0 %v8910_v31 }
  0xc2   :  { %v774_v22 = vld [vmem:[#allocation7 + $0xc00] sm:$0xff]  ;;  %v8903_v25 = vcombine.high %v646_v16, %v650_v19  ;;  %3669 = vmatprep.subr.bf16.mxu1 %v9039_v13  ;;  %v8902_v39 = vcombine.low %v646_v16, %v650_v19 }
  0xc3   :  { %v778_v23 = vld [vmem:[#allocation7 + $0xc20] sm:$0xff]  ;;  %3670 = vmatpush1.bf16.msra.mxu1 %v9038_v49 }
  0xc4   :  { %v9031_v29 = vcombine.high %v774_v22, %v778_v23  ;;  %v766_v32 = vld [vmem:[#allocation7 + $0xbc0] sm:$0xff]  ;;  %3620 = vmatprep.subr.bf16.mxu0 %v8903_v25  ;;  %v9030_v40 = vcombine.low %v774_v22, %v778_v23 }
  0xc5   :  { %v770_v35 = vld [vmem:[#allocation7 + $0xbe0] sm:$0xff]  ;;  %3621 = vmatpush1.bf16.msra.mxu0 %v8902_v39 }
  0xc6   :  { %v894_v36 = vld [vmem:[#allocation7 + $0xfc0] sm:$0xff]  ;;  %v9023_v26 = vcombine.high %v766_v32, %v770_v35  ;;  %3671 = vmatprep.subr.bf16.mxu1 %v9031_v29  ;;  %v9022_v51 = vcombine.low %v766_v32, %v770_v35 }
  0xc7   :  { %v898_v37 = vld [vmem:[#allocation7 + $0xfe0] sm:$0xff]  ;;  %3672 = vmatpush1.bf16.msra.mxu1 %v9030_v40 }
  0xc8   :  { %v9151_v41 = vcombine.high %v894_v36, %v898_v37  ;;  %v758_v43 = vld [vmem:[#allocation7 + $0xb80] sm:$0xff]  ;;  %3622 = vmatprep.subr.bf16.mxu0 %v9023_v26  ;;  %v9150_v52 = vcombine.low %v894_v36, %v898_v37 }
  0xc9   :  { %v762_v18 = vld [vmem:[#allocation7 + $0xba0] sm:$0xff]  ;;  %3623 = vmatpush2.bf16.msra.mxu0 %v9022_v51 }
  0xca   :  { %v886_v44 = vld [vmem:[#allocation7 + $0xf80] sm:$0xff]  ;;  %v9015_v53 = vcombine.high %v758_v43, %v762_v18  ;;  %3673 = vmatprep.subr.bf16.mxu1 %v9151_v41  ;;  %v9014_v2 = vcombine.low %v758_v43, %v762_v18 }
  0xcb   :  { %v890_v50 = vld [vmem:[#allocation7 + $0xfa0] sm:$0xff]  ;;  %3674 = vmatpush2.bf16.msra.mxu1 %v9150_v52 }
  0xcc   :  { %v9143_v56 = vcombine.high %v886_v44, %v890_v50  ;;  %v750_v57 = vld [vmem:[#allocation7 + $0xb40] sm:$0xff]  ;;  %3624 = vmatprep.subr.bf16.mxu0 %v9015_v53  ;;  %v9142_v5 = vcombine.low %v886_v44, %v890_v50 }
  0xcd   :  { %v754_v27 = vld [vmem:[#allocation7 + $0xb60] sm:$0xff]  ;;  %3625 = vmatpush2.bf16.msra.mxu0 %v9014_v2 }
  0xce   :  { %v878_v28 = vld [vmem:[#allocation7 + $0xf40] sm:$0xff]  ;;  %v9007_v42 = vcombine.high %v750_v57, %v754_v27  ;;  %3675 = vmatprep.subr.bf16.mxu1 %v9143_v56  ;;  %v9006_v10 = vcombine.low %v750_v57, %v754_v27 }
  0xcf   :  { %v882_v1 = vld [vmem:[#allocation7 + $0xf60] sm:$0xff]  ;;  %3676 = vmatpush2.bf16.msra.mxu1 %v9142_v5 }
  0xd0   :  { %v9135_v61 = vcombine.high %v878_v28, %v882_v1  ;;  %v742_v6 = vld [vmem:[#allocation7 + $0xb00] sm:$0xff]  ;;  %3626 = vmatprep.subr.bf16.mxu0 %v9007_v42  ;;  %v9134_v12 = vcombine.low %v878_v28, %v882_v1  ;;  %v293_v1 = vrot.slane %v10026_v33, %v10041_v46  ;;  %v301_v42 = vrot.slane %v10026_v33, %v10082_v14 }
  0xd1   :  { %v746_v7 = vld [vmem:[#allocation7 + $0xb20] sm:$0xff]  ;;  %3627 = vmatpush2.bf16.msra.mxu0 %v9006_v10  ;;  %v451_v10 = vld [vmem:[#allocation7 + $0x1e8] sm:$0xff] }
  0xd2   :  { %v870_v3 = vld [vmem:[#allocation7 + $0xf00] sm:$0xff]  ;;  %v8999_v13 = vcombine.high %v742_v6, %v746_v7  ;;  %3677 = vmatprep.subr.bf16.mxu1 %v9135_v61  ;;  %v8998_v49 = vcombine.low %v742_v6, %v746_v7 }
  0xd3   :  { %v874_v8 = vld [vmem:[#allocation7 + $0xf20] sm:$0xff]  ;;  %3678 = vmatpush2.bf16.msra.mxu1 %v9134_v12  ;;  %v347_v12 = vsub.f32 %v10115_v48, %v293_v1  ;;  %v443_v48 = vld [vmem:[#allocation7 + $0x1a8] sm:$0xff] }
  0xd4   :  { %v9127_v16 = vcombine.high %v870_v3, %v874_v8  ;;  %v734_v19 = vld [vmem:[#allocation7 + $0xac0] sm:$0xff]  ;;  %3628 = vmatprep.subr.bf16.mxu0 %v8999_v13  ;;  %v9126_v25 = vcombine.low %v870_v3, %v874_v8  ;;  %v447_v8 = vld [vmem:[#allocation7 + $0x1c8] sm:$0xff] }
  0xd5   :  { %v738_v22 = vld [vmem:[#allocation7 + $0xae0] sm:$0xff]  ;;  %3629 = vmatpush2.bf16.msra.mxu0 %v8998_v49  ;;  %v575_v13 = vld [vmem:[#allocation7 + $0x5c8] sm:$0xff] }
  0xd6   :  { %v862_v23 = vld [vmem:[#allocation7 + $0xec0] sm:$0xff]  ;;  %v8991_v29 = vcombine.high %v734_v19, %v738_v22  ;;  %3679 = vmatprep.subr.bf16.mxu1 %v9127_v16  ;;  %v8990_v40 = vcombine.low %v734_v19, %v738_v22  ;;  %v579_v16 = vld [vmem:[#allocation7 + $0x5e8] sm:$0xff]  ;;  %v289_v19 = vrot.slane %v10026_v33, %v10044_v47  ;;  %v349_v22 = vsub.f32 %v10126_v59, %v301_v42 }
  0xd7   :  { %v866_v31 = vld [vmem:[#allocation7 + $0xee0] sm:$0xff]  ;;  %3680 = vmatpush2.bf16.msra.mxu1 %v9126_v25  ;;  %v8705_v25 = vcombine.high %v447_v8, %v451_v10  ;;  %v8704_v59 = vcombine.low %v447_v8, %v451_v10  ;;  %v423_v1 = vld [vmem:[#allocation7 + $0x108] sm:$0xff] }
  0xd8   :  { %v9119_v32 = vcombine.high %v862_v23, %v866_v31  ;;  %v726_v35 = vld [vmem:[#allocation7 + $0xa80] sm:$0xff]  ;;  %3630 = vmatprep.subr.bf16.mxu0 %v8991_v29  ;;  %v9118_v26 = vcombine.low %v862_v23, %v866_v31  ;;  %v297_v31 = vrot.slane %v10026_v33, %v10055_v54  ;;  %v8833_v29 = vcombine.high %v575_v13, %v579_v16  ;;  %v551_v42 = vld [vmem:[#allocation7 + $0x508] sm:$0xff] }
  0xd9   :  { %v730_v36 = vld [vmem:[#allocation7 + $0xaa0] sm:$0xff]  ;;  %3631 = vmatpush2.bf16.msra.mxu0 %v8990_v40  ;;  %v373_v40 = vand.u32 2147483647, %v349_v22  ;;  %v8832_v33 = vcombine.low %v575_v13, %v579_v16  ;;  %v419_v13 = vld [vmem:[#allocation7 + $0xe8] sm:$0xff] }
  0xda   :  { %v854_v37 = vld [vmem:[#allocation7 + $0xe80] sm:$0xff]  ;;  %v8983_v41 = vcombine.high %v726_v35, %v730_v36  ;;  %3681 = vmatprep.subr.bf16.mxu1 %v9119_v32  ;;  %v8982_v52 = vcombine.low %v726_v35, %v730_v36  ;;  %v439_v32 = vld [vmem:[#allocation7 + $0x188] sm:$0xff]  ;;  %v371_v35 = vand.u32 2147483647, %v347_v12 }
  0xdb   :  { %v858_v39 = vld [vmem:[#allocation7 + $0xea0] sm:$0xff]  ;;  %3682 = vmatpush2.bf16.msra.mxu1 %v9118_v26  ;;  %v567_v36 = vld [vmem:[#allocation7 + $0x588] sm:$0xff]  ;;  %v348_v26 = vsub.f32 %v10092_v24, %v297_v31  ;;  %v8696_v24 = vcombine.low %v439_v32, %v443_v48 }
  0xdc   :  { %v9111_v43 = vcombine.high %v854_v37, %v858_v39  ;;  %v718_v18 = vld [vmem:[#allocation7 + $0xa40] sm:$0xff]  ;;  %3632 = vmatprep.subr.bf16.mxu0 %v8983_v41  ;;  %v9110_v53 = vcombine.low %v854_v37, %v858_v39  ;;  %v571_v37 = vld [vmem:[#allocation7 + $0x5a8] sm:$0xff]  ;;  %v346_v39 = vsub.f32 %v10084_v15, %v289_v19  ;;  %v8697_v41 = vcombine.high %v439_v32, %v443_v48 }
  0xdd   :  { %v722_v44 = vld [vmem:[#allocation7 + $0xa60] sm:$0xff]  ;;  %3633 = vmatpush2.bf16.msra.mxu0 %v8982_v52  ;;  %v559_v52 = vld [vmem:[#allocation7 + $0x548] sm:$0xff] }
  0xde   :  { %v846_v50 = vld [vmem:[#allocation7 + $0xe40] sm:$0xff]  ;;  %v8975_v56 = vcombine.high %v718_v18, %v722_v44  ;;  %3683 = vmatprep.subr.bf16.mxu1 %v9111_v43  ;;  %v8974_v61 = vcombine.low %v718_v18, %v722_v44  ;;  %v8825_v43 = vcombine.high %v567_v36, %v571_v37  ;;  %v10173_v18 = vpack.c.bf16 %v371_v35, %v371_v35  ;;  %v431_v44 = vld [vmem:[#allocation7 + $0x148] sm:$0xff] }
  0xdf   :  { %v850_v51 = vld [vmem:[#allocation7 + $0xe60] sm:$0xff]  ;;  %3684 = vmatpush2.bf16.msra.mxu1 %v9110_v53  ;;  %v563_v15 = vld [vmem:[#allocation7 + $0x568] sm:$0xff]  ;;  %v10176_v53 = vpack.c.bf16 %v373_v40, %v373_v40 }
  0xe0   :  { %v9103_v57 = vcombine.high %v846_v50, %v850_v51  ;;  %v710_v27 = vld [vmem:[#allocation7 + $0xa00] sm:$0xff]  ;;  %3634 = vmatprep.subr.bf16.mxu0 %v8975_v56  ;;  %v9102_v6 = vcombine.low %v846_v50, %v850_v51  ;;  %v435_v50 = vld [vmem:[#allocation7 + $0x168] sm:$0xff]  ;;  %v370_v51 = vand.u32 2147483647, %v346_v39  ;;  %v372_v56 = vand.u32 2147483647, %v348_v26 }
  0xe1   :  { %v714_v28 = vld [vmem:[#allocation7 + $0xa20] sm:$0xff]  ;;  %3635 = vmatpush2.bf16.msra.mxu0 %v8974_v61  ;;  %v555_v61 = vld [vmem:[#allocation7 + $0x528] sm:$0xff] }
  0xe2   :  { %v838_v2 = vld [vmem:[#allocation7 + $0xe00] sm:$0xff]  ;;  %v8967_v7 = vcombine.high %v710_v27, %v714_v28  ;;  %3685 = vmatprep.subr.bf16.mxu1 %v9103_v57  ;;  %v8966_v23 = vcombine.low %v710_v27, %v714_v28  ;;  %v8824_v57 = vcombine.low %v567_v36, %v571_v37  ;;  %v8689_v27 = vcombine.high %v431_v44, %v435_v50  ;;  %v415_v12 = vld [vmem:[#allocation7 + $0xc8] sm:$0xff] }
  0xe3   :  { %v842_v5 = vld [vmem:[#allocation7 + $0xe20] sm:$0xff]  ;;  %3686 = vmatpush2.bf16.msra.mxu1 %v9102_v6  ;;  %v8817_v28 = vcombine.high %v559_v52, %v563_v15  ;;  %v8688_v6 = vcombine.low %v431_v44, %v435_v50  ;;  %v8809_v10 = vcombine.high %v551_v42, %v555_v61  ;;  %v543_v16 = vld [vmem:[#allocation7 + $0x4c8] sm:$0xff]  ;;  %v8673_v31 = vcombine.high %v415_v12, %v419_v13 }
  0xe4   :  { %v9095_v3 = vcombine.high %v838_v2, %v842_v5  ;;  %3636 = vmatprep.subr.bf16.mxu0 %v8967_v7  ;;  %v9094_v49 = vcombine.low %v838_v2, %v842_v5  ;;  %v427_v2 = vld [vmem:[#allocation7 + $0x128] sm:$0xff]  ;;  %v10180_v5 = vpack.c.bf16 %v370_v51, %v370_v51  ;;  %v10183_v7 = vpack.c.bf16 %v372_v56, %v372_v56 }
  0xe5   :  { %3637 = vmatpush2.bf16.msra.mxu0 %v8966_v23  ;;  %v8681_v8 = vcombine.high %v423_v1, %v427_v2  ;;  %v547_v19 = vld [vmem:[#allocation7 + $0x4e8] sm:$0xff]  ;;  %v8680_v22 = vcombine.low %v423_v1, %v427_v2  ;;  %v8808_v23 = vcombine.low %v551_v42, %v555_v61  ;;  %v8672_v35 = vcombine.low %v415_v12, %v419_v13 }
  0xe6   :  { %3687 = vmatprep.subr.bf16.mxu1 %v9095_v3  ;;  %3708 = vmatprep.subr.bf16.mxu0 %v8705_v25  ;;  %v8816_v3 = vcombine.low %v559_v52, %v563_v15  ;;  %v407_v25 = vld [vmem:[#allocation7 + $0x88] sm:$0xff]  ;;  %v8800_v36 = vcombine.low %v543_v16, %v547_v19 }
  0xe7   :  { %3688 = vmatpush2.bf16.msra.mxu1 %v9094_v49  ;;  %v8801_v49 = vcombine.high %v543_v16, %v547_v19  ;;  %v535_v32 = vld [vmem:[#allocation7 + $0x488] sm:$0xff] }
  0xe8   :  { %3759 = vmatprep.subr.bf16.mxu1 %v8833_v29  ;;  %3639 = vmatmul.mubr.bf16.vlgmr.msra.gmra.mxu0 %v10128_v63  ;;  %v411_v29 = vld [vmem:[#allocation7 + $0xa8] sm:$0xff] }
  0xe9   :  { %3709 = vmatpush1.bf16.msra.mxu0 %v8704_v59  ;;  %3648 = vmatprep.mubr.bf16.mxu0 %v10173_v18  ;;  %v539_v48 = vld [vmem:[#allocation7 + $0x4a8] sm:$0xff]  ;;  %v8665_v37 = vcombine.high %v407_v25, %v411_v29 }
  0xea   :  { %3690 = vmatmul.mubr.bf16.vlgmr.msra.gmra.mxu1 %v10133_v0  ;;  %3710 = vmatprep.subr.bf16.mxu0 %v8697_v41  ;;  %v8793_v39 = vcombine.high %v535_v32, %v539_v48  ;;  %v399_v40 = vld [vmem:[#allocation7 + $0x48] sm:$0xff]  ;;  %v8664_v41 = vcombine.low %v407_v25, %v411_v29 }
  0xeb   :  { %3760 = vmatpush1.bf16.msra.mxu1 %v8832_v33  ;;  %3699 = vmatprep.mubr.bf16.mxu1 %v10176_v53  ;;  %v403_v59 = vld [vmem:[#allocation7 + $0x68] sm:$0xff] }
  0xec   :  { %3761 = vmatprep.subr.bf16.mxu1 %v8825_v43  ;;  %v527_v26 = vld [vmem:[#allocation7 + $0x448] sm:$0xff]  ;;  %v8792_v43 = vcombine.low %v535_v32, %v539_v48  ;;  %v8657_v44 = vcombine.high %v399_v40, %v403_v59  ;;  %v8656_v56 = vcombine.low %v399_v40, %v403_v59 }
  0xed   :  { %3711 = vmatpush1.bf16.msra.mxu0 %v8696_v24  ;;  %v531_v33 = vld [vmem:[#allocation7 + $0x468] sm:$0xff] }
  0xee   :  { %3712 = vmatprep.subr.bf16.mxu0 %v8689_v27  ;;  %v8785_v50 = vcombine.high %v527_v26, %v531_v33  ;;  %v391_v51 = vld [vmem:[#allocation7 + $0x8] sm:$0xff] }
  0xef   :  { %3762 = vmatpush1.bf16.msra.mxu1 %v8824_v57  ;;  %v395_v52 = vld [vmem:[#allocation7 + $0x28] sm:$0xff]  ;;  %v8784_v57 = vcombine.low %v527_v26, %v531_v33 }
  0xf0   :  { %3763 = vmatprep.subr.bf16.mxu1 %v8817_v28  ;;  %3649 = vmatmul.mubr.bf16.gmra.mxu0 %v10180_v5  ;;  %v519_v15 = vld [vmem:[#allocation7 + $0x408] sm:$0xff]  ;;  %v8649_v27 = vcombine.high %v391_v51, %v395_v52 }
  0xf1   :  { %3713 = vmatpush1.bf16.msra.mxu0 %v8688_v6  ;;  %3740 = vmatprep.mubr.bf16.mxu0 %v10006_v58  ;;  %v523_v24 = vld [vmem:[#allocation7 + $0x428] sm:$0xff]  ;;  %v8648_v6 = vcombine.low %v391_v51, %v395_v52 }
  0xf2   :  { %3700 = vmatmul.mubr.bf16.gmra.mxu1 %v10183_v7  ;;  %3714 = vmatprep.subr.bf16.mxu0 %v8681_v8  ;;  %v8777_v28 = vcombine.high %v519_v15, %v523_v24  ;;  %v511_v1 = vld [vmem:[#allocation7 + $0x3c8] sm:$0xff] }
  0xf3   :  { %3764 = vmatpush1.bf16.msra.mxu1 %v8816_v3  ;;  %3791 = vmatprep.mubr.bf16.mxu1 %v10008_v62  ;;  %v515_v2 = vld [vmem:[#allocation7 + $0x3e8] sm:$0xff]  ;;  %v8776_v3 = vcombine.low %v519_v15, %v523_v24 }
  0xf4   :  { %3765 = vmatprep.subr.bf16.mxu1 %v8809_v10  ;;  %v639_v42 = vld [vmem:[#allocation7 + $0x7c8] sm:$0xff]  ;;  %v8769_v8 = vcombine.high %v511_v1, %v515_v2 }
  0xf5   :  { %3715 = vmatpush1.bf16.msra.mxu0 %v8680_v22  ;;  %v643_v61 = vld [vmem:[#allocation7 + $0x7e8] sm:$0xff]  ;;  %v8768_v22 = vcombine.low %v511_v1, %v515_v2 }
  0xf6   :  { %3716 = vmatprep.subr.bf16.mxu0 %v8673_v31  ;;  %v8897_v10 = vcombine.high %v639_v42, %v643_v61  ;;  %v503_v12 = vld [vmem:[#allocation7 + $0x388] sm:$0xff] }
  0xf7   :  { %3766 = vmatpush1.bf16.msra.mxu1 %v8808_v23  ;;  %v507_v13 = vld [vmem:[#allocation7 + $0x3a8] sm:$0xff]  ;;  %v8896_v23 = vcombine.low %v639_v42, %v643_v61 }
  0xf8   :  { %3767 = vmatprep.subr.bf16.mxu1 %v8801_v49  ;;  %v631_v16 = vld [vmem:[#allocation7 + $0x788] sm:$0xff]  ;;  %v8761_v31 = vcombine.high %v503_v12, %v507_v13 }
  0xf9   :  { %3717 = vmatpush1.bf16.msra.mxu0 %v8672_v35  ;;  %v635_v19 = vld [vmem:[#allocation7 + $0x7a8] sm:$0xff]  ;;  %v8760_v35 = vcombine.low %v503_v12, %v507_v13 }
  0xfa   :  { %3718 = vmatprep.subr.bf16.mxu0 %v8665_v37  ;;  %v8889_v49 = vcombine.high %v631_v16, %v635_v19  ;;  %v495_v25 = vld [vmem:[#allocation7 + $0x348] sm:$0xff] }
  0xfb   :  { %3768 = vmatpush1.bf16.msra.mxu1 %v8800_v36  ;;  %v499_v29 = vld [vmem:[#allocation7 + $0x368] sm:$0xff]  ;;  %v8888_v36 = vcombine.low %v631_v16, %v635_v19 }
  0xfc   :  { %3769 = vmatprep.subr.bf16.mxu1 %v8793_v39  ;;  %v623_v32 = vld [vmem:[#allocation7 + $0x748] sm:$0xff]  ;;  %v8753_v37 = vcombine.high %v495_v25, %v499_v29 }
  0xfd   :  { %3719 = vmatpush1.bf16.msra.mxu0 %v8664_v41  ;;  %v627_v48 = vld [vmem:[#allocation7 + $0x768] sm:$0xff]  ;;  %v8752_v41 = vcombine.low %v495_v25, %v499_v29 }
  0xfe   :  { %3720 = vmatprep.subr.bf16.mxu0 %v8657_v44  ;;  %v8881_v39 = vcombine.high %v623_v32, %v627_v48  ;;  %v487_v40 = vld [vmem:[#allocation7 + $0x308] sm:$0xff] }
  0xff   :  { %3770 = vmatpush1.bf16.msra.mxu1 %v8792_v43  ;;  %v491_v59 = vld [vmem:[#allocation7 + $0x328] sm:$0xff]  ;;  %v8880_v43 = vcombine.low %v623_v32, %v627_v48 }
 0x100   :  { %3771 = vmatprep.subr.bf16.mxu1 %v8785_v50  ;;  %v615_v26 = vld [vmem:[#allocation7 + $0x708] sm:$0xff]  ;;  %v8745_v44 = vcombine.high %v487_v40, %v491_v59 }
 0x101   :  { %3721 = vmatpush1.bf16.msra.mxu0 %v8656_v56  ;;  %v619_v33 = vld [vmem:[#allocation7 + $0x728] sm:$0xff]  ;;  %v8744_v56 = vcombine.low %v487_v40, %v491_v59 }
 0x102   :  { %3722 = vmatprep.subr.bf16.mxu0 %v8649_v27  ;;  %v8873_v50 = vcombine.high %v615_v26, %v619_v33  ;;  %v479_v51 = vld [vmem:[#allocation7 + $0x2c8] sm:$0xff] }
 0x103   :  { %3772 = vmatpush1.bf16.msra.mxu1 %v8784_v57  ;;  %v483_v52 = vld [vmem:[#allocation7 + $0x2e8] sm:$0xff]  ;;  %v8872_v57 = vcombine.low %v615_v26, %v619_v33 }
 0x104   :  { %3773 = vmatprep.subr.bf16.mxu1 %v8777_v28  ;;  %v607_v15 = vld [vmem:[#allocation7 + $0x6c8] sm:$0xff]  ;;  %v8737_v27 = vcombine.high %v479_v51, %v483_v52 }
 0x105   :  { %3723 = vmatpush1.bf16.msra.mxu0 %v8648_v6  ;;  %v611_v24 = vld [vmem:[#allocation7 + $0x6e8] sm:$0xff]  ;;  %v8736_v6 = vcombine.low %v479_v51, %v483_v52 }
 0x106   :  { %3724 = vmatprep.subr.bf16.mxu0 %v8769_v8  ;;  %v8865_v28 = vcombine.high %v607_v15, %v611_v24  ;;  %v471_v1 = vld [vmem:[#allocation7 + $0x288] sm:$0xff] }
 0x107   :  { %3774 = vmatpush1.bf16.msra.mxu1 %v8776_v3  ;;  %v475_v2 = vld [vmem:[#allocation7 + $0x2a8] sm:$0xff]  ;;  %v8864_v3 = vcombine.low %v607_v15, %v611_v24 }
 0x108   :  { %3775 = vmatprep.subr.bf16.mxu1 %v8897_v10  ;;  %v599_v42 = vld [vmem:[#allocation7 + $0x688] sm:$0xff]  ;;  %v8729_v8 = vcombine.high %v471_v1, %v475_v2 }
 0x109   :  { %3725 = vmatpush2.bf16.msra.mxu0 %v8768_v22  ;;  %v603_v61 = vld [vmem:[#allocation7 + $0x6a8] sm:$0xff]  ;;  %v8728_v22 = vcombine.low %v471_v1, %v475_v2 }
 0x10a   :  { %3726 = vmatprep.subr.bf16.mxu0 %v8761_v31  ;;  %v8857_v10 = vcombine.high %v599_v42, %v603_v61  ;;  %v463_v12 = vld [vmem:[#allocation7 + $0x248] sm:$0xff] }
 0x10b   :  { %3776 = vmatpush2.bf16.msra.mxu1 %v8896_v23  ;;  %v467_v13 = vld [vmem:[#allocation7 + $0x268] sm:$0xff]  ;;  %v8856_v23 = vcombine.low %v599_v42, %v603_v61 }
 0x10c   :  { %3777 = vmatprep.subr.bf16.mxu1 %v8889_v49  ;;  %v591_v16 = vld [vmem:[#allocation7 + $0x648] sm:$0xff]  ;;  %v8721_v31 = vcombine.high %v463_v12, %v467_v13 }
 0x10d   :  { %3727 = vmatpush2.bf16.msra.mxu0 %v8760_v35  ;;  %v595_v19 = vld [vmem:[#allocation7 + $0x668] sm:$0xff]  ;;  %v8720_v35 = vcombine.low %v463_v12, %v467_v13 }
 0x10e   :  { %3728 = vmatprep.subr.bf16.mxu0 %v8753_v37  ;;  %v8849_v49 = vcombine.high %v591_v16, %v595_v19  ;;  %v455_v25 = vld [vmem:[#allocation7 + $0x208] sm:$0xff] }
 0x10f   :  { %3778 = vmatpush2.bf16.msra.mxu1 %v8888_v36  ;;  %v459_v29 = vld [vmem:[#allocation7 + $0x228] sm:$0xff]  ;;  %v8848_v36 = vcombine.low %v591_v16, %v595_v19 }
 0x110   :  { %3779 = vmatprep.subr.bf16.mxu1 %v8881_v39  ;;  %v583_v32 = vld [vmem:[#allocation7 + $0x608] sm:$0xff]  ;;  %v8713_v37 = vcombine.high %v455_v25, %v459_v29 }
 0x111   :  { %3729 = vmatpush2.bf16.msra.mxu0 %v8752_v41  ;;  %v587_v48 = vld [vmem:[#allocation7 + $0x628] sm:$0xff]  ;;  %v8712_v41 = vcombine.low %v455_v25, %v459_v29 }
 0x112   :  { %3730 = vmatprep.subr.bf16.mxu0 %v8745_v44  ;;  %v8841_v39 = vcombine.high %v583_v32, %v587_v48  ;;  %v703_v40 = vld [vmem:[#allocation7 + $0x9c8] sm:$0xff] }
 0x113   :  { %3780 = vmatpush2.bf16.msra.mxu1 %v8880_v43  ;;  %v707_v59 = vld [vmem:[#allocation7 + $0x9e8] sm:$0xff]  ;;  %v8840_v43 = vcombine.low %v583_v32, %v587_v48 }
 0x114   :  { %3781 = vmatprep.subr.bf16.mxu1 %v8873_v50  ;;  %v831_v26 = vld [vmem:[#allocation7 + $0xdc8] sm:$0xff]  ;;  %v8961_v44 = vcombine.high %v703_v40, %v707_v59 }
 0x115   :  { %3731 = vmatpush2.bf16.msra.mxu0 %v8744_v56  ;;  %v835_v33 = vld [vmem:[#allocation7 + $0xde8] sm:$0xff]  ;;  %v8960_v56 = vcombine.low %v703_v40, %v707_v59 }
 0x116   :  { %3732 = vmatprep.subr.bf16.mxu0 %v8737_v27  ;;  %v9089_v50 = vcombine.high %v831_v26, %v835_v33  ;;  %v695_v51 = vld [vmem:[#allocation7 + $0x988] sm:$0xff] }
 0x117   :  { %3782 = vmatpush2.bf16.msra.mxu1 %v8872_v57  ;;  %v699_v52 = vld [vmem:[#allocation7 + $0x9a8] sm:$0xff]  ;;  %v9088_v57 = vcombine.low %v831_v26, %v835_v33 }
 0x118   :  { %3783 = vmatprep.subr.bf16.mxu1 %v8865_v28  ;;  %v823_v15 = vld [vmem:[#allocation7 + $0xd88] sm:$0xff]  ;;  %v8953_v27 = vcombine.high %v695_v51, %v699_v52 }
 0x119   :  { %3733 = vmatpush2.bf16.msra.mxu0 %v8736_v6  ;;  %v827_v24 = vld [vmem:[#allocation7 + $0xda8] sm:$0xff]  ;;  %v8952_v6 = vcombine.low %v695_v51, %v699_v52 }
 0x11a   :  { %3734 = vmatprep.subr.bf16.mxu0 %v8729_v8  ;;  %v9081_v28 = vcombine.high %v823_v15, %v827_v24  ;;  %v687_v1 = vld [vmem:[#allocation7 + $0x948] sm:$0xff] }
 0x11b   :  { %3784 = vmatpush2.bf16.msra.mxu1 %v8864_v3  ;;  %v691_v2 = vld [vmem:[#allocation7 + $0x968] sm:$0xff]  ;;  %v9080_v3 = vcombine.low %v823_v15, %v827_v24 }
 0x11c   :  { %3785 = vmatprep.subr.bf16.mxu1 %v8857_v10  ;;  %v815_v42 = vld [vmem:[#allocation7 + $0xd48] sm:$0xff]  ;;  %v8945_v8 = vcombine.high %v687_v1, %v691_v2 }
 0x11d   :  { %3735 = vmatpush2.bf16.msra.mxu0 %v8728_v22  ;;  %v819_v61 = vld [vmem:[#allocation7 + $0xd68] sm:$0xff]  ;;  %v8944_v22 = vcombine.low %v687_v1, %v691_v2 }
 0x11e   :  { %3736 = vmatprep.subr.bf16.mxu0 %v8721_v31  ;;  %v9073_v10 = vcombine.high %v815_v42, %v819_v61  ;;  %v679_v12 = vld [vmem:[#allocation7 + $0x908] sm:$0xff] }
 0x11f   :  { %3786 = vmatpush2.bf16.msra.mxu1 %v8856_v23  ;;  %v683_v13 = vld [vmem:[#allocation7 + $0x928] sm:$0xff]  ;;  %v9072_v23 = vcombine.low %v815_v42, %v819_v61 }
 0x120   :  { %3787 = vmatprep.subr.bf16.mxu1 %v8849_v49  ;;  %v807_v16 = vld [vmem:[#allocation7 + $0xd08] sm:$0xff]  ;;  %v8937_v31 = vcombine.high %v679_v12, %v683_v13 }
 0x121   :  { %3737 = vmatpush2.bf16.msra.mxu0 %v8720_v35  ;;  %v811_v19 = vld [vmem:[#allocation7 + $0xd28] sm:$0xff]  ;;  %v8936_v35 = vcombine.low %v679_v12, %v683_v13 }
 0x122   :  { %3738 = vmatprep.subr.bf16.mxu0 %v8713_v37  ;;  %v9065_v49 = vcombine.high %v807_v16, %v811_v19  ;;  %v671_v25 = vld [vmem:[#allocation7 + $0x8c8] sm:$0xff] }
 0x123   :  { %3788 = vmatpush2.bf16.msra.mxu1 %v8848_v36  ;;  %v675_v29 = vld [vmem:[#allocation7 + $0x8e8] sm:$0xff]  ;;  %v9064_v36 = vcombine.low %v807_v16, %v811_v19 }
 0x124   :  { %3789 = vmatprep.subr.bf16.mxu1 %v8841_v39  ;;  %v799_v32 = vld [vmem:[#allocation7 + $0xcc8] sm:$0xff]  ;;  %v8929_v37 = vcombine.high %v671_v25, %v675_v29 }
 0x125   :  { %3739 = vmatpush2.bf16.msra.mxu0 %v8712_v41  ;;  %v803_v48 = vld [vmem:[#allocation7 + $0xce8] sm:$0xff]  ;;  %v8928_v41 = vcombine.low %v671_v25, %v675_v29 }
 0x126   :  { %3810 = vmatprep.subr.bf16.mxu0 %v8961_v44  ;;  %v9057_v39 = vcombine.high %v799_v32, %v803_v48  ;;  %v663_v40 = vld [vmem:[#allocation7 + $0x888] sm:$0xff] }
 0x127   :  { %3790 = vmatpush2.bf16.msra.mxu1 %v8840_v43  ;;  %v667_v59 = vld [vmem:[#allocation7 + $0x8a8] sm:$0xff]  ;;  %v9056_v43 = vcombine.low %v799_v32, %v803_v48 }
 0x128   :  { %3861 = vmatprep.subr.bf16.mxu1 %v9089_v50  ;;  %3741 = vmatmul.mubr.bf16.vlgmr.msra.gmra.mxu0 %v10094_v30  ;;  %v791_v26 = vld [vmem:[#allocation7 + $0xc88] sm:$0xff]  ;;  %v8921_v44 = vcombine.high %v663_v40, %v667_v59 }
 0x129   :  { %3811 = vmatpush1.bf16.msra.mxu0 %v8960_v56  ;;  %3750 = vmatprep.mubr.bf16.mxu0 %v10135_v60  ;;  %v795_v33 = vld [vmem:[#allocation7 + $0xca8] sm:$0xff]  ;;  %v8920_v56 = vcombine.low %v663_v40, %v667_v59 }
 0x12a   :  { %3792 = vmatmul.mubr.bf16.vlgmr.msra.gmra.mxu1 %v10121_v55  ;;  %3812 = vmatprep.subr.bf16.mxu0 %v8953_v27  ;;  %v9049_v50 = vcombine.high %v791_v26, %v795_v33  ;;  %v655_v51 = vld [vmem:[#allocation7 + $0x848] sm:$0xff] }
 0x12b   :  { %3862 = vmatpush1.bf16.msra.mxu1 %v9088_v57  ;;  %3801 = vmatprep.mubr.bf16.mxu1 %v10141_v4  ;;  %v659_v52 = vld [vmem:[#allocation7 + $0x868] sm:$0xff]  ;;  %v9048_v57 = vcombine.low %v791_v26, %v795_v33 }
 0x12c   :  { %3863 = vmatprep.subr.bf16.mxu1 %v9081_v28  ;;  %v783_v15 = vld [vmem:[#allocation7 + $0xc48] sm:$0xff]  ;;  %v8913_v27 = vcombine.high %v655_v51, %v659_v52 }
 0x12d   :  { %3813 = vmatpush1.bf16.msra.mxu0 %v8952_v6  ;;  %v787_v24 = vld [vmem:[#allocation7 + $0xc68] sm:$0xff]  ;;  %v8912_v6 = vcombine.low %v655_v51, %v659_v52 }
 0x12e   :  { %3814 = vmatprep.subr.bf16.mxu0 %v8945_v8  ;;  %v9041_v28 = vcombine.high %v783_v15, %v787_v24  ;;  %v647_v1 = vld [vmem:[#allocation7 + $0x808] sm:$0xff] }
 0x12f   :  { %3864 = vmatpush1.bf16.msra.mxu1 %v9080_v3  ;;  %v651_v2 = vld [vmem:[#allocation7 + $0x828] sm:$0xff]  ;;  %v9040_v3 = vcombine.low %v783_v15, %v787_v24 }
 0x130   :  { %3865 = vmatprep.subr.bf16.mxu1 %v9073_v10  ;;  %3751 = vmatmul.mubr.bf16.gmra.mxu0 %v10148_v34  ;;  %v775_v42 = vld [vmem:[#allocation7 + $0xc08] sm:$0xff]  ;;  %v8905_v8 = vcombine.high %v647_v1, %v651_v2 }
 0x131   :  { %3815 = vmatpush1.bf16.msra.mxu0 %v8944_v22  ;;  %3842 = vmatprep.mubr.bf16.mxu0 %v10153_v11  ;;  %v779_v61 = vld [vmem:[#allocation7 + $0xc28] sm:$0xff]  ;;  %v8904_v22 = vcombine.low %v647_v1, %v651_v2 }
 0x132   :  { %3802 = vmatmul.mubr.bf16.gmra.mxu1 %v10151_v38  ;;  %3816 = vmatprep.subr.bf16.mxu0 %v8937_v31  ;;  %v9033_v10 = vcombine.high %v775_v42, %v779_v61  ;;  %v767_v12 = vld [vmem:[#allocation7 + $0xbc8] sm:$0xff] }
 0x133   :  { %3866 = vmatpush1.bf16.msra.mxu1 %v9072_v23  ;;  %3893 = vmatprep.mubr.bf16.mxu1 %v10156_v45  ;;  %v771_v13 = vld [vmem:[#allocation7 + $0xbe8] sm:$0xff]  ;;  %v9032_v23 = vcombine.low %v775_v42, %v779_v61 }
 0x134   :  { %3867 = vmatprep.subr.bf16.mxu1 %v9065_v49  ;;  %v895_v16 = vld [vmem:[#allocation7 + $0xfc8] sm:$0xff]  ;;  %v9025_v31 = vcombine.high %v767_v12, %v771_v13 }
 0x135   :  { %3817 = vmatpush1.bf16.msra.mxu0 %v8936_v35  ;;  %v899_v19 = vld [vmem:[#allocation7 + $0xfe8] sm:$0xff]  ;;  %v9024_v35 = vcombine.low %v767_v12, %v771_v13 }
 0x136   :  { %3818 = vmatprep.subr.bf16.mxu0 %v8929_v37  ;;  %v9153_v49 = vcombine.high %v895_v16, %v899_v19  ;;  %v759_v25 = vld [vmem:[#allocation7 + $0xb88] sm:$0xff] }
 0x137   :  { %3868 = vmatpush1.bf16.msra.mxu1 %v9064_v36  ;;  %v763_v29 = vld [vmem:[#allocation7 + $0xba8] sm:$0xff]  ;;  %v9152_v36 = vcombine.low %v895_v16, %v899_v19 }
 0x138   :  { %3869 = vmatprep.subr.bf16.mxu1 %v9057_v39  ;;  %v887_v32 = vld [vmem:[#allocation7 + $0xf88] sm:$0xff]  ;;  %v9017_v37 = vcombine.high %v759_v25, %v763_v29 }
 0x139   :  { %3819 = vmatpush1.bf16.msra.mxu0 %v8928_v41  ;;  %v891_v48 = vld [vmem:[#allocation7 + $0xfa8] sm:$0xff]  ;;  %v9016_v41 = vcombine.low %v759_v25, %v763_v29 }
 0x13a   :  { %3820 = vmatprep.subr.bf16.mxu0 %v8921_v44  ;;  %v9145_v39 = vcombine.high %v887_v32, %v891_v48  ;;  %v751_v40 = vld [vmem:[#allocation7 + $0xb48] sm:$0xff] }
 0x13b   :  { %3870 = vmatpush1.bf16.msra.mxu1 %v9056_v43  ;;  %v755_v59 = vld [vmem:[#allocation7 + $0xb68] sm:$0xff]  ;;  %v9144_v43 = vcombine.low %v887_v32, %v891_v48 }
 0x13c   :  { %3871 = vmatprep.subr.bf16.mxu1 %v9049_v50  ;;  %v879_v26 = vld [vmem:[#allocation7 + $0xf48] sm:$0xff]  ;;  %v9009_v44 = vcombine.high %v751_v40, %v755_v59 }
 0x13d   :  { %3821 = vmatpush1.bf16.msra.mxu0 %v8920_v56  ;;  %v883_v33 = vld [vmem:[#allocation7 + $0xf68] sm:$0xff]  ;;  %v9008_v56 = vcombine.low %v751_v40, %v755_v59 }
 0x13e   :  { %3822 = vmatprep.subr.bf16.mxu0 %v8913_v27  ;;  %v9137_v50 = vcombine.high %v879_v26, %v883_v33  ;;  %v743_v51 = vld [vmem:[#allocation7 + $0xb08] sm:$0xff] }
 0x13f   :  { %3872 = vmatpush1.bf16.msra.mxu1 %v9048_v57  ;;  %v747_v52 = vld [vmem:[#allocation7 + $0xb28] sm:$0xff]  ;;  %v9136_v57 = vcombine.low %v879_v26, %v883_v33 }
 0x140   :  { %3873 = vmatprep.subr.bf16.mxu1 %v9041_v28  ;;  %v871_v15 = vld [vmem:[#allocation7 + $0xf08] sm:$0xff]  ;;  %v9001_v27 = vcombine.high %v743_v51, %v747_v52 }
 0x141   :  { %3823 = vmatpush1.bf16.msra.mxu0 %v8912_v6  ;;  %v875_v24 = vld [vmem:[#allocation7 + $0xf28] sm:$0xff]  ;;  %v9000_v6 = vcombine.low %v743_v51, %v747_v52  ;;  %v448_v51 = vld [vmem:[#allocation7 + $0x1d0] sm:$0xff] }
 0x142   :  { %3824 = vmatprep.subr.bf16.mxu0 %v8905_v8  ;;  %v9129_v28 = vcombine.high %v871_v15, %v875_v24  ;;  %v735_v1 = vld [vmem:[#allocation7 + $0xac8] sm:$0xff]  ;;  %v452_v52 = vld [vmem:[#allocation7 + $0x1f0] sm:$0xff] }
 0x143   :  { %3874 = vmatpush1.bf16.msra.mxu1 %v9040_v3  ;;  %v739_v2 = vld [vmem:[#allocation7 + $0xae8] sm:$0xff]  ;;  %v9128_v3 = vcombine.low %v871_v15, %v875_v24  ;;  %v576_v15 = vld [vmem:[#allocation7 + $0x5d0] sm:$0xff] }
 0x144   :  { %3875 = vmatprep.subr.bf16.mxu1 %v9033_v10  ;;  %v863_v42 = vld [vmem:[#allocation7 + $0xec8] sm:$0xff]  ;;  %v8993_v8 = vcombine.high %v735_v1, %v739_v2  ;;  %v580_v24 = vld [vmem:[#allocation7 + $0x5f0] sm:$0xff] }
 0x145   :  { %3825 = vmatpush1.bf16.msra.mxu0 %v8904_v22  ;;  %v867_v61 = vld [vmem:[#allocation7 + $0xee8] sm:$0xff]  ;;  %v8992_v22 = vcombine.low %v735_v1, %v739_v2  ;;  %v8835_v1 = vcombine.high %v576_v15, %v580_v24  ;;  %v440_v2 = vld [vmem:[#allocation7 + $0x190] sm:$0xff] }
 0x146   :  { %3826 = vmatprep.subr.bf16.mxu0 %v9025_v31  ;;  %v9121_v10 = vcombine.high %v863_v42, %v867_v61  ;;  %v727_v12 = vld [vmem:[#allocation7 + $0xa88] sm:$0xff] }
 0x147   :  { %3876 = vmatpush1.bf16.msra.mxu1 %v9032_v23  ;;  %v731_v13 = vld [vmem:[#allocation7 + $0xaa8] sm:$0xff]  ;;  %v9120_v23 = vcombine.low %v863_v42, %v867_v61  ;;  %v444_v42 = vld [vmem:[#allocation7 + $0x1b0] sm:$0xff] }
 0x148   :  { %3877 = vmatprep.subr.bf16.mxu1 %v9153_v49  ;;  %v855_v16 = vld [vmem:[#allocation7 + $0xe88] sm:$0xff]  ;;  %v8985_v31 = vcombine.high %v727_v12, %v731_v13  ;;  %v568_v61 = vld [vmem:[#allocation7 + $0x590] sm:$0xff] }
 0x149   :  { %3827 = vmatpush2.bf16.msra.mxu0 %v9024_v35  ;;  %v859_v19 = vld [vmem:[#allocation7 + $0xea8] sm:$0xff]  ;;  %v8984_v35 = vcombine.low %v727_v12, %v731_v13  ;;  %v8699_v12 = vcombine.high %v440_v2, %v444_v42 }
 0x14a   :  { %3828 = vmatprep.subr.bf16.mxu0 %v9017_v37  ;;  %v9113_v49 = vcombine.high %v855_v16, %v859_v19  ;;  %v719_v25 = vld [vmem:[#allocation7 + $0xa48] sm:$0xff] }
 0x14b   :  { %3878 = vmatpush2.bf16.msra.mxu1 %v9152_v36  ;;  %v723_v29 = vld [vmem:[#allocation7 + $0xa68] sm:$0xff]  ;;  %v9112_v36 = vcombine.low %v855_v16, %v859_v19  ;;  %v432_v19 = vld [vmem:[#allocation7 + $0x150] sm:$0xff] }
 0x14c   :  { %3879 = vmatprep.subr.bf16.mxu1 %v9145_v39  ;;  %v847_v32 = vld [vmem:[#allocation7 + $0xe48] sm:$0xff]  ;;  %v8977_v37 = vcombine.high %v719_v25, %v723_v29 }
 0x14d   :  { %3829 = vmatpush2.bf16.msra.mxu0 %v9016_v41  ;;  %v851_v48 = vld [vmem:[#allocation7 + $0xe68] sm:$0xff]  ;;  %v8976_v41 = vcombine.low %v719_v25, %v723_v29 }
 0x14e   :  { %3830 = vmatprep.subr.bf16.mxu0 %v9009_v44  ;;  %v9105_v39 = vcombine.high %v847_v32, %v851_v48  ;;  %v711_v40 = vld [vmem:[#allocation7 + $0xa08] sm:$0xff] }
 0x14f   :  { %3880 = vmatpush2.bf16.msra.mxu1 %v9144_v43  ;;  %v715_v59 = vld [vmem:[#allocation7 + $0xa28] sm:$0xff]  ;;  %v9104_v43 = vcombine.low %v847_v32, %v851_v48  ;;  %v8698_v32 = vcombine.low %v440_v2, %v444_v42  ;;  %v416_v42 = vld [vmem:[#allocation7 + $0xd0] sm:$0xff] }
 0x150   :  { %3881 = vmatprep.subr.bf16.mxu1 %v9137_v50  ;;  %v839_v26 = vld [vmem:[#allocation7 + $0xe08] sm:$0xff]  ;;  %v8969_v44 = vcombine.high %v711_v40, %v715_v59 }
 0x151   :  { %3831 = vmatpush2.bf16.msra.mxu0 %v9008_v56  ;;  %v843_v33 = vld [vmem:[#allocation7 + $0xe28] sm:$0xff]  ;;  %v8968_v56 = vcombine.low %v711_v40, %v715_v59 }
 0x152   :  { %3832 = vmatprep.subr.bf16.mxu0 %v9001_v27  ;;  %v9097_v50 = vcombine.high %v839_v26, %v843_v33  ;;  %v10197_v27 = vld [vmem:[#allocation8] sm:$0xff] }
 0x153   :  { %3882 = vmatpush2.bf16.msra.mxu1 %v9136_v57  ;;  %v9096_v57 = vcombine.low %v839_v26, %v843_v33  ;;  %v10203_v13 = vrot.slane %v10197_v27, %v9979_v20  ;;  %v424_v26 = vld [vmem:[#allocation7 + $0x110] sm:$0xff] }
 0x154   :  { %3883 = vmatprep.subr.bf16.mxu1 %v9129_v28  ;;  %v8707_v28 = vcombine.high %v448_v51, %v452_v52  ;;  %v428_v33 = vld [vmem:[#allocation7 + $0x130] sm:$0xff] }
 0x155   :  { %3833 = vmatpush2.bf16.msra.mxu0 %v9000_v6  ;;  %v572_v6 = vld [vmem:[#allocation7 + $0x5b0] sm:$0xff] }
 0x156   :  { %3834 = vmatprep.subr.bf16.mxu0 %v8993_v8  ;;  %v8706_v8 = vcombine.low %v448_v51, %v452_v52  ;;  %v8827_v16 = vcombine.high %v568_v61, %v572_v6 }
 0x157   :  { %3884 = vmatpush2.bf16.msra.mxu1 %v9128_v3  ;;  %v907_v3 = vrot.slane %v10197_v27, %v10013_v9 }
 0x158   :  { %3885 = vmatprep.subr.bf16.mxu1 %v9121_v10  ;;  %v8834_v10 = vcombine.low %v576_v15, %v580_v24 }
 0x159   :  { %3835 = vmatpush2.bf16.msra.mxu0 %v8992_v22  ;;  %v436_v22 = vld [vmem:[#allocation7 + $0x170] sm:$0xff] }
 0x15a   :  { %3836 = vmatprep.subr.bf16.mxu0 %v8985_v31  ;;  %v560_v31 = vld [vmem:[#allocation7 + $0x550] sm:$0xff]  ;;  %v8690_v15 = vcombine.low %v432_v19, %v436_v22 }
 0x15b   :  { %3886 = vmatpush2.bf16.msra.mxu1 %v9120_v23 }
 0x15c   :  { %3887 = vmatprep.subr.bf16.mxu1 %v9113_v49  ;;  %v564_v49 = vld [vmem:[#allocation7 + $0x570] sm:$0xff] }
 0x15d   :  { %3837 = vmatpush2.bf16.msra.mxu0 %v8984_v35  ;;  %v8826_v35 = vcombine.low %v568_v61, %v572_v6  ;;  %v8819_v59 = vcombine.high %v560_v31, %v564_v49  ;;  %v420_v61 = vld [vmem:[#allocation7 + $0xf0] sm:$0xff] }
 0x15e   :  { %3838 = vmatprep.subr.bf16.mxu0 %v8977_v37  ;;  %v544_v6 = vld [vmem:[#allocation7 + $0x4d0] sm:$0xff] }
 0x15f   :  { %3888 = vmatpush2.bf16.msra.mxu1 %v9112_v36  ;;  %v8691_v36 = vcombine.high %v432_v19, %v436_v22 }
 0x160   :  { %3889 = vmatprep.subr.bf16.mxu1 %v9105_v39 }
 0x161   :  { %3839 = vmatpush2.bf16.msra.mxu0 %v8976_v41 }
 0x162   :  { %3840 = vmatprep.subr.bf16.mxu0 %v8969_v44  ;;  %v556_v44 = vld [vmem:[#allocation7 + $0x530] sm:$0xff] }
 0x163   :  { %3890 = vmatpush2.bf16.msra.mxu1 %v9104_v43  ;;  %v552_v43 = vld [vmem:[#allocation7 + $0x510] sm:$0xff] }
 0x164   :  { %3891 = vmatprep.subr.bf16.mxu1 %v9097_v50  ;;  %v8811_v2 = vcombine.high %v552_v43, %v556_v44  ;;  %v8810_v22 = vcombine.low %v552_v43, %v556_v44 }
 0x165   :  { %3841 = vmatpush2.bf16.msra.mxu0 %v8968_v56  ;;  %v8818_v56 = vcombine.low %v560_v31, %v564_v49 }
 0x166   :  { %3912 = vmatprep.subr.bf16.mxu0 %v8707_v28 }
 0x167   :  { %3892 = vmatpush2.bf16.msra.mxu1 %v9096_v57  ;;  %v3538_v23 = vpop.f32.mrf.mxu0  ;;  %v8683_v57 = vcombine.high %v424_v26, %v428_v33 }
 0x168   :  { %3963 = vmatprep.subr.bf16.mxu1 %v8835_v1  ;;  %3843 = vmatmul.mubr.bf16.vlgmr.msra.gmra.mxu0 %v10128_v63  ;;  %v3539_v25 = vadd.f32 %v3538_v23, %v907_v3  ;;  %v8675_v23 = vcombine.high %v416_v42, %v420_v61 }
 0x169   :  { %v3589_v29 = vpop.f32.mrf.mxu1  ;;  %3913 = vmatpush1.bf16.msra.mxu0 %v8706_v8  ;;  %v3540_v48 = vpop.f32.mrf.mxu0  ;;  %3852 = vmatprep.mubr.bf16.mxu0 %v10173_v18  ;;  %v548_v8 = vld [vmem:[#allocation7 + $0x4f0] sm:$0xff] }
 0x16a   :  { %3894 = vmatmul.mubr.bf16.vlgmr.msra.gmra.mxu1 %v10133_v0  ;;  %3914 = vmatprep.subr.bf16.mxu0 %v8699_v12  ;;  %v10207_v37 = vadd.f32 %v3589_v29, %v3539_v25  ;;  %v3541_v39 = vadd.f32 %v3540_v48, %v10203_v13  ;;  %v8682_v12 = vcombine.low %v424_v26, %v428_v33  ;;  %v408_v25 = vld [vmem:[#allocation7 + $0x90] sm:$0xff] }
 0x16b   :  { %3964 = vmatpush1.bf16.msra.mxu1 %v8834_v10  ;;  %v3591_v40 = vpop.f32.mrf.mxu1  ;;  %v3542_v41 = vpop.f32.mrf.mxu0  ;;  %3903 = vmatprep.mubr.bf16.mxu1 %v10176_v53  ;;  %v8803_v49 = vcombine.high %v544_v6, %v548_v8  ;;  %v412_v29 = vld [vmem:[#allocation7 + $0xb0] sm:$0xff]  ;;  %v8802_v33 = vcombine.low %v544_v6, %v548_v8 }
 0x16c   :  { %3965 = vmatprep.subr.bf16.mxu1 %v8827_v16  ;;  %v10212_v50 = vadd.f32 %v3591_v40, %v3541_v39  ;;  %v3543_v51 = vadd.f32 %v3542_v41, %v907_v3  ;;  %v540_v39 = vld [vmem:[#allocation7 + $0x4b0] sm:$0xff]  ;;  %v8674_v40 = vcombine.low %v416_v42, %v420_v61  ;;  %v8667_v41 = vcombine.high %v408_v25, %v412_v29 }
 0x16d   :  { %v3593_v52 = vpop.f32.mrf.mxu1  ;;  %3915 = vmatpush1.bf16.msra.mxu0 %v8698_v32  ;;  %v10214_v24 = vpop.f32.mrf.mxu0  ;;  %v520_v6 = vld [vmem:[#allocation7 + $0x410] sm:$0xff] }
 0x16e   :  { %3916 = vmatprep.subr.bf16.mxu0 %v8691_v36  ;;  %v10216_v28 = vadd.f32 %v3593_v52, %v3543_v51  ;;  %v536_v36 = vld [vmem:[#allocation7 + $0x490] sm:$0xff] }
 0x16f   :  { %3966 = vmatpush1.bf16.msra.mxu1 %v8826_v35  ;;  %v10218_v1 = vpop.f32.mrf.mxu1  ;;  %v3548_v10 = vpop.f32.mrf.mxu0  ;;  %v8795_v44 = vcombine.high %v536_v36, %v540_v39  ;;  %v400_v51 = vld [vmem:[#allocation7 + $0x50] sm:$0xff]  ;;  %v8794_v42 = vcombine.low %v536_v36, %v540_v39 }
 0x170   :  { %3967 = vmatprep.subr.bf16.mxu1 %v8819_v59  ;;  %3853 = vmatmul.mubr.bf16.gmra.mxu0 %v10180_v5  ;;  %v3549_v16 = vadd.f32 %v3548_v10, %v907_v3  ;;  %v404_v52 = vld [vmem:[#allocation7 + $0x70] sm:$0xff] }
 0x171   :  { %3917 = vmatpush1.bf16.msra.mxu0 %v8690_v15  ;;  %v3599_v19 = vpop.f32.mrf.mxu1  ;;  %v3550_v31 = vpop.f32.mrf.mxu0  ;;  %3944 = vmatprep.mubr.bf16.mxu0 %v10006_v58  ;;  %v8659_v61 = vcombine.high %v400_v51, %v404_v52  ;;  %v524_v8 = vld [vmem:[#allocation7 + $0x430] sm:$0xff] }
 0x172   :  { %3904 = vmatmul.mubr.bf16.gmra.mxu1 %v10183_v7  ;;  %3918 = vmatprep.subr.bf16.mxu0 %v8683_v57  ;;  %v3551_v32 = vadd.f32 %v3550_v31, %v10203_v13  ;;  %v10223_v48 = vadd.f32 %v3599_v19, %v3549_v16  ;;  %v532_v57 = vld [vmem:[#allocation7 + $0x470] sm:$0xff]  ;;  %v8658_v19 = vcombine.low %v400_v51, %v404_v52 }
 0x173   :  { %3968 = vmatpush1.bf16.msra.mxu1 %v8818_v56  ;;  %v3601_v35 = vpop.f32.mrf.mxu1  ;;  %v3552_v3 = vpop.f32.mrf.mxu0  ;;  %3995 = vmatprep.mubr.bf16.mxu1 %v10008_v62  ;;  %v528_v56 = vld [vmem:[#allocation7 + $0x450] sm:$0xff]  ;;  %v8779_v31 = vcombine.high %v520_v6, %v524_v8  ;;  %v8778_v36 = vcombine.low %v520_v6, %v524_v8 }
 0x174   :  { %3969 = vmatprep.subr.bf16.mxu1 %v8811_v2  ;;  %v10227_v59 = vadd.f32 %v3601_v35, %v3551_v32  ;;  %v8666_v2 = vcombine.low %v408_v25, %v412_v29  ;;  %v8787_v10 = vcombine.high %v528_v56, %v532_v57  ;;  %v396_v16 = vld [vmem:[#allocation7 + $0x30] sm:$0xff] }
 0x175   :  { %3919 = vmatpush1.bf16.msra.mxu0 %v8682_v12  ;;  %v3603_v26 = vpop.f32.mrf.mxu1  ;;  %v3553_v43 = vpop.f32.mrf.mxu0  ;;  %v392_v12 = vld [vmem:[#allocation7 + $0x10] sm:$0xff] }
 0x176   :  { %3920 = vmatprep.subr.bf16.mxu0 %v8675_v23  ;;  %v8651_v23 = vcombine.high %v392_v12, %v396_v16  ;;  %v516_v25 = vld [vmem:[#allocation7 + $0x3f0] sm:$0xff]  ;;  %v8650_v35 = vcombine.low %v392_v12, %v396_v16 }
 0x177   :  { %3970 = vmatpush1.bf16.msra.mxu1 %v8810_v22  ;;  %v3604_v15 = vpop.f32.mrf.mxu1  ;;  %v8786_v22 = vcombine.low %v528_v56, %v532_v57  ;;  %v640_v29 = vld [vmem:[#allocation7 + $0x7d0] sm:$0xff] }
 0x178   :  { %3971 = vmatprep.subr.bf16.mxu1 %v8803_v49  ;;  %v512_v49 = vld [vmem:[#allocation7 + $0x3d0] sm:$0xff] }
 0x179   :  { %3921 = vmatpush1.bf16.msra.mxu0 %v8674_v40  ;;  %v644_v32 = vld [vmem:[#allocation7 + $0x7f0] sm:$0xff]  ;;  %v8771_v39 = vcombine.high %v512_v49, %v516_v25  ;;  %v8770_v43 = vcombine.low %v512_v49, %v516_v25 }
 0x17a   :  { %3922 = vmatprep.subr.bf16.mxu0 %v8667_v41  ;;  %v8899_v3 = vcombine.high %v640_v29, %v644_v32  ;;  %v504_v40 = vld [vmem:[#allocation7 + $0x390] sm:$0xff] }
 0x17b   :  { %3972 = vmatpush1.bf16.msra.mxu1 %v8802_v33  ;;  %v508_v26 = vld [vmem:[#allocation7 + $0x3b0] sm:$0xff] }
 0x17c   :  { %3973 = vmatprep.subr.bf16.mxu1 %v8795_v44  ;;  %v632_v33 = vld [vmem:[#allocation7 + $0x790] sm:$0xff]  ;;  %v8898_v44 = vcombine.low %v640_v29, %v644_v32  ;;  %v8763_v51 = vcombine.high %v504_v40, %v508_v26 }
 0x17d   :  { %3923 = vmatpush1.bf16.msra.mxu0 %v8666_v2  ;;  %v636_v41 = vld [vmem:[#allocation7 + $0x7b0] sm:$0xff] }
 0x17e   :  { %3924 = vmatprep.subr.bf16.mxu0 %v8659_v61  ;;  %v8891_v52 = vcombine.high %v632_v33, %v636_v41  ;;  %v496_v15 = vld [vmem:[#allocation7 + $0x350] sm:$0xff]  ;;  %v8890_v61 = vcombine.low %v632_v33, %v636_v41 }
 0x17f   :  { %3974 = vmatpush1.bf16.msra.mxu1 %v8794_v42  ;;  %v500_v56 = vld [vmem:[#allocation7 + $0x370] sm:$0xff]  ;;  %v8762_v42 = vcombine.low %v504_v40, %v508_v26 }
 0x180   :  { %3975 = vmatprep.subr.bf16.mxu1 %v8787_v10  ;;  %v624_v57 = vld [vmem:[#allocation7 + $0x750] sm:$0xff]  ;;  %v8755_v10 = vcombine.high %v496_v15, %v500_v56 }
 0x181   :  { %3925 = vmatpush1.bf16.msra.mxu0 %v8658_v19  ;;  %v628_v2 = vld [vmem:[#allocation7 + $0x770] sm:$0xff] }
 0x182   :  { %3926 = vmatprep.subr.bf16.mxu0 %v8651_v23  ;;  %v8883_v12 = vcombine.high %v624_v57, %v628_v2  ;;  %v488_v16 = vld [vmem:[#allocation7 + $0x310] sm:$0xff]  ;;  %v8882_v23 = vcombine.low %v624_v57, %v628_v2 }
 0x183   :  { %3976 = vmatpush1.bf16.msra.mxu1 %v8786_v22  ;;  %v492_v6 = vld [vmem:[#allocation7 + $0x330] sm:$0xff]  ;;  %v8754_v22 = vcombine.low %v496_v15, %v500_v56 }
 0x184   :  { %3977 = vmatprep.subr.bf16.mxu1 %v8779_v31  ;;  %v616_v8 = vld [vmem:[#allocation7 + $0x710] sm:$0xff]  ;;  %v8747_v31 = vcombine.high %v488_v16, %v492_v6 }
 0x185   :  { %3927 = vmatpush1.bf16.msra.mxu0 %v8650_v35  ;;  %v620_v19 = vld [vmem:[#allocation7 + $0x730] sm:$0xff] }
 0x186   :  { %3928 = vmatprep.subr.bf16.mxu0 %v8771_v39  ;;  %v8875_v49 = vcombine.high %v616_v8, %v620_v19  ;;  %v480_v25 = vld [vmem:[#allocation7 + $0x2d0] sm:$0xff]  ;;  %v8874_v39 = vcombine.low %v616_v8, %v620_v19 }
 0x187   :  { %3978 = vmatpush1.bf16.msra.mxu1 %v8778_v36  ;;  %v484_v29 = vld [vmem:[#allocation7 + $0x2f0] sm:$0xff]  ;;  %v8746_v36 = vcombine.low %v488_v16, %v492_v6 }
 0x188   :  { %3979 = vmatprep.subr.bf16.mxu1 %v8899_v3  ;;  %v608_v32 = vld [vmem:[#allocation7 + $0x6d0] sm:$0xff]  ;;  %v8739_v3 = vcombine.high %v480_v25, %v484_v29 }
 0x189   :  { %3929 = vmatpush2.bf16.msra.mxu0 %v8770_v43  ;;  %v612_v35 = vld [vmem:[#allocation7 + $0x6f0] sm:$0xff] }
 0x18a   :  { %3930 = vmatprep.subr.bf16.mxu0 %v8763_v51  ;;  %v8867_v40 = vcombine.high %v608_v32, %v612_v35  ;;  %v472_v26 = vld [vmem:[#allocation7 + $0x290] sm:$0xff]  ;;  %v8866_v51 = vcombine.low %v608_v32, %v612_v35 }
 0x18b   :  { %3980 = vmatpush2.bf16.msra.mxu1 %v8898_v44  ;;  %v476_v33 = vld [vmem:[#allocation7 + $0x2b0] sm:$0xff]  ;;  %v8738_v44 = vcombine.low %v480_v25, %v484_v29 }
 0x18c   :  { %3981 = vmatprep.subr.bf16.mxu1 %v8891_v52  ;;  %v600_v41 = vld [vmem:[#allocation7 + $0x690] sm:$0xff]  ;;  %v8731_v52 = vcombine.high %v472_v26, %v476_v33 }
 0x18d   :  { %3931 = vmatpush2.bf16.msra.mxu0 %v8762_v42  ;;  %v604_v43 = vld [vmem:[#allocation7 + $0x6b0] sm:$0xff] }
 0x18e   :  { %3932 = vmatprep.subr.bf16.mxu0 %v8755_v10  ;;  %v8859_v15 = vcombine.high %v600_v41, %v604_v43  ;;  %v464_v56 = vld [vmem:[#allocation7 + $0x250] sm:$0xff]  ;;  %v8858_v10 = vcombine.low %v600_v41, %v604_v43 }
 0x18f   :  { %3982 = vmatpush2.bf16.msra.mxu1 %v8890_v61  ;;  %v468_v57 = vld [vmem:[#allocation7 + $0x270] sm:$0xff]  ;;  %v8730_v61 = vcombine.low %v472_v26, %v476_v33 }
 0x190   :  { %3983 = vmatprep.subr.bf16.mxu1 %v8883_v12  ;;  %v592_v2 = vld [vmem:[#allocation7 + $0x650] sm:$0xff]  ;;  %v8723_v12 = vcombine.high %v464_v56, %v468_v57 }
 0x191   :  { %3933 = vmatpush2.bf16.msra.mxu0 %v8754_v22  ;;  %v596_v42 = vld [vmem:[#allocation7 + $0x670] sm:$0xff] }
 0x192   :  { %3934 = vmatprep.subr.bf16.mxu0 %v8747_v31  ;;  %v8851_v16 = vcombine.high %v592_v2, %v596_v42  ;;  %v456_v6 = vld [vmem:[#allocation7 + $0x210] sm:$0xff]  ;;  %v8850_v31 = vcombine.low %v592_v2, %v596_v42 }
 0x193   :  { %3984 = vmatpush2.bf16.msra.mxu1 %v8882_v23  ;;  %v460_v8 = vld [vmem:[#allocation7 + $0x230] sm:$0xff]  ;;  %v8722_v23 = vcombine.low %v464_v56, %v468_v57 }
 0x194   :  { %3985 = vmatprep.subr.bf16.mxu1 %v8875_v49  ;;  %v584_v19 = vld [vmem:[#allocation7 + $0x610] sm:$0xff]  ;;  %v8715_v49 = vcombine.high %v456_v6, %v460_v8 }
 0x195   :  { %3935 = vmatpush2.bf16.msra.mxu0 %v8746_v36  ;;  %v588_v22 = vld [vmem:[#allocation7 + $0x630] sm:$0xff] }
 0x196   :  { %3936 = vmatprep.subr.bf16.mxu0 %v8739_v3  ;;  %v8843_v25 = vcombine.high %v584_v19, %v588_v22  ;;  %v704_v29 = vld [vmem:[#allocation7 + $0x9d0] sm:$0xff]  ;;  %v8842_v3 = vcombine.low %v584_v19, %v588_v22 }
 0x197   :  { %3986 = vmatpush2.bf16.msra.mxu1 %v8874_v39  ;;  %v708_v32 = vld [vmem:[#allocation7 + $0x9f0] sm:$0xff]  ;;  %v8714_v39 = vcombine.low %v456_v6, %v460_v8 }
 0x198   :  { %3987 = vmatprep.subr.bf16.mxu1 %v8867_v40  ;;  %v832_v35 = vld [vmem:[#allocation7 + $0xdd0] sm:$0xff]  ;;  %v8963_v40 = vcombine.high %v704_v29, %v708_v32 }
 0x199   :  { %3937 = vmatpush2.bf16.msra.mxu0 %v8738_v44  ;;  %v836_v36 = vld [vmem:[#allocation7 + $0xdf0] sm:$0xff] }
 0x19a   :  { %3938 = vmatprep.subr.bf16.mxu0 %v8731_v52  ;;  %v9091_v26 = vcombine.high %v832_v35, %v836_v36  ;;  %v696_v33 = vld [vmem:[#allocation7 + $0x990] sm:$0xff]  ;;  %v9090_v52 = vcombine.low %v832_v35, %v836_v36 }
 0x19b   :  { %3988 = vmatpush2.bf16.msra.mxu1 %v8866_v51  ;;  %v700_v41 = vld [vmem:[#allocation7 + $0x9b0] sm:$0xff]  ;;  %v8962_v51 = vcombine.low %v704_v29, %v708_v32 }
 0x19c   :  { %3989 = vmatprep.subr.bf16.mxu1 %v8859_v15  ;;  %v824_v43 = vld [vmem:[#allocation7 + $0xd90] sm:$0xff]  ;;  %v8955_v15 = vcombine.high %v696_v33, %v700_v41  ;;  %v8954_v6 = vcombine.low %v696_v33, %v700_v41 }
 0x19d   :  { %3939 = vmatpush2.bf16.msra.mxu0 %v8730_v61  ;;  %v828_v44 = vld [vmem:[#allocation7 + $0xdb0] sm:$0xff] }
 0x19e   :  { %3940 = vmatprep.subr.bf16.mxu0 %v8723_v12  ;;  %v9083_v56 = vcombine.high %v824_v43, %v828_v44  ;;  %v688_v57 = vld [vmem:[#allocation7 + $0x950] sm:$0xff]  ;;  %v9082_v19 = vcombine.low %v824_v43, %v828_v44 }
 0x19f   :  { %3990 = vmatpush2.bf16.msra.mxu1 %v8858_v10  ;;  %v692_v2 = vld [vmem:[#allocation7 + $0x970] sm:$0xff] }
 0x1a0   :  { %3991 = vmatprep.subr.bf16.mxu1 %v8851_v16  ;;  %v816_v61 = vld [vmem:[#allocation7 + $0xd50] sm:$0xff]  ;;  %v8947_v22 = vcombine.high %v688_v57, %v692_v2 }
 0x1a1   :  { %3941 = vmatpush2.bf16.msra.mxu0 %v8722_v23  ;;  %v820_v10 = vld [vmem:[#allocation7 + $0xd70] sm:$0xff] }
 0x1a2   :  { %3942 = vmatprep.subr.bf16.mxu0 %v8715_v49  ;;  %v680_v29 = vld [vmem:[#allocation7 + $0x910] sm:$0xff]  ;;  %v9074_v33 = vcombine.low %v816_v61, %v820_v10 }
 0x1a3   :  { %3992 = vmatpush2.bf16.msra.mxu1 %v8850_v31  ;;  %v684_v32 = vld [vmem:[#allocation7 + $0x930] sm:$0xff] }
 0x1a4   :  { %3993 = vmatprep.subr.bf16.mxu1 %v8843_v25  ;;  %v9075_v25 = vcombine.high %v816_v61, %v820_v10  ;;  %v808_v35 = vld [vmem:[#allocation7 + $0xd10] sm:$0xff]  ;;  %v8939_v41 = vcombine.high %v680_v29, %v684_v32  ;;  %v8938_v61 = vcombine.low %v680_v29, %v684_v32 }
 0x1a5   :  { %3943 = vmatpush2.bf16.msra.mxu0 %v8714_v39  ;;  %v812_v36 = vld [vmem:[#allocation7 + $0xd30] sm:$0xff] }
 0x1a6   :  { %4014 = vmatprep.subr.bf16.mxu0 %v8963_v40  ;;  %v672_v43 = vld [vmem:[#allocation7 + $0x8d0] sm:$0xff] }
 0x1a7   :  { %3994 = vmatpush2.bf16.msra.mxu1 %v8842_v3  ;;  %v792_v29 = vld [vmem:[#allocation7 + $0xc90] sm:$0xff] }
 0x1a8   :  { %4065 = vmatprep.subr.bf16.mxu1 %v9091_v26  ;;  %v3640_v42 = vpop.f32.mrf.mxu0  ;;  %3945 = vmatmul.mubr.bf16.vlgmr.msra.gmra.mxu0 %v10094_v30  ;;  %v8946_v26 = vcombine.low %v688_v57, %v692_v2  ;;  %v796_v32 = vld [vmem:[#allocation7 + $0xcb0] sm:$0xff] }
 0x1a9   :  { %v3641_v12 = vadd.f32 %v3640_v42, %v10207_v37  ;;  %4015 = vmatpush1.bf16.msra.mxu0 %v8962_v51  ;;  %3954 = vmatprep.mubr.bf16.mxu0 %v10135_v60  ;;  %v804_v42 = vld [vmem:[#allocation7 + $0xcf0] sm:$0xff] }
 0x1aa   :  { %v3691_v16 = vpop.f32.mrf.mxu1  ;;  %3996 = vmatmul.mubr.bf16.vlgmr.msra.gmra.mxu1 %v10121_v55  ;;  %v3642_v8 = vpop.f32.mrf.mxu0  ;;  %4016 = vmatprep.subr.bf16.mxu0 %v8955_v15  ;;  %v676_v15 = vld [vmem:[#allocation7 + $0x8f0] sm:$0xff] }
 0x1ab   :  { %4066 = vmatpush1.bf16.msra.mxu1 %v9090_v52  ;;  %v3692_v23 = vadd.f32 %v3691_v16, %v3641_v12  ;;  %v3643_v31 = vadd.f32 %v3642_v8, %v10212_v50  ;;  %4005 = vmatprep.mubr.bf16.mxu1 %v10141_v4  ;;  %v9067_v52 = vcombine.high %v808_v35, %v812_v36 }
 0x1ac   :  { %v3693_v49 = vpop.f32.mrf.mxu1  ;;  %4067 = vmatprep.subr.bf16.mxu1 %v9083_v56  ;;  %v3644_v37 = vpop.f32.mrf.mxu0  ;;  %v800_v56 = vld [vmem:[#allocation7 + $0xcd0] sm:$0xff]  ;;  %v8931_v8 = vcombine.high %v672_v43, %v676_v15 }
 0x1ad   :  { %v10235_v39 = vadd.f32 %v3693_v49, %v3643_v31  ;;  %v3645_v3 = vadd.f32 %v3644_v37, %v10216_v28  ;;  %4017 = vmatpush1.bf16.msra.mxu0 %v8954_v6  ;;  %v4320_v28 = vmax.f32 %v3692_v23, 0.0  ;;  %v9066_v6 = vcombine.low %v808_v35, %v812_v36 }
 0x1ae   :  { %v3695_v40 = vpop.f32.mrf.mxu1  ;;  %v10238_v50 = vpop.f32.mrf.mxu0  ;;  %4018 = vmatprep.subr.bf16.mxu0 %v8947_v22  ;;  %v8930_v36 = vcombine.low %v672_v43, %v676_v15  ;;  %v648_v15 = vld [vmem:[#allocation7 + $0x810] sm:$0xff] }
 0x1af   :  { %4068 = vmatpush1.bf16.msra.mxu1 %v9082_v19  ;;  %v3696_v44 = vadd.f32 %v3695_v40, %v3645_v3  ;;  %v9059_v19 = vcombine.high %v800_v56, %v804_v42 }
 0x1b0   :  { %v10240_v51 = vpop.f32.mrf.mxu1  ;;  %4069 = vmatprep.subr.bf16.mxu1 %v9075_v25  ;;  %v3650_v12 = vpop.f32.mrf.mxu0  ;;  %3955 = vmatmul.mubr.bf16.gmra.mxu0 %v10148_v34  ;;  %v668_v25 = vld [vmem:[#allocation7 + $0x8b0] sm:$0xff] }
 0x1b1   :  { %v4328_v57 = vmax.f32 %v3696_v44, 0.0  ;;  %v3651_v2 = vadd.f32 %v3650_v12, %v10223_v48  ;;  %4019 = vmatpush1.bf16.msra.mxu0 %v8946_v26  ;;  %v664_v48 = vld [vmem:[#allocation7 + $0x890] sm:$0xff]  ;;  %4046 = vmatprep.mubr.bf16.mxu0 %v10153_v11 }
 0x1b2   :  { %v3701_v16 = vpop.f32.mrf.mxu1  ;;  %4006 = vmatmul.mubr.bf16.gmra.mxu1 %v10151_v38  ;;  %v3652_v10 = vpop.f32.mrf.mxu0  ;;  %4020 = vmatprep.subr.bf16.mxu0 %v8939_v41  ;;  %v8923_v40 = vcombine.high %v664_v48, %v668_v25  ;;  %v656_v41 = vld [vmem:[#allocation7 + $0x850] sm:$0xff] }
 0x1b3   :  { %4070 = vmatpush1.bf16.msra.mxu1 %v9074_v33  ;;  %v10245_v22 = vpack.c.bf16 %v4328_v57, %v4320_v28  ;;  %v3653_v31 = vadd.f32 %v3652_v10, %v10227_v59  ;;  %v10248_v49 = vadd.f32 %v3701_v16, %v3651_v2  ;;  %4097 = vmatprep.mubr.bf16.mxu1 %v10156_v45  ;;  %v660_v44 = vld [vmem:[#allocation7 + $0x870] sm:$0xff] }
 0x1b4   :  { %v3703_v23 = vpop.f32.mrf.mxu1  ;;  %4071 = vmatprep.subr.bf16.mxu1 %v9067_v52  ;;  %v3654_v37 = vpop.f32.mrf.mxu0  ;;  %v9058_v59 = vcombine.low %v800_v56, %v804_v42  ;;  %v9051_v33 = vcombine.high %v792_v29, %v796_v32  ;;  %v784_v12 = vld [vmem:[#allocation7 + $0xc50] sm:$0xff]  ;;  %v8922_v57 = vcombine.low %v664_v48, %v668_v25  ;;  %v9050_v2 = vcombine.low %v792_v29, %v796_v32 }
 0x1b5   :  { %v10252_v35 = vadd.f32 %v3703_v23, %v3653_v31  ;;  %4021 = vmatpush1.bf16.msra.mxu0 %v8938_v61  ;;  %v788_v28 = vld [vmem:[#allocation7 + $0xc70] sm:$0xff]  ;;  %v8915_v16 = vcombine.high %v656_v41, %v660_v44  ;;  %v8914_v10 = vcombine.low %v656_v41, %v660_v44 }
 0x1b6   :  { %v3705_v3 = vpop.f32.mrf.mxu1  ;;  %4022 = vmatprep.subr.bf16.mxu0 %v8931_v8  ;;  %v3655_v26 = vpop.f32.mrf.mxu0  ;;  %v9043_v43 = vcombine.high %v784_v12, %v788_v28  ;;  %v652_v61 = vld [vmem:[#allocation7 + $0x830] sm:$0xff] }
 0x1b7   :  { %4072 = vmatpush1.bf16.msra.mxu1 %v9066_v6  ;;  %v776_v56 = vld [vmem:[#allocation7 + $0xc10] sm:$0xff]  ;;  %v9042_v6 = vcombine.low %v784_v12, %v788_v28  ;;  %v8907_v8 = vcombine.high %v648_v15, %v652_v61  ;;  %v8906_v29 = vcombine.low %v648_v15, %v652_v61 }
 0x1b8   :  { %4073 = vmatprep.subr.bf16.mxu1 %v9059_v19  ;;  %v3706_v52 = vpop.f32.mrf.mxu1  ;;  %v780_v42 = vld [vmem:[#allocation7 + $0xc30] sm:$0xff] }
 0x1b9   :  { %4023 = vmatpush1.bf16.msra.mxu0 %v8930_v36  ;;  %v9035_v19 = vcombine.high %v776_v56, %v780_v42  ;;  %v768_v31 = vld [vmem:[#allocation7 + $0xbd0] sm:$0xff]  ;;  %v9034_v32 = vcombine.low %v776_v56, %v780_v42 }
 0x1ba   :  { %4024 = vmatprep.subr.bf16.mxu0 %v8923_v40  ;;  %v772_v23 = vld [vmem:[#allocation7 + $0xbf0] sm:$0xff] }
 0x1bb   :  { %4074 = vmatpush1.bf16.msra.mxu1 %v9058_v59  ;;  %v896_v48 = vld [vmem:[#allocation7 + $0xfd0] sm:$0xff]  ;;  %v9027_v37 = vcombine.high %v768_v31, %v772_v23 }
 0x1bc   :  { %4075 = vmatprep.subr.bf16.mxu1 %v9051_v33  ;;  %v900_v25 = vld [vmem:[#allocation7 + $0xff0] sm:$0xff]  ;;  %v9026_v33 = vcombine.low %v768_v31, %v772_v23 }
 0x1bd   :  { %4025 = vmatpush1.bf16.msra.mxu0 %v8922_v57  ;;  %v9155_v36 = vcombine.high %v896_v48, %v900_v25  ;;  %v760_v3 = vld [vmem:[#allocation7 + $0xb90] sm:$0xff]  ;;  %v9154_v41 = vcombine.low %v896_v48, %v900_v25 }
 0x1be   :  { %4026 = vmatprep.subr.bf16.mxu0 %v8915_v16  ;;  %v764_v59 = vld [vmem:[#allocation7 + $0xbb0] sm:$0xff] }
 0x1bf   :  { %4076 = vmatpush1.bf16.msra.mxu1 %v9050_v2  ;;  %v888_v40 = vld [vmem:[#allocation7 + $0xf90] sm:$0xff]  ;;  %v9019_v44 = vcombine.high %v760_v3, %v764_v59  ;;  %v9018_v16 = vcombine.low %v760_v3, %v764_v59 }
 0x1c0   :  { %4077 = vmatprep.subr.bf16.mxu1 %v9043_v43  ;;  %v892_v26 = vld [vmem:[#allocation7 + $0xfb0] sm:$0xff] }
 0x1c1   :  { %4027 = vmatpush1.bf16.msra.mxu0 %v8914_v10  ;;  %v9147_v52 = vcombine.high %v888_v40, %v892_v26  ;;  %v752_v12 = vld [vmem:[#allocation7 + $0xb50] sm:$0xff]  ;;  %v9146_v43 = vcombine.low %v888_v40, %v892_v26 }
 0x1c2   :  { %4028 = vmatprep.subr.bf16.mxu0 %v8907_v8  ;;  %v756_v28 = vld [vmem:[#allocation7 + $0xb70] sm:$0xff] }
 0x1c3   :  { %4078 = vmatpush1.bf16.msra.mxu1 %v9042_v6  ;;  %v880_v57 = vld [vmem:[#allocation7 + $0xf50] sm:$0xff]  ;;  %v9011_v15 = vcombine.high %v752_v12, %v756_v28  ;;  %v9010_v8 = vcombine.low %v752_v12, %v756_v28 }
 0x1c4   :  { %4079 = vmatprep.subr.bf16.mxu1 %v9035_v19  ;;  %v884_v2 = vld [vmem:[#allocation7 + $0xf70] sm:$0xff] }
 0x1c5   :  { %4029 = vmatpush1.bf16.msra.mxu0 %v8906_v29  ;;  %v9139_v61 = vcombine.high %v880_v57, %v884_v2  ;;  %v744_v56 = vld [vmem:[#allocation7 + $0xb10] sm:$0xff]  ;;  %v9138_v19 = vcombine.low %v880_v57, %v884_v2 }
 0x1c6   :  { %4030 = vmatprep.subr.bf16.mxu0 %v9027_v37  ;;  %v748_v42 = vld [vmem:[#allocation7 + $0xb30] sm:$0xff] }
 0x1c7   :  { %4080 = vmatpush1.bf16.msra.mxu1 %v9034_v32  ;;  %v872_v10 = vld [vmem:[#allocation7 + $0xf10] sm:$0xff]  ;;  %v9003_v31 = vcombine.high %v744_v56, %v748_v42  ;;  %v9002_v37 = vcombine.low %v744_v56, %v748_v42 }
 0x1c8   :  { %4081 = vmatprep.subr.bf16.mxu1 %v9155_v36  ;;  %v876_v6 = vld [vmem:[#allocation7 + $0xf30] sm:$0xff] }
 0x1c9   :  { %4031 = vmatpush2.bf16.msra.mxu0 %v9026_v33  ;;  %v9131_v23 = vcombine.high %v872_v10, %v876_v6  ;;  %v736_v48 = vld [vmem:[#allocation7 + $0xad0] sm:$0xff]  ;;  %v9130_v36 = vcombine.low %v872_v10, %v876_v6 }
 0x1ca   :  { %4032 = vmatprep.subr.bf16.mxu0 %v9019_v44  ;;  %v740_v25 = vld [vmem:[#allocation7 + $0xaf0] sm:$0xff] }
 0x1cb   :  { %4082 = vmatpush2.bf16.msra.mxu1 %v9154_v41  ;;  %v864_v29 = vld [vmem:[#allocation7 + $0xed0] sm:$0xff]  ;;  %v8995_v3 = vcombine.high %v736_v48, %v740_v25  ;;  %v8994_v44 = vcombine.low %v736_v48, %v740_v25 }
 0x1cc   :  { %4083 = vmatprep.subr.bf16.mxu1 %v9147_v52  ;;  %v868_v32 = vld [vmem:[#allocation7 + $0xef0] sm:$0xff] }
 0x1cd   :  { %4033 = vmatpush2.bf16.msra.mxu0 %v9018_v16  ;;  %v9123_v59 = vcombine.high %v864_v29, %v868_v32  ;;  %v728_v40 = vld [vmem:[#allocation7 + $0xa90] sm:$0xff]  ;;  %v9122_v52 = vcombine.low %v864_v29, %v868_v32  ;;  %v449_v29 = vld [vmem:[#allocation7 + $0x1d8] sm:$0xff] }
 0x1ce   :  { %4034 = vmatprep.subr.bf16.mxu0 %v9011_v15  ;;  %v732_v26 = vld [vmem:[#allocation7 + $0xab0] sm:$0xff]  ;;  %v453_v32 = vld [vmem:[#allocation7 + $0x1f8] sm:$0xff] }
 0x1cf   :  { %4084 = vmatpush2.bf16.msra.mxu1 %v9146_v43  ;;  %v856_v33 = vld [vmem:[#allocation7 + $0xe90] sm:$0xff]  ;;  %v8987_v12 = vcombine.high %v728_v40, %v732_v26  ;;  %v8986_v15 = vcombine.low %v728_v40, %v732_v26  ;;  %v8709_v40 = vcombine.high %v449_v29, %v453_v32 }
 0x1d0   :  { %4085 = vmatprep.subr.bf16.mxu1 %v9139_v61  ;;  %v860_v41 = vld [vmem:[#allocation7 + $0xeb0] sm:$0xff] }
 0x1d1   :  { %4035 = vmatpush2.bf16.msra.mxu0 %v9010_v8  ;;  %v9115_v28 = vcombine.high %v856_v33, %v860_v41  ;;  %v720_v57 = vld [vmem:[#allocation7 + $0xa50] sm:$0xff]  ;;  %v9114_v61 = vcombine.low %v856_v33, %v860_v41  ;;  %v441_v33 = vld [vmem:[#allocation7 + $0x198] sm:$0xff] }
 0x1d2   :  { %4036 = vmatprep.subr.bf16.mxu0 %v9003_v31  ;;  %v724_v2 = vld [vmem:[#allocation7 + $0xa70] sm:$0xff]  ;;  %v445_v41 = vld [vmem:[#allocation7 + $0x1b8] sm:$0xff] }
 0x1d3   :  { %4086 = vmatpush2.bf16.msra.mxu1 %v9138_v19  ;;  %v848_v16 = vld [vmem:[#allocation7 + $0xe50] sm:$0xff]  ;;  %v8979_v56 = vcombine.high %v720_v57, %v724_v2  ;;  %v8978_v31 = vcombine.low %v720_v57, %v724_v2  ;;  %v8701_v2 = vcombine.high %v441_v33, %v445_v41 }
 0x1d4   :  { %4087 = vmatprep.subr.bf16.mxu1 %v9131_v23  ;;  %v852_v43 = vld [vmem:[#allocation7 + $0xe70] sm:$0xff] }
 0x1d5   :  { %4037 = vmatpush2.bf16.msra.mxu0 %v9002_v37  ;;  %v9107_v42 = vcombine.high %v848_v16, %v852_v43  ;;  %v712_v10 = vld [vmem:[#allocation7 + $0xa10] sm:$0xff]  ;;  %v9106_v23 = vcombine.low %v848_v16, %v852_v43  ;;  %v577_v37 = vld [vmem:[#allocation7 + $0x5d8] sm:$0xff]  ;;  %v10258_v16 = vrot.slane %v10197_v27, %v9982_v21 }
 0x1d6   :  { %4038 = vmatprep.subr.bf16.mxu0 %v8995_v3  ;;  %v716_v6 = vld [vmem:[#allocation7 + $0xa30] sm:$0xff] }
 0x1d7   :  { %4088 = vmatpush2.bf16.msra.mxu1 %v9130_v36  ;;  %v840_v8 = vld [vmem:[#allocation7 + $0xe10] sm:$0xff]  ;;  %v8971_v48 = vcombine.high %v712_v10, %v716_v6  ;;  %v581_v36 = vld [vmem:[#allocation7 + $0x5f8] sm:$0xff]  ;;  %v8970_v3 = vcombine.low %v712_v10, %v716_v6 }
 0x1d8   :  { %4089 = vmatprep.subr.bf16.mxu1 %v9123_v59  ;;  %v844_v19 = vld [vmem:[#allocation7 + $0xe30] sm:$0xff]  ;;  %v8837_v26 = vcombine.high %v577_v37, %v581_v36  ;;  %v8836_v57 = vcombine.low %v577_v37, %v581_v36  ;;  %v565_v10 = vld [vmem:[#allocation7 + $0x578] sm:$0xff] }
 0x1d9   :  { %4039 = vmatpush2.bf16.msra.mxu0 %v8994_v44  ;;  %v9099_v25 = vcombine.high %v840_v8, %v844_v19  ;;  %v9098_v59 = vcombine.low %v840_v8, %v844_v19  ;;  %v569_v44 = vld [vmem:[#allocation7 + $0x598] sm:$0xff]  ;;  %v8700_v19 = vcombine.low %v441_v33, %v445_v41 }
 0x1da   :  { %4040 = vmatprep.subr.bf16.mxu0 %v8987_v12  ;;  %v915_v12 = vrot.slane %v10197_v27, %v10016_v17  ;;  %v425_v37 = vld [vmem:[#allocation7 + $0x118] sm:$0xff] }
 0x1db   :  { %4090 = vmatpush2.bf16.msra.mxu1 %v9122_v52  ;;  %v573_v52 = vld [vmem:[#allocation7 + $0x5b8] sm:$0xff] }
 0x1dc   :  { %4091 = vmatprep.subr.bf16.mxu1 %v9115_v28  ;;  %v8708_v28 = vcombine.low %v449_v29, %v453_v32  ;;  %v8829_v43 = vcombine.high %v569_v44, %v573_v52  ;;  %v429_v36 = vld [vmem:[#allocation7 + $0x138] sm:$0xff] }
 0x1dd   :  { %4041 = vmatpush2.bf16.msra.mxu0 %v8986_v15  ;;  %v433_v15 = vld [vmem:[#allocation7 + $0x158] sm:$0xff] }
 0x1de   :  { %4042 = vmatprep.subr.bf16.mxu0 %v8979_v56 }
 0x1df   :  { %4092 = vmatpush2.bf16.msra.mxu1 %v9114_v61  ;;  %v437_v61 = vld [vmem:[#allocation7 + $0x178] sm:$0xff] }
 0x1e0   :  { %4093 = vmatprep.subr.bf16.mxu1 %v9107_v42  ;;  %v561_v42 = vld [vmem:[#allocation7 + $0x558] sm:$0xff]  ;;  %v8693_v27 = vcombine.high %v433_v15, %v437_v61 }
 0x1e1   :  { %4043 = vmatpush2.bf16.msra.mxu0 %v8978_v31  ;;  %v8821_v32 = vcombine.high %v561_v42, %v565_v10 }
 0x1e2   :  { %4044 = vmatprep.subr.bf16.mxu0 %v8971_v48 }
 0x1e3   :  { %4094 = vmatpush2.bf16.msra.mxu1 %v9106_v23  ;;  %v8828_v23 = vcombine.low %v569_v44, %v573_v52  ;;  %v8692_v44 = vcombine.low %v433_v15, %v437_v61  ;;  %v8684_v61 = vcombine.low %v425_v37, %v429_v36 }
 0x1e4   :  { %4095 = vmatprep.subr.bf16.mxu1 %v9099_v25 }
 0x1e5   :  { %4045 = vmatpush2.bf16.msra.mxu0 %v8970_v3 }
 0x1e6   :  { %4116 = vmatprep.subr.bf16.mxu0 %v8709_v40  ;;  %v557_v40 = vld [vmem:[#allocation7 + $0x538] sm:$0xff] }
 0x1e7   :  { %4096 = vmatpush2.bf16.msra.mxu1 %v9098_v59  ;;  %v553_v59 = vld [vmem:[#allocation7 + $0x518] sm:$0xff] }
 0x1e8   :  { %4167 = vmatprep.subr.bf16.mxu1 %v8837_v26  ;;  %v3742_v56 = vpop.f32.mrf.mxu0  ;;  %4047 = vmatmul.mubr.bf16.vlgmr.msra.gmra.mxu0 %v10128_v63 }
 0x1e9   :  { %v3743_v6 = vadd.f32 %v3742_v56, %v915_v12  ;;  %4117 = vmatpush1.bf16.msra.mxu0 %v8708_v28  ;;  %4056 = vmatprep.mubr.bf16.mxu0 %v10173_v18  ;;  %v8820_v28 = vcombine.low %v561_v42, %v565_v10 }
 0x1ea   :  { %v3793_v8 = vpop.f32.mrf.mxu1  ;;  %4098 = vmatmul.mubr.bf16.vlgmr.msra.gmra.mxu1 %v10133_v0  ;;  %v3744_v31 = vpop.f32.mrf.mxu0  ;;  %4118 = vmatprep.subr.bf16.mxu0 %v8701_v2 }
 0x1eb   :  { %4168 = vmatpush1.bf16.msra.mxu1 %v8836_v57  ;;  %v10262_v48 = vadd.f32 %v3793_v8, %v3743_v6  ;;  %v3745_v25 = vadd.f32 %v3744_v31, %v10258_v16  ;;  %4107 = vmatprep.mubr.bf16.mxu1 %v10176_v53  ;;  %v8685_v57 = vcombine.high %v425_v37, %v429_v36  ;;  %v417_v8 = vld [vmem:[#allocation7 + $0xd8] sm:$0xff] }
 0x1ec   :  { %v3795_v29 = vpop.f32.mrf.mxu1  ;;  %4169 = vmatprep.subr.bf16.mxu1 %v8829_v43  ;;  %v3746_v3 = vpop.f32.mrf.mxu0  ;;  %v8813_v6 = vcombine.high %v553_v59, %v557_v40  ;;  %v421_v31 = vld [vmem:[#allocation7 + $0xf8] sm:$0xff] }
 0x1ed   :  { %v10267_v26 = vadd.f32 %v3795_v29, %v3745_v25  ;;  %v3747_v33 = vadd.f32 %v3746_v3, %v915_v12  ;;  %4119 = vmatpush1.bf16.msra.mxu0 %v8700_v19  ;;  %v545_v25 = vld [vmem:[#allocation7 + $0x4d8] sm:$0xff]  ;;  %v8676_v36 = vcombine.low %v417_v8, %v421_v31 }
 0x1ee   :  { %v3797_v41 = vpop.f32.mrf.mxu1  ;;  %v3748_v52 = vpop.f32.mrf.mxu0  ;;  %4120 = vmatprep.subr.bf16.mxu0 %v8693_v27  ;;  %v549_v29 = vld [vmem:[#allocation7 + $0x4f8] sm:$0xff]  ;;  %v8677_v27 = vcombine.high %v417_v8, %v421_v31 }
 0x1ef   :  { %4170 = vmatpush1.bf16.msra.mxu1 %v8828_v23  ;;  %v10269_v2 = vadd.f32 %v3797_v41, %v3747_v33  ;;  %v3749_v43 = vadd.f32 %v3748_v52, %v10258_v16  ;;  %v8812_v23 = vcombine.low %v553_v59, %v557_v40  ;;  %v8805_v3 = vcombine.high %v545_v25, %v549_v29  ;;  %v409_v33 = vld [vmem:[#allocation7 + $0x98] sm:$0xff] }
 0x1f0   :  { %v3799_v56 = vpop.f32.mrf.mxu1  ;;  %4171 = vmatprep.subr.bf16.mxu1 %v8821_v32  ;;  %4057 = vmatmul.mubr.bf16.gmra.mxu0 %v10180_v5  ;;  %v3752_v19 = vpop.f32.mrf.mxu0  ;;  %v413_v41 = vld [vmem:[#allocation7 + $0xb8] sm:$0xff] }
 0x1f1   :  { %v10273_v15 = vadd.f32 %v3799_v56, %v3749_v43  ;;  %4121 = vmatpush1.bf16.msra.mxu0 %v8692_v44  ;;  %v3753_v42 = vadd.f32 %v3752_v19, %v915_v12  ;;  %4148 = vmatprep.mubr.bf16.mxu0 %v10006_v58  ;;  %v537_v44 = vld [vmem:[#allocation7 + $0x498] sm:$0xff] }
 0x1f2   :  { %4108 = vmatmul.mubr.bf16.gmra.mxu1 %v10183_v7  ;;  %v3803_v10 = vpop.f32.mrf.mxu1  ;;  %4122 = vmatprep.subr.bf16.mxu0 %v8685_v57  ;;  %v3754_v32 = vpop.f32.mrf.mxu0  ;;  %v541_v37 = vld [vmem:[#allocation7 + $0x4b8] sm:$0xff]  ;;  %v8669_v57 = vcombine.high %v409_v33, %v413_v41 }
 0x1f3   :  { %4172 = vmatpush1.bf16.msra.mxu1 %v8820_v28  ;;  %v3755_v52 = vadd.f32 %v3754_v32, %v10258_v16  ;;  %v10277_v21 = vadd.f32 %v3803_v10, %v3753_v42  ;;  %4199 = vmatprep.mubr.bf16.mxu1 %v10008_v62  ;;  %v8804_v28 = vcombine.low %v545_v25, %v549_v29  ;;  %v405_v19 = vld [vmem:[#allocation7 + $0x78] sm:$0xff] }
 0x1f4   :  { %4173 = vmatprep.subr.bf16.mxu1 %v8813_v6  ;;  %v3805_v43 = vpop.f32.mrf.mxu1  ;;  %v3756_v12 = vpop.f32.mrf.mxu0  ;;  %v8797_v56 = vcombine.high %v537_v44, %v541_v37  ;;  %v401_v6 = vld [vmem:[#allocation7 + $0x58] sm:$0xff]  ;;  %v8668_v32 = vcombine.low %v409_v33, %v413_v41  ;;  %v8796_v62 = vcombine.low %v537_v44, %v541_v37 }
 0x1f5   :  { %4123 = vmatpush1.bf16.msra.mxu0 %v8684_v61  ;;  %v10281_v59 = vadd.f32 %v3805_v43, %v3755_v52  ;;  %v529_v42 = vld [vmem:[#allocation7 + $0x458] sm:$0xff]  ;;  %v8661_v8 = vcombine.high %v401_v6, %v405_v19 }
 0x1f6   :  { %v3807_v40 = vpop.f32.mrf.mxu1  ;;  %4124 = vmatprep.subr.bf16.mxu0 %v8677_v27  ;;  %v3757_v16 = vpop.f32.mrf.mxu0  ;;  %v533_v10 = vld [vmem:[#allocation7 + $0x478] sm:$0xff]  ;;  %v8660_v27 = vcombine.low %v401_v6, %v405_v19 }
 0x1f7   :  { %4174 = vmatpush1.bf16.msra.mxu1 %v8812_v23  ;;  %v8789_v31 = vcombine.high %v529_v42, %v533_v10  ;;  %v393_v61 = vld [vmem:[#allocation7 + $0x18] sm:$0xff] }
 0x1f8   :  { %4175 = vmatprep.subr.bf16.mxu1 %v8805_v3  ;;  %v3808_v58 = vpop.f32.mrf.mxu1  ;;  %v397_v23 = vld [vmem:[#allocation7 + $0x38] sm:$0xff]  ;;  %v8788_v3 = vcombine.low %v529_v42, %v533_v10 }
 0x1f9   :  { %4125 = vmatpush1.bf16.msra.mxu0 %v8676_v36  ;;  %v521_v25 = vld [vmem:[#allocation7 + $0x418] sm:$0xff]  ;;  %v8653_v52 = vcombine.high %v393_v61, %v397_v23  ;;  %v8652_v44 = vcombine.low %v393_v61, %v397_v23 }
 0x1fa   :  { %4126 = vmatprep.subr.bf16.mxu0 %v8669_v57  ;;  %v525_v29 = vld [vmem:[#allocation7 + $0x438] sm:$0xff] }
 0x1fb   :  { %4176 = vmatpush1.bf16.msra.mxu1 %v8804_v28  ;;  %v8781_v43 = vcombine.high %v521_v25, %v525_v29  ;;  %v513_v12 = vld [vmem:[#allocation7 + $0x3d8] sm:$0xff]  ;;  %v8780_v37 = vcombine.low %v521_v25, %v525_v29 }
 0x1fc   :  { %4177 = vmatprep.subr.bf16.mxu1 %v8797_v56  ;;  %v517_v33 = vld [vmem:[#allocation7 + $0x3f8] sm:$0xff] }
 0x1fd   :  { %4127 = vmatpush1.bf16.msra.mxu0 %v8668_v32  ;;  %v641_v41 = vld [vmem:[#allocation7 + $0x7d8] sm:$0xff]  ;;  %v8773_v40 = vcombine.high %v513_v12, %v517_v33  ;;  %v8772_v19 = vcombine.low %v513_v12, %v517_v33 }
 0x1fe   :  { %4128 = vmatprep.subr.bf16.mxu0 %v8661_v8  ;;  %v645_v36 = vld [vmem:[#allocation7 + $0x7f8] sm:$0xff] }
 0x1ff   :  { %4178 = vmatpush1.bf16.msra.mxu1 %v8796_v62  ;;  %v8901_v28 = vcombine.high %v641_v41, %v645_v36  ;;  %v505_v57 = vld [vmem:[#allocation7 + $0x398] sm:$0xff]  ;;  %v8900_v58 = vcombine.low %v641_v41, %v645_v36 }
 0x200   :  { %4179 = vmatprep.subr.bf16.mxu1 %v8789_v31  ;;  %v509_v16 = vld [vmem:[#allocation7 + $0x3b8] sm:$0xff] }
 0x201   :  { %4129 = vmatpush1.bf16.msra.mxu0 %v8660_v27  ;;  %v633_v56 = vld [vmem:[#allocation7 + $0x798] sm:$0xff]  ;;  %v8765_v42 = vcombine.high %v505_v57, %v509_v16  ;;  %v8764_v61 = vcombine.low %v505_v57, %v509_v16 }
 0x202   :  { %4130 = vmatprep.subr.bf16.mxu0 %v8653_v52  ;;  %v637_v6 = vld [vmem:[#allocation7 + $0x7b8] sm:$0xff] }
 0x203   :  { %4180 = vmatpush1.bf16.msra.mxu1 %v8788_v3  ;;  %v8893_v10 = vcombine.high %v633_v56, %v637_v6  ;;  %v497_v32 = vld [vmem:[#allocation7 + $0x358] sm:$0xff]  ;;  %v8892_v23 = vcombine.low %v633_v56, %v637_v6 }
 0x204   :  { %4181 = vmatprep.subr.bf16.mxu1 %v8781_v43  ;;  %v501_v62 = vld [vmem:[#allocation7 + $0x378] sm:$0xff] }
 0x205   :  { %4131 = vmatpush1.bf16.msra.mxu0 %v8652_v44  ;;  %v625_v8 = vld [vmem:[#allocation7 + $0x758] sm:$0xff]  ;;  %v8757_v25 = vcombine.high %v497_v32, %v501_v62  ;;  %v8756_v12 = vcombine.low %v497_v32, %v501_v62 }
 0x206   :  { %4132 = vmatprep.subr.bf16.mxu0 %v8773_v40  ;;  %v629_v31 = vld [vmem:[#allocation7 + $0x778] sm:$0xff] }
 0x207   :  { %4182 = vmatpush1.bf16.msra.mxu1 %v8780_v37  ;;  %v8885_v29 = vcombine.high %v625_v8, %v629_v31  ;;  %v489_v27 = vld [vmem:[#allocation7 + $0x318] sm:$0xff]  ;;  %v8884_v33 = vcombine.low %v625_v8, %v629_v31 }
 0x208   :  { %4183 = vmatprep.subr.bf16.mxu1 %v8901_v28  ;;  %v493_v3 = vld [vmem:[#allocation7 + $0x338] sm:$0xff] }
 0x209   :  { %4133 = vmatpush2.bf16.msra.mxu0 %v8772_v19  ;;  %v617_v52 = vld [vmem:[#allocation7 + $0x718] sm:$0xff]  ;;  %v8749_v41 = vcombine.high %v489_v27, %v493_v3  ;;  %v8748_v57 = vcombine.low %v489_v27, %v493_v3 }
 0x20a   :  { %4134 = vmatprep.subr.bf16.mxu0 %v8765_v42  ;;  %v621_v43 = vld [vmem:[#allocation7 + $0x738] sm:$0xff] }
 0x20b   :  { %4184 = vmatpush2.bf16.msra.mxu1 %v8900_v58  ;;  %v8877_v36 = vcombine.high %v617_v52, %v621_v43  ;;  %v481_v44 = vld [vmem:[#allocation7 + $0x2d8] sm:$0xff]  ;;  %v8876_v16 = vcombine.low %v617_v52, %v621_v43 }
 0x20c   :  { %4185 = vmatprep.subr.bf16.mxu1 %v8893_v10  ;;  %v485_v37 = vld [vmem:[#allocation7 + $0x2f8] sm:$0xff] }
 0x20d   :  { %4135 = vmatpush2.bf16.msra.mxu0 %v8764_v61  ;;  %v609_v40 = vld [vmem:[#allocation7 + $0x6d8] sm:$0xff]  ;;  %v8741_v56 = vcombine.high %v481_v44, %v485_v37  ;;  %v8740_v32 = vcombine.low %v481_v44, %v485_v37 }
 0x20e   :  { %4136 = vmatprep.subr.bf16.mxu0 %v8757_v25  ;;  %v613_v28 = vld [vmem:[#allocation7 + $0x6f8] sm:$0xff] }
 0x20f   :  { %4186 = vmatpush2.bf16.msra.mxu1 %v8892_v23  ;;  %v8869_v6 = vcombine.high %v609_v40, %v613_v28  ;;  %v473_v19 = vld [vmem:[#allocation7 + $0x298] sm:$0xff]  ;;  %v8868_v62 = vcombine.low %v609_v40, %v613_v28 }
 0x210   :  { %4187 = vmatprep.subr.bf16.mxu1 %v8885_v29  ;;  %v477_v58 = vld [vmem:[#allocation7 + $0x2b8] sm:$0xff] }
 0x211   :  { %4137 = vmatpush2.bf16.msra.mxu0 %v8756_v12  ;;  %v601_v42 = vld [vmem:[#allocation7 + $0x698] sm:$0xff]  ;;  %v8733_v8 = vcombine.high %v473_v19, %v477_v58  ;;  %v8732_v27 = vcombine.low %v473_v19, %v477_v58 }
 0x212   :  { %4138 = vmatprep.subr.bf16.mxu0 %v8749_v41  ;;  %v605_v10 = vld [vmem:[#allocation7 + $0x6b8] sm:$0xff] }
 0x213   :  { %4188 = vmatpush2.bf16.msra.mxu1 %v8884_v33  ;;  %v8861_v31 = vcombine.high %v601_v42, %v605_v10  ;;  %v465_v61 = vld [vmem:[#allocation7 + $0x258] sm:$0xff]  ;;  %v8860_v3 = vcombine.low %v601_v42, %v605_v10 }
 0x214   :  { %4189 = vmatprep.subr.bf16.mxu1 %v8877_v36  ;;  %v469_v23 = vld [vmem:[#allocation7 + $0x278] sm:$0xff] }
 0x215   :  { %4139 = vmatpush2.bf16.msra.mxu0 %v8748_v57  ;;  %v593_v25 = vld [vmem:[#allocation7 + $0x658] sm:$0xff]  ;;  %v8725_v52 = vcombine.high %v465_v61, %v469_v23  ;;  %v8724_v44 = vcombine.low %v465_v61, %v469_v23 }
 0x216   :  { %4140 = vmatprep.subr.bf16.mxu0 %v8741_v56  ;;  %v597_v29 = vld [vmem:[#allocation7 + $0x678] sm:$0xff] }
 0x217   :  { %4190 = vmatpush2.bf16.msra.mxu1 %v8876_v16  ;;  %v8853_v43 = vcombine.high %v593_v25, %v597_v29  ;;  %v457_v12 = vld [vmem:[#allocation7 + $0x218] sm:$0xff]  ;;  %v8852_v37 = vcombine.low %v593_v25, %v597_v29 }
 0x218   :  { %4191 = vmatprep.subr.bf16.mxu1 %v8869_v6  ;;  %v461_v33 = vld [vmem:[#allocation7 + $0x238] sm:$0xff] }
 0x219   :  { %4141 = vmatpush2.bf16.msra.mxu0 %v8740_v32  ;;  %v585_v41 = vld [vmem:[#allocation7 + $0x618] sm:$0xff]  ;;  %v8717_v40 = vcombine.high %v457_v12, %v461_v33  ;;  %v8716_v19 = vcombine.low %v457_v12, %v461_v33 }
 0x21a   :  { %4142 = vmatprep.subr.bf16.mxu0 %v8733_v8  ;;  %v589_v36 = vld [vmem:[#allocation7 + $0x638] sm:$0xff] }
 0x21b   :  { %4192 = vmatpush2.bf16.msra.mxu1 %v8868_v62  ;;  %v8845_v28 = vcombine.high %v585_v41, %v589_v36  ;;  %v705_v57 = vld [vmem:[#allocation7 + $0x9d8] sm:$0xff]  ;;  %v8844_v58 = vcombine.low %v585_v41, %v589_v36 }
 0x21c   :  { %4193 = vmatprep.subr.bf16.mxu1 %v8861_v31  ;;  %v709_v16 = vld [vmem:[#allocation7 + $0x9f8] sm:$0xff] }
 0x21d   :  { %4143 = vmatpush2.bf16.msra.mxu0 %v8732_v27  ;;  %v833_v56 = vld [vmem:[#allocation7 + $0xdd8] sm:$0xff]  ;;  %v8965_v42 = vcombine.high %v705_v57, %v709_v16  ;;  %v8964_v61 = vcombine.low %v705_v57, %v709_v16 }
 0x21e   :  { %4144 = vmatprep.subr.bf16.mxu0 %v8725_v52  ;;  %v837_v6 = vld [vmem:[#allocation7 + $0xdf8] sm:$0xff] }
 0x21f   :  { %4194 = vmatpush2.bf16.msra.mxu1 %v8860_v3  ;;  %v9093_v10 = vcombine.high %v833_v56, %v837_v6  ;;  %v697_v32 = vld [vmem:[#allocation7 + $0x998] sm:$0xff]  ;;  %v9092_v23 = vcombine.low %v833_v56, %v837_v6 }
 0x220   :  { %4195 = vmatprep.subr.bf16.mxu1 %v8853_v43  ;;  %v701_v62 = vld [vmem:[#allocation7 + $0x9b8] sm:$0xff] }
 0x221   :  { %4145 = vmatpush2.bf16.msra.mxu0 %v8724_v44  ;;  %v825_v8 = vld [vmem:[#allocation7 + $0xd98] sm:$0xff]  ;;  %v8957_v25 = vcombine.high %v697_v32, %v701_v62  ;;  %v8956_v36 = vcombine.low %v697_v32, %v701_v62 }
 0x222   :  { %4146 = vmatprep.subr.bf16.mxu0 %v8717_v40  ;;  %v829_v31 = vld [vmem:[#allocation7 + $0xdb8] sm:$0xff] }
 0x223   :  { %4196 = vmatpush2.bf16.msra.mxu1 %v8852_v37  ;;  %v9085_v29 = vcombine.high %v825_v8, %v829_v31  ;;  %v689_v27 = vld [vmem:[#allocation7 + $0x958] sm:$0xff]  ;;  %v9084_v37 = vcombine.low %v825_v8, %v829_v31 }
 0x224   :  { %4197 = vmatprep.subr.bf16.mxu1 %v8845_v28  ;;  %v693_v3 = vld [vmem:[#allocation7 + $0x978] sm:$0xff] }
 0x225   :  { %4147 = vmatpush2.bf16.msra.mxu0 %v8716_v19  ;;  %v817_v43 = vld [vmem:[#allocation7 + $0xd58] sm:$0xff]  ;;  %v8949_v40 = vcombine.high %v689_v27, %v693_v3  ;;  %v8948_v32 = vcombine.low %v689_v27, %v693_v3 }
 0x226   :  { %4218 = vmatprep.subr.bf16.mxu0 %v8965_v42  ;;  %v821_v12 = vld [vmem:[#allocation7 + $0xd78] sm:$0xff] }
 0x227   :  { %4198 = vmatpush2.bf16.msra.mxu1 %v8844_v58  ;;  %v681_v56 = vld [vmem:[#allocation7 + $0x918] sm:$0xff]  ;;  %v9076_v62 = vcombine.low %v817_v43, %v821_v12 }
 0x228   :  { %4269 = vmatprep.subr.bf16.mxu1 %v9093_v10  ;;  %v3844_v52 = vpop.f32.mrf.mxu0  ;;  %4149 = vmatmul.mubr.bf16.vlgmr.msra.gmra.mxu0 %v10094_v30  ;;  %v9077_v30 = vcombine.high %v817_v43, %v821_v12  ;;  %v685_v6 = vld [vmem:[#allocation7 + $0x938] sm:$0xff] }
 0x229   :  { %v3845_v33 = vadd.f32 %v3844_v52, %v10262_v48  ;;  %4219 = vmatpush1.bf16.msra.mxu0 %v8964_v61  ;;  %4158 = vmatprep.mubr.bf16.mxu0 %v10135_v60  ;;  %v809_v19 = vld [vmem:[#allocation7 + $0xd18] sm:$0xff]  ;;  %v8941_v8 = vcombine.high %v681_v56, %v685_v6 }
 0x22a   :  { %v3895_v41 = vpop.f32.mrf.mxu1  ;;  %4200 = vmatmul.mubr.bf16.vlgmr.msra.gmra.mxu1 %v10121_v55  ;;  %v3846_v44 = vpop.f32.mrf.mxu0  ;;  %4220 = vmatprep.subr.bf16.mxu0 %v8957_v25  ;;  %v813_v55 = vld [vmem:[#allocation7 + $0xd38] sm:$0xff] }
 0x22b   :  { %4270 = vmatpush1.bf16.msra.mxu1 %v9092_v23  ;;  %v3896_v28 = vadd.f32 %v3895_v41, %v3845_v33  ;;  %v3847_v57 = vadd.f32 %v3846_v44, %v10267_v26  ;;  %4209 = vmatprep.mubr.bf16.mxu1 %v10141_v4  ;;  %v673_v31 = vld [vmem:[#allocation7 + $0x8d8] sm:$0xff]  ;;  %v9069_v25 = vcombine.high %v809_v19, %v813_v55 }
 0x22c   :  { %v3897_v16 = vpop.f32.mrf.mxu1  ;;  %4271 = vmatprep.subr.bf16.mxu1 %v9085_v29  ;;  %v3848_v48 = vpop.f32.mrf.mxu0  ;;  %v677_v29 = vld [vmem:[#allocation7 + $0x8f8] sm:$0xff]  ;;  %v9068_v44 = vcombine.low %v809_v19, %v813_v55 }
 0x22d   :  { %v3898_v58 = vadd.f32 %v3897_v16, %v3847_v57  ;;  %v3849_v42 = vadd.f32 %v3848_v48, %v10269_v2  ;;  %4221 = vmatpush1.bf16.msra.mxu0 %v8956_v36  ;;  %v801_v4 = vld [vmem:[#allocation7 + $0xcd8] sm:$0xff]  ;;  %v8940_v2 = vcombine.low %v681_v56, %v685_v6  ;;  %v4322_v27 = vmax.f32 %v3896_v28, 0.0 }
 0x22e   :  { %v3899_v10 = vpop.f32.mrf.mxu1  ;;  %v3850_v26 = vpop.f32.mrf.mxu0  ;;  %4222 = vmatprep.subr.bf16.mxu0 %v8949_v40  ;;  %v805_v52 = vld [vmem:[#allocation7 + $0xcf8] sm:$0xff] }
 0x22f   :  { %4272 = vmatpush1.bf16.msra.mxu1 %v9084_v37  ;;  %v3900_v61 = vadd.f32 %v3899_v10, %v3849_v42  ;;  %v3851_v60 = vadd.f32 %v3850_v26, %v10273_v15  ;;  %v4323_v15 = vmax.f32 %v3898_v58, 0.0  ;;  %v8933_v37 = vcombine.high %v673_v31, %v677_v29  ;;  %v669_v56 = vld [vmem:[#allocation7 + $0x8b8] sm:$0xff] }
 0x230   :  { %v3901_v23 = vpop.f32.mrf.mxu1  ;;  %4273 = vmatprep.subr.bf16.mxu1 %v9077_v30  ;;  %v3854_v33 = vpop.f32.mrf.mxu0  ;;  %4159 = vmatmul.mubr.bf16.gmra.mxu0 %v10148_v34  ;;  %v9061_v40 = vcombine.high %v801_v4, %v805_v52  ;;  %v797_v6 = vld [vmem:[#allocation7 + $0xcb8] sm:$0xff]  ;;  %v8932_v58 = vcombine.low %v673_v31, %v677_v29  ;;  %v9060_v42 = vcombine.low %v801_v4, %v805_v52 }
 0x231   :  { %v4330_v3 = vmax.f32 %v3900_v61, 0.0  ;;  %v3902_v41 = vadd.f32 %v3901_v23, %v3851_v60  ;;  %v3855_v43 = vadd.f32 %v3854_v33, %v10277_v21  ;;  %4223 = vmatpush1.bf16.msra.mxu0 %v8948_v32  ;;  %v665_v21 = vld [vmem:[#allocation7 + $0x898] sm:$0xff]  ;;  %4250 = vmatprep.mubr.bf16.mxu0 %v10153_v11 }
 0x232   :  { %v3905_v12 = vpop.f32.mrf.mxu1  ;;  %4210 = vmatmul.mubr.bf16.gmra.mxu1 %v10151_v38  ;;  %v3856_v36 = vpop.f32.mrf.mxu0  ;;  %4224 = vmatprep.subr.bf16.mxu0 %v8941_v8  ;;  %v793_v38 = vld [vmem:[#allocation7 + $0xc98] sm:$0xff]  ;;  %v8925_v10 = vcombine.high %v665_v21, %v669_v56 }
 0x233   :  { %4274 = vmatpush1.bf16.msra.mxu1 %v9076_v62  ;;  %v10294_v57 = vpack.c.bf16 %v4330_v3, %v4322_v27  ;;  %v4331_v16 = vmax.f32 %v3902_v41, 0.0  ;;  %v3857_v34 = vadd.f32 %v3856_v36, %v10281_v59  ;;  %v10297_v28 = vadd.f32 %v3905_v12, %v3855_v43  ;;  %4301 = vmatprep.mubr.bf16.mxu1 %v10156_v45  ;;  %v657_v11 = vld [vmem:[#allocation7 + $0x858] sm:$0xff] }
 0x234   :  { %v3907_v30 = vpop.f32.mrf.mxu1  ;;  %4275 = vmatprep.subr.bf16.mxu1 %v9069_v25  ;;  %v3858_v48 = vpop.f32.mrf.mxu0  ;;  %v9053_v26 = vcombine.high %v793_v38, %v797_v6  ;;  %v661_v62 = vld [vmem:[#allocation7 + $0x878] sm:$0xff]  ;;  %v8924_v45 = vcombine.low %v665_v21, %v669_v56  ;;  %v9052_v23 = vcombine.low %v793_v38, %v797_v6 }
 0x235   :  { %v10301_v19 = vpack.c.bf16 %v4331_v16, %v4323_v15  ;;  %v10303_v55 = vadd.f32 %v3907_v30, %v3857_v34  ;;  %4225 = vmatpush1.bf16.msra.mxu0 %v8940_v2  ;;  %v785_v61 = vld [vmem:[#allocation7 + $0xc58] sm:$0xff]  ;;  %v8917_v25 = vcombine.high %v657_v11, %v661_v62  ;;  %v8916_v2 = vcombine.low %v657_v11, %v661_v62 }
 0x236   :  { %v3909_v59 = vpop.f32.mrf.mxu1  ;;  %4226 = vmatprep.subr.bf16.mxu0 %v8933_v37  ;;  %v3859_v32 = vpop.f32.mrf.mxu0  ;;  %v789_v60 = vld [vmem:[#allocation7 + $0xc78] sm:$0xff] }
 0x237   :  { %4276 = vmatpush1.bf16.msra.mxu1 %v9068_v44  ;;  %v9045_v31 = vcombine.high %v785_v61, %v789_v60  ;;  %v649_v29 = vld [vmem:[#allocation7 + $0x818] sm:$0xff]  ;;  %v9044_v27 = vcombine.low %v785_v61, %v789_v60 }
 0x238   :  { %4277 = vmatprep.subr.bf16.mxu1 %v9061_v40  ;;  %v3910_v8 = vpop.f32.mrf.mxu1  ;;  %v653_v33 = vld [vmem:[#allocation7 + $0x838] sm:$0xff] }
 0x239   :  { %4227 = vmatpush1.bf16.msra.mxu0 %v8932_v58  ;;  %v777_v4 = vld [vmem:[#allocation7 + $0xc18] sm:$0xff]  ;;  %v8909_v3 = vcombine.high %v649_v29, %v653_v33  ;;  %v8908_v44 = vcombine.low %v649_v29, %v653_v33 }
 0x23a   :  { %4228 = vmatprep.subr.bf16.mxu0 %v8925_v10  ;;  %v781_v52 = vld [vmem:[#allocation7 + $0xc38] sm:$0xff] }
 0x23b   :  { %4278 = vmatpush1.bf16.msra.mxu1 %v9060_v42  ;;  %v9037_v41 = vcombine.high %v777_v4, %v781_v52  ;;  %v769_v43 = vld [vmem:[#allocation7 + $0xbd8] sm:$0xff]  ;;  %v9036_v37 = vcombine.low %v777_v4, %v781_v52 }
 0x23c   :  { %4279 = vmatprep.subr.bf16.mxu1 %v9053_v26  ;;  %v773_v12 = vld [vmem:[#allocation7 + $0xbf8] sm:$0xff] }
 0x23d   :  { %4229 = vmatpush1.bf16.msra.mxu0 %v8924_v45  ;;  %v897_v15 = vld [vmem:[#allocation7 + $0xfd8] sm:$0xff]  ;;  %v9029_v40 = vcombine.high %v769_v43, %v773_v12  ;;  %v9028_v38 = vcombine.low %v769_v43, %v773_v12 }
 0x23e   :  { %4230 = vmatprep.subr.bf16.mxu0 %v8917_v25  ;;  %v901_v36 = vld [vmem:[#allocation7 + $0xff8] sm:$0xff] }
 0x23f   :  { %4280 = vmatpush1.bf16.msra.mxu1 %v9052_v23  ;;  %v9157_v16 = vcombine.high %v897_v15, %v901_v36  ;;  %v761_v34 = vld [vmem:[#allocation7 + $0xb98] sm:$0xff]  ;;  %v9156_v6 = vcombine.low %v897_v15, %v901_v36 }
 0x240   :  { %4281 = vmatprep.subr.bf16.mxu1 %v9045_v31  ;;  %v765_v30 = vld [vmem:[#allocation7 + $0xbb8] sm:$0xff] }
 0x241   :  { %4231 = vmatpush1.bf16.msra.mxu0 %v8916_v2  ;;  %v889_v21 = vld [vmem:[#allocation7 + $0xf98] sm:$0xff]  ;;  %v9021_v48 = vcombine.high %v761_v34, %v765_v30  ;;  %v9020_v26 = vcombine.low %v761_v34, %v765_v30 }
 0x242   :  { %4232 = vmatprep.subr.bf16.mxu0 %v8909_v3  ;;  %v893_v56 = vld [vmem:[#allocation7 + $0xfb8] sm:$0xff] }
 0x243   :  { %4282 = vmatpush1.bf16.msra.mxu1 %v9044_v27  ;;  %v9149_v58 = vcombine.high %v889_v21, %v893_v56  ;;  %v753_v59 = vld [vmem:[#allocation7 + $0xb58] sm:$0xff]  ;;  %v9148_v11 = vcombine.low %v889_v21, %v893_v56 }
 0x244   :  { %4283 = vmatprep.subr.bf16.mxu1 %v9037_v41  ;;  %v757_v42 = vld [vmem:[#allocation7 + $0xb78] sm:$0xff] }
 0x245   :  { %4233 = vmatpush1.bf16.msra.mxu0 %v8908_v44  ;;  %v881_v10 = vld [vmem:[#allocation7 + $0xf58] sm:$0xff]  ;;  %v9013_v62 = vcombine.high %v753_v59, %v757_v42  ;;  %v9012_v25 = vcombine.low %v753_v59, %v757_v42 }
 0x246   :  { %4234 = vmatprep.subr.bf16.mxu0 %v9029_v40  ;;  %v885_v32 = vld [vmem:[#allocation7 + $0xf78] sm:$0xff] }
 0x247   :  { %4284 = vmatpush1.bf16.msra.mxu1 %v9036_v37  ;;  %v9141_v8 = vcombine.high %v881_v10, %v885_v32  ;;  %v745_v61 = vld [vmem:[#allocation7 + $0xb18] sm:$0xff]  ;;  %v9140_v31 = vcombine.low %v881_v10, %v885_v32 }
 0x248   :  { %4285 = vmatprep.subr.bf16.mxu1 %v9157_v16  ;;  %v749_v60 = vld [vmem:[#allocation7 + $0xb38] sm:$0xff] }
 0x249   :  { %4235 = vmatpush2.bf16.msra.mxu0 %v9028_v38  ;;  %v873_v45 = vld [vmem:[#allocation7 + $0xf18] sm:$0xff]  ;;  %v9005_v29 = vcombine.high %v745_v61, %v749_v60  ;;  %v9004_v3 = vcombine.low %v745_v61, %v749_v60 }
 0x24a   :  { %4236 = vmatprep.subr.bf16.mxu0 %v9021_v48  ;;  %v877_v23 = vld [vmem:[#allocation7 + $0xf38] sm:$0xff] }
 0x24b   :  { %4286 = vmatpush2.bf16.msra.mxu1 %v9156_v6  ;;  %v9133_v33 = vcombine.high %v873_v45, %v877_v23  ;;  %v737_v4 = vld [vmem:[#allocation7 + $0xad8] sm:$0xff]  ;;  %v9132_v41 = vcombine.low %v873_v45, %v877_v23  ;;  %v4416_v23 = vld [vmem:[#allocation10 + $0x1c0] sm:$0xff] }
 0x24c   :  { %4287 = vmatprep.subr.bf16.mxu1 %v9149_v58  ;;  %v741_v52 = vld [vmem:[#allocation7 + $0xaf8] sm:$0xff] }
 0x24d   :  { %4237 = vmatpush2.bf16.msra.mxu0 %v9020_v26  ;;  %v865_v2 = vld [vmem:[#allocation7 + $0xed8] sm:$0xff]  ;;  %v8997_v43 = vcombine.high %v737_v4, %v741_v52  ;;  %v8996_v40 = vcombine.low %v737_v4, %v741_v52 }
 0x24e   :  { %4238 = vmatprep.subr.bf16.mxu0 %v9013_v62  ;;  %v869_v27 = vld [vmem:[#allocation7 + $0xef8] sm:$0xff] }
 0x24f   :  { %4288 = vmatpush2.bf16.msra.mxu1 %v9148_v11  ;;  %v9125_v12 = vcombine.high %v865_v2, %v869_v27  ;;  %v729_v15 = vld [vmem:[#allocation7 + $0xa98] sm:$0xff]  ;;  %v9124_v16 = vcombine.low %v865_v2, %v869_v27  ;;  %v4412_v27 = vld [vmem:[#allocation10 + $0x1a0] sm:$0xff] }
 0x250   :  { %4289 = vmatprep.subr.bf16.mxu1 %v9141_v8  ;;  %v733_v36 = vld [vmem:[#allocation7 + $0xab8] sm:$0xff]  ;;  %v3545_v8 = vadd.f32 %v10214_v24, %v10203_v13  ;;  %v4408_v24 = vld [vmem:[#allocation10 + $0x180] sm:$0xff] }
 0x251   :  { %4239 = vmatpush2.bf16.msra.mxu0 %v9012_v25  ;;  %v857_v44 = vld [vmem:[#allocation7 + $0xe98] sm:$0xff]  ;;  %v8989_v34 = vcombine.high %v729_v15, %v733_v36  ;;  %v8988_v48 = vcombine.low %v729_v15, %v733_v36  ;;  %v4420_v25 = vld [vmem:[#allocation10 + $0x1e0] sm:$0xff] }
 0x252   :  { %4240 = vmatprep.subr.bf16.mxu0 %v9005_v29  ;;  %v861_v37 = vld [vmem:[#allocation7 + $0xeb8] sm:$0xff]  ;;  %v4548_v29 = vld [vmem:[#allocation10 + $0x5e0] sm:$0xff]  ;;  %v3596_v4 = vadd.f32 %v10218_v1, %v3545_v8  ;;  %v9215_v2 = vcombine.high %v4416_v23, %v4420_v25  ;;  %v9214_v1 = vcombine.low %v4416_v23, %v4420_v25 }
 0x253   :  { %4290 = vmatpush2.bf16.msra.mxu1 %v9140_v31  ;;  %v9117_v30 = vcombine.high %v857_v44, %v861_v37  ;;  %v721_v21 = vld [vmem:[#allocation7 + $0xa58] sm:$0xff]  ;;  %v9116_v58 = vcombine.low %v857_v44, %v861_v37  ;;  %v4544_v31 = vld [vmem:[#allocation10 + $0x5c0] sm:$0xff]  ;;  %v9207_v44 = vcombine.high %v4408_v24, %v4412_v27 }
 0x254   :  { %4291 = vmatprep.subr.bf16.mxu1 %v9133_v33  ;;  %v725_v56 = vld [vmem:[#allocation7 + $0xa78] sm:$0xff]  ;;  %v9343_v13 = vcombine.high %v4544_v31, %v4548_v29  ;;  %v9342_v36 = vcombine.low %v4544_v31, %v4548_v29  ;;  %v4520_v23 = vld [vmem:[#allocation10 + $0x500] sm:$0xff]  ;;  %v4321_v31 = vmax.f32 %v10235_v39, 0.0 }
 0x255   :  { %4241 = vmatpush2.bf16.msra.mxu0 %v9004_v3  ;;  %v849_v38 = vld [vmem:[#allocation7 + $0xe58] sm:$0xff]  ;;  %v8981_v59 = vcombine.high %v721_v21, %v725_v56  ;;  %v8980_v62 = vcombine.low %v721_v21, %v725_v56  ;;  %v3647_v3 = vadd.f32 %v10238_v50, %v3596_v4  ;;  %v4528_v21 = vld [vmem:[#allocation10 + $0x540] sm:$0xff] }
 0x256   :  { %4242 = vmatprep.subr.bf16.mxu0 %v8997_v43  ;;  %v853_v6 = vld [vmem:[#allocation7 + $0xe78] sm:$0xff]  ;;  %v4540_v43 = vld [vmem:[#allocation10 + $0x5a0] sm:$0xff] }
 0x257   :  { %4292 = vmatpush2.bf16.msra.mxu1 %v9132_v41  ;;  %v9109_v42 = vcombine.high %v849_v38, %v853_v6  ;;  %v713_v10 = vld [vmem:[#allocation7 + $0xa18] sm:$0xff]  ;;  %v9108_v61 = vcombine.low %v849_v38, %v853_v6  ;;  %v4536_v41 = vld [vmem:[#allocation10 + $0x580] sm:$0xff] }
 0x258   :  { %4293 = vmatprep.subr.bf16.mxu1 %v9125_v12  ;;  %v717_v32 = vld [vmem:[#allocation7 + $0xa38] sm:$0xff]  ;;  %v10309_v12 = vld [vmem:[#allocation8] sm:$0xff]  ;;  %v9335_v50 = vcombine.high %v4536_v41, %v4540_v43  ;;  %v4532_v56 = vld [vmem:[#allocation10 + $0x560] sm:$0xff] }
 0x259   :  { %4243 = vmatpush2.bf16.msra.mxu0 %v8996_v40  ;;  %v841_v26 = vld [vmem:[#allocation7 + $0xe18] sm:$0xff]  ;;  %v8973_v60 = vcombine.high %v713_v10, %v717_v32  ;;  %v8972_v33 = vcombine.low %v713_v10, %v717_v32  ;;  %v10313_v15 = vrot.slane %v10309_v12, %v10044_v47  ;;  %v10317_v37 = vrot.slane %v10309_v12, %v10041_v46  ;;  %v4400_v40 = vld [vmem:[#allocation10 + $0x140] sm:$0xff] }
 0x25a   :  { %4244 = vmatprep.subr.bf16.mxu0 %v8989_v34  ;;  %v845_v11 = vld [vmem:[#allocation7 + $0xe38] sm:$0xff]  ;;  %v3698_v34 = vadd.f32 %v10240_v51, %v3647_v3  ;;  %v4524_v25 = vld [vmem:[#allocation10 + $0x520] sm:$0xff]  ;;  %v9326_v29 = vcombine.low %v4528_v21, %v4532_v56 }
 0x25b   :  { %4294 = vmatpush2.bf16.msra.mxu1 %v9124_v16  ;;  %v9101_v45 = vcombine.high %v841_v26, %v845_v11  ;;  %v9100_v52 = vcombine.low %v841_v26, %v845_v11  ;;  %v4404_v16 = vld [vmem:[#allocation10 + $0x160] sm:$0xff] }
 0x25c   :  { %4295 = vmatprep.subr.bf16.mxu1 %v9117_v30  ;;  %v4329_v26 = vmax.f32 %v3698_v34, 0.0  ;;  %v4516_v39 = vld [vmem:[#allocation10 + $0x4e0] sm:$0xff] }
 0x25d   :  { %4245 = vmatpush2.bf16.msra.mxu0 %v8988_v48  ;;  %v9206_v48 = vcombine.low %v4408_v24, %v4412_v27  ;;  %v9319_v24 = vcombine.high %v4520_v23, %v4524_v25  ;;  %v4512_v27 = vld [vmem:[#allocation10 + $0x4c0] sm:$0xff] }
 0x25e   :  { %4246 = vmatprep.subr.bf16.mxu0 %v8981_v59  ;;  %v9334_v59 = vcombine.low %v4536_v41, %v4540_v43 }
 0x25f   :  { %4296 = vmatpush2.bf16.msra.mxu1 %v9116_v58 }
 0x260   :  { %4297 = vmatprep.subr.bf16.mxu1 %v9109_v42  ;;  %v9199_v42 = vcombine.high %v4400_v40, %v4404_v16 }
 0x261   :  { %4247 = vmatpush2.bf16.msra.mxu0 %v8980_v62  ;;  %v4396_v62 = vld [vmem:[#allocation10 + $0x120] sm:$0xff] }
 0x262   :  { %4248 = vmatprep.subr.bf16.mxu0 %v8973_v60 }
 0x263   :  { %4298 = vmatpush2.bf16.msra.mxu1 %v9108_v61 }
 0x264   :  { %4299 = vmatprep.subr.bf16.mxu1 %v9101_v45  ;;  %v9198_v45 = vcombine.low %v4400_v40, %v4404_v16  ;;  %v4376_v40 = vld [vmem:[#allocation10 + $0x80] sm:$0xff] }
 0x265   :  { %4249 = vmatpush2.bf16.msra.mxu0 %v8972_v33  ;;  %v4380_v16 = vld [vmem:[#allocation10 + $0xa0] sm:$0xff] }
 0x266   :  { %7474 = vmatprep.subr.bf16.mxu0 %v9215_v2  ;;  %v4388_v2 = vld [vmem:[#allocation10 + $0xe0] sm:$0xff] }
 0x267   :  { %4300 = vmatpush2.bf16.msra.mxu1 %v9100_v52  ;;  %v4384_v52 = vld [vmem:[#allocation10 + $0xc0] sm:$0xff] }
 0x268   :  { %7525 = vmatprep.subr.bf16.mxu1 %v9343_v13  ;;  %v3946_v30 = vpop.f32.mrf.mxu0  ;;  %4251 = vmatmul.mubr.bf16.vlgmr.msra.gmra.mxu0 %v10128_v63  ;;  %v9327_v63 = vcombine.high %v4528_v21, %v4532_v56  ;;  %v10338_v13 = vpack.c.bf16 %v4329_v26, %v4321_v31  ;;  %v4508_v21 = vld [vmem:[#allocation10 + $0x4a0] sm:$0xff] }
 0x269   :  { %v3947_v38 = vadd.f32 %v3946_v30, %v10313_v15  ;;  %7475 = vmatpush1.bf16.msra.mxu0 %v9214_v1  ;;  %4260 = vmatprep.mubr.bf16.mxu0 %v10173_v18  ;;  %v4488_v31 = vld [vmem:[#allocation10 + $0x400] sm:$0xff] }
 0x26a   :  { %v3997_v6 = vpop.f32.mrf.mxu1  ;;  %4302 = vmatmul.mubr.bf16.vlgmr.msra.gmra.mxu1 %v10133_v0  ;;  %v3948_v58 = vpop.f32.mrf.mxu0  ;;  %7476 = vmatprep.subr.bf16.mxu0 %v9207_v44  ;;  %v4392_v0 = vld [vmem:[#allocation10 + $0x100] sm:$0xff]  ;;  %v9183_v44 = vcombine.high %v4384_v52, %v4388_v2 }
 0x26b   :  { %7526 = vmatpush1.bf16.msra.mxu1 %v9342_v36  ;;  %v10323_v10 = vadd.f32 %v3997_v6, %v3947_v38  ;;  %v3949_v51 = vadd.f32 %v3948_v58, %v10317_v37  ;;  %4311 = vmatprep.mubr.bf16.mxu1 %v10176_v53  ;;  %v9191_v4 = vcombine.high %v4392_v0, %v4396_v62 }
 0x26c   :  { %v3999_v32 = vpop.f32.mrf.mxu1  ;;  %7527 = vmatprep.subr.bf16.mxu1 %v9335_v50  ;;  %v3950_v11 = vpop.f32.mrf.mxu0  ;;  %v9190_v41 = vcombine.low %v4392_v0, %v4396_v62  ;;  %v9318_v36 = vcombine.low %v4520_v23, %v4524_v25  ;;  %v9182_v38 = vcombine.low %v4384_v52, %v4388_v2  ;;  %v9310_v58 = vcombine.low %v4512_v27, %v4516_v39  ;;  %v4500_v0 = vld [vmem:[#allocation10 + $0x460] sm:$0xff] }
 0x26d   :  { %v10328_v8 = vadd.f32 %v3999_v32, %v3949_v51  ;;  %v3951_v61 = vadd.f32 %v3950_v11, %v10313_v15  ;;  %7477 = vmatpush1.bf16.msra.mxu0 %v9206_v48  ;;  %v4368_v32 = vld [vmem:[#allocation10 + $0x40] sm:$0xff]  ;;  %v9174_v62 = vcombine.low %v4376_v40, %v4380_v16 }
 0x26e   :  { %v4001_v60 = vpop.f32.mrf.mxu1  ;;  %v10332_v18 = vpop.f32.mrf.mxu0  ;;  %7478 = vmatprep.subr.bf16.mxu0 %v9199_v42  ;;  %v4496_v11 = vld [vmem:[#allocation10 + $0x440] sm:$0xff] }
 0x26f   :  { %7528 = vmatpush1.bf16.msra.mxu1 %v9334_v59  ;;  %v10334_v33 = vadd.f32 %v4001_v60, %v3951_v61  ;;  %v9175_v59 = vcombine.high %v4376_v40, %v4380_v16  ;;  %v4360_v23 = vld [vmem:[#allocation10] sm:$0xff]  ;;  %v9294_v52 = vcombine.low %v4496_v11, %v4500_v0 }
 0x270   :  { %v10336_v53 = vpop.f32.mrf.mxu1  ;;  %7529 = vmatprep.subr.bf16.mxu1 %v9327_v63  ;;  %4261 = vmatmul.mubr.bf16.gmra.mxu0 %v10180_v5  ;;  %v3956_v3 = vpop.f32.mrf.mxu0  ;;  %v9311_v5 = vcombine.high %v4512_v27, %v4516_v39  ;;  %v4372_v63 = vld [vmem:[#allocation10 + $0x60] sm:$0xff] }
 0x271   :  { %7479 = vmatpush1.bf16.msra.mxu0 %v9198_v45  ;;  %v3957_v43 = vadd.f32 %v3956_v3, %v10313_v15  ;;  %7506 = vmatprep.mubr.bf16.mxu0 %v10338_v13  ;;  %v4504_v15 = vld [vmem:[#allocation10 + $0x480] sm:$0xff]  ;;  %v9167_v60 = vcombine.high %v4368_v32, %v4372_v63  ;;  %v9295_v45 = vcombine.high %v4496_v11, %v4500_v0 }
 0x272   :  { %4312 = vmatmul.mubr.bf16.gmra.mxu1 %v10183_v7  ;;  %v4007_v1 = vpop.f32.mrf.mxu1  ;;  %v3958_v50 = vpop.f32.mrf.mxu0  ;;  %7480 = vmatprep.subr.bf16.mxu0 %v9191_v4  ;;  %v9303_v51 = vcombine.high %v4504_v15, %v4508_v21  ;;  %v9302_v61 = vcombine.low %v4504_v15, %v4508_v21  ;;  %v4364_v25 = vld [vmem:[#allocation10 + $0x20] sm:$0xff]  ;;  %v9166_v4 = vcombine.low %v4368_v32, %v4372_v63 }
 0x273   :  { %7530 = vmatpush1.bf16.msra.mxu1 %v9326_v29  ;;  %7557 = vmatprep.mubr.bf16.mxu1 %v10301_v19  ;;  %v3959_v34 = vadd.f32 %v3958_v50, %v10317_v37  ;;  %v10346_v7 = vadd.f32 %v4007_v1, %v3957_v43  ;;  %v4492_v29 = vld [vmem:[#allocation10 + $0x420] sm:$0xff]  ;;  %v9159_v2 = vcombine.high %v4360_v23, %v4364_v25 }
 0x274   :  { %v4009_v30 = vpop.f32.mrf.mxu1  ;;  %7531 = vmatprep.subr.bf16.mxu1 %v9319_v24  ;;  %v3960_v56 = vpop.f32.mrf.mxu0  ;;  %v9287_v24 = vcombine.high %v4488_v31, %v4492_v29  ;;  %v4480_v27 = vld [vmem:[#allocation10 + $0x3c0] sm:$0xff]  ;;  %v9158_v43 = vcombine.low %v4360_v23, %v4364_v25  ;;  %v9286_v1 = vcombine.low %v4488_v31, %v4492_v29 }
 0x275   :  { %7481 = vmatpush1.bf16.msra.mxu0 %v9190_v41  ;;  %v10348_v6 = vadd.f32 %v4009_v30, %v3959_v34  ;;  %v4484_v39 = vld [vmem:[#allocation10 + $0x3e0] sm:$0xff] }
 0x276   :  { %v4011_v48 = vpop.f32.mrf.mxu1  ;;  %7482 = vmatprep.subr.bf16.mxu0 %v9183_v44  ;;  %v3961_v42 = vpop.f32.mrf.mxu0  ;;  %v4608_v3 = vld [vmem:[#allocation10 + $0x7c0] sm:$0xff]  ;;  %v9278_v34 = vcombine.low %v4480_v27, %v4484_v39 }
 0x277   :  { %7532 = vmatpush1.bf16.msra.mxu1 %v9318_v36  ;;  %v4612_v41 = vld [vmem:[#allocation10 + $0x7e0] sm:$0xff]  ;;  %v9279_v36 = vcombine.high %v4480_v27, %v4484_v39 }
 0x278   :  { %7533 = vmatprep.subr.bf16.mxu1 %v9311_v5  ;;  %v4012_v26 = vpop.f32.mrf.mxu1  ;;  %v9407_v44 = vcombine.high %v4608_v3, %v4612_v41  ;;  %v4472_v50 = vld [vmem:[#allocation10 + $0x380] sm:$0xff]  ;;  %v9406_v30 = vcombine.low %v4608_v3, %v4612_v41 }
 0x279   :  { %7483 = vmatpush1.bf16.msra.mxu0 %v9182_v38  ;;  %v4476_v5 = vld [vmem:[#allocation10 + $0x3a0] sm:$0xff] }
 0x27a   :  { %7484 = vmatprep.subr.bf16.mxu0 %v9175_v59  ;;  %v4600_v40 = vld [vmem:[#allocation10 + $0x780] sm:$0xff]  ;;  %v9271_v15 = vcombine.high %v4472_v50, %v4476_v5  ;;  %v9270_v59 = vcombine.low %v4472_v50, %v4476_v5 }
 0x27b   :  { %7534 = vmatpush1.bf16.msra.mxu1 %v9310_v58  ;;  %v4604_v16 = vld [vmem:[#allocation10 + $0x7a0] sm:$0xff] }
 0x27c   :  { %7535 = vmatprep.subr.bf16.mxu1 %v9303_v51  ;;  %v9399_v21 = vcombine.high %v4600_v40, %v4604_v16  ;;  %v4464_v56 = vld [vmem:[#allocation10 + $0x340] sm:$0xff]  ;;  %v9398_v42 = vcombine.low %v4600_v40, %v4604_v16 }
 0x27d   :  { %7485 = vmatpush1.bf16.msra.mxu0 %v9174_v62  ;;  %v4468_v38 = vld [vmem:[#allocation10 + $0x360] sm:$0xff] }
 0x27e   :  { %7486 = vmatprep.subr.bf16.mxu0 %v9167_v60  ;;  %v4592_v48 = vld [vmem:[#allocation10 + $0x740] sm:$0xff]  ;;  %v9263_v51 = vcombine.high %v4464_v56, %v4468_v38  ;;  %v9262_v62 = vcombine.low %v4464_v56, %v4468_v38 }
 0x27f   :  { %7536 = vmatpush1.bf16.msra.mxu1 %v9302_v61  ;;  %v4596_v58 = vld [vmem:[#allocation10 + $0x760] sm:$0xff] }
 0x280   :  { %7537 = vmatprep.subr.bf16.mxu1 %v9295_v45  ;;  %v9391_v32 = vcombine.high %v4592_v48, %v4596_v58  ;;  %v4456_v63 = vld [vmem:[#allocation10 + $0x300] sm:$0xff]  ;;  %v9390_v61 = vcombine.low %v4592_v48, %v4596_v58 }
 0x281   :  { %7487 = vmatpush1.bf16.msra.mxu0 %v9166_v4  ;;  %v4460_v26 = vld [vmem:[#allocation10 + $0x320] sm:$0xff] }
 0x282   :  { %7488 = vmatprep.subr.bf16.mxu0 %v9159_v2  ;;  %v4584_v11 = vld [vmem:[#allocation10 + $0x700] sm:$0xff]  ;;  %v9255_v60 = vcombine.high %v4456_v63, %v4460_v26  ;;  %v9254_v4 = vcombine.low %v4456_v63, %v4460_v26 }
 0x283   :  { %7538 = vmatpush1.bf16.msra.mxu1 %v9294_v52  ;;  %v4588_v0 = vld [vmem:[#allocation10 + $0x720] sm:$0xff] }
 0x284   :  { %7539 = vmatprep.subr.bf16.mxu1 %v9287_v24  ;;  %v9383_v45 = vcombine.high %v4584_v11, %v4588_v0  ;;  %v4448_v23 = vld [vmem:[#allocation10 + $0x2c0] sm:$0xff]  ;;  %v9382_v52 = vcombine.low %v4584_v11, %v4588_v0 }
 0x285   :  { %7489 = vmatpush1.bf16.msra.mxu0 %v9158_v43  ;;  %v4452_v25 = vld [vmem:[#allocation10 + $0x2e0] sm:$0xff] }
 0x286   :  { %7490 = vmatprep.subr.bf16.mxu0 %v9279_v36  ;;  %v4576_v31 = vld [vmem:[#allocation10 + $0x6c0] sm:$0xff]  ;;  %v9247_v2 = vcombine.high %v4448_v23, %v4452_v25  ;;  %v9246_v43 = vcombine.low %v4448_v23, %v4452_v25  ;;  %v4339_v25 = vmax.f32 %v10303_v55, 0.0 }
 0x287   :  { %7540 = vmatpush1.bf16.msra.mxu1 %v9286_v1  ;;  %v4580_v29 = vld [vmem:[#allocation10 + $0x6e0] sm:$0xff] }
 0x288   :  { %7541 = vmatprep.subr.bf16.mxu1 %v9407_v44  ;;  %v9375_v24 = vcombine.high %v4576_v31, %v4580_v29  ;;  %v4440_v27 = vld [vmem:[#allocation10 + $0x280] sm:$0xff]  ;;  %v9374_v1 = vcombine.low %v4576_v31, %v4580_v29 }
 0x289   :  { %7491 = vmatpush2.bf16.msra.mxu0 %v9278_v34  ;;  %v4444_v39 = vld [vmem:[#allocation10 + $0x2a0] sm:$0xff] }
 0x28a   :  { %7492 = vmatprep.subr.bf16.mxu0 %v9271_v15  ;;  %v4568_v3 = vld [vmem:[#allocation10 + $0x680] sm:$0xff]  ;;  %v9239_v36 = vcombine.high %v4440_v27, %v4444_v39  ;;  %v9238_v34 = vcombine.low %v4440_v27, %v4444_v39 }
 0x28b   :  { %7542 = vmatpush2.bf16.msra.mxu1 %v9406_v30  ;;  %v4572_v41 = vld [vmem:[#allocation10 + $0x6a0] sm:$0xff] }
 0x28c   :  { %7543 = vmatprep.subr.bf16.mxu1 %v9399_v21  ;;  %v9367_v44 = vcombine.high %v4568_v3, %v4572_v41  ;;  %v4432_v50 = vld [vmem:[#allocation10 + $0x240] sm:$0xff]  ;;  %v9366_v30 = vcombine.low %v4568_v3, %v4572_v41  ;;  %v10354_v3 = vpack.c.bf16 %v4339_v25, %v4339_v25 }
 0x28d   :  { %7493 = vmatpush2.bf16.msra.mxu0 %v9270_v59  ;;  %v4436_v5 = vld [vmem:[#allocation10 + $0x260] sm:$0xff] }
 0x28e   :  { %7494 = vmatprep.subr.bf16.mxu0 %v9263_v51  ;;  %v4560_v40 = vld [vmem:[#allocation10 + $0x640] sm:$0xff]  ;;  %v9231_v15 = vcombine.high %v4432_v50, %v4436_v5  ;;  %v9230_v59 = vcombine.low %v4432_v50, %v4436_v5 }
 0x28f   :  { %7544 = vmatpush2.bf16.msra.mxu1 %v9398_v42  ;;  %v4564_v16 = vld [vmem:[#allocation10 + $0x660] sm:$0xff] }
 0x290   :  { %7545 = vmatprep.subr.bf16.mxu1 %v9391_v32  ;;  %v9359_v21 = vcombine.high %v4560_v40, %v4564_v16  ;;  %v4424_v56 = vld [vmem:[#allocation10 + $0x200] sm:$0xff]  ;;  %v9358_v42 = vcombine.low %v4560_v40, %v4564_v16  ;;  %v4338_v16 = vmax.f32 %v10297_v28, 0.0 }
 0x291   :  { %7495 = vmatpush2.bf16.msra.mxu0 %v9262_v62  ;;  %v4428_v38 = vld [vmem:[#allocation10 + $0x220] sm:$0xff] }
 0x292   :  { %7496 = vmatprep.subr.bf16.mxu0 %v9255_v60  ;;  %v4552_v48 = vld [vmem:[#allocation10 + $0x600] sm:$0xff]  ;;  %v9223_v51 = vcombine.high %v4424_v56, %v4428_v38  ;;  %v9222_v62 = vcombine.low %v4424_v56, %v4428_v38 }
 0x293   :  { %7546 = vmatpush2.bf16.msra.mxu1 %v9390_v61  ;;  %v4556_v58 = vld [vmem:[#allocation10 + $0x620] sm:$0xff] }
 0x294   :  { %7547 = vmatprep.subr.bf16.mxu1 %v9383_v45  ;;  %v9351_v32 = vcombine.high %v4552_v48, %v4556_v58  ;;  %v4672_v63 = vld [vmem:[#allocation10 + $0x9c0] sm:$0xff]  ;;  %v9350_v61 = vcombine.low %v4552_v48, %v4556_v58  ;;  %v4337_v45 = vmax.f32 %v10252_v35, 0.0 }
 0x295   :  { %7497 = vmatpush2.bf16.msra.mxu0 %v9254_v4  ;;  %v4676_v26 = vld [vmem:[#allocation10 + $0x9e0] sm:$0xff] }
 0x296   :  { %7498 = vmatprep.subr.bf16.mxu0 %v9247_v2  ;;  %v4800_v11 = vld [vmem:[#allocation10 + $0xdc0] sm:$0xff]  ;;  %v9471_v60 = vcombine.high %v4672_v63, %v4676_v26  ;;  %v9470_v2 = vcombine.low %v4672_v63, %v4676_v26 }
 0x297   :  { %7548 = vmatpush2.bf16.msra.mxu1 %v9382_v52  ;;  %v4804_v0 = vld [vmem:[#allocation10 + $0xde0] sm:$0xff] }
 0x298   :  { %7549 = vmatprep.subr.bf16.mxu1 %v9375_v24  ;;  %v9599_v23 = vcombine.high %v4800_v11, %v4804_v0  ;;  %v4664_v31 = vld [vmem:[#allocation10 + $0x980] sm:$0xff]  ;;  %v10352_v24 = vpack.c.bf16 %v4337_v45, %v4337_v45  ;;  %v9598_v39 = vcombine.low %v4800_v11, %v4804_v0 }
 0x299   :  { %7499 = vmatpush2.bf16.msra.mxu0 %v9246_v43  ;;  %v4668_v29 = vld [vmem:[#allocation10 + $0x9a0] sm:$0xff] }
 0x29a   :  { %7500 = vmatprep.subr.bf16.mxu0 %v9239_v36  ;;  %v4792_v4 = vld [vmem:[#allocation10 + $0xd80] sm:$0xff]  ;;  %v9463_v27 = vcombine.high %v4664_v31, %v4668_v29  ;;  %v3953_v36 = vadd.f32 %v10332_v18, %v10317_v37 }
 0x29b   :  { %7550 = vmatpush2.bf16.msra.mxu1 %v9374_v1  ;;  %v4796_v52 = vld [vmem:[#allocation10 + $0xda0] sm:$0xff]  ;;  %v4336_v1 = vmax.f32 %v10248_v49, 0.0 }
 0x29c   :  { %7551 = vmatprep.subr.bf16.mxu1 %v9367_v44  ;;  %v4656_v41 = vld [vmem:[#allocation10 + $0x940] sm:$0xff]  ;;  %v9591_v43 = vcombine.high %v4792_v4, %v4796_v52  ;;  %v4004_v28 = vadd.f32 %v10336_v53, %v3953_v36 }
 0x29d   :  { %7501 = vmatpush2.bf16.msra.mxu0 %v9238_v34  ;;  %v4660_v55 = vld [vmem:[#allocation10 + $0x960] sm:$0xff]  ;;  %v10366_v48 = vpack.c.bf16 %v4336_v1, %v4336_v1 }
 0x29e   :  { %7502 = vmatprep.subr.bf16.mxu0 %v9231_v15  ;;  %v4784_v5 = vld [vmem:[#allocation10 + $0xd40] sm:$0xff]  ;;  %v9455_v37 = vcombine.high %v4656_v41, %v4660_v55  ;;  %v9454_v26 = vcombine.low %v4656_v41, %v4660_v55 }
 0x29f   :  { %7552 = vmatpush2.bf16.msra.mxu1 %v9366_v30  ;;  %v4788_v40 = vld [vmem:[#allocation10 + $0xd60] sm:$0xff]  ;;  %v9462_v30 = vcombine.low %v4664_v31, %v4668_v29 }
 0x2a0   :  { %7553 = vmatprep.subr.bf16.mxu1 %v9359_v21  ;;  %v4652_v18 = vld [vmem:[#allocation10 + $0x920] sm:$0xff]  ;;  %v9590_v21 = vcombine.low %v4792_v4, %v4796_v52  ;;  %v9583_v38 = vcombine.high %v4784_v5, %v4788_v40  ;;  %v9582_v0 = vcombine.low %v4784_v5, %v4788_v40 }
 0x2a1   :  { %7503 = vmatpush2.bf16.msra.mxu0 %v9230_v59 }
 0x2a2   :  { %7504 = vmatprep.subr.bf16.mxu0 %v9223_v51  ;;  %v4776_v51 = vld [vmem:[#allocation10 + $0xd00] sm:$0xff] }
 0x2a3   :  { %7554 = vmatpush2.bf16.msra.mxu1 %v9358_v42 }
 0x2a4   :  { %7555 = vmatprep.subr.bf16.mxu1 %v9351_v32  ;;  %v10370_v32 = vpack.c.bf16 %v4338_v16, %v4338_v16 }
 0x2a5   :  { %7505 = vmatpush2.bf16.msra.mxu0 %v9222_v62 }
 0x2a6   :  { %7576 = vmatprep.subr.bf16.mxu0 %v9471_v60 }
 0x2a7   :  { %7556 = vmatpush2.bf16.msra.mxu1 %v9350_v61 }
 0x2a8   :  { %7627 = vmatprep.subr.bf16.mxu1 %v9599_v23  ;;  %v4048_v35 = vpop.f32.mrf.mxu0  ;;  %7507 = vmatmul.mubr.bf16.vlgmr.msra.gmra.mxu0 %v10245_v22  ;;  %v4644_v23 = vld [vmem:[#allocation10 + $0x8e0] sm:$0xff] }
 0x2a9   :  { %v4049_v44 = vadd.f32 %v4048_v35, %v10323_v10  ;;  %7516 = vmatprep.mubr.bf16.mxu0 %v10352_v24  ;;  %7577 = vmatpush1.bf16.msra.mxu0 %v9470_v2  ;;  %v4648_v10 = vld [vmem:[#allocation10 + $0x900] sm:$0xff] }
 0x2aa   :  { %v4099_v50 = vpop.f32.mrf.mxu1  ;;  %7558 = vmatmul.mubr.bf16.vlgmr.msra.gmra.mxu1 %v10294_v57  ;;  %v4050_v34 = vpop.f32.mrf.mxu0  ;;  %7578 = vmatprep.subr.bf16.mxu0 %v9463_v27  ;;  %v9447_v11 = vcombine.high %v4648_v10, %v4652_v18  ;;  %v9446_v27 = vcombine.low %v4648_v10, %v4652_v18  ;;  %v4772_v35 = vld [vmem:[#allocation10 + $0xce0] sm:$0xff]  ;;  %v10386_v18 = vld [vmem:[#allocation10 + $0x5c8] sm:$0xff] }
 0x2ab   :  { %7567 = vmatprep.mubr.bf16.mxu1 %v10354_v3  ;;  %v4051_v49 = vadd.f32 %v4050_v34, %v10328_v8  ;;  %7628 = vmatpush1.bf16.msra.mxu1 %v9598_v39  ;;  %v4100_v58 = vadd.f32 %v4099_v50, %v4049_v44  ;;  %v4780_v8 = vld [vmem:[#allocation10 + $0xd20] sm:$0xff] }
 0x2ac   :  { %v4101_v15 = vpop.f32.mrf.mxu1  ;;  %v4052_v56 = vpop.f32.mrf.mxu0  ;;  %7629 = vmatprep.subr.bf16.mxu1 %v9591_v43  ;;  %v9575_v25 = vcombine.high %v4776_v51, %v4780_v8  ;;  %v4768_v39 = vld [vmem:[#allocation10 + $0xcc0] sm:$0xff]  ;;  %v9574_v40 = vcombine.low %v4776_v51, %v4780_v8 }
 0x2ad   :  { %v4053_v59 = vadd.f32 %v4052_v56, %v10334_v33  ;;  %7579 = vmatpush1.bf16.msra.mxu0 %v9462_v30  ;;  %v4102_v62 = vadd.f32 %v4101_v15, %v4051_v49  ;;  %v4640_v33 = vld [vmem:[#allocation10 + $0x8c0] sm:$0xff]  ;;  %v4324_v31 = vmax.f32 %v4100_v58, 0.0  ;;  %v9567_v30 = vcombine.high %v4768_v39, %v4772_v35 }
 0x2ae   :  { %v4103_v42 = vpop.f32.mrf.mxu1  ;;  %v4054_v63 = vpop.f32.mrf.mxu0  ;;  %7580 = vmatprep.subr.bf16.mxu0 %v9455_v37  ;;  %v9439_v36 = vcombine.high %v4640_v33, %v4644_v23  ;;  %v4632_v44 = vld [vmem:[#allocation10 + $0x880] sm:$0xff]  ;;  %v9438_v15 = vcombine.low %v4640_v33, %v4644_v23 }
 0x2af   :  { %v4104_v61 = vadd.f32 %v4103_v42, %v4053_v59  ;;  %v4055_v60 = vadd.f32 %v4054_v63, %v4004_v28  ;;  %7630 = vmatpush1.bf16.msra.mxu1 %v9590_v21  ;;  %v4325_v41 = vmax.f32 %v4102_v62, 0.0  ;;  %v4636_v50 = vld [vmem:[#allocation10 + $0x8a0] sm:$0xff]  ;;  %v10388_v21 = vld [vmem:[#allocation10 + $0x5e8] sm:$0xff]  ;;  %v9566_v59 = vcombine.low %v4768_v39, %v4772_v35 }
 0x2b0   :  { %v4105_v45 = vpop.f32.mrf.mxu1  ;;  %v10372_v53 = vpop.f32.mrf.mxu0  ;;  %7517 = vmatmul.mubr.bf16.gmra.mxu0 %v10366_v48  ;;  %7631 = vmatprep.subr.bf16.mxu1 %v9583_v38  ;;  %v4760_v49 = vld [vmem:[#allocation10 + $0xc80] sm:$0xff]  ;;  %v9431_v56 = vcombine.high %v4632_v44, %v4636_v50  ;;  %v9344_v42 = vcombine.low %v10386_v18, %v10388_v21  ;;  %v9430_v8 = vcombine.low %v4632_v44, %v4636_v50 }
 0x2b1   :  { %v4332_v29 = vmax.f32 %v4104_v61, 0.0  ;;  %v4106_v4 = vadd.f32 %v4105_v45, %v4055_v60  ;;  %7581 = vmatpush1.bf16.msra.mxu0 %v9454_v26  ;;  %v4764_v10 = vld [vmem:[#allocation10 + $0xca0] sm:$0xff] }
 0x2b2   :  { %7568 = vmatmul.mubr.bf16.gmra.mxu1 %v10370_v32  ;;  %v10376_v52 = vpop.f32.mrf.mxu1  ;;  %v10378_v2 = vpop.f32.mrf.mxu0  ;;  %7582 = vmatprep.subr.bf16.mxu0 %v9447_v11  ;;  %v4624_v28 = vld [vmem:[#allocation10 + $0x840] sm:$0xff]  ;;  %v9559_v51 = vcombine.high %v4760_v49, %v4764_v10  ;;  %v9558_v61 = vcombine.low %v4760_v49, %v4764_v10 }
 0x2b3   :  { %v10380_v55 = vpack.c.bf16 %v4332_v29, %v4324_v31  ;;  %v4333_v43 = vmax.f32 %v4106_v4, 0.0  ;;  %7632 = vmatpush1.bf16.msra.mxu1 %v9582_v0  ;;  %v4628_v58 = vld [vmem:[#allocation10 + $0x860] sm:$0xff] }
 0x2b4   :  { %v10382_v1 = vpop.f32.mrf.mxu1  ;;  %v4062_v5 = vpop.f32.mrf.mxu0  ;;  %7633 = vmatprep.subr.bf16.mxu1 %v9575_v25  ;;  %v4752_v63 = vld [vmem:[#allocation10 + $0xc40] sm:$0xff]  ;;  %v9423_v11 = vcombine.high %v4624_v28, %v4628_v58  ;;  %v9422_v45 = vcombine.low %v4624_v28, %v4628_v58 }
 0x2b5   :  { %v10384_v16 = vpack.c.bf16 %v4333_v43, %v4325_v41  ;;  %7583 = vmatpush1.bf16.msra.mxu0 %v9446_v27  ;;  %v4756_v26 = vld [vmem:[#allocation10 + $0xc60] sm:$0xff] }
 0x2b6   :  { %v4113_v34 = vpop.f32.mrf.mxu1  ;;  %v4063_v37 = vpop.f32.mrf.mxu0  ;;  %7584 = vmatprep.subr.bf16.mxu0 %v9439_v36  ;;  %v4616_v0 = vld [vmem:[#allocation10 + $0x800] sm:$0xff]  ;;  %v9551_v60 = vcombine.high %v4752_v63, %v4756_v26  ;;  %v9550_v4 = vcombine.low %v4752_v63, %v4756_v26 }
 0x2b7   :  { %7608 = vmatprep.mubr.bf16.mxu0 %v10384_v16  ;;  %7634 = vmatpush1.bf16.msra.mxu1 %v9574_v40  ;;  %v4620_v62 = vld [vmem:[#allocation10 + $0x820] sm:$0xff] }
 0x2b8   :  { %v4114_v38 = vpop.f32.mrf.mxu1  ;;  %7635 = vmatprep.subr.bf16.mxu1 %v9567_v30  ;;  %v4744_v33 = vld [vmem:[#allocation10 + $0xc00] sm:$0xff]  ;;  %v9415_v25 = vcombine.high %v4616_v0, %v4620_v62  ;;  %v9414_v39 = vcombine.low %v4616_v0, %v4620_v62 }
 0x2b9   :  { %7585 = vmatpush1.bf16.msra.mxu0 %v9438_v15  ;;  %v4748_v23 = vld [vmem:[#allocation10 + $0xc20] sm:$0xff] }
 0x2ba   :  { %7586 = vmatprep.subr.bf16.mxu0 %v9431_v56  ;;  %v4736_v31 = vld [vmem:[#allocation10 + $0xbc0] sm:$0xff]  ;;  %v9543_v27 = vcombine.high %v4744_v33, %v4748_v23  ;;  %v9542_v50 = vcombine.low %v4744_v33, %v4748_v23 }
 0x2bb   :  { %7636 = vmatpush1.bf16.msra.mxu1 %v9566_v59  ;;  %v4740_v29 = vld [vmem:[#allocation10 + $0xbe0] sm:$0xff] }
 0x2bc   :  { %7637 = vmatprep.subr.bf16.mxu1 %v9559_v51  ;;  %v4864_v35 = vld [vmem:[#allocation10 + $0xfc0] sm:$0xff]  ;;  %v9535_v43 = vcombine.high %v4736_v31, %v4740_v29  ;;  %v9534_v40 = vcombine.low %v4736_v31, %v4740_v29 }
 0x2bd   :  { %7587 = vmatpush1.bf16.msra.mxu0 %v9430_v8  ;;  %v4868_v41 = vld [vmem:[#allocation10 + $0xfe0] sm:$0xff] }
 0x2be   :  { %7588 = vmatprep.subr.bf16.mxu0 %v9423_v11  ;;  %v4728_v36 = vld [vmem:[#allocation10 + $0xb80] sm:$0xff]  ;;  %v9663_v5 = vcombine.high %v4864_v35, %v4868_v41  ;;  %v9662_v10 = vcombine.low %v4864_v35, %v4868_v41 }
 0x2bf   :  { %7638 = vmatpush1.bf16.msra.mxu1 %v9558_v61  ;;  %v4732_v44 = vld [vmem:[#allocation10 + $0xba0] sm:$0xff] }
 0x2c0   :  { %7639 = vmatprep.subr.bf16.mxu1 %v9551_v60  ;;  %v4856_v34 = vld [vmem:[#allocation10 + $0xf80] sm:$0xff]  ;;  %v9527_v49 = vcombine.high %v4728_v36, %v4732_v44  ;;  %v9526_v38 = vcombine.low %v4728_v36, %v4732_v44 }
 0x2c1   :  { %7589 = vmatpush1.bf16.msra.mxu0 %v9422_v45  ;;  %v4860_v30 = vld [vmem:[#allocation10 + $0xfa0] sm:$0xff] }
 0x2c2   :  { %7590 = vmatprep.subr.bf16.mxu0 %v9415_v25  ;;  %v4720_v15 = vld [vmem:[#allocation10 + $0xb40] sm:$0xff]  ;;  %v9655_v56 = vcombine.high %v4856_v34, %v4860_v30  ;;  %v9654_v63 = vcombine.low %v4856_v34, %v4860_v30 }
 0x2c3   :  { %7640 = vmatpush1.bf16.msra.mxu1 %v9550_v4  ;;  %v4724_v37 = vld [vmem:[#allocation10 + $0xb60] sm:$0xff] }
 0x2c4   :  { %7641 = vmatprep.subr.bf16.mxu1 %v9543_v27  ;;  %v4848_v28 = vld [vmem:[#allocation10 + $0xf40] sm:$0xff]  ;;  %v9519_v59 = vcombine.high %v4720_v15, %v4724_v37  ;;  %v9518_v11 = vcombine.low %v4720_v15, %v4724_v37 }
 0x2c5   :  { %7591 = vmatpush1.bf16.msra.mxu0 %v9414_v39  ;;  %v4852_v58 = vld [vmem:[#allocation10 + $0xf60] sm:$0xff] }
 0x2c6   :  { %7592 = vmatprep.subr.bf16.mxu0 %v9535_v43  ;;  %v4712_v51 = vld [vmem:[#allocation10 + $0xb00] sm:$0xff]  ;;  %v9647_v26 = vcombine.high %v4848_v28, %v4852_v58  ;;  %v9646_v33 = vcombine.low %v4848_v28, %v4852_v58 }
 0x2c7   :  { %7642 = vmatpush1.bf16.msra.mxu1 %v9542_v50  ;;  %v4716_v8 = vld [vmem:[#allocation10 + $0xb20] sm:$0xff] }
 0x2c8   :  { %7643 = vmatprep.subr.bf16.mxu1 %v9663_v5  ;;  %v4840_v0 = vld [vmem:[#allocation10 + $0xf00] sm:$0xff]  ;;  %v9511_v61 = vcombine.high %v4712_v51, %v4716_v8  ;;  %v9510_v25 = vcombine.low %v4712_v51, %v4716_v8 }
 0x2c9   :  { %7593 = vmatpush2.bf16.msra.mxu0 %v9534_v40  ;;  %v4844_v62 = vld [vmem:[#allocation10 + $0xf20] sm:$0xff] }
 0x2ca   :  { %7594 = vmatprep.subr.bf16.mxu0 %v9527_v49  ;;  %v4704_v60 = vld [vmem:[#allocation10 + $0xac0] sm:$0xff]  ;;  %v9639_v23 = vcombine.high %v4840_v0, %v4844_v62  ;;  %v9638_v35 = vcombine.low %v4840_v0, %v4844_v62  ;;  %v4417_v0 = vld [vmem:[#allocation10 + $0x1c8] sm:$0xff] }
 0x2cb   :  { %7644 = vmatpush2.bf16.msra.mxu1 %v9662_v10  ;;  %v4708_v45 = vld [vmem:[#allocation10 + $0xae0] sm:$0xff]  ;;  %v4421_v62 = vld [vmem:[#allocation10 + $0x1e8] sm:$0xff] }
 0x2cc   :  { %7645 = vmatprep.subr.bf16.mxu1 %v9655_v56  ;;  %v4832_v31 = vld [vmem:[#allocation10 + $0xec0] sm:$0xff]  ;;  %v9503_v4 = vcombine.high %v4704_v60, %v4708_v45  ;;  %v9502_v43 = vcombine.low %v4704_v60, %v4708_v45  ;;  %v4061_v56 = vadd.f32 %v10378_v2, %v10348_v6  ;;  %v4059_v60 = vadd.f32 %v10372_v53, %v10346_v7 }
 0x2cd   :  { %7595 = vmatpush2.bf16.msra.mxu0 %v9526_v38  ;;  %v4836_v29 = vld [vmem:[#allocation10 + $0xee0] sm:$0xff]  ;;  %v9217_v45 = vcombine.high %v4417_v0, %v4421_v62  ;;  %v10407_v7 = vrot.slane %v10309_v12, %v10082_v14 }
 0x2ce   :  { %7596 = vmatprep.subr.bf16.mxu0 %v9519_v59  ;;  %v4696_v27 = vld [vmem:[#allocation10 + $0xa80] sm:$0xff]  ;;  %v9631_v41 = vcombine.high %v4832_v31, %v4836_v29  ;;  %v9630_v34 = vcombine.low %v4832_v31, %v4836_v29  ;;  %v9345_v29 = vcombine.high %v10386_v18, %v10388_v21 }
 0x2cf   :  { %7646 = vmatpush2.bf16.msra.mxu1 %v9654_v63  ;;  %v4700_v39 = vld [vmem:[#allocation10 + $0xaa0] sm:$0xff] }
 0x2d0   :  { %7647 = vmatprep.subr.bf16.mxu1 %v9647_v26  ;;  %v4824_v36 = vld [vmem:[#allocation10 + $0xe80] sm:$0xff]  ;;  %v9495_v50 = vcombine.high %v4696_v27, %v4700_v39  ;;  %v9494_v49 = vcombine.low %v4696_v27, %v4700_v39  ;;  %v4110_v27 = vadd.f32 %v10376_v52, %v4059_v60 }
 0x2d1   :  { %7597 = vmatpush2.bf16.msra.mxu0 %v9518_v11  ;;  %v4828_v44 = vld [vmem:[#allocation10 + $0xea0] sm:$0xff]  ;;  %v4112_v11 = vadd.f32 %v10382_v1, %v4061_v56  ;;  %v10400_v1 = vrot.slane %v10309_v12, %v10055_v54 }
 0x2d2   :  { %7598 = vmatprep.subr.bf16.mxu0 %v9511_v61  ;;  %v4688_v5 = vld [vmem:[#allocation10 + $0xa40] sm:$0xff]  ;;  %v9623_v30 = vcombine.high %v4824_v36, %v4828_v44  ;;  %v9622_v58 = vcombine.low %v4824_v36, %v4828_v44  ;;  %v4340_v12 = vmax.f32 %v4110_v27, 0.0 }
 0x2d3   :  { %7648 = vmatpush2.bf16.msra.mxu1 %v9646_v33  ;;  %v4692_v40 = vld [vmem:[#allocation10 + $0xa60] sm:$0xff]  ;;  %v4341_v33 = vmax.f32 %v4112_v11, 0.0 }
 0x2d4   :  { %7649 = vmatprep.subr.bf16.mxu1 %v9639_v23  ;;  %v4816_v15 = vld [vmem:[#allocation10 + $0xe40] sm:$0xff]  ;;  %v9487_v10 = vcombine.high %v4688_v5, %v4692_v40  ;;  %v9486_v51 = vcombine.low %v4688_v5, %v4692_v40  ;;  %v4409_v23 = vld [vmem:[#allocation10 + $0x188] sm:$0xff] }
 0x2d5   :  { %7599 = vmatpush2.bf16.msra.mxu0 %v9510_v25  ;;  %v4820_v37 = vld [vmem:[#allocation10 + $0xe60] sm:$0xff]  ;;  %v4413_v25 = vld [vmem:[#allocation10 + $0x1a8] sm:$0xff]  ;;  %v10409_v39 = vpack.c.bf16 %v4341_v33, %v4341_v33 }
 0x2d6   :  { %7600 = vmatprep.subr.bf16.mxu0 %v9503_v4  ;;  %v4680_v38 = vld [vmem:[#allocation10 + $0xa00] sm:$0xff]  ;;  %v9615_v59 = vcombine.high %v4816_v15, %v4820_v37  ;;  %v9614_v61 = vcombine.low %v4816_v15, %v4820_v37  ;;  %v9216_v4 = vcombine.low %v4417_v0, %v4421_v62  ;;  %v9209_v53 = vcombine.high %v4409_v23, %v4413_v25  ;;  %v4393_v15 = vld [vmem:[#allocation10 + $0x108] sm:$0xff] }
 0x2d7   :  { %7650 = vmatpush2.bf16.msra.mxu1 %v9638_v35  ;;  %v4684_v28 = vld [vmem:[#allocation10 + $0xa20] sm:$0xff]  ;;  %v4397_v37 = vld [vmem:[#allocation10 + $0x128] sm:$0xff] }
 0x2d8   :  { %7651 = vmatprep.subr.bf16.mxu1 %v9631_v41  ;;  %v4808_v8 = vld [vmem:[#allocation10 + $0xe00] sm:$0xff]  ;;  %v9479_v26 = vcombine.high %v4680_v38, %v4684_v28  ;;  %v9478_v2 = vcombine.low %v4680_v38, %v4684_v28  ;;  %v4401_v41 = vld [vmem:[#allocation10 + $0x148] sm:$0xff]  ;;  %v9192_v62 = vcombine.low %v4393_v15, %v4397_v37 }
 0x2d9   :  { %7601 = vmatpush2.bf16.msra.mxu0 %v9502_v43  ;;  %v4812_v63 = vld [vmem:[#allocation10 + $0xe20] sm:$0xff]  ;;  %v4405_v43 = vld [vmem:[#allocation10 + $0x168] sm:$0xff] }
 0x2da   :  { %7602 = vmatprep.subr.bf16.mxu0 %v9495_v50  ;;  %v9607_v6 = vcombine.high %v4808_v8, %v4812_v63  ;;  %v9606_v31 = vcombine.low %v4808_v8, %v4812_v63  ;;  %v9208_v50 = vcombine.low %v4409_v23, %v4413_v25  ;;  %v9200_v28 = vcombine.low %v4401_v41, %v4405_v43  ;;  %v4385_v8 = vld [vmem:[#allocation10 + $0xc8] sm:$0xff] }
 0x2db   :  { %7652 = vmatpush2.bf16.msra.mxu1 %v9630_v34  ;;  %v4389_v63 = vld [vmem:[#allocation10 + $0xe8] sm:$0xff] }
 0x2dc   :  { %7653 = vmatprep.subr.bf16.mxu1 %v9623_v30  ;;  %v9201_v30 = vcombine.high %v4401_v41, %v4405_v43  ;;  %v4381_v33 = vld [vmem:[#allocation10 + $0xa8] sm:$0xff] }
 0x2dd   :  { %7603 = vmatpush2.bf16.msra.mxu0 %v9494_v49 }
 0x2de   :  { %7604 = vmatprep.subr.bf16.mxu0 %v9487_v10 }
 0x2df   :  { %7654 = vmatpush2.bf16.msra.mxu1 %v9622_v58  ;;  %v10425_v58 = vpack.c.bf16 %v4340_v12, %v4340_v12  ;;  %v4481_v12 = vld [vmem:[#allocation10 + $0x3c8] sm:$0xff] }
 0x2e0   :  { %7655 = vmatprep.subr.bf16.mxu1 %v9615_v59 }
 0x2e1   :  { %7605 = vmatpush2.bf16.msra.mxu0 %v9486_v51  ;;  %v9193_v51 = vcombine.high %v4393_v15, %v4397_v37  ;;  %v4473_v15 = vld [vmem:[#allocation10 + $0x388] sm:$0xff] }
 0x2e2   :  { %7606 = vmatprep.subr.bf16.mxu0 %v9479_v26  ;;  %v4477_v37 = vld [vmem:[#allocation10 + $0x3a8] sm:$0xff] }
 0x2e3   :  { %7656 = vmatpush2.bf16.msra.mxu1 %v9614_v61 }
 0x2e4   :  { %7657 = vmatprep.subr.bf16.mxu1 %v9607_v6  ;;  %v9185_v6 = vcombine.high %v4385_v8, %v4389_v63 }
 0x2e5   :  { %7607 = vmatpush2.bf16.msra.mxu0 %v9478_v2 }
 0x2e6   :  { %7678 = vmatprep.subr.bf16.mxu0 %v9217_v45  ;;  %v4377_v45 = vld [vmem:[#allocation10 + $0x88] sm:$0xff] }
 0x2e7   :  { %7658 = vmatpush2.bf16.msra.mxu1 %v9606_v31  ;;  %v9184_v31 = vcombine.low %v4385_v8, %v4389_v63  ;;  %v9176_v41 = vcombine.low %v4377_v45, %v4381_v33  ;;  %v4465_v8 = vld [vmem:[#allocation10 + $0x348] sm:$0xff] }
 0x2e8   :  { %v4150_v35 = vpop.f32.mrf.mxu0  ;;  %7609 = vmatmul.mubr.bf16.vlgmr.msra.gmra.mxu0 %v10380_v55  ;;  %7729 = vmatprep.subr.bf16.mxu1 %v9345_v29  ;;  %v4469_v63 = vld [vmem:[#allocation10 + $0x368] sm:$0xff] }
 0x2e9   :  { %v4151_v36 = vadd.f32 %v4150_v35, %v10400_v1  ;;  %7618 = vmatprep.mubr.bf16.mxu0 %v10409_v39  ;;  %7679 = vmatpush1.bf16.msra.mxu0 %v9216_v4  ;;  %v9177_v4 = vcombine.high %v4377_v45, %v4381_v33  ;;  %v4373_v35 = vld [vmem:[#allocation10 + $0x68] sm:$0xff] }
 0x2ea   :  { %v4201_v44 = vpop.f32.mrf.mxu1  ;;  %v4152_v52 = vpop.f32.mrf.mxu0  ;;  %7680 = vmatprep.subr.bf16.mxu0 %v9209_v53  ;;  %v4369_v53 = vld [vmem:[#allocation10 + $0x48] sm:$0xff] }
 0x2eb   :  { %v10414_v5 = vadd.f32 %v4201_v44, %v4151_v36  ;;  %v4153_v40 = vadd.f32 %v4152_v52, %v10407_v7  ;;  %v9169_v43 = vcombine.high %v4369_v53, %v4373_v35  ;;  %v4361_v36 = vld [vmem:[#allocation10 + $0x8] sm:$0xff]  ;;  %v9168_v52 = vcombine.low %v4369_v53, %v4373_v35 }
 0x2ec   :  { %v4203_v34 = vpop.f32.mrf.mxu1  ;;  %v10417_v49 = vpop.f32.mrf.mxu0  ;;  %v4365_v44 = vld [vmem:[#allocation10 + $0x28] sm:$0xff] }
 0x2ed   :  { %v10419_v10 = vadd.f32 %v4203_v34, %v4153_v40  ;;  %7681 = vmatpush1.bf16.msra.mxu0 %v9208_v50  ;;  %v9161_v50 = vcombine.high %v4361_v36, %v4365_v44  ;;  %v4485_v40 = vld [vmem:[#allocation10 + $0x3e8] sm:$0xff]  ;;  %v9160_v34 = vcombine.low %v4361_v36, %v4365_v44 }
 0x2ee   :  { %v10421_v56 = vpop.f32.mrf.mxu1  ;;  %v10423_v38 = vpop.f32.mrf.mxu0  ;;  %7682 = vmatprep.subr.bf16.mxu0 %v9201_v30  ;;  %v9281_v30 = vcombine.high %v4481_v12, %v4485_v40  ;;  %v4449_v33 = vld [vmem:[#allocation10 + $0x2c8] sm:$0xff] }
 0x2ef   :  { %v4433_v35 = vld [vmem:[#allocation10 + $0x248] sm:$0xff] }
 0x2f0   :  { %v10427_v59 = vpop.f32.mrf.mxu1  ;;  %v4160_v26 = vpop.f32.mrf.mxu0  ;;  %7619 = vmatmul.mubr.bf16.gmra.mxu0 %v10425_v58  ;;  %v4425_v44 = vld [vmem:[#allocation10 + $0x208] sm:$0xff] }
 0x2f1   :  { %v4161_v11 = vadd.f32 %v4160_v26, %v10400_v1  ;;  %7683 = vmatpush1.bf16.msra.mxu0 %v9200_v28  ;;  %7710 = vmatprep.mubr.bf16.mxu0 %v10338_v13  ;;  %v9280_v28 = vcombine.low %v4481_v12, %v4485_v40  ;;  %v9272_v26 = vcombine.low %v4473_v15, %v4477_v37  ;;  %v4673_v40 = vld [vmem:[#allocation10 + $0x9c8] sm:$0xff] }
 0x2f2   :  { %v4211_v0 = vpop.f32.mrf.mxu1  ;;  %v10432_v61 = vpop.f32.mrf.mxu0  ;;  %7684 = vmatprep.subr.bf16.mxu0 %v9193_v51  ;;  %v9273_v51 = vcombine.high %v4473_v15, %v4477_v37  ;;  %v4665_v37 = vld [vmem:[#allocation10 + $0x988] sm:$0xff] }
 0x2f3   :  { %v10434_v2 = vadd.f32 %v4211_v0, %v4161_v11  ;;  %v9265_v11 = vcombine.high %v4465_v8, %v4469_v63  ;;  %v4457_v0 = vld [vmem:[#allocation10 + $0x308] sm:$0xff] }
 0x2f4   :  { %v10436_v60 = vpop.f32.mrf.mxu1  ;;  %v4164_v23 = vpop.f32.mrf.mxu0 }
 0x2f5   :  { %7685 = vmatpush1.bf16.msra.mxu0 %v9192_v62  ;;  %v4461_v62 = vld [vmem:[#allocation10 + $0x328] sm:$0xff] }
 0x2f6   :  { %v4215_v25 = vpop.f32.mrf.mxu1  ;;  %v4165_v29 = vpop.f32.mrf.mxu0  ;;  %7686 = vmatprep.subr.bf16.mxu0 %v9185_v6  ;;  %v9264_v6 = vcombine.low %v4465_v8, %v4469_v63  ;;  %v9257_v45 = vcombine.high %v4457_v0, %v4461_v62  ;;  %v4453_v23 = vld [vmem:[#allocation10 + $0x2e8] sm:$0xff]  ;;  %v4155_v8 = vadd.f32 %v10417_v49, %v10400_v1 }
 0x2f7   :  { %v9256_v25 = vcombine.low %v4457_v0, %v4461_v62  ;;  %v4441_v29 = vld [vmem:[#allocation10 + $0x288] sm:$0xff]  ;;  %v4157_v62 = vadd.f32 %v10423_v38, %v10407_v7 }
 0x2f8   :  { %v4216_v27 = vpop.f32.mrf.mxu1  ;;  %v4661_v0 = vld [vmem:[#allocation10 + $0x968] sm:$0xff]  ;;  %v4206_v1 = vadd.f32 %v10421_v56, %v4155_v8 }
 0x2f9   :  { %7687 = vmatpush1.bf16.msra.mxu0 %v9184_v31  ;;  %v9249_v31 = vcombine.high %v4449_v33, %v4453_v23  ;;  %v9248_v27 = vcombine.low %v4449_v33, %v4453_v23  ;;  %v4653_v38 = vld [vmem:[#allocation10 + $0x928] sm:$0xff] }
 0x2fa   :  { %7688 = vmatprep.subr.bf16.mxu0 %v9177_v4  ;;  %v4445_v4 = vld [vmem:[#allocation10 + $0x2a8] sm:$0xff] }
 0x2fb   :  { %v9241_v53 = vcombine.high %v4441_v29, %v4445_v4 }
 0x2fd   :  { %7689 = vmatpush1.bf16.msra.mxu0 %v9176_v41  ;;  %v4437_v41 = vld [vmem:[#allocation10 + $0x268] sm:$0xff] }
 0x2fe   :  { %7690 = vmatprep.subr.bf16.mxu0 %v9169_v43  ;;  %v9240_v43 = vcombine.low %v4441_v29, %v4445_v4  ;;  %v9233_v36 = vcombine.high %v4433_v35, %v4437_v41  ;;  %v4649_v4 = vld [vmem:[#allocation10 + $0x908] sm:$0xff] }
 0x301   :  { %7691 = vmatpush1.bf16.msra.mxu0 %v9168_v52  ;;  %v4429_v52 = vld [vmem:[#allocation10 + $0x228] sm:$0xff] }
 0x302   :  { %7692 = vmatprep.subr.bf16.mxu0 %v9161_v50  ;;  %v9232_v50 = vcombine.low %v4433_v35, %v4437_v41  ;;  %v9225_v12 = vcombine.high %v4425_v44, %v4429_v52 }
 0x305   :  { %7693 = vmatpush1.bf16.msra.mxu0 %v9160_v34  ;;  %v4677_v34 = vld [vmem:[#allocation10 + $0x9e8] sm:$0xff] }
 0x306   :  { %7694 = vmatprep.subr.bf16.mxu0 %v9281_v30  ;;  %v9224_v30 = vcombine.low %v4425_v44, %v4429_v52  ;;  %v9473_v15 = vcombine.high %v4673_v40, %v4677_v34 }
 0x309   :  { %7695 = vmatpush2.bf16.msra.mxu0 %v9280_v28  ;;  %v4669_v28 = vld [vmem:[#allocation10 + $0x9a8] sm:$0xff] }
 0x30a   :  { %7696 = vmatprep.subr.bf16.mxu0 %v9273_v51  ;;  %v9472_v51 = vcombine.low %v4673_v40, %v4677_v34  ;;  %v9465_v63 = vcombine.high %v4665_v37, %v4669_v28  ;;  %v9464_v23 = vcombine.low %v4665_v37, %v4669_v28  ;;  %v4645_v40 = vld [vmem:[#allocation10 + $0x8e8] sm:$0xff] }
 0x30d   :  { %7697 = vmatpush2.bf16.msra.mxu0 %v9272_v26 }
 0x30e   :  { %7698 = vmatprep.subr.bf16.mxu0 %v9265_v11  ;;  %v4657_v11 = vld [vmem:[#allocation10 + $0x948] sm:$0xff] }
 0x311   :  { %7699 = vmatpush2.bf16.msra.mxu0 %v9264_v6 }
 0x312   :  { %7700 = vmatprep.subr.bf16.mxu0 %v9257_v45 }
 0x315   :  { %7701 = vmatpush2.bf16.msra.mxu0 %v9256_v25 }
 0x316   :  { %7702 = vmatprep.subr.bf16.mxu0 %v9249_v31  ;;  %v9457_v31 = vcombine.high %v4657_v11, %v4661_v0 }
 0x319   :  { %7703 = vmatpush2.bf16.msra.mxu0 %v9248_v27  ;;  %v4163_v27 = vadd.f32 %v10432_v61, %v10407_v7 }
 0x31a   :  { %7704 = vmatprep.subr.bf16.mxu0 %v9241_v53 }
 0x31d   :  { %7705 = vmatpush2.bf16.msra.mxu0 %v9240_v43 }
 0x31e   :  { %7706 = vmatprep.subr.bf16.mxu0 %v9233_v36  ;;  %v9456_v36 = vcombine.low %v4657_v11, %v4661_v0 }
 0x321   :  { %7707 = vmatpush2.bf16.msra.mxu0 %v9232_v50  ;;  %v9449_v50 = vcombine.high %v4649_v4, %v4653_v38 }
 0x322   :  { %7708 = vmatprep.subr.bf16.mxu0 %v9225_v12  ;;  %v4641_v12 = vld [vmem:[#allocation10 + $0x8c8] sm:$0xff] }
 0x323   :  { %v9441_v8 = vcombine.high %v4641_v12, %v4645_v40 }
 0x325   :  { %7709 = vmatpush2.bf16.msra.mxu0 %v9224_v30 }
 0x326   :  { %7780 = vmatprep.subr.bf16.mxu0 %v9473_v15 }
 0x328   :  { %v4252_v26 = vpop.f32.mrf.mxu0  ;;  %7711 = vmatmul.mubr.bf16.vlgmr.msra.gmra.mxu0 %v10245_v22 }
 0x329   :  { %v4253_v6 = vadd.f32 %v4252_v26, %v10414_v5  ;;  %7720 = vmatprep.mubr.bf16.mxu0 %v10352_v24  ;;  %7781 = vmatpush1.bf16.msra.mxu0 %v9472_v51  ;;  %v4208_v5 = vadd.f32 %v10427_v59, %v4157_v62  ;;  %v4214_v59 = vadd.f32 %v10436_v60, %v4163_v27  ;;  %v4537_v62 = vld [vmem:[#allocation10 + $0x588] sm:$0xff] }
 0x32a   :  { %v4303_v45 = vpop.f32.mrf.mxu1  ;;  %v4254_v33 = vpop.f32.mrf.mxu0  ;;  %7782 = vmatprep.subr.bf16.mxu0 %v9465_v63  ;;  %v9448_v51 = vcombine.low %v4649_v4, %v4653_v38  ;;  %v4529_v27 = vld [vmem:[#allocation10 + $0x548] sm:$0xff] }
 0x32b   :  { %v4255_v49 = vadd.f32 %v4254_v33, %v10419_v10  ;;  %v4304_v53 = vadd.f32 %v4303_v45, %v4253_v6  ;;  %v4541_v6 = vld [vmem:[#allocation10 + $0x5a8] sm:$0xff] }
 0x32c   :  { %v4305_v25 = vpop.f32.mrf.mxu1  ;;  %v4256_v29 = vpop.f32.mrf.mxu0  ;;  %v4633_v45 = vld [vmem:[#allocation10 + $0x888] sm:$0xff] }
 0x32d   :  { %v4257_v35 = vadd.f32 %v4256_v29, %v4206_v1  ;;  %7783 = vmatpush1.bf16.msra.mxu0 %v9464_v23  ;;  %v4306_v56 = vadd.f32 %v4305_v25, %v4255_v49  ;;  %v4326_v30 = vmax.f32 %v4304_v53, 0.0  ;;  %v4637_v33 = vld [vmem:[#allocation10 + $0x8a8] sm:$0xff]  ;;  %v9337_v29 = vcombine.high %v4537_v62, %v4541_v6 }
 0x32e   :  { %v4307_v41 = vpop.f32.mrf.mxu1  ;;  %v4258_v43 = vpop.f32.mrf.mxu0  ;;  %7784 = vmatprep.subr.bf16.mxu0 %v9457_v31  ;;  %v9440_v31 = vcombine.low %v4641_v12, %v4645_v40  ;;  %v4533_v53 = vld [vmem:[#allocation10 + $0x568] sm:$0xff] }
 0x32f   :  { %v4308_v44 = vadd.f32 %v4307_v41, %v4257_v35  ;;  %v4259_v10 = vadd.f32 %v4258_v43, %v4208_v5  ;;  %v4327_v63 = vmax.f32 %v4306_v56, 0.0  ;;  %v9433_v5 = vcombine.high %v4633_v45, %v4637_v33  ;;  %v4625_v41 = vld [vmem:[#allocation10 + $0x848] sm:$0xff] }
 0x330   :  { %v4309_v52 = vpop.f32.mrf.mxu1  ;;  %v4262_v34 = vpop.f32.mrf.mxu0  ;;  %7721 = vmatmul.mubr.bf16.gmra.mxu0 %v10366_v48  ;;  %v4629_v43 = vld [vmem:[#allocation10 + $0x868] sm:$0xff]  ;;  %v9336_v56 = vcombine.low %v4537_v62, %v4541_v6 }
 0x331   :  { %v4334_v15 = vmax.f32 %v4308_v44, 0.0  ;;  %v4310_v7 = vadd.f32 %v4309_v52, %v4259_v10  ;;  %v4263_v37 = vadd.f32 %v4262_v34, %v10434_v2  ;;  %7785 = vmatpush1.bf16.msra.mxu0 %v9456_v36  ;;  %7812 = vmatprep.mubr.bf16.mxu0 %v10384_v16  ;;  %v9432_v10 = vcombine.low %v4633_v45, %v4637_v33  ;;  %v4521_v12 = vld [vmem:[#allocation10 + $0x508] sm:$0xff] }
 0x332   :  { %v4313_v61 = vpop.f32.mrf.mxu1  ;;  %v4264_v28 = vpop.f32.mrf.mxu0  ;;  %7786 = vmatprep.subr.bf16.mxu0 %v9449_v50  ;;  %v9329_v52 = vcombine.high %v4529_v27, %v4533_v53  ;;  %v9425_v50 = vcombine.high %v4625_v41, %v4629_v43  ;;  %v4525_v40 = vld [vmem:[#allocation10 + $0x528] sm:$0xff]  ;;  %v9424_v18 = vcombine.low %v4625_v41, %v4629_v43 }
 0x333   :  { %v10454_v26 = vpack.c.bf16 %v4334_v15, %v4326_v30  ;;  %v4335_v11 = vmax.f32 %v4310_v7, 0.0  ;;  %v4265_v0 = vadd.f32 %v4264_v28, %v4214_v59  ;;  %v4314_v25 = vadd.f32 %v4313_v61, %v4263_v37  ;;  %v4617_v34 = vld [vmem:[#allocation10 + $0x808] sm:$0xff] }
 0x334   :  { %v4315_v60 = vpop.f32.mrf.mxu1  ;;  %v4266_v23 = vpop.f32.mrf.mxu0  ;;  %v4621_v59 = vld [vmem:[#allocation10 + $0x828] sm:$0xff]  ;;  %v9328_v30 = vcombine.low %v4529_v27, %v4533_v53  ;;  %v9321_v21 = vcombine.high %v4521_v12, %v4525_v40 }
 0x335   :  { %v10456_v1 = vpack.c.bf16 %v4335_v11, %v4327_v63  ;;  %v4316_v2 = vadd.f32 %v4315_v60, %v4265_v0  ;;  %7787 = vmatpush1.bf16.msra.mxu0 %v9448_v51  ;;  %v4342_v44 = vmax.f32 %v4314_v25, 0.0  ;;  %v4513_v7 = vld [vmem:[#allocation10 + $0x4c8] sm:$0xff]  ;;  %v9320_v51 = vcombine.low %v4521_v12, %v4525_v40 }
 0x336   :  { %v4317_v49 = vpop.f32.mrf.mxu1  ;;  %v4267_v4 = vpop.f32.mrf.mxu0  ;;  %7788 = vmatprep.subr.bf16.mxu0 %v9441_v8  ;;  %v4517_v61 = vld [vmem:[#allocation10 + $0x4e8] sm:$0xff]  ;;  %v9416_v8 = vcombine.low %v4617_v34, %v4621_v59 }
 0x337   :  { %v4343_v38 = vmax.f32 %v4316_v2, 0.0  ;;  %7659 = vmatprep.mubr.bf16.mxu1 %v10456_v1  ;;  %v10466_v15 = vpack.c.bf16 %v4342_v44, %v4342_v44  ;;  %v4737_v37 = vld [vmem:[#allocation10 + $0xbc8] sm:$0xff]  ;;  %v9313_v63 = vcombine.high %v4513_v7, %v4517_v61  ;;  %v9312_v45 = vcombine.low %v4513_v7, %v4517_v61 }
 0x338   :  { %v4318_v35 = vpop.f32.mrf.mxu1  ;;  %7660 = vmatmul.mubr.bf16.vlgmr.msra.gmra.mxu1 %v10454_v26  ;;  %v4741_v28 = vld [vmem:[#allocation10 + $0xbe8] sm:$0xff] }
 0x339   :  { %v10460_v36 = vpack.c.bf16 %v4343_v38, %v4343_v38  ;;  %7730 = vmatpush1.bf16.msra.mxu1 %v9344_v42  ;;  %7789 = vmatpush1.bf16.msra.mxu0 %v9440_v31  ;;  %v9417_v42 = vcombine.high %v4617_v34, %v4621_v59  ;;  %v9537_v11 = vcombine.high %v4737_v37, %v4741_v28  ;;  %v4505_v0 = vld [vmem:[#allocation10 + $0x488] sm:$0xff] }
 0x33a   :  { %7731 = vmatprep.subr.bf16.mxu1 %v9337_v29  ;;  %7790 = vmatprep.subr.bf16.mxu0 %v9433_v5  ;;  %v4509_v60 = vld [vmem:[#allocation10 + $0x4a8] sm:$0xff]  ;;  %v9536_v33 = vcombine.low %v4737_v37, %v4741_v28 }
 0x33b   :  { %7669 = vmatprep.mubr.bf16.mxu1 %v10460_v36  ;;  %v4729_v62 = vld [vmem:[#allocation10 + $0xb88] sm:$0xff]  ;;  %v9305_v23 = vcombine.high %v4505_v0, %v4509_v60  ;;  %v9304_v4 = vcombine.low %v4505_v0, %v4509_v60 }
 0x33c   :  { %v4733_v6 = vld [vmem:[#allocation10 + $0xba8] sm:$0xff] }
 0x33d   :  { %7732 = vmatpush1.bf16.msra.mxu1 %v9336_v56  ;;  %7791 = vmatpush1.bf16.msra.mxu0 %v9432_v10  ;;  %v9529_v2 = vcombine.high %v4729_v62, %v4733_v6  ;;  %v4497_v49 = vld [vmem:[#allocation10 + $0x448] sm:$0xff]  ;;  %v9528_v38 = vcombine.low %v4729_v62, %v4733_v6 }
 0x33e   :  { %7733 = vmatprep.subr.bf16.mxu1 %v9329_v52  ;;  %7792 = vmatprep.subr.bf16.mxu0 %v9425_v50  ;;  %v4501_v25 = vld [vmem:[#allocation10 + $0x468] sm:$0xff] }
 0x33f   :  { %v4721_v31 = vld [vmem:[#allocation10 + $0xb48] sm:$0xff]  ;;  %v9297_v5 = vcombine.high %v4497_v49, %v4501_v25  ;;  %v9296_v56 = vcombine.low %v4497_v49, %v4501_v25 }
 0x340   :  { %7670 = vmatmul.mubr.bf16.gmra.mxu1 %v10466_v15  ;;  %v4725_v29 = vld [vmem:[#allocation10 + $0xb68] sm:$0xff] }
 0x341   :  { %7734 = vmatpush1.bf16.msra.mxu1 %v9328_v30  ;;  %7761 = vmatprep.mubr.bf16.mxu1 %v10301_v19  ;;  %v9521_v27 = vcombine.high %v4721_v31, %v4725_v29  ;;  %v4489_v53 = vld [vmem:[#allocation10 + $0x408] sm:$0xff]  ;;  %v9520_v44 = vcombine.low %v4721_v31, %v4725_v29 }
 0x342   :  { %7793 = vmatpush1.bf16.msra.mxu0 %v9424_v18  ;;  %7735 = vmatprep.subr.bf16.mxu1 %v9321_v21  ;;  %v4493_v35 = vld [vmem:[#allocation10 + $0x428] sm:$0xff] }
 0x343   :  { %7794 = vmatprep.subr.bf16.mxu0 %v9417_v42  ;;  %v4713_v41 = vld [vmem:[#allocation10 + $0xb08] sm:$0xff]  ;;  %v9289_v10 = vcombine.high %v4489_v53, %v4493_v35  ;;  %v9288_v59 = vcombine.low %v4489_v53, %v4493_v35  ;;  %v4418_v35 = vld [vmem:[#allocation10 + $0x1d0] sm:$0xff] }
 0x344   :  { %v4717_v43 = vld [vmem:[#allocation10 + $0xb28] sm:$0xff] }
 0x345   :  { %7736 = vmatpush1.bf16.msra.mxu1 %v9320_v51  ;;  %v9513_v52 = vcombine.high %v4713_v41, %v4717_v43  ;;  %v4609_v50 = vld [vmem:[#allocation10 + $0x7c8] sm:$0xff]  ;;  %v9512_v30 = vcombine.low %v4713_v41, %v4717_v43  ;;  %v4422_v41 = vld [vmem:[#allocation10 + $0x1f0] sm:$0xff] }
 0x346   :  { %7795 = vmatpush1.bf16.msra.mxu0 %v9416_v8  ;;  %7737 = vmatprep.subr.bf16.mxu1 %v9313_v63  ;;  %v4613_v12 = vld [vmem:[#allocation10 + $0x7e8] sm:$0xff] }
 0x347   :  { %7796 = vmatprep.subr.bf16.mxu0 %v9537_v11  ;;  %v4705_v40 = vld [vmem:[#allocation10 + $0xac8] sm:$0xff]  ;;  %v9409_v18 = vcombine.high %v4609_v50, %v4613_v12  ;;  %v9408_v28 = vcombine.low %v4609_v50, %v4613_v12 }
 0x348   :  { %v4709_v34 = vld [vmem:[#allocation10 + $0xae8] sm:$0xff] }
 0x349   :  { %7738 = vmatpush1.bf16.msra.mxu1 %v9312_v45  ;;  %v9505_v21 = vcombine.high %v4705_v40, %v4709_v34  ;;  %v4601_v42 = vld [vmem:[#allocation10 + $0x788] sm:$0xff]  ;;  %v9504_v51 = vcombine.low %v4705_v40, %v4709_v34  ;;  %v4410_v40 = vld [vmem:[#allocation10 + $0x190] sm:$0xff] }
 0x34a   :  { %7797 = vmatpush2.bf16.msra.mxu0 %v9536_v33  ;;  %7739 = vmatprep.subr.bf16.mxu1 %v9305_v23  ;;  %v4605_v7 = vld [vmem:[#allocation10 + $0x7a8] sm:$0xff]  ;;  %v4414_v34 = vld [vmem:[#allocation10 + $0x1b0] sm:$0xff] }
 0x34b   :  { %7798 = vmatprep.subr.bf16.mxu0 %v9529_v2  ;;  %v4697_v61 = vld [vmem:[#allocation10 + $0xa88] sm:$0xff]  ;;  %v9401_v8 = vcombine.high %v4601_v42, %v4605_v7  ;;  %v9400_v6 = vcombine.low %v4601_v42, %v4605_v7  ;;  %v9211_v7 = vcombine.high %v4410_v40, %v4414_v34 }
 0x34c   :  { %v4701_v37 = vld [vmem:[#allocation10 + $0xaa8] sm:$0xff] }
 0x34d   :  { %7740 = vmatpush1.bf16.msra.mxu1 %v9304_v4  ;;  %v9497_v63 = vcombine.high %v4697_v61, %v4701_v37  ;;  %v4593_v11 = vld [vmem:[#allocation10 + $0x748] sm:$0xff]  ;;  %v9496_v45 = vcombine.low %v4697_v61, %v4701_v37 }
 0x34e   :  { %7799 = vmatpush2.bf16.msra.mxu0 %v9528_v38  ;;  %7741 = vmatprep.subr.bf16.mxu1 %v9297_v5  ;;  %v4597_v0 = vld [vmem:[#allocation10 + $0x768] sm:$0xff] }
 0x34f   :  { %7800 = vmatprep.subr.bf16.mxu0 %v9521_v27  ;;  %v4689_v60 = vld [vmem:[#allocation10 + $0xa48] sm:$0xff]  ;;  %v9393_v33 = vcombine.high %v4593_v11, %v4597_v0  ;;  %v9392_v29 = vcombine.low %v4593_v11, %v4597_v0 }
 0x350   :  { %v4693_v62 = vld [vmem:[#allocation10 + $0xa68] sm:$0xff] }
 0x351   :  { %7742 = vmatpush1.bf16.msra.mxu1 %v9296_v56  ;;  %v9489_v23 = vcombine.high %v4689_v60, %v4693_v62  ;;  %v4585_v2 = vld [vmem:[#allocation10 + $0x708] sm:$0xff]  ;;  %v9488_v4 = vcombine.low %v4689_v60, %v4693_v62  ;;  %v9210_v62 = vcombine.low %v4410_v40, %v4414_v34  ;;  %v4386_v34 = vld [vmem:[#allocation10 + $0xd0] sm:$0xff] }
 0x352   :  { %7801 = vmatpush2.bf16.msra.mxu0 %v9520_v44  ;;  %7743 = vmatprep.subr.bf16.mxu1 %v9289_v10  ;;  %v4589_v49 = vld [vmem:[#allocation10 + $0x728] sm:$0xff]  ;;  %v4872_v10 = vld [vmem:[#allocation11] sm:$0xff] }
 0x353   :  { %7802 = vmatprep.subr.bf16.mxu0 %v9513_v52  ;;  %v4681_v25 = vld [vmem:[#allocation10 + $0xa08] sm:$0xff]  ;;  %v9385_v38 = vcombine.high %v4585_v2, %v4589_v49  ;;  %v9384_v43 = vcombine.low %v4585_v2, %v4589_v49  ;;  %v9219_v52 = vcombine.high %v4418_v35, %v4422_v41 }
 0x354   :  { %v4685_v31 = vld [vmem:[#allocation10 + $0xa28] sm:$0xff] }
 0x355   :  { %7744 = vmatpush1.bf16.msra.mxu1 %v9288_v59  ;;  %v9481_v5 = vcombine.high %v4681_v25, %v4685_v31  ;;  %v4577_v27 = vld [vmem:[#allocation10 + $0x6c8] sm:$0xff]  ;;  %v9480_v56 = vcombine.low %v4681_v25, %v4685_v31 }
 0x356   :  { %7803 = vmatpush2.bf16.msra.mxu0 %v9512_v30  ;;  %7745 = vmatprep.subr.bf16.mxu1 %v9409_v18  ;;  %v4581_v53 = vld [vmem:[#allocation10 + $0x6e8] sm:$0xff]  ;;  %v4877_v30 = vrot.slane %v4872_v10, %v10013_v9  ;;  %v9218_v18 = vcombine.low %v4418_v35, %v4422_v41 }
 0x357   :  { %7804 = vmatprep.subr.bf16.mxu0 %v9505_v21  ;;  %v9377_v44 = vcombine.high %v4577_v27, %v4581_v53  ;;  %v4569_v50 = vld [vmem:[#allocation10 + $0x688] sm:$0xff]  ;;  %v9376_v59 = vcombine.low %v4577_v27, %v4581_v53  ;;  %v4881_v21 = vrot.slane %v4872_v10, %v9979_v20 }
 0x358   :  { %v4573_v12 = vld [vmem:[#allocation10 + $0x6a8] sm:$0xff] }
 0x359   :  { %7746 = vmatpush2.bf16.msra.mxu1 %v9408_v28  ;;  %v9369_v42 = vcombine.high %v4569_v50, %v4573_v12  ;;  %v4561_v61 = vld [vmem:[#allocation10 + $0x648] sm:$0xff]  ;;  %v9368_v0 = vcombine.low %v4569_v50, %v4573_v12 }
 0x35a   :  { %7805 = vmatpush2.bf16.msra.mxu0 %v9504_v51  ;;  %7747 = vmatprep.subr.bf16.mxu1 %v9401_v8  ;;  %v4565_v37 = vld [vmem:[#allocation10 + $0x668] sm:$0xff]  ;;  %v4402_v51 = vld [vmem:[#allocation10 + $0x150] sm:$0xff] }
 0x35b   :  { %7806 = vmatprep.subr.bf16.mxu0 %v9497_v63  ;;  %v4406_v8 = vld [vmem:[#allocation10 + $0x170] sm:$0xff]  ;;  %v4553_v49 = vld [vmem:[#allocation10 + $0x608] sm:$0xff]  ;;  %v9360_v53 = vcombine.low %v4561_v61, %v4565_v37 }
 0x35c   :  { %v9203_v2 = vcombine.high %v4402_v51, %v4406_v8  ;;  %v4557_v31 = vld [vmem:[#allocation10 + $0x628] sm:$0xff]  ;;  %v9202_v41 = vcombine.low %v4402_v51, %v4406_v8 }
 0x35d   :  { %7748 = vmatpush2.bf16.msra.mxu1 %v9400_v6  ;;  %v9361_v6 = vcombine.high %v4561_v61, %v4565_v37  ;;  %v9353_v10 = vcombine.high %v4553_v49, %v4557_v31  ;;  %v4801_v50 = vld [vmem:[#allocation10 + $0xdc8] sm:$0xff]  ;;  %v9352_v61 = vcombine.low %v4553_v49, %v4557_v31 }
 0x35e   :  { %7807 = vmatpush2.bf16.msra.mxu0 %v9496_v45  ;;  %7749 = vmatprep.subr.bf16.mxu1 %v9393_v33  ;;  %v4805_v12 = vld [vmem:[#allocation10 + $0xde8] sm:$0xff] }
 0x35f   :  { %7808 = vmatprep.subr.bf16.mxu0 %v9489_v23  ;;  %v9601_v51 = vcombine.high %v4801_v50, %v4805_v12  ;;  %v9600_v49 = vcombine.low %v4801_v50, %v4805_v12  ;;  %v4781_v50 = vld [vmem:[#allocation10 + $0xd28] sm:$0xff]  ;;  %v4362_v12 = vld [vmem:[#allocation10 + $0x10] sm:$0xff] }
 0x361   :  { %7750 = vmatpush2.bf16.msra.mxu1 %v9392_v29  ;;  %v4394_v29 = vld [vmem:[#allocation10 + $0x110] sm:$0xff] }
 0x362   :  { %7809 = vmatpush2.bf16.msra.mxu0 %v9488_v4  ;;  %7751 = vmatprep.subr.bf16.mxu1 %v9385_v38  ;;  %v4398_v4 = vld [vmem:[#allocation10 + $0x130] sm:$0xff] }
 0x363   :  { %7810 = vmatprep.subr.bf16.mxu0 %v9481_v5 }
 0x365   :  { %7752 = vmatpush2.bf16.msra.mxu1 %v9384_v43 }
 0x366   :  { %7811 = vmatpush2.bf16.msra.mxu0 %v9480_v56  ;;  %7753 = vmatprep.subr.bf16.mxu1 %v9377_v44 }
 0x367   :  { %7882 = vmatprep.subr.bf16.mxu0 %v9219_v52  ;;  %v9195_v52 = vcombine.high %v4394_v29, %v4398_v4 }
 0x368   :  { %v7508_v28 = vpop.f32.mrf.mxu0 }
 0x369   :  { %v7509_v63 = vadd.f32 %v7508_v28, %v4877_v30  ;;  %7754 = vmatpush2.bf16.msra.mxu1 %v9376_v59  ;;  %7813 = vmatmul.mubr.bf16.vlgmr.msra.gmra.mxu0 %v10380_v55  ;;  %v4390_v59 = vld [vmem:[#allocation10 + $0xf0] sm:$0xff]  ;;  %v9194_v28 = vcombine.low %v4394_v29, %v4398_v4 }
 0x36a   :  { %v7559_v11 = vpop.f32.mrf.mxu1  ;;  %7822 = vmatprep.mubr.bf16.mxu0 %v10409_v39  ;;  %7883 = vmatpush1.bf16.msra.mxu0 %v9218_v18  ;;  %v7510_v60 = vpop.f32.mrf.mxu0  ;;  %v9186_v31 = vcombine.low %v4386_v34, %v4390_v59 }
 0x36b   :  { %v10474_v45 = vadd.f32 %v7559_v11, %v7509_v63  ;;  %v7511_v33 = vadd.f32 %v7510_v60, %v4881_v21  ;;  %7755 = vmatprep.subr.bf16.mxu1 %v9369_v42  ;;  %7884 = vmatprep.subr.bf16.mxu0 %v9211_v7  ;;  %v4793_v60 = vld [vmem:[#allocation10 + $0xd88] sm:$0xff] }
 0x36c   :  { %v7561_v23 = vpop.f32.mrf.mxu1  ;;  %v7512_v25 = vpop.f32.mrf.mxu0 }
 0x36d   :  { %v10476_v38 = vadd.f32 %v7561_v23, %v7511_v33  ;;  %v7513_v5 = vadd.f32 %v7512_v25, %v4877_v30  ;;  %7756 = vmatpush2.bf16.msra.mxu1 %v9368_v0  ;;  %v9187_v0 = vcombine.high %v4386_v34, %v4390_v59  ;;  %v4382_v33 = vld [vmem:[#allocation10 + $0xb0] sm:$0xff] }
 0x36e   :  { %v7563_v27 = vpop.f32.mrf.mxu1  ;;  %7885 = vmatpush1.bf16.msra.mxu0 %v9210_v62  ;;  %v7514_v35 = vpop.f32.mrf.mxu0  ;;  %7757 = vmatprep.subr.bf16.mxu1 %v9361_v6  ;;  %v4378_v6 = vld [vmem:[#allocation10 + $0x90] sm:$0xff] }
 0x36f   :  { %v10478_v43 = vadd.f32 %v7563_v27, %v7513_v5  ;;  %v7515_v56 = vadd.f32 %v7514_v35, %v4881_v21  ;;  %7886 = vmatprep.subr.bf16.mxu0 %v9203_v2  ;;  %v9179_v4 = vcombine.high %v4378_v6, %v4382_v33  ;;  %v4785_v5 = vld [vmem:[#allocation10 + $0xd48] sm:$0xff]  ;;  %v4374_v35 = vld [vmem:[#allocation10 + $0x70] sm:$0xff] }
 0x370   :  { %v7565_v44 = vpop.f32.mrf.mxu1  ;;  %v7518_v40 = vpop.f32.mrf.mxu0  ;;  %v4789_v27 = vld [vmem:[#allocation10 + $0xd68] sm:$0xff] }
 0x371   :  { %v10480_v18 = vadd.f32 %v7565_v44, %v7515_v56  ;;  %v7519_v42 = vadd.f32 %v7518_v40, %v4877_v30  ;;  %7758 = vmatpush2.bf16.msra.mxu1 %v9360_v53  ;;  %7823 = vmatmul.mubr.bf16.gmra.mxu0 %v10425_v58  ;;  %v4797_v30 = vld [vmem:[#allocation10 + $0xda8] sm:$0xff]  ;;  %v4370_v53 = vld [vmem:[#allocation10 + $0x50] sm:$0xff]  ;;  %v9178_v56 = vcombine.low %v4378_v6, %v4382_v33 }
 0x372   :  { %v7569_v7 = vpop.f32.mrf.mxu1  ;;  %7887 = vmatpush1.bf16.msra.mxu0 %v9202_v41  ;;  %7914 = vmatprep.mubr.bf16.mxu0 %v10338_v13  ;;  %v7520_v37 = vpop.f32.mrf.mxu0  ;;  %v9593_v29 = vcombine.high %v4793_v60, %v4797_v30  ;;  %v9592_v41 = vcombine.low %v4793_v60, %v4797_v30  ;;  %v9585_v44 = vcombine.high %v4785_v5, %v4789_v27  ;;  %v4366_v40 = vld [vmem:[#allocation10 + $0x30] sm:$0xff]  ;;  %v4761_v30 = vld [vmem:[#allocation10 + $0xc88] sm:$0xff] }
 0x373   :  { %v10484_v8 = vadd.f32 %v7569_v7, %v7519_v42  ;;  %v7521_v63 = vadd.f32 %v7520_v37, %v4881_v21  ;;  %7759 = vmatprep.subr.bf16.mxu1 %v9353_v10  ;;  %7888 = vmatprep.subr.bf16.mxu0 %v9195_v52  ;;  %v9171_v10 = vcombine.high %v4370_v53, %v4374_v35  ;;  %v4777_v52 = vld [vmem:[#allocation10 + $0xd08] sm:$0xff]  ;;  %v4474_v6 = vld [vmem:[#allocation10 + $0x390] sm:$0xff] }
 0x374   :  { %v7571_v11 = vpop.f32.mrf.mxu1  ;;  %v7522_v62 = vpop.f32.mrf.mxu0  ;;  %v9584_v34 = vcombine.low %v4785_v5, %v4789_v27  ;;  %v9170_v59 = vcombine.low %v4370_v53, %v4374_v35  ;;  %v9577_v42 = vcombine.high %v4777_v52, %v4781_v50  ;;  %v9163_v7 = vcombine.high %v4362_v12, %v4366_v40  ;;  %v4773_v37 = vld [vmem:[#allocation10 + $0xce8] sm:$0xff]  ;;  %v4478_v33 = vld [vmem:[#allocation10 + $0x3b0] sm:$0xff] }
 0x375   :  { %v10486_v23 = vadd.f32 %v7571_v11, %v7521_v63  ;;  %7760 = vmatpush2.bf16.msra.mxu1 %v9352_v61  ;;  %v4769_v61 = vld [vmem:[#allocation10 + $0xcc8] sm:$0xff]  ;;  %v9576_v63 = vcombine.low %v4777_v52, %v4781_v50  ;;  %v9162_v11 = vcombine.low %v4362_v12, %v4366_v40  ;;  %v4470_v5 = vld [vmem:[#allocation10 + $0x370] sm:$0xff]  ;;  %v9274_v53 = vcombine.low %v4474_v6, %v4478_v33 }
 0x376   :  { %v7573_v2 = vpop.f32.mrf.mxu1  ;;  %7889 = vmatpush1.bf16.msra.mxu0 %v9194_v28  ;;  %v7523_v25 = vpop.f32.mrf.mxu0  ;;  %7831 = vmatprep.subr.bf16.mxu1 %v9601_v51  ;;  %v4482_v28 = vld [vmem:[#allocation10 + $0x3d0] sm:$0xff]  ;;  %v4765_v62 = vld [vmem:[#allocation10 + $0xca8] sm:$0xff] }
 0x377   :  { %7890 = vmatprep.subr.bf16.mxu0 %v9187_v0  ;;  %v4486_v51 = vld [vmem:[#allocation10 + $0x3f0] sm:$0xff]  ;;  %v9569_v0 = vcombine.high %v4769_v61, %v4773_v37  ;;  %v9568_v2 = vcombine.low %v4769_v61, %v4773_v37  ;;  %v9561_v25 = vcombine.high %v4761_v30, %v4765_v62  ;;  %v9560_v27 = vcombine.low %v4761_v30, %v4765_v62 }
 0x378   :  { %v7574_v21 = vpop.f32.mrf.mxu1  ;;  %7762 = vmatmul.mubr.bf16.vlgmr.msra.gmra.mxu1 %v10294_v57  ;;  %v9283_v60 = vcombine.high %v4482_v28, %v4486_v51  ;;  %v4462_v52 = vld [vmem:[#allocation10 + $0x330] sm:$0xff] }
 0x379   :  { %7771 = vmatprep.mubr.bf16.mxu1 %v10354_v3  ;;  %7832 = vmatpush1.bf16.msra.mxu1 %v9600_v49  ;;  %v9282_v49 = vcombine.low %v4482_v28, %v4486_v51  ;;  %v4757_v21 = vld [vmem:[#allocation10 + $0xc68] sm:$0xff]  ;;  %v4454_v61 = vld [vmem:[#allocation10 + $0x2f0] sm:$0xff] }
 0x37a   :  { %7891 = vmatpush1.bf16.msra.mxu0 %v9186_v31  ;;  %7833 = vmatprep.subr.bf16.mxu1 %v9593_v29  ;;  %v9275_v31 = vcombine.high %v4474_v6, %v4478_v33  ;;  %v4753_v29 = vld [vmem:[#allocation10 + $0xc48] sm:$0xff]  ;;  %v4446_v30 = vld [vmem:[#allocation10 + $0x2b0] sm:$0xff] }
 0x37b   :  { %7892 = vmatprep.subr.bf16.mxu0 %v9179_v4  ;;  %v4466_v4 = vld [vmem:[#allocation10 + $0x350] sm:$0xff]  ;;  %v9553_v35 = vcombine.high %v4753_v29, %v4757_v21  ;;  %v9552_v50 = vcombine.low %v4753_v29, %v4757_v21 }
 0x37c   :  { %v9266_v12 = vcombine.low %v4466_v4, %v4470_v5  ;;  %v4438_v29 = vld [vmem:[#allocation10 + $0x270] sm:$0xff] }
 0x37d   :  { %7834 = vmatpush1.bf16.msra.mxu1 %v9592_v41  ;;  %v9267_v41 = vcombine.high %v4466_v4, %v4470_v5 }
 0x37e   :  { %7893 = vmatpush1.bf16.msra.mxu0 %v9178_v56  ;;  %7835 = vmatprep.subr.bf16.mxu1 %v9585_v44  ;;  %v4745_v56 = vld [vmem:[#allocation10 + $0xc08] sm:$0xff] }
 0x37f   :  { %7894 = vmatprep.subr.bf16.mxu0 %v9171_v10  ;;  %v4749_v44 = vld [vmem:[#allocation10 + $0xc28] sm:$0xff]  ;;  %v4458_v10 = vld [vmem:[#allocation10 + $0x310] sm:$0xff] }
 0x380   :  { %7772 = vmatmul.mubr.bf16.gmra.mxu1 %v10370_v32  ;;  %v9545_v40 = vcombine.high %v4745_v56, %v4749_v44  ;;  %v9544_v37 = vcombine.low %v4745_v56, %v4749_v44  ;;  %v9258_v28 = vcombine.low %v4458_v10, %v4462_v52  ;;  %v4430_v56 = vld [vmem:[#allocation10 + $0x230] sm:$0xff] }
 0x381   :  { %7836 = vmatpush1.bf16.msra.mxu1 %v9584_v34  ;;  %7863 = vmatprep.mubr.bf16.mxu1 %v10456_v1  ;;  %v9259_v34 = vcombine.high %v4458_v10, %v4462_v52 }
 0x382   :  { %7895 = vmatpush1.bf16.msra.mxu0 %v9170_v59  ;;  %7837 = vmatprep.subr.bf16.mxu1 %v9577_v42  ;;  %v4865_v59 = vld [vmem:[#allocation10 + $0xfc8] sm:$0xff] }
 0x383   :  { %7896 = vmatprep.subr.bf16.mxu0 %v9163_v7  ;;  %v4869_v42 = vld [vmem:[#allocation10 + $0xfe8] sm:$0xff]  ;;  %v4450_v7 = vld [vmem:[#allocation10 + $0x2d0] sm:$0xff] }
 0x384   :  { %v9665_v51 = vcombine.high %v4865_v59, %v4869_v42  ;;  %v9664_v62 = vcombine.low %v4865_v59, %v4869_v42  ;;  %v9250_v6 = vcombine.low %v4450_v7, %v4454_v61  ;;  %v4678_v59 = vld [vmem:[#allocation10 + $0x9f0] sm:$0xff] }
 0x385   :  { %7838 = vmatpush1.bf16.msra.mxu1 %v9576_v63  ;;  %v9251_v63 = vcombine.high %v4450_v7, %v4454_v61 }
 0x386   :  { %7897 = vmatpush1.bf16.msra.mxu0 %v9162_v11  ;;  %7839 = vmatprep.subr.bf16.mxu1 %v9569_v0  ;;  %v4857_v11 = vld [vmem:[#allocation10 + $0xf88] sm:$0xff] }
 0x387   :  { %7898 = vmatprep.subr.bf16.mxu0 %v9283_v60  ;;  %v4861_v0 = vld [vmem:[#allocation10 + $0xfa8] sm:$0xff]  ;;  %v4442_v60 = vld [vmem:[#allocation10 + $0x290] sm:$0xff] }
 0x388   :  { %v9657_v33 = vcombine.high %v4857_v11, %v4861_v0  ;;  %v9656_v21 = vcombine.low %v4857_v11, %v4861_v0  ;;  %v9242_v4 = vcombine.low %v4442_v60, %v4446_v30  ;;  %v4670_v11 = vld [vmem:[#allocation10 + $0x9b0] sm:$0xff] }
 0x389   :  { %7840 = vmatpush1.bf16.msra.mxu1 %v9568_v2  ;;  %v9243_v2 = vcombine.high %v4442_v60, %v4446_v30 }
 0x38a   :  { %7899 = vmatpush2.bf16.msra.mxu0 %v9282_v49  ;;  %7841 = vmatprep.subr.bf16.mxu1 %v9561_v25  ;;  %v4849_v49 = vld [vmem:[#allocation10 + $0xf48] sm:$0xff] }
 0x38b   :  { %7900 = vmatprep.subr.bf16.mxu0 %v9275_v31  ;;  %v4853_v25 = vld [vmem:[#allocation10 + $0xf68] sm:$0xff]  ;;  %v4434_v31 = vld [vmem:[#allocation10 + $0x250] sm:$0xff] }
 0x38c   :  { %v9649_v5 = vcombine.high %v4849_v49, %v4853_v25  ;;  %v9648_v44 = vcombine.low %v4849_v49, %v4853_v25  ;;  %v9234_v10 = vcombine.low %v4434_v31, %v4438_v29  ;;  %v4662_v49 = vld [vmem:[#allocation10 + $0x970] sm:$0xff] }
 0x38d   :  { %7842 = vmatpush1.bf16.msra.mxu1 %v9560_v27  ;;  %v9235_v27 = vcombine.high %v4434_v31, %v4438_v29 }
 0x38e   :  { %7901 = vmatpush2.bf16.msra.mxu0 %v9274_v53  ;;  %7843 = vmatprep.subr.bf16.mxu1 %v9553_v35  ;;  %v4841_v53 = vld [vmem:[#allocation10 + $0xf08] sm:$0xff] }
 0x38f   :  { %7902 = vmatprep.subr.bf16.mxu0 %v9267_v41  ;;  %v4845_v35 = vld [vmem:[#allocation10 + $0xf28] sm:$0xff]  ;;  %v4426_v41 = vld [vmem:[#allocation10 + $0x210] sm:$0xff] }
 0x390   :  { %v9641_v52 = vcombine.high %v4841_v53, %v4845_v35  ;;  %v9640_v42 = vcombine.low %v4841_v53, %v4845_v35  ;;  %v9226_v7 = vcombine.low %v4426_v41, %v4430_v56  ;;  %v4809_v53 = vld [vmem:[#allocation10 + $0xe08] sm:$0xff] }
 0x391   :  { %7844 = vmatpush1.bf16.msra.mxu1 %v9552_v50  ;;  %v9227_v50 = vcombine.high %v4426_v41, %v4430_v56  ;;  %v4813_v41 = vld [vmem:[#allocation10 + $0xe28] sm:$0xff]  ;;  %v4650_v56 = vld [vmem:[#allocation10 + $0x910] sm:$0xff] }
 0x392   :  { %7903 = vmatpush2.bf16.msra.mxu0 %v9266_v12  ;;  %7845 = vmatprep.subr.bf16.mxu1 %v9545_v40  ;;  %v4833_v12 = vld [vmem:[#allocation10 + $0xec8] sm:$0xff] }
 0x393   :  { %7904 = vmatprep.subr.bf16.mxu0 %v9259_v34  ;;  %v4837_v40 = vld [vmem:[#allocation10 + $0xee8] sm:$0xff]  ;;  %v4674_v34 = vld [vmem:[#allocation10 + $0x9d0] sm:$0xff] }
 0x394   :  { %v9633_v61 = vcombine.high %v4833_v12, %v4837_v40  ;;  %v9632_v0 = vcombine.low %v4833_v12, %v4837_v40  ;;  %v9474_v60 = vcombine.low %v4674_v34, %v4678_v59  ;;  %v9609_v40 = vcombine.high %v4809_v53, %v4813_v41 }
 0x395   :  { %7846 = vmatpush1.bf16.msra.mxu1 %v9544_v37  ;;  %v9475_v37 = vcombine.high %v4674_v34, %v4678_v59  ;;  %v4546_v59 = vld [vmem:[#allocation10 + $0x5d0] sm:$0xff] }
 0x396   :  { %7905 = vmatpush2.bf16.msra.mxu0 %v9258_v28  ;;  %7847 = vmatprep.subr.bf16.mxu1 %v9665_v51  ;;  %v4825_v28 = vld [vmem:[#allocation10 + $0xe88] sm:$0xff] }
 0x397   :  { %7906 = vmatprep.subr.bf16.mxu0 %v9251_v63  ;;  %v4829_v51 = vld [vmem:[#allocation10 + $0xea8] sm:$0xff]  ;;  %v4666_v63 = vld [vmem:[#allocation10 + $0x990] sm:$0xff] }
 0x398   :  { %v9625_v30 = vcombine.high %v4825_v28, %v4829_v51  ;;  %v9624_v31 = vcombine.low %v4825_v28, %v4829_v51 }
 0x399   :  { %7848 = vmatpush2.bf16.msra.mxu1 %v9664_v62  ;;  %v9467_v62 = vcombine.high %v4666_v63, %v4670_v11 }
 0x39a   :  { %7907 = vmatpush2.bf16.msra.mxu0 %v9250_v6  ;;  %7849 = vmatprep.subr.bf16.mxu1 %v9657_v33  ;;  %v4817_v6 = vld [vmem:[#allocation10 + $0xe48] sm:$0xff] }
 0x39b   :  { %7908 = vmatprep.subr.bf16.mxu0 %v9243_v2  ;;  %v4821_v33 = vld [vmem:[#allocation10 + $0xe68] sm:$0xff]  ;;  %v4658_v2 = vld [vmem:[#allocation10 + $0x950] sm:$0xff] }
 0x39d   :  { %7850 = vmatpush2.bf16.msra.mxu1 %v9656_v21  ;;  %v9466_v21 = vcombine.low %v4666_v63, %v4670_v11 }
 0x39e   :  { %7909 = vmatpush2.bf16.msra.mxu0 %v9242_v4  ;;  %7851 = vmatprep.subr.bf16.mxu1 %v9649_v5  ;;  %v9617_v4 = vcombine.high %v4817_v6, %v4821_v33 }
 0x39f   :  { %7910 = vmatprep.subr.bf16.mxu0 %v9235_v27  ;;  %v9459_v27 = vcombine.high %v4658_v2, %v4662_v49 }
 0x3a1   :  { %7852 = vmatpush2.bf16.msra.mxu1 %v9648_v44  ;;  %v4654_v44 = vld [vmem:[#allocation10 + $0x930] sm:$0xff] }
 0x3a2   :  { %7911 = vmatpush2.bf16.msra.mxu0 %v9234_v10  ;;  %7853 = vmatprep.subr.bf16.mxu1 %v9641_v52  ;;  %v9451_v34 = vcombine.high %v4650_v56, %v4654_v44  ;;  %v9450_v51 = vcombine.low %v4650_v56, %v4654_v44  ;;  %v4522_v44 = vld [vmem:[#allocation10 + $0x510] sm:$0xff] }
 0x3a3   :  { %7912 = vmatprep.subr.bf16.mxu0 %v9227_v50  ;;  %v9458_v50 = vcombine.low %v4658_v2, %v4662_v49 }
 0x3a5   :  { %7854 = vmatpush2.bf16.msra.mxu1 %v9640_v42  ;;  %v4550_v42 = vld [vmem:[#allocation10 + $0x5f0] sm:$0xff] }
 0x3a6   :  { %7913 = vmatpush2.bf16.msra.mxu0 %v9226_v7  ;;  %7855 = vmatprep.subr.bf16.mxu1 %v9633_v61  ;;  %v4642_v7 = vld [vmem:[#allocation10 + $0x8d0] sm:$0xff]  ;;  %v9347_v63 = vcombine.high %v4546_v59, %v4550_v42 }
 0x3a7   :  { %7984 = vmatprep.subr.bf16.mxu0 %v9475_v37  ;;  %v4646_v61 = vld [vmem:[#allocation10 + $0x8f0] sm:$0xff] }
 0x3a8   :  { %v7610_v25 = vpop.f32.mrf.mxu0  ;;  %v9442_v2 = vcombine.low %v4642_v7, %v4646_v61 }
 0x3a9   :  { %7856 = vmatpush2.bf16.msra.mxu1 %v9632_v0  ;;  %7915 = vmatmul.mubr.bf16.vlgmr.msra.gmra.mxu0 %v10245_v22  ;;  %v10494_v29 = vadd.f32 %v7610_v25, %v10474_v45  ;;  %v9616_v45 = vcombine.low %v4817_v6, %v4821_v33  ;;  %v4538_v0 = vld [vmem:[#allocation10 + $0x590] sm:$0xff] }
 0x3aa   :  { %7924 = vmatprep.mubr.bf16.mxu0 %v10352_v24  ;;  %7985 = vmatpush1.bf16.msra.mxu0 %v9474_v60  ;;  %v7612_v5 = vpop.f32.mrf.mxu0  ;;  %v4542_v60 = vld [vmem:[#allocation10 + $0x5b0] sm:$0xff] }
 0x3ab   :  { %7857 = vmatprep.subr.bf16.mxu1 %v9625_v30  ;;  %7986 = vmatprep.subr.bf16.mxu0 %v9467_v62  ;;  %v10498_v35 = vadd.f32 %v7612_v5, %v10476_v38  ;;  %v4634_v62 = vld [vmem:[#allocation10 + $0x890] sm:$0xff]  ;;  %v9339_v49 = vcombine.high %v4538_v0, %v4542_v60 }
 0x3ac   :  { %v7614_v10 = vpop.f32.mrf.mxu0  ;;  %v4638_v6 = vld [vmem:[#allocation10 + $0x8b0] sm:$0xff] }
 0x3ad   :  { %7858 = vmatpush2.bf16.msra.mxu1 %v9624_v31  ;;  %v10501_v52 = vadd.f32 %v7614_v10, %v10478_v43  ;;  %v9608_v43 = vcombine.low %v4809_v53, %v4813_v41  ;;  %v9435_v31 = vcombine.high %v4634_v62, %v4638_v6  ;;  %v4626_v5 = vld [vmem:[#allocation10 + $0x850] sm:$0xff]  ;;  %v9434_v53 = vcombine.low %v4634_v62, %v4638_v6 }
 0x3ae   :  { %7987 = vmatpush1.bf16.msra.mxu0 %v9466_v21  ;;  %7859 = vmatprep.subr.bf16.mxu1 %v9617_v4  ;;  %v7616_v12 = vpop.f32.mrf.mxu0  ;;  %v4530_v21 = vld [vmem:[#allocation10 + $0x550] sm:$0xff] }
 0x3af   :  { %7988 = vmatprep.subr.bf16.mxu0 %v9459_v27  ;;  %v10504_v38 = vadd.f32 %v7616_v12, %v10480_v18  ;;  %v9443_v18 = vcombine.high %v4642_v7, %v4646_v61  ;;  %v4534_v4 = vld [vmem:[#allocation10 + $0x570] sm:$0xff] }
 0x3b0   :  { %v7620_v37 = vpop.f32.mrf.mxu0  ;;  %v4630_v27 = vld [vmem:[#allocation10 + $0x870] sm:$0xff]  ;;  %v9331_v41 = vcombine.high %v4530_v21, %v4534_v4  ;;  %v9330_v12 = vcombine.low %v4530_v21, %v4534_v4 }
 0x3b1   :  { %7860 = vmatpush2.bf16.msra.mxu1 %v9616_v45  ;;  %7925 = vmatmul.mubr.bf16.gmra.mxu0 %v10366_v48  ;;  %v10508_v28 = vadd.f32 %v7620_v37, %v10484_v8  ;;  %v9346_v8 = vcombine.low %v4546_v59, %v4550_v42  ;;  %v9427_v56 = vcombine.high %v4626_v5, %v4630_v27  ;;  %v4526_v10 = vld [vmem:[#allocation10 + $0x530] sm:$0xff] }
 0x3b2   :  { %7989 = vmatpush1.bf16.msra.mxu0 %v9458_v50  ;;  %8016 = vmatprep.mubr.bf16.mxu0 %v10384_v16  ;;  %v7622_v11 = vpop.f32.mrf.mxu0  ;;  %v4618_v45 = vld [vmem:[#allocation10 + $0x810] sm:$0xff] }
 0x3b3   :  { %7861 = vmatprep.subr.bf16.mxu1 %v9609_v40  ;;  %7990 = vmatprep.subr.bf16.mxu0 %v9451_v34  ;;  %v10512_v30 = vadd.f32 %v7622_v11, %v10486_v23  ;;  %v9338_v23 = vcombine.low %v4538_v0, %v4542_v60  ;;  %v4622_v50 = vld [vmem:[#allocation10 + $0x830] sm:$0xff]  ;;  %v9426_v40 = vcombine.low %v4626_v5, %v4630_v27 }
 0x3b4   :  { %v7624_v33 = vpop.f32.mrf.mxu0  ;;  %v9323_v34 = vcombine.high %v4522_v44, %v4526_v10  ;;  %v9419_v59 = vcombine.high %v4618_v45, %v4622_v50  ;;  %v4514_v42 = vld [vmem:[#allocation10 + $0x4d0] sm:$0xff] }
 0x3b5   :  { %7862 = vmatpush2.bf16.msra.mxu1 %v9608_v43  ;;  %v4518_v7 = vld [vmem:[#allocation10 + $0x4f0] sm:$0xff]  ;;  %v9322_v43 = vcombine.low %v4522_v44, %v4526_v10 }
 0x3b6   :  { %7991 = vmatpush1.bf16.msra.mxu0 %v9450_v51  ;;  %7933 = vmatprep.subr.bf16.mxu1 %v9347_v63  ;;  %v7625_v25 = vpop.f32.mrf.mxu0  ;;  %v4738_v61 = vld [vmem:[#allocation10 + $0xbd0] sm:$0xff]  ;;  %v9418_v51 = vcombine.low %v4618_v45, %v4622_v50  ;;  %v9315_v63 = vcombine.high %v4514_v42, %v4518_v7  ;;  %v9314_v6 = vcombine.low %v4514_v42, %v4518_v7 }
 0x3b7   :  { %7992 = vmatprep.subr.bf16.mxu0 %v9443_v18  ;;  %v4742_v37 = vld [vmem:[#allocation10 + $0xbf0] sm:$0xff] }
 0x3b8   :  { %7864 = vmatmul.mubr.bf16.vlgmr.msra.gmra.mxu1 %v10454_v26  ;;  %v9539_v11 = vcombine.high %v4738_v61, %v4742_v37  ;;  %v4506_v18 = vld [vmem:[#allocation10 + $0x490] sm:$0xff]  ;;  %v9538_v33 = vcombine.low %v4738_v61, %v4742_v37 }
 0x3b9   :  { %7873 = vmatprep.mubr.bf16.mxu1 %v10460_v36  ;;  %7934 = vmatpush1.bf16.msra.mxu1 %v9346_v8  ;;  %v4510_v0 = vld [vmem:[#allocation10 + $0x4b0] sm:$0xff] }
 0x3ba   :  { %7993 = vmatpush1.bf16.msra.mxu0 %v9442_v2  ;;  %7935 = vmatprep.subr.bf16.mxu1 %v9339_v49  ;;  %v4730_v60 = vld [vmem:[#allocation10 + $0xb90] sm:$0xff]  ;;  %v9307_v8 = vcombine.high %v4506_v18, %v4510_v0  ;;  %v9306_v4 = vcombine.low %v4506_v18, %v4510_v0 }
 0x3bb   :  { %7994 = vmatprep.subr.bf16.mxu0 %v9435_v31  ;;  %v4734_v62 = vld [vmem:[#allocation10 + $0xbb0] sm:$0xff] }
 0x3bc   :  { %v9531_v2 = vcombine.high %v4730_v60, %v4734_v62  ;;  %v4498_v49 = vld [vmem:[#allocation10 + $0x450] sm:$0xff]  ;;  %v9530_v5 = vcombine.low %v4730_v60, %v4734_v62 }
 0x3bd   :  { %7936 = vmatpush1.bf16.msra.mxu1 %v9338_v23  ;;  %v4502_v25 = vld [vmem:[#allocation10 + $0x470] sm:$0xff] }
 0x3be   :  { %7995 = vmatpush1.bf16.msra.mxu0 %v9434_v53  ;;  %7937 = vmatprep.subr.bf16.mxu1 %v9331_v41  ;;  %v4722_v31 = vld [vmem:[#allocation10 + $0xb50] sm:$0xff]  ;;  %v9299_v27 = vcombine.high %v4498_v49, %v4502_v25  ;;  %v9298_v10 = vcombine.low %v4498_v49, %v4502_v25 }
 0x3bf   :  { %7996 = vmatprep.subr.bf16.mxu0 %v9427_v56  ;;  %v4726_v21 = vld [vmem:[#allocation10 + $0xb70] sm:$0xff] }
 0x3c0   :  { %7874 = vmatmul.mubr.bf16.gmra.mxu1 %v10466_v15  ;;  %v9523_v23 = vcombine.high %v4722_v31, %v4726_v21  ;;  %v4490_v53 = vld [vmem:[#allocation10 + $0x410] sm:$0xff]  ;;  %v9522_v45 = vcombine.low %v4722_v31, %v4726_v21 }
 0x3c1   :  { %7938 = vmatpush1.bf16.msra.mxu1 %v9330_v12  ;;  %7965 = vmatprep.mubr.bf16.mxu1 %v10301_v19  ;;  %v4494_v41 = vld [vmem:[#allocation10 + $0x430] sm:$0xff] }
 0x3c2   :  { %7997 = vmatpush1.bf16.msra.mxu0 %v9426_v40  ;;  %7939 = vmatprep.subr.bf16.mxu1 %v9323_v34  ;;  %v4714_v56 = vld [vmem:[#allocation10 + $0xb10] sm:$0xff]  ;;  %v9291_v50 = vcombine.high %v4490_v53, %v4494_v41  ;;  %v9290_v7 = vcombine.low %v4490_v53, %v4494_v41 }
 0x3c3   :  { %7998 = vmatprep.subr.bf16.mxu0 %v9419_v59  ;;  %v4718_v44 = vld [vmem:[#allocation10 + $0xb30] sm:$0xff] }
 0x3c4   :  { %v9515_v12 = vcombine.high %v4714_v56, %v4718_v44  ;;  %v4610_v40 = vld [vmem:[#allocation10 + $0x7d0] sm:$0xff]  ;;  %v9514_v61 = vcombine.low %v4714_v56, %v4718_v44 }
 0x3c5   :  { %7940 = vmatpush1.bf16.msra.mxu1 %v9322_v43  ;;  %v4614_v34 = vld [vmem:[#allocation10 + $0x7f0] sm:$0xff] }
 0x3c6   :  { %7999 = vmatpush1.bf16.msra.mxu0 %v9418_v51  ;;  %7941 = vmatprep.subr.bf16.mxu1 %v9315_v63  ;;  %v4706_v59 = vld [vmem:[#allocation10 + $0xad0] sm:$0xff]  ;;  %v9411_v37 = vcombine.high %v4610_v40, %v4614_v34  ;;  %v9410_v0 = vcombine.low %v4610_v40, %v4614_v34  ;;  %v4423_v40 = vld [vmem:[#allocation10 + $0x1f8] sm:$0xff] }
 0x3c7   :  { %8000 = vmatprep.subr.bf16.mxu0 %v9539_v11  ;;  %v4710_v42 = vld [vmem:[#allocation10 + $0xaf0] sm:$0xff] }
 0x3c8   :  { %v9507_v43 = vcombine.high %v4706_v59, %v4710_v42  ;;  %v4602_v51 = vld [vmem:[#allocation10 + $0x790] sm:$0xff]  ;;  %v9506_v60 = vcombine.low %v4706_v59, %v4710_v42 }
 0x3c9   :  { %7942 = vmatpush1.bf16.msra.mxu1 %v9314_v6  ;;  %v4606_v63 = vld [vmem:[#allocation10 + $0x7b0] sm:$0xff] }
 0x3ca   :  { %8001 = vmatpush2.bf16.msra.mxu0 %v9538_v33  ;;  %7943 = vmatprep.subr.bf16.mxu1 %v9307_v8  ;;  %v4698_v11 = vld [vmem:[#allocation10 + $0xa90] sm:$0xff]  ;;  %v9403_v62 = vcombine.high %v4602_v51, %v4606_v63  ;;  %v9402_v25 = vcombine.low %v4602_v51, %v4606_v63  ;;  %v4415_v51 = vld [vmem:[#allocation10 + $0x1b8] sm:$0xff] }
 0x3cb   :  { %8002 = vmatprep.subr.bf16.mxu0 %v9531_v2  ;;  %v4702_v18 = vld [vmem:[#allocation10 + $0xab0] sm:$0xff] }
 0x3cc   :  { %v9499_v6 = vcombine.high %v4698_v11, %v4702_v18  ;;  %v4594_v33 = vld [vmem:[#allocation10 + $0x750] sm:$0xff]  ;;  %v9498_v31 = vcombine.low %v4698_v11, %v4702_v18 }
 0x3cd   :  { %7944 = vmatpush1.bf16.msra.mxu1 %v9306_v4  ;;  %v4598_v8 = vld [vmem:[#allocation10 + $0x770] sm:$0xff] }
 0x3ce   :  { %8003 = vmatpush2.bf16.msra.mxu0 %v9530_v5  ;;  %7945 = vmatprep.subr.bf16.mxu1 %v9299_v27  ;;  %v4690_v2 = vld [vmem:[#allocation10 + $0xa50] sm:$0xff]  ;;  %v9395_v21 = vcombine.high %v4594_v33, %v4598_v8  ;;  %v9394_v41 = vcombine.low %v4594_v33, %v4598_v8  ;;  %v4407_v33 = vld [vmem:[#allocation10 + $0x178] sm:$0xff] }
 0x3cf   :  { %8004 = vmatprep.subr.bf16.mxu0 %v9523_v23  ;;  %v4694_v49 = vld [vmem:[#allocation10 + $0xa70] sm:$0xff] }
 0x3d0   :  { %v9491_v4 = vcombine.high %v4690_v2, %v4694_v49  ;;  %v4586_v5 = vld [vmem:[#allocation10 + $0x710] sm:$0xff]  ;;  %v9490_v56 = vcombine.low %v4690_v2, %v4694_v49 }
 0x3d1   :  { %7946 = vmatpush1.bf16.msra.mxu1 %v9298_v10  ;;  %v4590_v27 = vld [vmem:[#allocation10 + $0x730] sm:$0xff] }
 0x3d2   :  { %8005 = vmatpush2.bf16.msra.mxu0 %v9522_v45  ;;  %7947 = vmatprep.subr.bf16.mxu1 %v9291_v50  ;;  %v4682_v23 = vld [vmem:[#allocation10 + $0xa10] sm:$0xff]  ;;  %v9387_v44 = vcombine.high %v4586_v5, %v4590_v27  ;;  %v9386_v34 = vcombine.low %v4586_v5, %v4590_v27  ;;  %v4395_v27 = vld [vmem:[#allocation10 + $0x118] sm:$0xff] }
 0x3d3   :  { %8006 = vmatprep.subr.bf16.mxu0 %v9515_v12  ;;  %v4686_v53 = vld [vmem:[#allocation10 + $0xa30] sm:$0xff]  ;;  %v4419_v12 = vld [vmem:[#allocation10 + $0x1d8] sm:$0xff] }
 0x3d4   :  { %v9483_v10 = vcombine.high %v4682_v23, %v4686_v53  ;;  %v4578_v45 = vld [vmem:[#allocation10 + $0x6d0] sm:$0xff]  ;;  %v9482_v59 = vcombine.low %v4682_v23, %v4686_v53  ;;  %v9220_v11 = vcombine.low %v4419_v12, %v4423_v40  ;;  %v4399_v23 = vld [vmem:[#allocation10 + $0x138] sm:$0xff] }
 0x3d5   :  { %7948 = vmatpush1.bf16.msra.mxu1 %v9290_v7  ;;  %v4582_v50 = vld [vmem:[#allocation10 + $0x6f0] sm:$0xff]  ;;  %v9221_v7 = vcombine.high %v4419_v12, %v4423_v40  ;;  %v4387_v40 = vld [vmem:[#allocation10 + $0xd8] sm:$0xff] }
 0x3d6   :  { %8007 = vmatpush2.bf16.msra.mxu0 %v9514_v61  ;;  %7949 = vmatprep.subr.bf16.mxu1 %v9411_v37  ;;  %v9379_v42 = vcombine.high %v4578_v45, %v4582_v50  ;;  %v4570_v61 = vld [vmem:[#allocation10 + $0x690] sm:$0xff]  ;;  %v9378_v63 = vcombine.low %v4578_v45, %v4582_v50  ;;  %v9197_v45 = vcombine.high %v4395_v27, %v4399_v23 }
 0x3d7   :  { %8008 = vmatprep.subr.bf16.mxu0 %v9507_v43  ;;  %v4574_v37 = vld [vmem:[#allocation10 + $0x6b0] sm:$0xff]  ;;  %v4411_v43 = vld [vmem:[#allocation10 + $0x198] sm:$0xff] }
 0x3d8   :  { %v9371_v18 = vcombine.high %v4570_v61, %v4574_v37  ;;  %v9370_v2 = vcombine.low %v4570_v61, %v4574_v37  ;;  %v9212_v49 = vcombine.low %v4411_v43, %v4415_v51  ;;  %v4558_v5 = vld [vmem:[#allocation10 + $0x630] sm:$0xff] }
 0x3d9   :  { %7950 = vmatpush2.bf16.msra.mxu1 %v9410_v0  ;;  %v9213_v0 = vcombine.high %v4411_v43, %v4415_v51  ;;  %v4802_v50 = vld [vmem:[#allocation10 + $0xdd0] sm:$0xff] }
 0x3da   :  { %8009 = vmatpush2.bf16.msra.mxu0 %v9506_v60  ;;  %7951 = vmatprep.subr.bf16.mxu1 %v9403_v62  ;;  %v4562_v60 = vld [vmem:[#allocation10 + $0x650] sm:$0xff] }
 0x3db   :  { %8010 = vmatprep.subr.bf16.mxu0 %v9499_v6  ;;  %v4566_v62 = vld [vmem:[#allocation10 + $0x670] sm:$0xff]  ;;  %v4403_v6 = vld [vmem:[#allocation10 + $0x158] sm:$0xff] }
 0x3dc   :  { %v4806_v12 = vld [vmem:[#allocation10 + $0xdf0] sm:$0xff] }
 0x3dd   :  { %7952 = vmatpush2.bf16.msra.mxu1 %v9402_v25  ;;  %v9363_v25 = vcombine.high %v4562_v60, %v4566_v62  ;;  %v9603_v61 = vcombine.high %v4802_v50, %v4806_v12  ;;  %v4794_v51 = vld [vmem:[#allocation10 + $0xd90] sm:$0xff] }
 0x3de   :  { %8011 = vmatpush2.bf16.msra.mxu0 %v9498_v31  ;;  %7953 = vmatprep.subr.bf16.mxu1 %v9395_v21  ;;  %v9205_v21 = vcombine.high %v4403_v6, %v4407_v33 }
 0x3df   :  { %8012 = vmatprep.subr.bf16.mxu0 %v9491_v4  ;;  %v4554_v4 = vld [vmem:[#allocation10 + $0x610] sm:$0xff] }
 0x3e1   :  { %7954 = vmatpush2.bf16.msra.mxu1 %v9394_v41  ;;  %v9362_v41 = vcombine.low %v4562_v60, %v4566_v62  ;;  %v9602_v60 = vcombine.low %v4802_v50, %v4806_v12  ;;  %v4778_v50 = vld [vmem:[#allocation10 + $0xd10] sm:$0xff] }
 0x3e2   :  { %8013 = vmatpush2.bf16.msra.mxu0 %v9490_v56  ;;  %7955 = vmatprep.subr.bf16.mxu1 %v9387_v44  ;;  %v9204_v56 = vcombine.low %v4403_v6, %v4407_v33  ;;  %v4782_v12 = vld [vmem:[#allocation10 + $0xd30] sm:$0xff] }
 0x3e3   :  { %8014 = vmatprep.subr.bf16.mxu0 %v9483_v10  ;;  %v9355_v10 = vcombine.high %v4554_v4, %v4558_v5 }
 0x3e5   :  { %7956 = vmatpush2.bf16.msra.mxu1 %v9386_v34  ;;  %v4391_v34 = vld [vmem:[#allocation10 + $0xf8] sm:$0xff] }
 0x3e6   :  { %8015 = vmatpush2.bf16.msra.mxu0 %v9482_v59  ;;  %7957 = vmatprep.subr.bf16.mxu1 %v9379_v42  ;;  %v9354_v42 = vcombine.low %v4554_v4, %v4558_v5  ;;  %v9189_v43 = vcombine.high %v4387_v40, %v4391_v34  ;;  %v9188_v62 = vcombine.low %v4387_v40, %v4391_v34  ;;  %v4375_v4 = vld [vmem:[#allocation10 + $0x78] sm:$0xff] }
 0x3e7   :  { %8086 = vmatprep.subr.bf16.mxu0 %v9221_v7  ;;  %v9196_v7 = vcombine.low %v4395_v27, %v4399_v23  ;;  %v4363_v34 = vld [vmem:[#allocation10 + $0x18] sm:$0xff] }
 0x3e8   :  { %v10518_v8 = vpop.f32.mrf.mxu0 }
 0x3e9   :  { %7958 = vmatpush2.bf16.msra.mxu1 %v9378_v63  ;;  %8017 = vmatmul.mubr.bf16.vlgmr.msra.gmra.mxu0 %v10380_v55  ;;  %v4798_v63 = vld [vmem:[#allocation10 + $0xdb0] sm:$0xff] }
 0x3ea   :  { %8026 = vmatprep.mubr.bf16.mxu0 %v10409_v39  ;;  %8087 = vmatpush1.bf16.msra.mxu0 %v9220_v11  ;;  %v10522_v31 = vpop.f32.mrf.mxu0  ;;  %v4379_v11 = vld [vmem:[#allocation10 + $0x98] sm:$0xff]  ;;  %v9595_v6 = vcombine.high %v4794_v51, %v4798_v63  ;;  %v9594_v27 = vcombine.low %v4794_v51, %v4798_v63  ;;  %v9579_v51 = vcombine.high %v4778_v50, %v4782_v12 }
 0x3eb   :  { %7959 = vmatprep.subr.bf16.mxu1 %v9371_v18  ;;  %8088 = vmatprep.subr.bf16.mxu0 %v9213_v0  ;;  %v4383_v18 = vld [vmem:[#allocation10 + $0xb8] sm:$0xff] }
 0x3ec   :  { %v10524_v53 = vpop.f32.mrf.mxu0 }
 0x3ed   :  { %7960 = vmatpush2.bf16.msra.mxu1 %v9370_v2  ;;  %v4786_v2 = vld [vmem:[#allocation10 + $0xd50] sm:$0xff] }
 0x3ee   :  { %8089 = vmatpush1.bf16.msra.mxu0 %v9212_v49  ;;  %7961 = vmatprep.subr.bf16.mxu1 %v9363_v25  ;;  %v10526_v44 = vpop.f32.mrf.mxu0  ;;  %v4790_v49 = vld [vmem:[#allocation10 + $0xd70] sm:$0xff] }
 0x3ef   :  { %8090 = vmatprep.subr.bf16.mxu0 %v9205_v21  ;;  %v4371_v21 = vld [vmem:[#allocation10 + $0x58] sm:$0xff] }
 0x3f0   :  { %v10528_v59 = vpop.f32.mrf.mxu0 }
 0x3f1   :  { %7962 = vmatpush2.bf16.msra.mxu1 %v9362_v41  ;;  %8027 = vmatmul.mubr.bf16.gmra.mxu0 %v10425_v58  ;;  %v9180_v41 = vcombine.low %v4379_v11, %v4383_v18 }
 0x3f2   :  { %8091 = vmatpush1.bf16.msra.mxu0 %v9204_v56  ;;  %8118 = vmatprep.mubr.bf16.mxu0 %v10338_v13  ;;  %v10532_v37 = vpop.f32.mrf.mxu0  ;;  %v9181_v13 = vcombine.high %v4379_v11, %v4383_v18  ;;  %v9587_v56 = vcombine.high %v4786_v2, %v4790_v49  ;;  %v4770_v11 = vld [vmem:[#allocation10 + $0xcd0] sm:$0xff] }
 0x3f3   :  { %7963 = vmatprep.subr.bf16.mxu1 %v9355_v10  ;;  %8092 = vmatprep.subr.bf16.mxu0 %v9197_v45  ;;  %v9173_v45 = vcombine.high %v4371_v21, %v4375_v4  ;;  %v4774_v18 = vld [vmem:[#allocation10 + $0xcf0] sm:$0xff] }
 0x3f4   :  { %v7726_v0 = vpop.f32.mrf.mxu0 }
 0x3f5   :  { %7964 = vmatpush2.bf16.msra.mxu1 %v9354_v42 }
 0x3f6   :  { %8093 = vmatpush1.bf16.msra.mxu0 %v9196_v7  ;;  %8035 = vmatprep.subr.bf16.mxu1 %v9603_v61  ;;  %v7727_v33 = vpop.f32.mrf.mxu0  ;;  %v9586_v7 = vcombine.low %v4786_v2, %v4790_v49 }
 0x3f7   :  { %8094 = vmatprep.subr.bf16.mxu0 %v9189_v43  ;;  %v9172_v43 = vcombine.low %v4371_v21, %v4375_v4  ;;  %v4766_v21 = vld [vmem:[#allocation10 + $0xcb0] sm:$0xff] }
 0x3f8   :  { %7966 = vmatmul.mubr.bf16.vlgmr.msra.gmra.mxu1 %v10294_v57  ;;  %v7661_v25 = vpop.f32.mrf.mxu1 }
 0x3f9   :  { %v10536_v5 = vadd.f32 %v7661_v25, %v10494_v29  ;;  %7975 = vmatprep.mubr.bf16.mxu1 %v10354_v3  ;;  %8036 = vmatpush1.bf16.msra.mxu1 %v9602_v60  ;;  %v4367_v29 = vld [vmem:[#allocation10 + $0x38] sm:$0xff]  ;;  %v4762_v25 = vld [vmem:[#allocation10 + $0xc90] sm:$0xff] }
 0x3fa   :  { %8095 = vmatpush1.bf16.msra.mxu0 %v9188_v62  ;;  %v7663_v23 = vpop.f32.mrf.mxu1  ;;  %8037 = vmatprep.subr.bf16.mxu1 %v9595_v6  ;;  %v9165_v63 = vcombine.high %v4363_v34, %v4367_v29  ;;  %v4483_v60 = vld [vmem:[#allocation10 + $0x3d8] sm:$0xff]  ;;  %v9578_v6 = vcombine.low %v4778_v50, %v4782_v12  ;;  %v4754_v12 = vld [vmem:[#allocation10 + $0xc50] sm:$0xff] }
 0x3fb   :  { %v10540_v10 = vadd.f32 %v7663_v23, %v10498_v35  ;;  %8096 = vmatprep.subr.bf16.mxu0 %v9181_v13  ;;  %v9571_v13 = vcombine.high %v4770_v11, %v4774_v18  ;;  %v9570_v23 = vcombine.low %v4770_v11, %v4774_v18  ;;  %v4459_v11 = vld [vmem:[#allocation10 + $0x318] sm:$0xff] }
 0x3fc   :  { %v7665_v40 = vpop.f32.mrf.mxu1  ;;  %v4463_v18 = vld [vmem:[#allocation10 + $0x338] sm:$0xff] }
 0x3fd   :  { %v10543_v42 = vadd.f32 %v7665_v40, %v10501_v52  ;;  %8038 = vmatpush1.bf16.msra.mxu1 %v9594_v27  ;;  %v4487_v52 = vld [vmem:[#allocation10 + $0x3f8] sm:$0xff]  ;;  %v4758_v40 = vld [vmem:[#allocation10 + $0xc70] sm:$0xff] }
 0x3fe   :  { %8097 = vmatpush1.bf16.msra.mxu0 %v9180_v41  ;;  %v7667_v61 = vpop.f32.mrf.mxu1  ;;  %8039 = vmatprep.subr.bf16.mxu1 %v9587_v56  ;;  %v9285_v49 = vcombine.high %v4483_v60, %v4487_v52  ;;  %v4475_v27 = vld [vmem:[#allocation10 + $0x398] sm:$0xff]  ;;  %v9284_v56 = vcombine.low %v4483_v60, %v4487_v52 }
 0x3ff   :  { %v10546_v35 = vadd.f32 %v7667_v61, %v10504_v38  ;;  %8098 = vmatprep.subr.bf16.mxu0 %v9173_v45  ;;  %v9164_v38 = vcombine.low %v4363_v34, %v4367_v29  ;;  %v9563_v45 = vcombine.high %v4762_v25, %v4766_v21  ;;  %v4471_v34 = vld [vmem:[#allocation10 + $0x378] sm:$0xff]  ;;  %v9562_v29 = vcombine.low %v4762_v25, %v4766_v21 }
 0x400   :  { %7976 = vmatmul.mubr.bf16.gmra.mxu1 %v10370_v32  ;;  %v7671_v0 = vpop.f32.mrf.mxu1  ;;  %v9555_v61 = vcombine.high %v4754_v12, %v4758_v40  ;;  %v9260_v21 = vcombine.low %v4459_v11, %v4463_v18 }
 0x401   :  { %v10550_v62 = vadd.f32 %v7671_v0, %v10508_v28  ;;  %8040 = vmatpush1.bf16.msra.mxu1 %v9586_v7  ;;  %8067 = vmatprep.mubr.bf16.mxu1 %v10456_v1  ;;  %v4479_v28 = vld [vmem:[#allocation10 + $0x3b8] sm:$0xff]  ;;  %v9554_v0 = vcombine.low %v4754_v12, %v4758_v40 }
 0x402   :  { %8099 = vmatpush1.bf16.msra.mxu0 %v9172_v43  ;;  %v7673_v33 = vpop.f32.mrf.mxu1  ;;  %8041 = vmatprep.subr.bf16.mxu1 %v9579_v51  ;;  %v9277_v50 = vcombine.high %v4475_v27, %v4479_v28  ;;  %v9276_v7 = vcombine.low %v4475_v27, %v4479_v28  ;;  %v4746_v51 = vld [vmem:[#allocation10 + $0xc10] sm:$0xff] }
 0x403   :  { %v10554_v2 = vadd.f32 %v7673_v33, %v10512_v30  ;;  %8100 = vmatprep.subr.bf16.mxu0 %v9165_v63  ;;  %v4467_v30 = vld [vmem:[#allocation10 + $0x358] sm:$0xff]  ;;  %v4750_v63 = vld [vmem:[#allocation10 + $0xc30] sm:$0xff] }
 0x404   :  { %v7675_v4 = vpop.f32.mrf.mxu1  ;;  %v9269_v43 = vcombine.high %v4467_v30, %v4471_v34  ;;  %v9268_v60 = vcombine.low %v4467_v30, %v4471_v34  ;;  %v9547_v52 = vcombine.high %v4746_v51, %v4750_v63  ;;  %v4866_v33 = vld [vmem:[#allocation10 + $0xfd0] sm:$0xff]  ;;  %v9546_v25 = vcombine.low %v4746_v51, %v4750_v63 }
 0x405   :  { %8042 = vmatpush1.bf16.msra.mxu1 %v9578_v6  ;;  %v9261_v6 = vcombine.high %v4459_v11, %v4463_v18  ;;  %v4858_v28 = vld [vmem:[#allocation10 + $0xf90] sm:$0xff] }
 0x406   :  { %8101 = vmatpush1.bf16.msra.mxu0 %v9164_v38  ;;  %v7676_v41 = vpop.f32.mrf.mxu1  ;;  %8043 = vmatprep.subr.bf16.mxu1 %v9571_v13  ;;  %v4870_v38 = vld [vmem:[#allocation10 + $0xff0] sm:$0xff]  ;;  %v4451_v13 = vld [vmem:[#allocation10 + $0x2d8] sm:$0xff] }
 0x407   :  { %8102 = vmatprep.subr.bf16.mxu0 %v9285_v49  ;;  %v4455_v49 = vld [vmem:[#allocation10 + $0x2f8] sm:$0xff]  ;;  %v9667_v4 = vcombine.high %v4866_v33, %v4870_v38  ;;  %v4850_v30 = vld [vmem:[#allocation10 + $0xf50] sm:$0xff] }
 0x408   :  { %v9253_v27 = vcombine.high %v4451_v13, %v4455_v49  ;;  %v4443_v41 = vld [vmem:[#allocation10 + $0x298] sm:$0xff]  ;;  %v4854_v34 = vld [vmem:[#allocation10 + $0xf70] sm:$0xff] }
 0x409   :  { %8044 = vmatpush1.bf16.msra.mxu1 %v9570_v23  ;;  %v4862_v23 = vld [vmem:[#allocation10 + $0xfb0] sm:$0xff]  ;;  %v9651_v51 = vcombine.high %v4850_v30, %v4854_v34 }
 0x40a   :  { %8103 = vmatpush2.bf16.msra.mxu0 %v9284_v56  ;;  %8045 = vmatprep.subr.bf16.mxu1 %v9563_v45  ;;  %v4447_v56 = vld [vmem:[#allocation10 + $0x2b8] sm:$0xff]  ;;  %v9666_v45 = vcombine.low %v4866_v33, %v4870_v38  ;;  %v9659_v12 = vcombine.high %v4858_v28, %v4862_v23  ;;  %v4842_v11 = vld [vmem:[#allocation10 + $0xf10] sm:$0xff] }
 0x40b   :  { %8104 = vmatprep.subr.bf16.mxu0 %v9277_v50  ;;  %v9252_v50 = vcombine.low %v4451_v13, %v4455_v49  ;;  %v9245_v40 = vcombine.high %v4443_v41, %v4447_v56  ;;  %v4846_v18 = vld [vmem:[#allocation10 + $0xf30] sm:$0xff] }
 0x40c   :  { %v9643_v33 = vcombine.high %v4842_v11, %v4846_v18  ;;  %v4834_v13 = vld [vmem:[#allocation10 + $0xed0] sm:$0xff] }
 0x40d   :  { %8046 = vmatpush1.bf16.msra.mxu1 %v9562_v29  ;;  %v4435_v29 = vld [vmem:[#allocation10 + $0x258] sm:$0xff]  ;;  %v4838_v49 = vld [vmem:[#allocation10 + $0xef0] sm:$0xff] }
 0x40e   :  { %8105 = vmatpush2.bf16.msra.mxu0 %v9276_v7  ;;  %8047 = vmatprep.subr.bf16.mxu1 %v9555_v61  ;;  %v4439_v7 = vld [vmem:[#allocation10 + $0x278] sm:$0xff]  ;;  %v9658_v61 = vcombine.low %v4858_v28, %v4862_v23  ;;  %v9635_v28 = vcombine.high %v4834_v13, %v4838_v49 }
 0x40f   :  { %8106 = vmatprep.subr.bf16.mxu0 %v9269_v43  ;;  %v9244_v43 = vcombine.low %v4443_v41, %v4447_v56  ;;  %v9237_v63 = vcombine.high %v4435_v29, %v4439_v7  ;;  %v4826_v41 = vld [vmem:[#allocation10 + $0xe90] sm:$0xff] }
 0x410   :  { %v4830_v56 = vld [vmem:[#allocation10 + $0xeb0] sm:$0xff] }
 0x411   :  { %8048 = vmatpush1.bf16.msra.mxu1 %v9554_v0  ;;  %v4427_v0 = vld [vmem:[#allocation10 + $0x218] sm:$0xff] }
 0x412   :  { %8107 = vmatpush2.bf16.msra.mxu0 %v9268_v60  ;;  %8049 = vmatprep.subr.bf16.mxu1 %v9547_v52  ;;  %v4431_v60 = vld [vmem:[#allocation10 + $0x238] sm:$0xff]  ;;  %v9650_v52 = vcombine.low %v4850_v30, %v4854_v34  ;;  %v9627_v30 = vcombine.high %v4826_v41, %v4830_v56 }
 0x413   :  { %8108 = vmatprep.subr.bf16.mxu0 %v9261_v6  ;;  %v9236_v6 = vcombine.low %v4435_v29, %v4439_v7  ;;  %v9229_v38 = vcombine.high %v4427_v0, %v4431_v60  ;;  %v4818_v29 = vld [vmem:[#allocation10 + $0xe50] sm:$0xff] }
 0x414   :  { %v4822_v7 = vld [vmem:[#allocation10 + $0xe70] sm:$0xff] }
 0x415   :  { %8050 = vmatpush1.bf16.msra.mxu1 %v9546_v25  ;;  %v4675_v25 = vld [vmem:[#allocation10 + $0x9d8] sm:$0xff] }
 0x416   :  { %8109 = vmatpush2.bf16.msra.mxu0 %v9260_v21  ;;  %8051 = vmatprep.subr.bf16.mxu1 %v9667_v4  ;;  %v4679_v21 = vld [vmem:[#allocation10 + $0x9f8] sm:$0xff]  ;;  %v9642_v4 = vcombine.low %v4842_v11, %v4846_v18  ;;  %v9619_v18 = vcombine.high %v4818_v29, %v4822_v7 }
 0x417   :  { %8110 = vmatprep.subr.bf16.mxu0 %v9253_v27  ;;  %v9228_v27 = vcombine.low %v4427_v0, %v4431_v60  ;;  %v9477_v23 = vcombine.high %v4675_v25, %v4679_v21 }
 0x419   :  { %8052 = vmatpush2.bf16.msra.mxu1 %v9666_v45  ;;  %v4667_v45 = vld [vmem:[#allocation10 + $0x998] sm:$0xff] }
 0x41a   :  { %8111 = vmatpush2.bf16.msra.mxu0 %v9252_v50  ;;  %8053 = vmatprep.subr.bf16.mxu1 %v9659_v12  ;;  %v4671_v50 = vld [vmem:[#allocation10 + $0x9b8] sm:$0xff]  ;;  %v9634_v12 = vcombine.low %v4834_v13, %v4838_v49  ;;  %v9618_v49 = vcombine.low %v4818_v29, %v4822_v7 }
 0x41b   :  { %8112 = vmatprep.subr.bf16.mxu0 %v9245_v40  ;;  %v9476_v40 = vcombine.low %v4675_v25, %v4679_v21  ;;  %v9469_v34 = vcombine.high %v4667_v45, %v4671_v50  ;;  %v9468_v11 = vcombine.low %v4667_v45, %v4671_v50  ;;  %v4539_v29 = vld [vmem:[#allocation10 + $0x598] sm:$0xff] }
 0x41c   :  { %v4543_v7 = vld [vmem:[#allocation10 + $0x5b8] sm:$0xff] }
 0x41d   :  { %8054 = vmatpush2.bf16.msra.mxu1 %v9658_v61  ;;  %v4659_v61 = vld [vmem:[#allocation10 + $0x958] sm:$0xff] }
 0x41e   :  { %8113 = vmatpush2.bf16.msra.mxu0 %v9244_v43  ;;  %8055 = vmatprep.subr.bf16.mxu1 %v9651_v51  ;;  %v4663_v43 = vld [vmem:[#allocation10 + $0x978] sm:$0xff] }
 0x41f   :  { %8114 = vmatprep.subr.bf16.mxu0 %v9237_v63  ;;  %v9626_v63 = vcombine.low %v4826_v41, %v4830_v56  ;;  %v9461_v60 = vcombine.high %v4659_v61, %v4663_v43 }
 0x421   :  { %8056 = vmatpush2.bf16.msra.mxu1 %v9650_v52  ;;  %v4810_v52 = vld [vmem:[#allocation10 + $0xe10] sm:$0xff] }
 0x422   :  { %8115 = vmatpush2.bf16.msra.mxu0 %v9236_v6  ;;  %8057 = vmatprep.subr.bf16.mxu1 %v9643_v33  ;;  %v4814_v6 = vld [vmem:[#allocation10 + $0xe30] sm:$0xff]  ;;  %v4651_v33 = vld [vmem:[#allocation10 + $0x918] sm:$0xff] }
 0x423   :  { %8116 = vmatprep.subr.bf16.mxu0 %v9229_v38  ;;  %v4655_v38 = vld [vmem:[#allocation10 + $0x938] sm:$0xff]  ;;  %v9611_v25 = vcombine.high %v4810_v52, %v4814_v6  ;;  %v9610_v56 = vcombine.low %v4810_v52, %v4814_v6 }
 0x424   :  { %v9453_v21 = vcombine.high %v4651_v33, %v4655_v38  ;;  %v9452_v45 = vcombine.low %v4651_v33, %v4655_v38  ;;  %v4531_v38 = vld [vmem:[#allocation10 + $0x558] sm:$0xff] }
 0x425   :  { %8058 = vmatpush2.bf16.msra.mxu1 %v9642_v4  ;;  %v4547_v4 = vld [vmem:[#allocation10 + $0x5d8] sm:$0xff] }
 0x426   :  { %8117 = vmatpush2.bf16.msra.mxu0 %v9228_v27  ;;  %8059 = vmatprep.subr.bf16.mxu1 %v9635_v28  ;;  %v4551_v27 = vld [vmem:[#allocation10 + $0x5f8] sm:$0xff] }
 0x427   :  { %8188 = vmatprep.subr.bf16.mxu0 %v9477_v23  ;;  %v4643_v28 = vld [vmem:[#allocation10 + $0x8d8] sm:$0xff]  ;;  %v9349_v50 = vcombine.high %v4547_v4, %v4551_v27 }
 0x428   :  { %v4647_v23 = vld [vmem:[#allocation10 + $0x8f8] sm:$0xff] }
 0x429   :  { %v10556_v51 = vpop.f32.mrf.mxu0  ;;  %8060 = vmatpush2.bf16.msra.mxu1 %v9634_v12  ;;  %8119 = vmatmul.mubr.bf16.vlgmr.msra.gmra.mxu0 %v10245_v22  ;;  %v9460_v22 = vcombine.low %v4659_v61, %v4663_v43  ;;  %v10570_v12 = vld [vmem:[#allocation11] sm:$0xff]  ;;  %v4635_v61 = vld [vmem:[#allocation10 + $0x898] sm:$0xff] }
 0x42a   :  { %8128 = vmatprep.mubr.bf16.mxu0 %v10352_v24  ;;  %8189 = vmatpush1.bf16.msra.mxu0 %v9476_v40  ;;  %v4885_v40 = vrot.slane %v10570_v12, %v10016_v17  ;;  %v10960_v43 = vld [vmem:[#allocation23_spill] sm:$0xff] }
 0x42b   :  { %v10560_v0 = vpop.f32.mrf.mxu0  ;;  %8061 = vmatprep.subr.bf16.mxu1 %v9627_v30  ;;  %8190 = vmatprep.subr.bf16.mxu0 %v9469_v34  ;;  %v9445_v34 = vcombine.high %v4643_v28, %v4647_v23 }
 0x42c   :  { %v7713_v52 = vadd.f32 %v10518_v8, %v4885_v40 }
 0x42d   :  { %v10562_v13 = vpop.f32.mrf.mxu0  ;;  %8062 = vmatpush2.bf16.msra.mxu1 %v9626_v63  ;;  %v4889_v63 = vrot.slane %v10570_v12, %v10960_v43 }
 0x42e   :  { %8191 = vmatpush1.bf16.msra.mxu0 %v9468_v11  ;;  %8063 = vmatprep.subr.bf16.mxu1 %v9619_v18  ;;  %v9348_v11 = vcombine.low %v4547_v4, %v4551_v27  ;;  %v9444_v18 = vcombine.low %v4643_v28, %v4647_v23  ;;  %v9340_v4 = vcombine.low %v4539_v29, %v4543_v7 }
 0x42f   :  { %v10564_v24 = vpop.f32.mrf.mxu0  ;;  %8192 = vmatprep.subr.bf16.mxu0 %v9461_v60  ;;  %v9341_v60 = vcombine.high %v4539_v29, %v4543_v7  ;;  %v7717_v23 = vadd.f32 %v10524_v53, %v4885_v40  ;;  %v7719_v29 = vadd.f32 %v10526_v44, %v4889_v63 }
 0x431   :  { %v10566_v41 = vpop.f32.mrf.mxu0  ;;  %8064 = vmatpush2.bf16.msra.mxu1 %v9618_v49  ;;  %8129 = vmatmul.mubr.bf16.gmra.mxu0 %v10366_v48  ;;  %v4639_v48 = vld [vmem:[#allocation10 + $0x8b8] sm:$0xff] }
 0x432   :  { %8193 = vmatpush1.bf16.msra.mxu0 %v9460_v22  ;;  %8220 = vmatprep.mubr.bf16.mxu0 %v10384_v16  ;;  %v9437_v33 = vcombine.high %v4635_v61, %v4639_v48  ;;  %v4535_v49 = vld [vmem:[#allocation10 + $0x578] sm:$0xff]  ;;  %v9436_v8 = vcombine.low %v4635_v61, %v4639_v48 }
 0x433   :  { %v10574_v30 = vpop.f32.mrf.mxu0  ;;  %8065 = vmatprep.subr.bf16.mxu1 %v9611_v25  ;;  %8194 = vmatprep.subr.bf16.mxu0 %v9453_v21  ;;  %v4627_v25 = vld [vmem:[#allocation10 + $0x858] sm:$0xff]  ;;  %v9333_v28 = vcombine.high %v4531_v38, %v4535_v49 }
 0x434   :  { %v4631_v21 = vld [vmem:[#allocation10 + $0x878] sm:$0xff] }
 0x435   :  { %v7828_v16 = vpop.f32.mrf.mxu0  ;;  %8066 = vmatpush2.bf16.msra.mxu1 %v9610_v56  ;;  %v9428_v48 = vcombine.low %v4627_v25, %v4631_v21 }
 0x436   :  { %8195 = vmatpush1.bf16.msra.mxu0 %v9452_v45  ;;  %8137 = vmatprep.subr.bf16.mxu1 %v9349_v50  ;;  %v7715_v16 = vadd.f32 %v10522_v31, %v4889_v63  ;;  %v9429_v50 = vcombine.high %v4627_v25, %v4631_v21 }
 0x437   :  { %v7829_v6 = vpop.f32.mrf.mxu0  ;;  %8196 = vmatprep.subr.bf16.mxu0 %v9445_v34  ;;  %v4523_v34 = vld [vmem:[#allocation10 + $0x518] sm:$0xff] }
 0x438   :  { %v7763_v22 = vpop.f32.mrf.mxu1  ;;  %8068 = vmatmul.mubr.bf16.vlgmr.msra.gmra.mxu1 %v10454_v26  ;;  %v4527_v6 = vld [vmem:[#allocation10 + $0x538] sm:$0xff] }
 0x439   :  { %v7764_v56 = vadd.f32 %v7763_v22, %v7713_v52  ;;  %8077 = vmatprep.mubr.bf16.mxu1 %v10460_v36  ;;  %8138 = vmatpush1.bf16.msra.mxu1 %v9348_v11  ;;  %v4619_v52 = vld [vmem:[#allocation10 + $0x818] sm:$0xff]  ;;  %v9332_v11 = vcombine.low %v4531_v38, %v4535_v49 }
 0x43a   :  { %v7765_v27 = vpop.f32.mrf.mxu1  ;;  %8197 = vmatpush1.bf16.msra.mxu0 %v9444_v18  ;;  %8139 = vmatprep.subr.bf16.mxu1 %v9341_v60  ;;  %v4623_v22 = vld [vmem:[#allocation10 + $0x838] sm:$0xff]  ;;  %v9325_v18 = vcombine.high %v4523_v34, %v4527_v6  ;;  %v7723_v60 = vadd.f32 %v10528_v59, %v4885_v40 }
 0x43b   :  { %v7766_v45 = vadd.f32 %v7765_v27, %v7715_v16  ;;  %8198 = vmatprep.subr.bf16.mxu0 %v9437_v33  ;;  %v10584_v43 = vadd.f32 %v10556_v51, %v7764_v56  ;;  %v9421_v33 = vcombine.high %v4619_v52, %v4623_v22  ;;  %v4515_v16 = vld [vmem:[#allocation10 + $0x4d8] sm:$0xff]  ;;  %v7725_v27 = vadd.f32 %v10532_v37, %v4889_v63 }
 0x43c   :  { %v7767_v31 = vpop.f32.mrf.mxu1  ;;  %v4519_v56 = vld [vmem:[#allocation10 + $0x4f8] sm:$0xff] }
 0x43d   :  { %v7768_v7 = vadd.f32 %v7767_v31, %v7717_v23  ;;  %8140 = vmatpush1.bf16.msra.mxu1 %v9340_v4  ;;  %v10588_v61 = vadd.f32 %v10560_v0, %v7766_v45  ;;  %v9324_v0 = vcombine.low %v4523_v34, %v4527_v6  ;;  %v4739_v38 = vld [vmem:[#allocation10 + $0xbd8] sm:$0xff]  ;;  %v9317_v21 = vcombine.high %v4515_v16, %v4519_v56 }
 0x43e   :  { %v7769_v53 = vpop.f32.mrf.mxu1  ;;  %8199 = vmatpush1.bf16.msra.mxu0 %v9436_v8  ;;  %8141 = vmatprep.subr.bf16.mxu1 %v9333_v28  ;;  %v4743_v49 = vld [vmem:[#allocation10 + $0xbf8] sm:$0xff] }
 0x43f   :  { %v7770_v51 = vadd.f32 %v7769_v53, %v7719_v29  ;;  %8200 = vmatprep.subr.bf16.mxu0 %v9429_v50  ;;  %v10592_v44 = vadd.f32 %v10562_v13, %v7768_v7  ;;  %v9420_v13 = vcombine.low %v4619_v52, %v4623_v22  ;;  %v9541_v28 = vcombine.high %v4739_v38, %v4743_v49  ;;  %v4507_v23 = vld [vmem:[#allocation10 + $0x498] sm:$0xff] }
 0x440   :  { %v7773_v4 = vpop.f32.mrf.mxu1  ;;  %8078 = vmatmul.mubr.bf16.gmra.mxu1 %v10466_v15  ;;  %v4511_v45 = vld [vmem:[#allocation10 + $0x4b8] sm:$0xff]  ;;  %v9540_v31 = vcombine.low %v4739_v38, %v4743_v49 }
 0x441   :  { %v7774_v25 = vadd.f32 %v7773_v4, %v7723_v60  ;;  %8142 = vmatpush1.bf16.msra.mxu1 %v9332_v11  ;;  %8169 = vmatprep.mubr.bf16.mxu1 %v10301_v19  ;;  %v10598_v59 = vadd.f32 %v10564_v24, %v7770_v51  ;;  %v4731_v63 = vld [vmem:[#allocation10 + $0xb98] sm:$0xff]  ;;  %v9316_v19 = vcombine.low %v4515_v16, %v4519_v56 }
 0x442   :  { %v7775_v40 = vpop.f32.mrf.mxu1  ;;  %8201 = vmatpush1.bf16.msra.mxu0 %v9428_v48  ;;  %8143 = vmatprep.subr.bf16.mxu1 %v9325_v18  ;;  %v4735_v34 = vld [vmem:[#allocation10 + $0xbb8] sm:$0xff]  ;;  %v9309_v52 = vcombine.high %v4507_v23, %v4511_v45  ;;  %v9308_v53 = vcombine.low %v4507_v23, %v4511_v45 }
 0x443   :  { %v7776_v8 = vadd.f32 %v7775_v40, %v7725_v27  ;;  %8202 = vmatprep.subr.bf16.mxu0 %v9421_v33  ;;  %v10601_v50 = vadd.f32 %v10566_v41, %v7774_v25  ;;  %v9533_v22 = vcombine.high %v4731_v63, %v4735_v34  ;;  %v4499_v29 = vld [vmem:[#allocation10 + $0x458] sm:$0xff]  ;;  %v9532_v48 = vcombine.low %v4731_v63, %v4735_v34 }
 0x444   :  { %v7777_v37 = vpop.f32.mrf.mxu1  ;;  %v4503_v7 = vld [vmem:[#allocation10 + $0x478] sm:$0xff] }
 0x445   :  { %8144 = vmatpush1.bf16.msra.mxu1 %v9324_v0  ;;  %v10604_v24 = vadd.f32 %v10574_v30, %v7776_v8  ;;  %v4723_v11 = vld [vmem:[#allocation10 + $0xb58] sm:$0xff]  ;;  %v9301_v18 = vcombine.high %v4499_v29, %v4503_v7  ;;  %v9300_v56 = vcombine.low %v4499_v29, %v4503_v7 }
 0x446   :  { %v7778_v6 = vpop.f32.mrf.mxu1  ;;  %8203 = vmatpush1.bf16.msra.mxu0 %v9420_v13  ;;  %8145 = vmatprep.subr.bf16.mxu1 %v9317_v21  ;;  %v4727_v41 = vld [vmem:[#allocation10 + $0xb78] sm:$0xff] }
 0x447   :  { %8204 = vmatprep.subr.bf16.mxu0 %v9541_v28  ;;  %v9525_v30 = vcombine.high %v4723_v11, %v4727_v41  ;;  %v4491_v60 = vld [vmem:[#allocation10 + $0x418] sm:$0xff]  ;;  %v9524_v4 = vcombine.low %v4723_v11, %v4727_v41 }
 0x448   :  { %v4495_v51 = vld [vmem:[#allocation10 + $0x438] sm:$0xff] }
 0x449   :  { %8146 = vmatpush1.bf16.msra.mxu1 %v9316_v19  ;;  %v4715_v33 = vld [vmem:[#allocation10 + $0xb18] sm:$0xff]  ;;  %v9293_v0 = vcombine.high %v4491_v60, %v4495_v51  ;;  %v9292_v13 = vcombine.low %v4491_v60, %v4495_v51 }
 0x44a   :  { %8205 = vmatpush2.bf16.msra.mxu0 %v9540_v31  ;;  %8147 = vmatprep.subr.bf16.mxu1 %v9309_v52  ;;  %v4719_v16 = vld [vmem:[#allocation10 + $0xb38] sm:$0xff] }
 0x44b   :  { %8206 = vmatprep.subr.bf16.mxu0 %v9533_v22  ;;  %v9517_v38 = vcombine.high %v4715_v33, %v4719_v16  ;;  %v4611_v49 = vld [vmem:[#allocation10 + $0x7d8] sm:$0xff]  ;;  %v9516_v21 = vcombine.low %v4715_v33, %v4719_v16 }
 0x44c   :  { %v4615_v27 = vld [vmem:[#allocation10 + $0x7f8] sm:$0xff] }
 0x44d   :  { %8148 = vmatpush1.bf16.msra.mxu1 %v9308_v53  ;;  %v4707_v25 = vld [vmem:[#allocation10 + $0xad8] sm:$0xff]  ;;  %v9413_v8 = vcombine.high %v4611_v49, %v4615_v27  ;;  %v9412_v34 = vcombine.low %v4611_v49, %v4615_v27 }
 0x44e   :  { %8207 = vmatpush2.bf16.msra.mxu0 %v9532_v48  ;;  %8149 = vmatprep.subr.bf16.mxu1 %v9301_v18  ;;  %v4711_v40 = vld [vmem:[#allocation10 + $0xaf8] sm:$0xff] }
 0x44f   :  { %8208 = vmatprep.subr.bf16.mxu0 %v9525_v30  ;;  %v9509_v28 = vcombine.high %v4707_v25, %v4711_v40  ;;  %v4603_v23 = vld [vmem:[#allocation10 + $0x798] sm:$0xff]  ;;  %v9508_v19 = vcombine.low %v4707_v25, %v4711_v40 }
 0x450   :  { %v4607_v45 = vld [vmem:[#allocation10 + $0x7b8] sm:$0xff] }
 0x451   :  { %8150 = vmatpush1.bf16.msra.mxu1 %v9300_v56  ;;  %v4699_v37 = vld [vmem:[#allocation10 + $0xa98] sm:$0xff]  ;;  %v9405_v6 = vcombine.high %v4603_v23, %v4607_v45  ;;  %v9404_v11 = vcombine.low %v4603_v23, %v4607_v45 }
 0x452   :  { %8209 = vmatpush2.bf16.msra.mxu0 %v9524_v4  ;;  %8151 = vmatprep.subr.bf16.mxu1 %v9293_v0  ;;  %v4703_v63 = vld [vmem:[#allocation10 + $0xab8] sm:$0xff] }
 0x453   :  { %8210 = vmatprep.subr.bf16.mxu0 %v9517_v38  ;;  %v9501_v31 = vcombine.high %v4699_v37, %v4703_v63  ;;  %v4595_v52 = vld [vmem:[#allocation10 + $0x758] sm:$0xff]  ;;  %v9500_v41 = vcombine.low %v4699_v37, %v4703_v63 }
 0x454   :  { %v4599_v22 = vld [vmem:[#allocation10 + $0x778] sm:$0xff] }
 0x455   :  { %8152 = vmatpush1.bf16.msra.mxu1 %v9292_v13  ;;  %v4691_v29 = vld [vmem:[#allocation10 + $0xa58] sm:$0xff]  ;;  %v9397_v53 = vcombine.high %v4595_v52, %v4599_v22  ;;  %v9396_v33 = vcombine.low %v4595_v52, %v4599_v22 }
 0x456   :  { %8211 = vmatpush2.bf16.msra.mxu0 %v9516_v21  ;;  %8153 = vmatprep.subr.bf16.mxu1 %v9413_v8  ;;  %v4695_v7 = vld [vmem:[#allocation10 + $0xa78] sm:$0xff] }
 0x457   :  { %8212 = vmatprep.subr.bf16.mxu0 %v9509_v28  ;;  %v9493_v48 = vcombine.high %v4691_v29, %v4695_v7  ;;  %v4587_v18 = vld [vmem:[#allocation10 + $0x718] sm:$0xff]  ;;  %v9492_v16 = vcombine.low %v4691_v29, %v4695_v7 }
 0x458   :  { %v4591_v30 = vld [vmem:[#allocation10 + $0x738] sm:$0xff] }
 0x459   :  { %8154 = vmatpush2.bf16.msra.mxu1 %v9412_v34  ;;  %v4683_v60 = vld [vmem:[#allocation10 + $0xa18] sm:$0xff]  ;;  %v9389_v56 = vcombine.high %v4587_v18, %v4591_v30  ;;  %v9388_v49 = vcombine.low %v4587_v18, %v4591_v30 }
 0x45a   :  { %8213 = vmatpush2.bf16.msra.mxu0 %v9508_v19  ;;  %8155 = vmatprep.subr.bf16.mxu1 %v9405_v6  ;;  %v4687_v51 = vld [vmem:[#allocation10 + $0xa38] sm:$0xff] }
 0x45b   :  { %8214 = vmatprep.subr.bf16.mxu0 %v9501_v31  ;;  %v9485_v4 = vcombine.high %v4683_v60, %v4687_v51  ;;  %v4579_v0 = vld [vmem:[#allocation10 + $0x6d8] sm:$0xff]  ;;  %v9484_v27 = vcombine.low %v4683_v60, %v4687_v51 }
 0x45c   :  { %v4583_v38 = vld [vmem:[#allocation10 + $0x6f8] sm:$0xff] }
 0x45d   :  { %8156 = vmatpush2.bf16.msra.mxu1 %v9404_v11  ;;  %v9381_v25 = vcombine.high %v4579_v0, %v4583_v38  ;;  %v4571_v40 = vld [vmem:[#allocation10 + $0x698] sm:$0xff]  ;;  %v9380_v21 = vcombine.low %v4579_v0, %v4583_v38 }
 0x45e   :  { %8215 = vmatpush2.bf16.msra.mxu0 %v9500_v41  ;;  %8157 = vmatprep.subr.bf16.mxu1 %v9397_v53  ;;  %v4575_v13 = vld [vmem:[#allocation10 + $0x6b8] sm:$0xff] }
 0x45f   :  { %8216 = vmatprep.subr.bf16.mxu0 %v9493_v48  ;;  %v9373_v8 = vcombine.high %v4571_v40, %v4575_v13  ;;  %v4563_v28 = vld [vmem:[#allocation10 + $0x658] sm:$0xff]  ;;  %v9372_v37 = vcombine.low %v4571_v40, %v4575_v13 }
 0x460   :  { %v4567_v23 = vld [vmem:[#allocation10 + $0x678] sm:$0xff] }
 0x461   :  { %8158 = vmatpush2.bf16.msra.mxu1 %v9396_v33  ;;  %v9365_v63 = vcombine.high %v4563_v28, %v4567_v23  ;;  %v4555_v19 = vld [vmem:[#allocation10 + $0x618] sm:$0xff]  ;;  %v9364_v52 = vcombine.low %v4563_v28, %v4567_v23 }
 0x462   :  { %8217 = vmatpush2.bf16.msra.mxu0 %v9492_v16  ;;  %8159 = vmatprep.subr.bf16.mxu1 %v9389_v56  ;;  %v4559_v6 = vld [vmem:[#allocation10 + $0x638] sm:$0xff] }
 0x463   :  { %8218 = vmatprep.subr.bf16.mxu0 %v9485_v4  ;;  %v9357_v22 = vcombine.high %v4555_v19, %v4559_v6  ;;  %v4803_v7 = vld [vmem:[#allocation10 + $0xdd8] sm:$0xff] }
 0x464   :  { %v4807_v11 = vld [vmem:[#allocation10 + $0xdf8] sm:$0xff] }
 0x465   :  { %8160 = vmatpush2.bf16.msra.mxu1 %v9388_v49  ;;  %v9605_v41 = vcombine.high %v4803_v7, %v4807_v11  ;;  %v4795_v48 = vld [vmem:[#allocation10 + $0xd98] sm:$0xff]  ;;  %v9604_v60 = vcombine.low %v4803_v7, %v4807_v11 }
 0x466   :  { %8219 = vmatpush2.bf16.msra.mxu0 %v9484_v27  ;;  %8161 = vmatprep.subr.bf16.mxu1 %v9381_v25  ;;  %v4799_v18 = vld [vmem:[#allocation10 + $0xdb8] sm:$0xff] }
 0x467   :  { %v9597_v51 = vcombine.high %v4795_v48, %v4799_v18  ;;  %v4787_v16 = vld [vmem:[#allocation10 + $0xd58] sm:$0xff]  ;;  %v9596_v0 = vcombine.low %v4795_v48, %v4799_v18 }
 0x468   :  { %v4791_v56 = vld [vmem:[#allocation10 + $0xd78] sm:$0xff] }
 0x469   :  { %v10606_v45 = vpop.f32.mrf.mxu0  ;;  %8162 = vmatpush2.bf16.msra.mxu1 %v9380_v21  ;;  %8221 = vmatmul.mubr.bf16.vlgmr.msra.gmra.mxu0 %v10380_v55  ;;  %v9589_v49 = vcombine.high %v4787_v16, %v4791_v56  ;;  %v4779_v25 = vld [vmem:[#allocation10 + $0xd18] sm:$0xff] }
 0x46a   :  { %8230 = vmatprep.mubr.bf16.mxu0 %v10409_v39  ;;  %8163 = vmatprep.subr.bf16.mxu1 %v9373_v8  ;;  %v9356_v39 = vcombine.low %v4555_v19, %v4559_v6  ;;  %v4783_v40 = vld [vmem:[#allocation10 + $0xd38] sm:$0xff] }
 0x46b   :  { %v10610_v34 = vpop.f32.mrf.mxu0  ;;  %v9581_v8 = vcombine.high %v4779_v25, %v4783_v40  ;;  %v4771_v28 = vld [vmem:[#allocation10 + $0xcd8] sm:$0xff] }
 0x46c   :  { %v4775_v23 = vld [vmem:[#allocation10 + $0xcf8] sm:$0xff] }
 0x46d   :  { %v10612_v31 = vpop.f32.mrf.mxu0  ;;  %8164 = vmatpush2.bf16.msra.mxu1 %v9372_v37  ;;  %v9573_v19 = vcombine.high %v4771_v28, %v4775_v23  ;;  %v9572_v7 = vcombine.low %v4771_v28, %v4775_v23  ;;  %v4747_v48 = vld [vmem:[#allocation10 + $0xc18] sm:$0xff] }
 0x46e   :  { %8165 = vmatprep.subr.bf16.mxu1 %v9365_v63  ;;  %v9580_v63 = vcombine.low %v4779_v25, %v4783_v40  ;;  %v4751_v18 = vld [vmem:[#allocation10 + $0xc38] sm:$0xff] }
 0x46f   :  { %v10614_v29 = vpop.f32.mrf.mxu0  ;;  %v4855_v25 = vld [vmem:[#allocation10 + $0xf78] sm:$0xff] }
 0x470   :  { %v4835_v23 = vld [vmem:[#allocation10 + $0xed8] sm:$0xff] }
 0x471   :  { %v10616_v55 = vpop.f32.mrf.mxu0  ;;  %8166 = vmatpush2.bf16.msra.mxu1 %v9364_v52  ;;  %8231 = vmatmul.mubr.bf16.gmra.mxu0 %v10425_v58  ;;  %v4767_v52 = vld [vmem:[#allocation10 + $0xcb8] sm:$0xff] }
 0x472   :  { %8167 = vmatprep.subr.bf16.mxu1 %v9357_v22 }
 0x473   :  { %v10619_v53 = vpop.f32.mrf.mxu0 }
 0x475   :  { %v7930_v30 = vpop.f32.mrf.mxu0  ;;  %8168 = vmatpush2.bf16.msra.mxu1 %v9356_v39  ;;  %v4759_v39 = vld [vmem:[#allocation10 + $0xc78] sm:$0xff] }
 0x476   :  { %8239 = vmatprep.subr.bf16.mxu1 %v9605_v41 }
 0x477   :  { %v7931_v33 = vpop.f32.mrf.mxu0 }
 0x478   :  { %v7865_v4 = vpop.f32.mrf.mxu1  ;;  %8170 = vmatmul.mubr.bf16.vlgmr.msra.gmra.mxu1 %v10294_v57  ;;  %v9588_v57 = vcombine.low %v4787_v16, %v4791_v56  ;;  %v9548_v33 = vcombine.low %v4747_v48, %v4751_v18  ;;  %v4859_v56 = vld [vmem:[#allocation10 + $0xf98] sm:$0xff] }
 0x479   :  { %v10623_v58 = vadd.f32 %v7865_v4, %v10584_v43  ;;  %8179 = vmatprep.mubr.bf16.mxu1 %v10354_v3  ;;  %8240 = vmatpush1.bf16.msra.mxu1 %v9604_v60  ;;  %v4867_v60 = vld [vmem:[#allocation10 + $0xfd8] sm:$0xff] }
 0x47a   :  { %v7867_v38 = vpop.f32.mrf.mxu1  ;;  %8241 = vmatprep.subr.bf16.mxu1 %v9597_v51  ;;  %v4871_v51 = vld [vmem:[#allocation10 + $0xff8] sm:$0xff] }
 0x47b   :  { %v10627_v27 = vadd.f32 %v7867_v38, %v10588_v61  ;;  %v9669_v16 = vcombine.high %v4867_v60, %v4871_v51  ;;  %v4863_v4 = vld [vmem:[#allocation10 + $0xfb8] sm:$0xff] }
 0x47c   :  { %v7869_v13 = vpop.f32.mrf.mxu1  ;;  %v9661_v38 = vcombine.high %v4859_v56, %v4863_v4  ;;  %v9660_v40 = vcombine.low %v4859_v56, %v4863_v4  ;;  %v4897_v4 = vrot.slane %v10570_v12, %v10041_v46 }
 0x47d   :  { %v10630_v21 = vadd.f32 %v7869_v13, %v10592_v44  ;;  %8242 = vmatpush1.bf16.msra.mxu1 %v9596_v0  ;;  %v9668_v0 = vcombine.low %v4867_v60, %v4871_v51 }
 0x47e   :  { %v7871_v43 = vpop.f32.mrf.mxu1  ;;  %8243 = vmatprep.subr.bf16.mxu1 %v9589_v49  ;;  %v4851_v49 = vld [vmem:[#allocation10 + $0xf58] sm:$0xff] }
 0x47f   :  { %v10633_v3 = vadd.f32 %v7871_v43, %v10598_v59  ;;  %v4763_v59 = vld [vmem:[#allocation10 + $0xc98] sm:$0xff]  ;;  %v9653_v13 = vcombine.high %v4851_v49, %v4855_v25 }
 0x480   :  { %v7875_v37 = vpop.f32.mrf.mxu1  ;;  %8180 = vmatmul.mubr.bf16.gmra.mxu1 %v10370_v32  ;;  %v9565_v32 = vcombine.high %v4763_v59, %v4767_v52  ;;  %v9564_v41 = vcombine.low %v4763_v59, %v4767_v52  ;;  %v4847_v43 = vld [vmem:[#allocation10 + $0xf38] sm:$0xff] }
 0x481   :  { %v10637_v61 = vadd.f32 %v7875_v37, %v10601_v50  ;;  %8244 = vmatpush1.bf16.msra.mxu1 %v9588_v57  ;;  %8271 = vmatprep.mubr.bf16.mxu1 %v10456_v1  ;;  %v4755_v50 = vld [vmem:[#allocation10 + $0xc58] sm:$0xff] }
 0x482   :  { %v7877_v44 = vpop.f32.mrf.mxu1  ;;  %8245 = vmatprep.subr.bf16.mxu1 %v9581_v8  ;;  %v9557_v1 = vcombine.high %v4755_v50, %v4759_v39  ;;  %v9556_v30 = vcombine.low %v4755_v50, %v4759_v39  ;;  %v4843_v57 = vld [vmem:[#allocation10 + $0xf18] sm:$0xff]  ;;  %v9652_v8 = vcombine.low %v4851_v49, %v4855_v25 }
 0x483   :  { %v10641_v6 = vadd.f32 %v7877_v44, %v10604_v24  ;;  %v9549_v24 = vcombine.high %v4747_v48, %v4751_v18  ;;  %v9645_v28 = vcombine.high %v4843_v57, %v4847_v43  ;;  %v4839_v37 = vld [vmem:[#allocation10 + $0xef8] sm:$0xff] }
 0x484   :  { %v7879_v22 = vpop.f32.mrf.mxu1  ;;  %v9637_v44 = vcombine.high %v4835_v23, %v4839_v37  ;;  %v4831_v59 = vld [vmem:[#allocation10 + $0xeb8] sm:$0xff]  ;;  %v9636_v52 = vcombine.low %v4835_v23, %v4839_v37  ;;  %v7923_v37 = vadd.f32 %v10614_v29, %v4897_v4 }
 0x485   :  { %8246 = vmatpush1.bf16.msra.mxu1 %v9580_v63  ;;  %v9644_v63 = vcombine.low %v4843_v57, %v4847_v43  ;;  %v4815_v48 = vld [vmem:[#allocation10 + $0xe38] sm:$0xff] }
 0x486   :  { %v7880_v11 = vpop.f32.mrf.mxu1  ;;  %8247 = vmatprep.subr.bf16.mxu1 %v9573_v19  ;;  %v4827_v19 = vld [vmem:[#allocation10 + $0xe98] sm:$0xff] }
 0x487   :  { %v9629_v22 = vcombine.high %v4827_v19, %v4831_v59  ;;  %v4823_v11 = vld [vmem:[#allocation10 + $0xe78] sm:$0xff]  ;;  %v9628_v50 = vcombine.low %v4827_v19, %v4831_v59 }
 0x489   :  { %8248 = vmatpush1.bf16.msra.mxu1 %v9572_v7  ;;  %v4819_v7 = vld [vmem:[#allocation10 + $0xe58] sm:$0xff] }
 0x48a   :  { %8249 = vmatprep.subr.bf16.mxu1 %v9565_v32  ;;  %v9621_v39 = vcombine.high %v4819_v7, %v4823_v11 }
 0x48d   :  { %8250 = vmatpush1.bf16.msra.mxu1 %v9564_v41 }
 0x48e   :  { %8251 = vmatprep.subr.bf16.mxu1 %v9557_v1  ;;  %v4811_v1 = vld [vmem:[#allocation10 + $0xe18] sm:$0xff] }
 0x491   :  { %8252 = vmatpush1.bf16.msra.mxu1 %v9556_v30  ;;  %v9620_v30 = vcombine.low %v4819_v7, %v4823_v11 }
 0x492   :  { %8253 = vmatprep.subr.bf16.mxu1 %v9549_v24  ;;  %v9613_v24 = vcombine.high %v4811_v1, %v4815_v48 }
 0x495   :  { %8254 = vmatpush1.bf16.msra.mxu1 %v9548_v33  ;;  %v9612_v33 = vcombine.low %v4811_v1, %v4815_v48 }
 0x496   :  { %8255 = vmatprep.subr.bf16.mxu1 %v9669_v16  ;;  %v4893_v16 = vrot.slane %v10570_v12, %v10044_v47 }
 0x498   :  { %v7921_v43 = vadd.f32 %v10612_v31, %v4893_v16  ;;  %v7927_v19 = vadd.f32 %v10616_v55, %v4893_v16 }
 0x499   :  { %8256 = vmatpush2.bf16.msra.mxu1 %v9668_v0 }
 0x49a   :  { %8257 = vmatprep.subr.bf16.mxu1 %v9661_v38  ;;  %v7917_v38 = vadd.f32 %v10606_v45, %v4893_v16 }
 0x49d   :  { %8258 = vmatpush2.bf16.msra.mxu1 %v9660_v40  ;;  %v7919_v40 = vadd.f32 %v10610_v34, %v4897_v4 }
 0x49e   :  { %8259 = vmatprep.subr.bf16.mxu1 %v9653_v13 }
 0x4a1   :  { %8260 = vmatpush2.bf16.msra.mxu1 %v9652_v8 }
 0x4a2   :  { %8261 = vmatprep.subr.bf16.mxu1 %v9645_v28 }
 0x4a5   :  { %8262 = vmatpush2.bf16.msra.mxu1 %v9644_v63 }
 0x4a6   :  { %8263 = vmatprep.subr.bf16.mxu1 %v9637_v44 }
 0x4a9   :  { %v8018_v32 = vpop.f32.mrf.mxu0  ;;  %8264 = vmatpush2.bf16.msra.mxu1 %v9636_v52 }
 0x4aa   :  { %8265 = vmatprep.subr.bf16.mxu1 %v9629_v22 }
 0x4ab   :  { %v8020_v41 = vpop.f32.mrf.mxu0 }
 0x4ad   :  { %v8022_v18 = vpop.f32.mrf.mxu0  ;;  %8266 = vmatpush2.bf16.msra.mxu1 %v9628_v50 }
 0x4ae   :  { %8267 = vmatprep.subr.bf16.mxu1 %v9621_v39 }
 0x4af   :  { %v8024_v60 = vpop.f32.mrf.mxu0 }
 0x4b1   :  { %v8028_v51 = vpop.f32.mrf.mxu0  ;;  %8268 = vmatpush2.bf16.msra.mxu1 %v9620_v30 }
 0x4b2   :  { %8269 = vmatprep.subr.bf16.mxu1 %v9613_v24 }
 0x4b3   :  { %v8030_v56 = vpop.f32.mrf.mxu0 }
 0x4b5   :  { %v8032_v0 = vpop.f32.mrf.mxu0  ;;  %8270 = vmatpush2.bf16.msra.mxu1 %v9612_v33 }
 0x4b7   :  { %v8033_v49 = vpop.f32.mrf.mxu0 }
 0x4b8   :  { %v7967_v25 = vpop.f32.mrf.mxu1  ;;  %8272 = vmatmul.mubr.bf16.vlgmr.msra.gmra.mxu1 %v10454_v26 }
 0x4b9   :  { %v7968_v13 = vadd.f32 %v7967_v25, %v7917_v38  ;;  %8281 = vmatprep.mubr.bf16.mxu1 %v10460_v36  ;;  %v7929_v36 = vadd.f32 %v10619_v53, %v4897_v4 }
 0x4ba   :  { %v7969_v57 = vpop.f32.mrf.mxu1 }
 0x4bb   :  { %v7970_v8 = vadd.f32 %v7969_v57, %v7919_v40  ;;  %v8019_v28 = vadd.f32 %v8018_v32, %v7968_v13 }
 0x4bc   :  { %v7971_v23 = vpop.f32.mrf.mxu1 }
 0x4bd   :  { %v7972_v63 = vadd.f32 %v7971_v23, %v7921_v43  ;;  %v8021_v44 = vadd.f32 %v8020_v41, %v7970_v8 }
 0x4be   :  { %v7973_v45 = vpop.f32.mrf.mxu1 }
 0x4bf   :  { %v7974_v59 = vadd.f32 %v7973_v45, %v7923_v37  ;;  %v8023_v26 = vadd.f32 %v8022_v18, %v7972_v63  ;;  %v4901_v37 = vrot.slane %v10570_v12, %v10055_v54 }
 0x4c0   :  { %v7977_v52 = vpop.f32.mrf.mxu1  ;;  %8282 = vmatmul.mubr.bf16.gmra.mxu1 %v10466_v15 }
 0x4c1   :  { %v7978_v34 = vadd.f32 %v7977_v52, %v7927_v19  ;;  %v8025_v22 = vadd.f32 %v8024_v60, %v7974_v59 }
 0x4c2   :  { %v7979_v31 = vpop.f32.mrf.mxu1 }
 0x4c3   :  { %v7980_v7 = vadd.f32 %v7979_v31, %v7929_v36  ;;  %v8029_v11 = vadd.f32 %v8028_v51, %v7978_v34 }
 0x4c4   :  { %v7981_v32 = vpop.f32.mrf.mxu1 }
 0x4c5   :  { %v8031_v50 = vadd.f32 %v8030_v56, %v7980_v7 }
 0x4c6   :  { %v7982_v29 = vpop.f32.mrf.mxu1 }
 0x4e9   :  { %v8120_v39 = vpop.f32.mrf.mxu0 }
 0x4ea   :  { %v8121_v19 = vadd.f32 %v8120_v39, %v4901_v37 }
 0x4eb   :  { %v8122_v41 = vpop.f32.mrf.mxu0 }
 0x4ed   :  { %v8124_v1 = vpop.f32.mrf.mxu0 }
 0x4ef   :  { %v8126_v48 = vpop.f32.mrf.mxu0 }
 0x4f1   :  { %v8130_v55 = vpop.f32.mrf.mxu0 }
 0x4f3   :  { %v8132_v30 = vpop.f32.mrf.mxu0 }
 0x4f5   :  { %v8134_v18 = vpop.f32.mrf.mxu0 }
 0x4f7   :  { %v8135_v24 = vpop.f32.mrf.mxu0 }
 0x4f8   :  { %v8069_v33 = vpop.f32.mrf.mxu1  ;;  %v8131_v24 = vadd.f32 %v8130_v55, %v4901_v37  ;;  %v8321_v55 = vmul.f32 %v10536_v5, %v10536_v5 }
 0x4f9   :  { %v10656_v15 = vadd.f32 %v8069_v33, %v8019_v28 }
 0x4fa   :  { %v8071_v53 = vpop.f32.mrf.mxu1 }
 0x4fb   :  { %v10658_v16 = vadd.f32 %v8071_v53, %v8021_v44  ;;  %v4905_v44 = vrot.slane %v10570_v12, %v10082_v14 }
 0x4fc   :  { %v8073_v60 = vpop.f32.mrf.mxu1 }
 0x4fd   :  { %v10660_v4 = vadd.f32 %v8073_v60, %v8023_v26  ;;  %v8123_v52 = vadd.f32 %v8122_v41, %v4905_v44  ;;  %v8127_v32 = vadd.f32 %v8126_v48, %v4905_v44  ;;  %v8133_v12 = vadd.f32 %v8132_v30, %v4905_v44 }
 0x4fe   :  { %v8075_v51 = vpop.f32.mrf.mxu1  ;;  %v8322_v48 = vmul.f32 %v10540_v10, %v10540_v10  ;;  %v8290_v30 = vadd.f32 %v10540_v10, %v10536_v5 }
 0x4ff   :  { %v10662_v56 = vadd.f32 %v8075_v51, %v8025_v22  ;;  %v8125_v22 = vadd.f32 %v8124_v1, %v4901_v37  ;;  %v8299_v37 = vadd.f32 %v10546_v35, %v10543_v42 }
 0x500   :  { %v8079_v0 = vpop.f32.mrf.mxu1 }
 0x501   :  { %v10664_v38 = vadd.f32 %v8079_v0, %v8029_v11 }
 0x502   :  { %v8081_v49 = vpop.f32.mrf.mxu1 }
 0x503   :  { %v10666_v25 = vadd.f32 %v8081_v49, %v8031_v50 }
 0x504   :  { %v8083_v40 = vpop.f32.mrf.mxu1 }
 0x506   :  { %v8084_v13 = vpop.f32.mrf.mxu1 }
 0x529   :  { %v8222_v57 = vpop.f32.mrf.mxu0 }
 0x52b   :  { %v8224_v43 = vpop.f32.mrf.mxu0 }
 0x52d   :  { %v8226_v8 = vpop.f32.mrf.mxu0 }
 0x52f   :  { %v8228_v28 = vpop.f32.mrf.mxu0 }
 0x531   :  { %v8232_v23 = vpop.f32.mrf.mxu0 }
 0x533   :  { %v8234_v63 = vpop.f32.mrf.mxu0 }
 0x535   :  { %v8236_v45 = vpop.f32.mrf.mxu0 }
 0x536   :  { %v8324_v45 = vmul.f32 %v10627_v27, %v10627_v27 }
 0x537   :  { %v8237_v59 = vpop.f32.mrf.mxu0 }
 0x538   :  { %v8171_v26 = vpop.f32.mrf.mxu1  ;;  %v8338_v59 = vmul.f32 %v10554_v2, %v10554_v2 }
 0x539   :  { %v8172_v36 = vadd.f32 %v8171_v26, %v8121_v19  ;;  %v8300_v26 = vadd.f32 %v8299_v37, %v10630_v21 }
 0x53a   :  { %v8173_v34 = vpop.f32.mrf.mxu1 }
 0x53b   :  { %v8174_v31 = vadd.f32 %v8173_v34, %v8123_v52  ;;  %v8223_v7 = vadd.f32 %v8222_v57, %v8172_v36  ;;  %v8323_v57 = vmul.f32 %v10623_v58, %v10623_v58  ;;  %v8337_v52 = vmul.f32 %v10550_v62, %v10550_v62 }
 0x53c   :  { %v8175_v11 = vpop.f32.mrf.mxu1  ;;  %v8325_v34 = vmul.f32 %v10656_v15, %v10656_v15 }
 0x53d   :  { %v8176_v50 = vadd.f32 %v8175_v11, %v8125_v22  ;;  %v8225_v29 = vadd.f32 %v8224_v43, %v8174_v31  ;;  %v8330_v43 = vmul.f32 %v10546_v35, %v10546_v35  ;;  %v8308_v22 = vadd.f32 %v10554_v2, %v10550_v62 }
 0x53e   :  { %v8177_v18 = vpop.f32.mrf.mxu1  ;;  %v8332_v11 = vmul.f32 %v10633_v3, %v10633_v3 }
 0x53f   :  { %v8178_v33 = vadd.f32 %v8177_v18, %v8127_v32  ;;  %v8227_v53 = vadd.f32 %v8226_v8, %v8176_v50  ;;  %v8345_v8 = vadd.f32 %v8322_v48, %v8321_v55  ;;  %v8339_v32 = vmul.f32 %v10637_v61, %v10637_v61 }
 0x540   :  { %v8181_v60 = vpop.f32.mrf.mxu1 }
 0x541   :  { %v8182_v51 = vadd.f32 %v8181_v60, %v8131_v24  ;;  %v10672_v39 = vadd.f32 %v8228_v28, %v8178_v33  ;;  %v8291_v28 = vadd.f32 %v8290_v30, %v10623_v58  ;;  %v8346_v44 = vadd.f32 %v8345_v8, %v8323_v57 }
 0x542   :  { %v8183_v0 = vpop.f32.mrf.mxu1  ;;  %v8363_v24 = vadd.f32 %v8338_v59, %v8337_v52  ;;  %v8301_v33 = vadd.f32 %v8300_v26, %v10633_v3  ;;  %v8309_v60 = vadd.f32 %v8308_v22, %v10637_v61 }
 0x543   :  { %v8184_v41 = vadd.f32 %v8183_v0, %v8133_v12  ;;  %v10674_v49 = vadd.f32 %v8232_v23, %v8182_v51  ;;  %v8329_v23 = vmul.f32 %v10543_v42, %v10543_v42  ;;  %v8292_v36 = vadd.f32 %v8291_v28, %v10627_v27 }
 0x544   :  { %v8185_v1 = vpop.f32.mrf.mxu1  ;;  %v8347_v50 = vadd.f32 %v8346_v44, %v8324_v45  ;;  %v8333_v12 = vmul.f32 %v10660_v4, %v10660_v4  ;;  %v8326_v51 = vmul.f32 %v10658_v16, %v10658_v16  ;;  %v8302_v48 = vadd.f32 %v8301_v33, %v10660_v4 }
 0x545   :  { %v10676_v40 = vadd.f32 %v8234_v63, %v8184_v41  ;;  %v8331_v63 = vmul.f32 %v10630_v21, %v10630_v21  ;;  %v8354_v19 = vadd.f32 %v8330_v43, %v8329_v23  ;;  %v8293_v18 = vadd.f32 %v8292_v36, %v10656_v15 }
 0x546   :  { %v8186_v13 = vpop.f32.mrf.mxu1  ;;  %v8348_v0 = vadd.f32 %v8347_v50, %v8325_v34  ;;  %v8364_v1 = vadd.f32 %v8363_v24, %v8339_v32  ;;  %v8310_v43 = vadd.f32 %v8309_v60, %v10641_v6  ;;  %v8334_v28 = vmul.f32 %v10662_v56, %v10662_v56 }
 0x547   :  { %v8355_v31 = vadd.f32 %v8354_v19, %v8331_v63  ;;  %v8340_v13 = vmul.f32 %v10641_v6, %v10641_v6  ;;  %v8294_v57 = vadd.f32 %v8293_v18, %v10658_v16  ;;  %v8341_v23 = vmul.f32 %v10664_v38, %v10664_v38 }
 0x548   :  { %v8349_v45 = vadd.f32 %v8348_v0, %v8326_v51  ;;  %v8303_v59 = vadd.f32 %v8302_v48, %v10662_v56  ;;  %v8311_v26 = vadd.f32 %v8310_v43, %v10664_v38 }
 0x549   :  { %v8356_v41 = vadd.f32 %v8355_v31, %v8332_v11  ;;  %v8365_v19 = vadd.f32 %v8364_v1, %v8340_v13  ;;  %v8342_v11 = vmul.f32 %v10666_v25, %v10666_v25 }
 0x54a   :  { %v8312_v60 = vadd.f32 %v8311_v26, %v10666_v25 }
 0x54b   :  { %v8357_v8 = vadd.f32 %v8356_v41, %v8333_v12  ;;  %v8366_v31 = vadd.f32 %v8365_v19, %v8341_v23 }
 0x54d   :  { %v8358_v50 = vadd.f32 %v8357_v8, %v8334_v28 }
 0x578   :  { %v8273_v55 = vpop.f32.mrf.mxu1 }
 0x579   :  { %v10721_v30 = vadd.f32 %v8273_v55, %v8223_v7 }
 0x57a   :  { %v8275_v37 = vpop.f32.mrf.mxu1 }
 0x57b   :  { %v10729_v63 = vadd.f32 %v8275_v37, %v8225_v29  ;;  %v8295_v44 = vadd.f32 %v8294_v57, %v10721_v30  ;;  %v8327_v7 = vmul.f32 %v10721_v30, %v10721_v30  ;;  %v8367_v57 = vadd.f32 %v8366_v31, %v8342_v11  ;;  %v8387_v11 = vld [vmem:[#allocation13] sm:$0xff] }
 0x57c   :  { %v8277_v52 = vpop.f32.mrf.mxu1 }
 0x57d   :  { %v10736_v36 = vadd.f32 %v8277_v52, %v8227_v53  ;;  %v8296_v34 = vadd.f32 %v8295_v44, %v10729_v63  ;;  %v8328_v29 = vmul.f32 %v10729_v63, %v10729_v63  ;;  %v8350_v22 = vadd.f32 %v8349_v45, %v8327_v7 }
 0x57e   :  { %v8279_v32 = vpop.f32.mrf.mxu1 }
 0x57f   :  { %v8335_v18 = vmul.f32 %v10736_v36, %v10736_v36  ;;  %v10746_v24 = vadd.f32 %v8279_v32, %v10672_v39  ;;  %8297 = vadd.xlane.f32.xlu0 %v8296_v34  ;;  %v8351_v53 = vadd.f32 %v8350_v22, %v8328_v29  ;;  %v8304_v33 = vadd.f32 %v8303_v59, %v10736_v36 }
 0x580   :  { %v8283_v12 = vpop.f32.mrf.mxu1 }
 0x581   :  { %v10751_v51 = vadd.f32 %v8283_v12, %v10674_v49  ;;  %8352 = vadd.xlane.f32.xlu1 %v8351_v53  ;;  %v8305_v0 = vadd.f32 %v8304_v33, %v10746_v24  ;;  %v8336_v41 = vmul.f32 %v10746_v24, %v10746_v24  ;;  %v8359_v1 = vadd.f32 %v8358_v50, %v8335_v18 }
 0x582   :  { %v8285_v13 = vpop.f32.mrf.mxu1  ;;  %v10776_v33 = vrot.slane %v8387_v11, %v10013_v9  ;;  %v10782_v12 = vrot.slane %v8387_v11, %v10016_v17 }
 0x583   :  { %v8343_v39 = vmul.f32 %v10751_v51, %v10751_v51  ;;  %v10759_v48 = vadd.f32 %v8285_v13, %v10676_v40  ;;  %8306 = vadd.xlane.f32.xlu0 %v8305_v0  ;;  %v8313_v55 = vadd.f32 %v8312_v60, %v10751_v51  ;;  %v8360_v8 = vadd.f32 %v8359_v1, %v8336_v41  ;;  %v8501_v0 = vld [vmem:[#allocation14] sm:$0xff]  ;;  %v10961_v1 = vld [vmem:[#allocation23_spill] sm:$0xff] }
 0x584   :  { %v8287_v49 = vpop.f32.mrf.mxu1  ;;  %v10779_v60 = vrot.slane %v8387_v11, %v9979_v20  ;;  %v10785_v13 = vrot.slane %v8387_v11, %v10961_v1 }
 0x585   :  { %v8314_v43 = vadd.f32 %v8313_v55, %v10759_v48  ;;  %v8344_v28 = vmul.f32 %v10759_v48, %v10759_v48  ;;  %v8368_v23 = vadd.f32 %v8367_v57, %v8343_v39  ;;  %v10788_v39 = vrot.slane %v8387_v11, %v10044_v47 }
 0x586   :  { %v8288_v37 = vpop.f32.mrf.mxu1  ;;  %v10791_v55 = vrot.slane %v8387_v11, %v10041_v46  ;;  %v10794_v57 = vrot.slane %v8387_v11, %v10055_v54 }
 0x587   :  { %8315 = vadd.xlane.f32.xlu1 %v8314_v43  ;;  %8361 = vadd.xlane.f32.xlu0 %v8360_v8  ;;  %v8369_v44 = vadd.f32 %v8368_v23, %v8344_v28  ;;  %v10799_v28 = vrot.slane %v8387_v11, %v10082_v14  ;;  %v10802_v23 = vrot.slane %v8501_v0, %v10013_v9 }
 0x588   :  { %v10805_v37 = vrot.slane %v8501_v0, %v9979_v20 }
 0x58b   :  { %8370 = vadd.xlane.f32.xlu1 %v8369_v44  ;;  %v10808_v44 = vrot.slane %v8501_v0, %v10016_v17  ;;  %v10824_v17 = vrot.slane %v8501_v0, %v10055_v54 }
 0x608   :  { %v8298_v7 = vpop.xlane.xlu0 %8297 }
 0x609   :  { %v10765_v40 = vmul.f32 0.0009765625, %v8298_v7  ;;  %v10811_v7 = vrot.slane %v8501_v0, %v10961_v1 }
 0x60a   :  { %v8353_v45 = vpop.xlane.xlu1 %8352 }
 0x60b   :  { %v8372_v19 = vmul.f32 0.0009765625, %v8353_v45  ;;  %v8375_v59 = vmul.f32 %v10765_v40, %v10765_v40  ;;  %v8453_v9 = vsub.f32 %v10536_v5, %v10765_v40  ;;  %v8454_v20 = vsub.f32 %v10540_v10, %v10765_v40 }
 0x60c   :  { %v8307_v26 = vpop.xlane.xlu0 %8306  ;;  %v8458_v5 = vsub.f32 %v10658_v16, %v10765_v40  ;;  %v8459_v54 = vsub.f32 %v10721_v30, %v10765_v40 }
 0x60d   :  { %v8378_v52 = vsub.f32 %v8372_v19, %v8375_v59  ;;  %v10769_v34 = vmul.f32 0.0009765625, %v8307_v26  ;;  %v10814_v19 = vrot.slane %v8501_v0, %v10044_v47  ;;  %v10817_v59 = vrot.slane %v8501_v0, %v10041_v46 }
 0x60e   :  { %v10827_v26 = vrot.slane %v8501_v0, %v10082_v14  ;;  %v8455_v47 = vsub.f32 %v10623_v58, %v10765_v40  ;;  %v8456_v46 = vsub.f32 %v10627_v27, %v10765_v40  ;;  %v8460_v14 = vsub.f32 %v10729_v63, %v10765_v40 }
 0x60f   :  { %v8381_v29 = vadd.f32 1e-05, %v8378_v52  ;;  %v8376_v50 = vmul.f32 %v10769_v34, %v10769_v34  ;;  %v8461_v10 = vsub.f32 %v10543_v42, %v10769_v34  ;;  %v8462_v58 = vsub.f32 %v10546_v35, %v10769_v34 }
 0x610   :  { %v8316_v22 = vpop.xlane.xlu1 %8315  ;;  %v8362_v31 = vpop.xlane.xlu0 %8361  ;;  %v8463_v27 = vsub.f32 %v10630_v21, %v10769_v34  ;;  %v8465_v16 = vsub.f32 %v10660_v4, %v10769_v34  ;;  %v8466_v30 = vsub.f32 %v10662_v56, %v10769_v34  ;;  %v8467_v63 = vsub.f32 %v10736_v36, %v10769_v34 }
 0x611   :  { %9682 = vrsqrt.f32 %v8381_v29  ;;  %v10771_v32 = vmul.f32 0.0009765625, %v8316_v22  ;;  %v8373_v18 = vmul.f32 0.0009765625, %v8362_v31  ;;  %v8457_v29 = vsub.f32 %v10656_v15, %v10765_v40 }
 0x612   :  { %v8464_v15 = vsub.f32 %v10633_v3, %v10769_v34  ;;  %v8468_v42 = vsub.f32 %v10746_v24, %v10769_v34 }
 0x613   :  { %v8379_v53 = vsub.f32 %v8373_v18, %v8376_v50  ;;  %v8377_v43 = vmul.f32 %v10771_v32, %v10771_v32  ;;  %v8469_v35 = vsub.f32 %v10550_v62, %v10771_v32  ;;  %v8470_v21 = vsub.f32 %v10554_v2, %v10771_v32 }
 0x614   :  { %v8371_v41 = vpop.xlane.xlu1 %8370  ;;  %v8471_v3 = vsub.f32 %v10637_v61, %v10771_v32  ;;  %v8472_v4 = vsub.f32 %v10641_v6, %v10771_v32  ;;  %v8473_v56 = vsub.f32 %v10664_v38, %v10771_v32  ;;  %v8474_v36 = vsub.f32 %v10666_v25, %v10771_v32 }
 0x615   :  { %v8382_v49 = vadd.f32 1e-05, %v8379_v53  ;;  %v8374_v8 = vmul.f32 0.0009765625, %v8371_v41  ;;  %v8475_v24 = vsub.f32 %v10751_v51, %v10771_v32  ;;  %v8476_v62 = vsub.f32 %v10759_v48, %v10771_v32 }
 0x617   :  { %9684 = vrsqrt.f32 %v8382_v49  ;;  %v8380_v45 = vsub.f32 %v8374_v8, %v8377_v43 }
 0x619   :  { %v8383_v52 = vadd.f32 1e-05, %v8380_v45 }
 0x61b   :  { %9686 = vrsqrt.f32 %v8383_v52 }
 0x61e   :  { %v9683_v40 = vpop.eup %9682 }
 0x61f   :  { %v8429_v2 = vmul.f32 %v9683_v40, %v10776_v33  ;;  %v8430_v61 = vmul.f32 %v9683_v40, %v10779_v60  ;;  %v8431_v34 = vmul.f32 %v9683_v40, %v10782_v12  ;;  %v8432_v6 = vmul.f32 %v9683_v40, %v10785_v13 }
 0x620   :  { %v8433_v22 = vmul.f32 %v9683_v40, %v10788_v39  ;;  %v8434_v38 = vmul.f32 %v9683_v40, %v10791_v55  ;;  %v8435_v25 = vmul.f32 %v9683_v40, %v10794_v57  ;;  %v8436_v31 = vmul.f32 %v9683_v40, %v10799_v28 }
 0x621   :  { %v8477_v51 = vmul.f32 %v8453_v9, %v8429_v2  ;;  %v8478_v11 = vmul.f32 %v8454_v20, %v8430_v61  ;;  %v8479_v50 = vmul.f32 %v8455_v47, %v8431_v34  ;;  %v8480_v48 = vmul.f32 %v8456_v46, %v8432_v6 }
 0x622   :  { %v8481_v32 = vmul.f32 %v8457_v29, %v8433_v22  ;;  %v8482_v18 = vmul.f32 %v8458_v5, %v8434_v38  ;;  %v8483_v53 = vmul.f32 %v8459_v54, %v8435_v25  ;;  %v8484_v0 = vmul.f32 %v8460_v14, %v8436_v31 }
 0x623   :  { %v10882_v41 = vadd.f32 %v10802_v23, %v8477_v51  ;;  %v10885_v1 = vadd.f32 %v10805_v37, %v8478_v11  ;;  %v10888_v49 = vadd.f32 %v10808_v44, %v8479_v50  ;;  %v10891_v43 = vadd.f32 %v10811_v7, %v8480_v48 }
 0x624   :  { %v9685_v8 = vpop.eup %9684  ;;  %v10894_v45 = vadd.f32 %v10814_v19, %v8481_v32  ;;  %v10897_v9 = vadd.f32 %v10817_v59, %v8482_v18  ;;  %v10900_v20 = vadd.f32 %v10824_v17, %v8483_v53  ;;  %v10903_v52 = vadd.f32 %v10827_v26, %v8484_v0 }
 0x625   :  { %v8437_v47 = vmul.f32 %v9685_v8, %v10776_v33  ;;  %v8438_v46 = vmul.f32 %v9685_v8, %v10779_v60  ;;  %v8439_v29 = vmul.f32 %v9685_v8, %v10782_v12  ;;  %v8440_v5 = vmul.f32 %v9685_v8, %v10785_v13 }
 0x626   :  { %v8441_v54 = vmul.f32 %v9685_v8, %v10788_v39  ;;  %v8442_v14 = vmul.f32 %v9685_v8, %v10791_v55  ;;  %v8443_v40 = vmul.f32 %v9685_v8, %v10794_v57  ;;  %v8444_v2 = vmul.f32 %v9685_v8, %v10799_v28 }
 0x627   :  { %v8485_v61 = vmul.f32 %v8461_v10, %v8437_v47  ;;  %v8486_v34 = vmul.f32 %v8462_v58, %v8438_v46  ;;  %v8487_v6 = vmul.f32 %v8463_v27, %v8439_v29  ;;  %v8488_v22 = vmul.f32 %v8464_v15, %v8440_v5 }
 0x628   :  { %v9687_v38 = vpop.eup %9686  ;;  %v8489_v25 = vmul.f32 %v8465_v16, %v8441_v54  ;;  %v8490_v31 = vmul.f32 %v8466_v30, %v8442_v14  ;;  %v8491_v51 = vmul.f32 %v8467_v63, %v8443_v40  ;;  %v8492_v11 = vmul.f32 %v8468_v42, %v8444_v2 }
 0x629   :  { %v8445_v50 = vmul.f32 %v9687_v38, %v10776_v33  ;;  %v8446_v48 = vmul.f32 %v9687_v38, %v10779_v60  ;;  %v8447_v32 = vmul.f32 %v9687_v38, %v10782_v12  ;;  %v8448_v18 = vmul.f32 %v9687_v38, %v10785_v13 }
 0x62a   :  { %v8449_v53 = vmul.f32 %v9687_v38, %v10788_v39  ;;  %v8450_v10 = vmul.f32 %v9687_v38, %v10791_v55  ;;  %v8451_v58 = vmul.f32 %v9687_v38, %v10794_v57  ;;  %v8452_v27 = vmul.f32 %v9687_v38, %v10799_v28 }
 0x62b   :  { %v8493_v15 = vmul.f32 %v8469_v35, %v8445_v50  ;;  %v8494_v16 = vmul.f32 %v8470_v21, %v8446_v48  ;;  %v8495_v30 = vmul.f32 %v8471_v3, %v8447_v32  ;;  %v8496_v63 = vmul.f32 %v8472_v4, %v8448_v18 }
 0x62c   :  { %v8497_v42 = vmul.f32 %v8473_v56, %v8449_v53  ;;  %v8498_v33 = vmul.f32 %v8474_v36, %v8450_v10  ;;  %v8499_v0 = vmul.f32 %v8475_v24, %v8451_v58  ;;  %v8500_v60 = vmul.f32 %v8476_v62, %v8452_v27 }
 0x62d   :  { %v8551_v12 = vadd.f32 %v10802_v23, %v8485_v61  ;;  %v8552_v13 = vadd.f32 %v10805_v37, %v8486_v34  ;;  %v8553_v39 = vadd.f32 %v10808_v44, %v8487_v6  ;;  %v8554_v55 = vadd.f32 %v10811_v7, %v8488_v22 }
 0x62e   :  { %v8555_v57 = vadd.f32 %v10814_v19, %v8489_v25  ;;  %v8556_v28 = vadd.f32 %v10817_v59, %v8490_v31  ;;  %v8557_v35 = vadd.f32 %v10824_v17, %v8491_v51  ;;  %v8558_v21 = vadd.f32 %v10827_v26, %v8492_v11 }
 0x62f   :  { %v8559_v3 = vadd.f32 %v10802_v23, %v8493_v15  ;;  %v8560_v4 = vadd.f32 %v10805_v37, %v8494_v16  ;;  %v8561_v56 = vadd.f32 %v10808_v44, %v8495_v30  ;;  %v8562_v36 = vadd.f32 %v10811_v7, %v8496_v63  ;;  %v9690_v15 = vld [vmem:[#allocation2] sm:$0xff]  ;;  %v9691_v30 = vld [vmem:[#allocation2 + $0x8] sm:$0xff] }
 0x630   :  { %v8563_v24 = vadd.f32 %v10814_v19, %v8497_v42  ;;  %v8564_v62 = vadd.f32 %v10817_v59, %v8498_v33  ;;  %v8565_v8 = vadd.f32 %v10824_v17, %v8499_v0  ;;  %v8566_v47 = vadd.f32 %v10827_v26, %v8500_v60  ;;  %v9692_v42 = vld [vmem:[#allocation2 + $0x10] sm:$0xff]  ;;  %v9693_v0 = vld [vmem:[#allocation2 + $0x18] sm:$0xff] }
 0x631   :  { %v8567_v46 = vmax.f32 %v10882_v41, 0.0  ;;  %v8568_v29 = vmax.f32 %v10885_v1, 0.0  ;;  %v8569_v23 = vmax.f32 %v10888_v49, 0.0  ;;  %v8570_v37 = vmax.f32 %v10891_v43, 0.0 }
 0x632   :  { %v8571_v44 = vmax.f32 %v10894_v45, 0.0  ;;  %v8572_v7 = vmax.f32 %v10897_v9, 0.0  ;;  %v8573_v19 = vmax.f32 %v10900_v20, 0.0  ;;  %v8574_v59 = vmax.f32 %v10903_v52, 0.0 }
 0x633   :  { %v8575_v5 = vmax.f32 %v8551_v12, 0.0  ;;  %v8576_v17 = vmax.f32 %v8552_v13, 0.0  ;;  %v8577_v54 = vmax.f32 %v8553_v39, 0.0  ;;  %v8578_v26 = vmax.f32 %v8554_v55, 0.0  ;;  %v9694_v12 = vld [vmem:[#allocation2 + $0x20] sm:$0xff]  ;;  %v9695_v39 = vld [vmem:[#allocation2 + $0x28] sm:$0xff] }
 0x634   :  { %v8579_v14 = vmax.f32 %v8555_v57, 0.0  ;;  %v8580_v41 = vmax.f32 %v8556_v28, 0.0  ;;  %v8581_v40 = vmax.f32 %v8557_v35, 0.0  ;;  %v8582_v1 = vmax.f32 %v8558_v21, 0.0  ;;  %v9696_v57 = vld [vmem:[#allocation2 + $0x30] sm:$0xff]  ;;  %v9697_v35 = vld [vmem:[#allocation2 + $0x38] sm:$0xff] }
 0x635   :  { %v8583_v2 = vmax.f32 %v8559_v3, 0.0  ;;  %v8584_v49 = vmax.f32 %v8560_v4, 0.0  ;;  %v8585_v61 = vmax.f32 %v8561_v56, 0.0  ;;  %v8586_v43 = vmax.f32 %v8562_v36, 0.0 }
 0x636   :  { %v8587_v34 = vmax.f32 %v8563_v24, 0.0  ;;  %v8588_v45 = vmax.f32 %v8564_v62, 0.0  ;;  %v8589_v6 = vmax.f32 %v8565_v8, 0.0  ;;  %v8590_v9 = vmax.f32 %v8566_v47, 0.0 }
 0x637   :  { %v8591_v22 = vmax.f32 %v8567_v46, %v8575_v5  ;;  %v8593_v20 = vmax.f32 %v8568_v29, %v8576_v17  ;;  %v8595_v38 = vmax.f32 %v8569_v23, %v8577_v54  ;;  %v8597_v52 = vmax.f32 %v8570_v37, %v8578_v26 }
 0x638   :  { %v8599_v25 = vmax.f32 %v8571_v44, %v8579_v14  ;;  %v8601_v31 = vmax.f32 %v8572_v7, %v8580_v41  ;;  %v8603_v51 = vmax.f32 %v8573_v19, %v8581_v40  ;;  %v8605_v11 = vmax.f32 %v8574_v59, %v8582_v1 }
 0x639   :  { %v8592_v50 = vmax.f32 %v8591_v22, %v8583_v2  ;;  %v8594_v48 = vmax.f32 %v8593_v20, %v8584_v49  ;;  %v8596_v32 = vmax.f32 %v8595_v38, %v8585_v61  ;;  %v8598_v18 = vmax.f32 %v8597_v52, %v8586_v43 }
 0x63a   :  { %v8600_v53 = vmax.f32 %v8599_v25, %v8587_v34  ;;  %v8602_v10 = vmax.f32 %v8601_v31, %v8588_v45  ;;  %v8604_v58 = vmax.f32 %v8603_v51, %v8589_v6  ;;  %v8606_v27 = vmax.f32 %v8605_v11, %v8590_v9 }
 0x63b   :  { %v8607_v16 = vmul.f32 %v9690_v15, %v8592_v50  ;;  %v8608_v63 = vmul.f32 %v9691_v30, %v8594_v48  ;;  %v8609_v33 = vmul.f32 %v9692_v42, %v8596_v32  ;;  %v8610_v60 = vmul.f32 %v9693_v0, %v8598_v18 }
 0x63c   :  { %v8611_v13 = vmul.f32 %v9694_v12, %v8600_v53  ;;  %v8612_v55 = vmul.f32 %v9695_v39, %v8602_v10  ;;  %v8613_v28 = vmul.f32 %v9696_v57, %v8604_v58  ;;  %v8614_v21 = vmul.f32 %v9697_v35, %v8606_v27 }
 0x63d   :  { %8615 = vst [vmem:[#allocation16] sm:$0xff] %v8607_v16  ;;  %8616 = vst [vmem:[#allocation16 + $0x8] sm:$0xff] %v8608_v63 }
 0x63e   :  { %8617 = vst [vmem:[#allocation16 + $0x10] sm:$0xff] %v8609_v33  ;;  %8618 = vst [vmem:[#allocation16 + $0x18] sm:$0xff] %v8610_v60 }
 0x63f   :  { %8619 = vst [vmem:[#allocation16 + $0x20] sm:$0xff] %v8611_v13  ;;  %8620 = vst [vmem:[#allocation16 + $0x28] sm:$0xff] %v8612_v55 }
 0x640   :  { %8621 = vst [vmem:[#allocation16 + $0x30] sm:$0xff] %v8613_v28  ;;  %8622 = vst [vmem:[#allocation16 + $0x38] sm:$0xff] %v8614_v21 }
 0x641   :  { %9869 = shalt.err (!%p9866_p2)
}
 0x642   :  { %8632 = dma.vmem_to_hbm [thread:$0]  %s8630_s7, 1024, %s10956_s8, [#allocation4]  }
 0x643   :  { %9888 = dma.done.wait [#allocation4], 1024  }
 0x644   :  { %9889 = vsyncadd [#allocation4], 4294966272 }
 0x645   :  { %8636 = vsyncpa [#allocation3], 1 }
 0x646   :  { %8637 = vsyncpa [#allocation6], 1 }
 0x647   :  { %8638 = vsyncpa [#allocation9], 1 }
 0x648   :  { %8639 = vsyncpa [#allocation12], 1 }
 0x649   :  { %8640 = vsyncpa [#allocation15], 1 }
 0x64a   :  { %8641 = vsyncpa [#allocation4], 1 }

</bundles_post_ra>
